<compile_context>
chip_gen: v6e
topology: v6e:2x2x1
jax: 0.10.0
libtpu: 0.0.40
codegen_flags: <defaults>
</compile_context>

<pallas_src>
import math
import functools

import jax
import jax.numpy as jnp
from jax.experimental import pallas as pl
from jax.experimental.pallas import tpu as pltpu

# ----------------------------- configuration --------------------------------
B = 2              # batch
S = 8              # window_size (sequence length)
META = 16          # meta_feature_size
D_MODEL = 128      # config['train']['d_model']
NHEAD = 8          # TransformerEncoderLayer(nhead=8)
HEAD_DIM = D_MODEL // NHEAD
FFN_DIM = 2048     # PyTorch TransformerEncoderLayer default dim_feedforward
NUM_LAYERS = 2     # config['train']['num_transform_layers']
LN_EPS = 1e-5

# extractor widths: while f*2 < d_model: f -> 2f ; then f -> d_model
_EXT_DIMS = []
_f = META
while _f * 2 < D_MODEL:
    _EXT_DIMS.append((_f, _f * 2))
    _f *= 2
_EXT_DIMS.append((_f, D_MODEL))
N_EXT = len(_EXT_DIMS)

# fc head widths: while f > 64: f -> f//2 ; then f -> 1
_FC_DIMS = []
_f = D_MODEL
while _f > 64:
    _FC_DIMS.append((_f, _f // 2))
    _f //= 2
N_FC_HIDDEN = len(_FC_DIMS)
FC_OUT_IN = _f


# ------------------------------- fused kernel --------------------------------
def _prefab_kernel(*refs):
    """Entire Prefab forward (meta mode, eval) on VMEM-resident tensors."""
    out_ref = refs[-1]
    it = iter(refs[:-1])

    feat_ref = next(it)
    pe_ref = next(it)
    ext = [(next(it), next(it), next(it), next(it)) for _ in range(N_EXT)]
    layers = [tuple(next(it) for _ in range(12)) for _ in range(NUM_LAYERS)]
    fc_hidden = [(next(it), next(it), next(it), next(it))
                 for _ in range(N_FC_HIDDEN)]
    fco_w = next(it)
    fco_b = next(it)
    assert next(it, None) is None  # trace-time sanity check on arg count

    def layer_norm(y, g_ref, b_ref):
        mu = jnp.mean(y, axis=-1, keepdims=True)
        var = jnp.mean(jnp.square(y - mu), axis=-1, keepdims=True)
        return (y - mu) * jax.lax.rsqrt(var + LN_EPS) * g_ref[...] + b_ref[...]

    def matmul(x_f32, w_ref):
        # bf16 operands (native MXU), f32 accumulation.
        return jnp.dot(x_f32.astype(jnp.bfloat16), w_ref[...],
                       preferred_element_type=jnp.float32)

    # ---------------- extractor: (Linear -> LayerNorm -> LeakyReLU) * N ------
    x = feat_ref[...]                                          # (B*S, META) f32
    for (w_ref, b_ref, g_ref, z_ref) in ext:
        y = matmul(x, w_ref) + b_ref[...]
        y = layer_norm(y, g_ref, z_ref)
        x = jnp.maximum(y, 0.01 * y)                           # LeakyReLU

    # ---------------- positional encoding (dropout identity in eval) --------
    x = x + pe_ref[...]                                        # (B*S, D_MODEL)

    # ---------------- transformer encoder (post-norm, eval) ------------------
    # NOTE: attention scale is pre-folded into the q-columns of wqkv/bqkv.
    for (wqkv, bqkv, wo, bo, g1, z1, w1, b1, w2, b2, g2, z2) in layers:
        qkv = matmul(x, wqkv) + bqkv[...]                      # (B*S, 3*D)
        q = qkv[:, :D_MODEL].reshape(B, S, D_MODEL)
        k = qkv[:, D_MODEL:2 * D_MODEL].reshape(B, S, D_MODEL)
        v = qkv[:, 2 * D_MODEL:].reshape(B, S, D_MODEL)

        heads = []
        for h in range(NHEAD):                                 # static unroll
            lo = h * HEAD_DIM
            qh = q[:, :, lo:lo + HEAD_DIM].astype(jnp.bfloat16)
            kh = k[:, :, lo:lo + HEAD_DIM].astype(jnp.bfloat16)
            vh = v[:, :, lo:lo + HEAD_DIM].astype(jnp.bfloat16)
            s = jnp.einsum("bqd,bkd->bqk", qh, kh,
                           preferred_element_type=jnp.float32)
            s = s - jnp.max(s, axis=-1, keepdims=True)
            p = jnp.exp(s)
            p = p * pl.reciprocal(jnp.sum(p, axis=-1, keepdims=True),
                                  approx=True)
            heads.append(jnp.einsum("bqk,bkd->bqd", p.astype(jnp.bfloat16), vh,
                                    preferred_element_type=jnp.float32))
        attn = jnp.concatenate(heads, axis=-1).reshape(B * S, D_MODEL)
        sa = matmul(attn, wo) + bo[...]

        x = layer_norm(x + sa, g1, z1)                         # post-norm 1
        h1 = jnp.maximum(matmul(x, w1) + b1[...], 0.0)         # FFN ReLU
        ff = matmul(h1, w2) + b2[...]
        x = layer_norm(x + ff, g2, z2)                         # post-norm 2

    # ---------------- mean pool over window + fc head ------------------------
    pooled = jnp.mean(x.reshape(B, S, D_MODEL), axis=1)        # (B, D_MODEL)
    hfc = pooled
    for (w_ref, b_ref, g_ref, z_ref) in fc_hidden:
        y = matmul(hfc, w_ref) + b_ref[...]
        y = layer_norm(y, g_ref, z_ref)
        hfc = jnp.maximum(y, 0.0)                              # ReLU
    # final Linear(f, 1) as multiply + lane reduction (avoids a 1-lane matmul)
    out = jnp.sum(hfc * fco_w[...], axis=-1, keepdims=True) + fco_b[...]
    out_ref[...] = out                                         # (B, 1)


# --------------------------- parameter construction --------------------------
def _kaiming_t(key, out_f, in_f, dtype=jnp.bfloat16):
    """kaiming_normal_(fan_out, relu) weight, stored pre-transposed (in, out)."""
    std = math.sqrt(2.0 / out_f)
    w = std * jax.random.normal(key, (out_f, in_f), jnp.float32)
    return w.T.astype(dtype)


def make_params(key):
    keys = iter(jax.random.split(key, 64))
    params = {}

    # extractor: Linear->LN->LeakyReLU stack, META -> ... -> D_MODEL
    ext = []
    for (fi, fo) in _EXT_DIMS:
        ext.append((_kaiming_t(next(keys), fo, fi),
                    jnp.zeros((1, fo), jnp.float32),
                    jnp.ones((1, fo), jnp.float32),
                    jnp.zeros((1, fo), jnp.float32)))
    params["ext"] = ext

    # transformer encoder layers (weights stored (in, out), bf16)
    scale = 1.0 / math.sqrt(HEAD_DIM)            # folded into q-projection
    layers = []
    for _ in range(NUM_LAYERS):
        wqkv_t = ((1.0 / math.sqrt(D_MODEL))
                  * jax.random.normal(next(keys), (3 * D_MODEL, D_MODEL),
                                      jnp.float32)).T               # (D, 3D)
        wqkv_t = wqkv_t.at[:, :D_MODEL].multiply(scale)             # scale q
        bqkv = jnp.zeros((1, 3 * D_MODEL), jnp.float32)
        bqkv = bqkv.at[:, :D_MODEL].multiply(scale)                 # scale q bias
        layers.append({
            "wqkv": wqkv_t.astype(jnp.bfloat16),
            "bqkv": bqkv,
            "wo": _kaiming_t(next(keys), D_MODEL, D_MODEL),
            "bo": jnp.zeros((1, D_MODEL), jnp.float32),
            "ln1_g": jnp.ones((1, D_MODEL), jnp.float32),
            "ln1_b": jnp.zeros((1, D_MODEL), jnp.float32),
            "w1": _kaiming_t(next(keys), FFN_DIM, D_MODEL),
            "b1": jnp.zeros((1, FFN_DIM), jnp.float32),
            "w2": _kaiming_t(next(keys), D_MODEL, FFN_DIM),
            "b2": jnp.zeros((1, D_MODEL), jnp.float32),
            "ln2_g": jnp.ones((1, D_MODEL), jnp.float32),
            "ln2_b": jnp.zeros((1, D_MODEL), jnp.float32),
        })
    params["layers"] = layers

    # fc head: Linear->LN->ReLU while f_dim > 64, then Linear(f_dim, 1)
    fc_hidden = []
    for (fi, fo) in _FC_DIMS:
        fc_hidden.append((_kaiming_t(next(keys), fo, fi),
                          jnp.zeros((1, fo), jnp.float32),
                          jnp.ones((1, fo), jnp.float32),
                          jnp.zeros((1, fo), jnp.float32)))
    params["fc_hidden"] = fc_hidden
    # final Linear(FC_OUT_IN, 1): keep f32 row vector (used as mul + reduce)
    std = math.sqrt(2.0 / 1.0)
    params["fc_out_w"] = (std * jax.random.normal(next(keys), (1, FC_OUT_IN),
                                                  jnp.float32))
    params["fc_out_b"] = jnp.zeros((1, 1), jnp.float32)

    # sinusoidal positional encoding (buffer), pre-broadcast to (B*S, D)
    pos = jnp.arange(S, dtype=jnp.float32)[:, None]
    div = jnp.exp(jnp.arange(0, D_MODEL, 2, dtype=jnp.float32)
                  * (-math.log(10000.0) / D_MODEL))
    pe = jnp.zeros((S, D_MODEL), jnp.float32)
    pe = pe.at[:, 0::2].set(jnp.sin(pos * div))
    pe = pe.at[:, 1::2].set(jnp.cos(pos * div))
    params["pe"] = jnp.broadcast_to(pe[None], (B, S, D_MODEL)).reshape(
        B * S, D_MODEL)
    return params


# ------------------------------- forward pass --------------------------------
def prefab_forward(img, feature, params):
    del img  # TODO(synk): AutoEncoder branch ('prefab'/'image' modes) not defined in the spec
    feat2d = feature.reshape(B * S, META).astype(jnp.float32)

    args = [feat2d, params["pe"]]
    for layer in params["ext"]:
        args += list(layer)
    for L in params["layers"]:
        args += [L["wqkv"], L["bqkv"], L["wo"], L["bo"], L["ln1_g"], L["ln1_b"],
                 L["w1"], L["b1"], L["w2"], L["b2"], L["ln2_g"], L["ln2_b"]]
    for layer in params["fc_hidden"]:
        args += list(layer)
    args += [params["fc_out_w"], params["fc_out_b"]]

    vmem = pltpu.MemorySpace.VMEM
    out = pl.pallas_call(
        _prefab_kernel,
        out_shape=jax.ShapeDtypeStruct((B, 1), jnp.float32),
        in_specs=[pl.BlockSpec(memory_space=vmem) for _ in args],
        out_specs=pl.BlockSpec(memory_space=vmem),
        compiler_params=pltpu.CompilerParams(
            vmem_limit_bytes=32 * 1024 * 1024),
    )(*args)
    return out, None


# ---------------------------------- main --------------------------------------
if __name__ == "__main__":
    key = jax.random.PRNGKey(0)
    k_param, k_img, k_feat = jax.random.split(key, 3)

    params = make_params(k_param)
    img = jax.random.normal(k_img, (B, S, 1, 16, 16), jnp.float32)  # unused ('meta')
    feature = jax.random.normal(k_feat, (B, S, META), jnp.float32)

    fwd = jax.jit(functools.partial(prefab_forward, params=params))
    out, d = fwd(img, feature)
    out = jax.block_until_ready(out)

    assert out.shape == (B, 1) and d is None
    assert bool(jnp.all(jnp.isfinite(out)))
    print("KERNEL_OK")
</pallas_src>

<mosaic_0001>
module attributes {stable_mosaic.version = 11 : i64} {
  func.func @_prefab_kernel(%arg0: memref<16x16xf32, #tpu.memory_space<vmem>>, %arg1: memref<16x128xf32, #tpu.memory_space<vmem>>, %arg2: memref<16x32xbf16, #tpu.memory_space<vmem>>, %arg3: memref<1x32xf32, #tpu.memory_space<vmem>>, %arg4: memref<1x32xf32, #tpu.memory_space<vmem>>, %arg5: memref<1x32xf32, #tpu.memory_space<vmem>>, %arg6: memref<32x64xbf16, #tpu.memory_space<vmem>>, %arg7: memref<1x64xf32, #tpu.memory_space<vmem>>, %arg8: memref<1x64xf32, #tpu.memory_space<vmem>>, %arg9: memref<1x64xf32, #tpu.memory_space<vmem>>, %arg10: memref<64x128xbf16, #tpu.memory_space<vmem>>, %arg11: memref<1x128xf32, #tpu.memory_space<vmem>>, %arg12: memref<1x128xf32, #tpu.memory_space<vmem>>, %arg13: memref<1x128xf32, #tpu.memory_space<vmem>>, %arg14: memref<128x384xbf16, #tpu.memory_space<vmem>>, %arg15: memref<1x384xf32, #tpu.memory_space<vmem>>, %arg16: memref<128x128xbf16, #tpu.memory_space<vmem>>, %arg17: memref<1x128xf32, #tpu.memory_space<vmem>>, %arg18: memref<1x128xf32, #tpu.memory_space<vmem>>, %arg19: memref<1x128xf32, #tpu.memory_space<vmem>>, %arg20: memref<128x2048xbf16, #tpu.memory_space<vmem>>, %arg21: memref<1x2048xf32, #tpu.memory_space<vmem>>, %arg22: memref<2048x128xbf16, #tpu.memory_space<vmem>>, %arg23: memref<1x128xf32, #tpu.memory_space<vmem>>, %arg24: memref<1x128xf32, #tpu.memory_space<vmem>>, %arg25: memref<1x128xf32, #tpu.memory_space<vmem>>, %arg26: memref<128x384xbf16, #tpu.memory_space<vmem>>, %arg27: memref<1x384xf32, #tpu.memory_space<vmem>>, %arg28: memref<128x128xbf16, #tpu.memory_space<vmem>>, %arg29: memref<1x128xf32, #tpu.memory_space<vmem>>, %arg30: memref<1x128xf32, #tpu.memory_space<vmem>>, %arg31: memref<1x128xf32, #tpu.memory_space<vmem>>, %arg32: memref<128x2048xbf16, #tpu.memory_space<vmem>>, %arg33: memref<1x2048xf32, #tpu.memory_space<vmem>>, %arg34: memref<2048x128xbf16, #tpu.memory_space<vmem>>, %arg35: memref<1x128xf32, #tpu.memory_space<vmem>>, %arg36: memref<1x128xf32, #tpu.memory_space<vmem>>, %arg37: memref<1x128xf32, #tpu.memory_space<vmem>>, %arg38: memref<128x64xbf16, #tpu.memory_space<vmem>>, %arg39: memref<1x64xf32, #tpu.memory_space<vmem>>, %arg40: memref<1x64xf32, #tpu.memory_space<vmem>>, %arg41: memref<1x64xf32, #tpu.memory_space<vmem>>, %arg42: memref<1x64xf32, #tpu.memory_space<vmem>>, %arg43: memref<1x1xf32, #tpu.memory_space<vmem>>, %arg44: memref<2x1xf32, #tpu.memory_space<vmem>>) attributes {dimension_semantics = [], scalar_prefetch = 0 : i64, scratch_operands = 0 : i64, tpu.core_type = #tpu.core_type<tc>} {
    %c0 = arith.constant 0 : index
    %c0_0 = arith.constant 0 : index
    %0 = vector.load %arg0[%c0, %c0_0] : memref<16x16xf32, #tpu.memory_space<vmem>>, vector<16x16xf32>
    %1 = arith.truncf %0 : vector<16x16xf32> to vector<16x16xbf16>
    %c0_1 = arith.constant 0 : index
    %c0_2 = arith.constant 0 : index
    %2 = vector.load %arg2[%c0_1, %c0_2] : memref<16x32xbf16, #tpu.memory_space<vmem>>, vector<16x32xbf16>
    %cst = arith.constant dense<0.000000e+00> : vector<16x32xf32>
    %3 = tpu.matmul %1, %2, %cst {dimension_numbers = #tpu.dot_dimension_numbers<[1], [0], [0], [1], [0, 0, 1, 1], [], []>} : vector<16x16xbf16>, vector<16x32xbf16>, vector<16x32xf32> -> vector<16x32xf32>
    %c0_3 = arith.constant 0 : index
    %c0_4 = arith.constant 0 : index
    %4 = vector.load %arg3[%c0_3, %c0_4] : memref<1x32xf32, #tpu.memory_space<vmem>>, vector<1x32xf32>
    %5 = vector.broadcast %4 : vector<1x32xf32> to vector<16x32xf32>
    %6 = arith.addf %3, %5 : vector<16x32xf32>
    %cst_5 = arith.constant dense<0.000000e+00> : vector<16xf32>
    %7 = vector.multi_reduction <add>, %6, %cst_5 [1] : vector<16x32xf32> to vector<16xf32>
    %8 = vector.shape_cast %7 : vector<16xf32> to vector<16x1xf32>
    %cst_6 = arith.constant 3.200000e+01 : f32
    %9 = vector.broadcast %cst_6 : f32 to vector<16x1xf32>
    %10 = arith.divf %8, %9 : vector<16x1xf32>
    %11 = vector.broadcast %10 : vector<16x1xf32> to vector<16x32xf32>
    %12 = arith.subf %6, %11 : vector<16x32xf32>
    %13 = arith.mulf %12, %12 : vector<16x32xf32>
    %cst_7 = arith.constant dense<0.000000e+00> : vector<16xf32>
    %14 = vector.multi_reduction <add>, %13, %cst_7 [1] : vector<16x32xf32> to vector<16xf32>
    %15 = vector.shape_cast %14 : vector<16xf32> to vector<16x1xf32>
    %cst_8 = arith.constant 3.200000e+01 : f32
    %16 = vector.broadcast %cst_8 : f32 to vector<16x1xf32>
    %17 = arith.divf %15, %16 : vector<16x1xf32>
    %18 = vector.broadcast %10 : vector<16x1xf32> to vector<16x32xf32>
    %19 = arith.subf %6, %18 : vector<16x32xf32>
    %cst_9 = arith.constant 9.99999974E-6 : f32
    %20 = vector.broadcast %cst_9 : f32 to vector<16x1xf32>
    %21 = arith.addf %17, %20 : vector<16x1xf32>
    %22 = math.rsqrt %21 : vector<16x1xf32>
    %23 = vector.broadcast %22 : vector<16x1xf32> to vector<16x32xf32>
    %24 = arith.mulf %19, %23 : vector<16x32xf32>
    %c0_10 = arith.constant 0 : index
    %c0_11 = arith.constant 0 : index
    %25 = vector.load %arg4[%c0_10, %c0_11] : memref<1x32xf32, #tpu.memory_space<vmem>>, vector<1x32xf32>
    %26 = vector.broadcast %25 : vector<1x32xf32> to vector<16x32xf32>
    %27 = arith.mulf %24, %26 : vector<16x32xf32>
    %c0_12 = arith.constant 0 : index
    %c0_13 = arith.constant 0 : index
    %28 = vector.load %arg5[%c0_12, %c0_13] : memref<1x32xf32, #tpu.memory_space<vmem>>, vector<1x32xf32>
    %29 = vector.broadcast %28 : vector<1x32xf32> to vector<16x32xf32>
    %30 = arith.addf %27, %29 : vector<16x32xf32>
    %cst_14 = arith.constant 0.00999999977 : f32
    %31 = vector.broadcast %cst_14 : f32 to vector<16x32xf32>
    %32 = arith.mulf %31, %30 : vector<16x32xf32>
    %33 = arith.maximumf %30, %32 : vector<16x32xf32>
    %34 = arith.truncf %33 : vector<16x32xf32> to vector<16x32xbf16>
    %c0_15 = arith.constant 0 : index
    %c0_16 = arith.constant 0 : index
    %35 = vector.load %arg6[%c0_15, %c0_16] : memref<32x64xbf16, #tpu.memory_space<vmem>>, vector<32x64xbf16>
    %cst_17 = arith.constant dense<0.000000e+00> : vector<16x64xf32>
    %36 = tpu.matmul %34, %35, %cst_17 {dimension_numbers = #tpu.dot_dimension_numbers<[1], [0], [0], [1], [0, 0, 1, 1], [], []>} : vector<16x32xbf16>, vector<32x64xbf16>, vector<16x64xf32> -> vector<16x64xf32>
    %c0_18 = arith.constant 0 : index
    %c0_19 = arith.constant 0 : index
    %37 = vector.load %arg7[%c0_18, %c0_19] : memref<1x64xf32, #tpu.memory_space<vmem>>, vector<1x64xf32>
    %38 = vector.broadcast %37 : vector<1x64xf32> to vector<16x64xf32>
    %39 = arith.addf %36, %38 : vector<16x64xf32>
    %cst_20 = arith.constant dense<0.000000e+00> : vector<16xf32>
    %40 = vector.multi_reduction <add>, %39, %cst_20 [1] : vector<16x64xf32> to vector<16xf32>
    %41 = vector.shape_cast %40 : vector<16xf32> to vector<16x1xf32>
    %cst_21 = arith.constant 6.400000e+01 : f32
    %42 = vector.broadcast %cst_21 : f32 to vector<16x1xf32>
    %43 = arith.divf %41, %42 : vector<16x1xf32>
    %44 = vector.broadcast %43 : vector<16x1xf32> to vector<16x64xf32>
    %45 = arith.subf %39, %44 : vector<16x64xf32>
    %46 = arith.mulf %45, %45 : vector<16x64xf32>
    %cst_22 = arith.constant dense<0.000000e+00> : vector<16xf32>
    %47 = vector.multi_reduction <add>, %46, %cst_22 [1] : vector<16x64xf32> to vector<16xf32>
    %48 = vector.shape_cast %47 : vector<16xf32> to vector<16x1xf32>
    %cst_23 = arith.constant 6.400000e+01 : f32
    %49 = vector.broadcast %cst_23 : f32 to vector<16x1xf32>
    %50 = arith.divf %48, %49 : vector<16x1xf32>
    %51 = vector.broadcast %43 : vector<16x1xf32> to vector<16x64xf32>
    %52 = arith.subf %39, %51 : vector<16x64xf32>
    %cst_24 = arith.constant 9.99999974E-6 : f32
    %53 = vector.broadcast %cst_24 : f32 to vector<16x1xf32>
    %54 = arith.addf %50, %53 : vector<16x1xf32>
    %55 = math.rsqrt %54 : vector<16x1xf32>
    %56 = vector.broadcast %55 : vector<16x1xf32> to vector<16x64xf32>
    %57 = arith.mulf %52, %56 : vector<16x64xf32>
    %c0_25 = arith.constant 0 : index
    %c0_26 = arith.constant 0 : index
    %58 = vector.load %arg8[%c0_25, %c0_26] : memref<1x64xf32, #tpu.memory_space<vmem>>, vector<1x64xf32>
    %59 = vector.broadcast %58 : vector<1x64xf32> to vector<16x64xf32>
    %60 = arith.mulf %57, %59 : vector<16x64xf32>
    %c0_27 = arith.constant 0 : index
    %c0_28 = arith.constant 0 : index
    %61 = vector.load %arg9[%c0_27, %c0_28] : memref<1x64xf32, #tpu.memory_space<vmem>>, vector<1x64xf32>
    %62 = vector.broadcast %61 : vector<1x64xf32> to vector<16x64xf32>
    %63 = arith.addf %60, %62 : vector<16x64xf32>
    %cst_29 = arith.constant 0.00999999977 : f32
    %64 = vector.broadcast %cst_29 : f32 to vector<16x64xf32>
    %65 = arith.mulf %64, %63 : vector<16x64xf32>
    %66 = arith.maximumf %63, %65 : vector<16x64xf32>
    %67 = arith.truncf %66 : vector<16x64xf32> to vector<16x64xbf16>
    %c0_30 = arith.constant 0 : index
    %c0_31 = arith.constant 0 : index
    %68 = vector.load %arg10[%c0_30, %c0_31] : memref<64x128xbf16, #tpu.memory_space<vmem>>, vector<64x128xbf16>
    %cst_32 = arith.constant dense<0.000000e+00> : vector<16x128xf32>
    %69 = tpu.matmul %67, %68, %cst_32 {dimension_numbers = #tpu.dot_dimension_numbers<[1], [0], [0], [1], [0, 0, 1, 1], [], []>} : vector<16x64xbf16>, vector<64x128xbf16>, vector<16x128xf32> -> vector<16x128xf32>
    %c0_33 = arith.constant 0 : index
    %c0_34 = arith.constant 0 : index
    %70 = vector.load %arg11[%c0_33, %c0_34] : memref<1x128xf32, #tpu.memory_space<vmem>>, vector<1x128xf32>
    %71 = vector.broadcast %70 : vector<1x128xf32> to vector<16x128xf32>
    %72 = arith.addf %69, %71 : vector<16x128xf32>
    %cst_35 = arith.constant dense<0.000000e+00> : vector<16xf32>
    %73 = vector.multi_reduction <add>, %72, %cst_35 [1] : vector<16x128xf32> to vector<16xf32>
    %74 = vector.shape_cast %73 : vector<16xf32> to vector<16x1xf32>
    %cst_36 = arith.constant 1.280000e+02 : f32
    %75 = vector.broadcast %cst_36 : f32 to vector<16x1xf32>
    %76 = arith.divf %74, %75 : vector<16x1xf32>
    %77 = vector.broadcast %76 : vector<16x1xf32> to vector<16x128xf32>
    %78 = arith.subf %72, %77 : vector<16x128xf32>
    %79 = arith.mulf %78, %78 : vector<16x128xf32>
    %cst_37 = arith.constant dense<0.000000e+00> : vector<16xf32>
    %80 = vector.multi_reduction <add>, %79, %cst_37 [1] : vector<16x128xf32> to vector<16xf32>
    %81 = vector.shape_cast %80 : vector<16xf32> to vector<16x1xf32>
    %cst_38 = arith.constant 1.280000e+02 : f32
    %82 = vector.broadcast %cst_38 : f32 to vector<16x1xf32>
    %83 = arith.divf %81, %82 : vector<16x1xf32>
    %84 = vector.broadcast %76 : vector<16x1xf32> to vector<16x128xf32>
    %85 = arith.subf %72, %84 : vector<16x128xf32>
    %cst_39 = arith.constant 9.99999974E-6 : f32
    %86 = vector.broadcast %cst_39 : f32 to vector<16x1xf32>
    %87 = arith.addf %83, %86 : vector<16x1xf32>
    %88 = math.rsqrt %87 : vector<16x1xf32>
    %89 = vector.broadcast %88 : vector<16x1xf32> to vector<16x128xf32>
    %90 = arith.mulf %85, %89 : vector<16x128xf32>
    %c0_40 = arith.constant 0 : index
    %c0_41 = arith.constant 0 : index
    %91 = vector.load %arg12[%c0_40, %c0_41] : memref<1x128xf32, #tpu.memory_space<vmem>>, vector<1x128xf32>
    %92 = vector.broadcast %91 : vector<1x128xf32> to vector<16x128xf32>
    %93 = arith.mulf %90, %92 : vector<16x128xf32>
    %c0_42 = arith.constant 0 : index
    %c0_43 = arith.constant 0 : index
    %94 = vector.load %arg13[%c0_42, %c0_43] : memref<1x128xf32, #tpu.memory_space<vmem>>, vector<1x128xf32>
    %95 = vector.broadcast %94 : vector<1x128xf32> to vector<16x128xf32>
    %96 = arith.addf %93, %95 : vector<16x128xf32>
    %cst_44 = arith.constant 0.00999999977 : f32
    %97 = vector.broadcast %cst_44 : f32 to vector<16x128xf32>
    %98 = arith.mulf %97, %96 : vector<16x128xf32>
    %99 = arith.maximumf %96, %98 : vector<16x128xf32>
    %c0_45 = arith.constant 0 : index
    %c0_46 = arith.constant 0 : index
    %100 = vector.load %arg1[%c0_45, %c0_46] : memref<16x128xf32, #tpu.memory_space<vmem>>, vector<16x128xf32>
    %101 = arith.addf %99, %100 : vector<16x128xf32>
    %102 = arith.truncf %101 : vector<16x128xf32> to vector<16x128xbf16>
    %c0_47 = arith.constant 0 : index
    %c0_48 = arith.constant 0 : index
    %103 = vector.load %arg14[%c0_47, %c0_48] : memref<128x384xbf16, #tpu.memory_space<vmem>>, vector<128x384xbf16>
    %cst_49 = arith.constant dense<0.000000e+00> : vector<16x384xf32>
    %104 = tpu.matmul %102, %103, %cst_49 {dimension_numbers = #tpu.dot_dimension_numbers<[1], [0], [0], [1], [0, 0, 1, 1], [], []>} : vector<16x128xbf16>, vector<128x384xbf16>, vector<16x384xf32> -> vector<16x384xf32>
    %c0_50 = arith.constant 0 : index
    %c0_51 = arith.constant 0 : index
    %105 = vector.load %arg15[%c0_50, %c0_51] : memref<1x384xf32, #tpu.memory_space<vmem>>, vector<1x384xf32>
    %106 = vector.broadcast %105 : vector<1x384xf32> to vector<16x384xf32>
    %107 = arith.addf %104, %106 : vector<16x384xf32>
    %108 = vector.extract_strided_slice %107 {offsets = [0, 0], sizes = [16, 128], strides = [1, 1]} : vector<16x384xf32> to vector<16x128xf32>
    %109 = vector.shape_cast %108 : vector<16x128xf32> to vector<2x8x128xf32>
    %110 = vector.extract_strided_slice %107 {offsets = [0, 128], sizes = [16, 128], strides = [1, 1]} : vector<16x384xf32> to vector<16x128xf32>
    %111 = vector.shape_cast %110 : vector<16x128xf32> to vector<2x8x128xf32>
    %112 = vector.extract_strided_slice %107 {offsets = [0, 256], sizes = [16, 128], strides = [1, 1]} : vector<16x384xf32> to vector<16x128xf32>
    %113 = vector.shape_cast %112 : vector<16x128xf32> to vector<2x8x128xf32>
    %114 = vector.extract_strided_slice %109 {offsets = [0, 0, 0], sizes = [2, 8, 16], strides = [1, 1, 1]} : vector<2x8x128xf32> to vector<2x8x16xf32>
    %115 = arith.truncf %114 : vector<2x8x16xf32> to vector<2x8x16xbf16>
    %116 = vector.extract_strided_slice %111 {offsets = [0, 0, 0], sizes = [2, 8, 16], strides = [1, 1, 1]} : vector<2x8x128xf32> to vector<2x8x16xf32>
    %117 = arith.truncf %116 : vector<2x8x16xf32> to vector<2x8x16xbf16>
    %118 = vector.extract_strided_slice %113 {offsets = [0, 0, 0], sizes = [2, 8, 16], strides = [1, 1, 1]} : vector<2x8x128xf32> to vector<2x8x16xf32>
    %119 = arith.truncf %118 : vector<2x8x16xf32> to vector<2x8x16xbf16>
    "tpu.trace_start"() <{level = 10 : i32, message = "bqd,bkd->bqk"}> : () -> ()
    %cst_52 = arith.constant dense<0.000000e+00> : vector<2x8x8xf32>
    %120 = tpu.matmul %115, %117, %cst_52 {dimension_numbers = #tpu.dot_dimension_numbers<[2], [2], [1], [1], [0, 0, 0, 1, 1, 1], [0], [0]>} : vector<2x8x16xbf16>, vector<2x8x16xbf16>, vector<2x8x8xf32> -> vector<2x8x8xf32>
    "tpu.trace_stop"() : () -> ()
    %cst_53 = arith.constant dense<0xFF800000> : vector<2x8xf32>
    %121 = vector.multi_reduction <maximumf>, %120, %cst_53 [2] : vector<2x8x8xf32> to vector<2x8xf32>
    %122 = vector.shape_cast %121 : vector<2x8xf32> to vector<2x8x1xf32>
    %123 = vector.broadcast %122 : vector<2x8x1xf32> to vector<2x8x8xf32>
    %124 = arith.subf %120, %123 : vector<2x8x8xf32>
    %125 = math.exp %124 : vector<2x8x8xf32>
    %cst_54 = arith.constant dense<0.000000e+00> : vector<2x8xf32>
    %126 = vector.multi_reduction <add>, %125, %cst_54 [2] : vector<2x8x8xf32> to vector<2x8xf32>
    %127 = vector.shape_cast %126 : vector<2x8xf32> to vector<2x8x1xf32>
    %128 = tpu.reciprocal %127 {approx = true} : vector<2x8x1xf32> -> vector<2x8x1xf32>
    %129 = vector.broadcast %128 : vector<2x8x1xf32> to vector<2x8x8xf32>
    %130 = arith.mulf %125, %129 : vector<2x8x8xf32>
    %131 = arith.truncf %130 : vector<2x8x8xf32> to vector<2x8x8xbf16>
    "tpu.trace_start"() <{level = 10 : i32, message = "bqk,bkd->bqd"}> : () -> ()
    %cst_55 = arith.constant dense<0.000000e+00> : vector<2x8x16xf32>
    %132 = tpu.matmul %131, %119, %cst_55 {dimension_numbers = #tpu.dot_dimension_numbers<[2], [1], [1], [2], [0, 0, 0, 1, 1, 2], [0], [0]>} : vector<2x8x8xbf16>, vector<2x8x16xbf16>, vector<2x8x16xf32> -> vector<2x8x16xf32>
    "tpu.trace_stop"() : () -> ()
    %133 = vector.extract_strided_slice %109 {offsets = [0, 0, 16], sizes = [2, 8, 16], strides = [1, 1, 1]} : vector<2x8x128xf32> to vector<2x8x16xf32>
    %134 = arith.truncf %133 : vector<2x8x16xf32> to vector<2x8x16xbf16>
    %135 = vector.extract_strided_slice %111 {offsets = [0, 0, 16], sizes = [2, 8, 16], strides = [1, 1, 1]} : vector<2x8x128xf32> to vector<2x8x16xf32>
    %136 = arith.truncf %135 : vector<2x8x16xf32> to vector<2x8x16xbf16>
    %137 = vector.extract_strided_slice %113 {offsets = [0, 0, 16], sizes = [2, 8, 16], strides = [1, 1, 1]} : vector<2x8x128xf32> to vector<2x8x16xf32>
    %138 = arith.truncf %137 : vector<2x8x16xf32> to vector<2x8x16xbf16>
    "tpu.trace_start"() <{level = 10 : i32, message = "bqd,bkd->bqk"}> : () -> ()
    %cst_56 = arith.constant dense<0.000000e+00> : vector<2x8x8xf32>
    %139 = tpu.matmul %134, %136, %cst_56 {dimension_numbers = #tpu.dot_dimension_numbers<[2], [2], [1], [1], [0, 0, 0, 1, 1, 1], [0], [0]>} : vector<2x8x16xbf16>, vector<2x8x16xbf16>, vector<2x8x8xf32> -> vector<2x8x8xf32>
    "tpu.trace_stop"() : () -> ()
    %cst_57 = arith.constant dense<0xFF800000> : vector<2x8xf32>
    %140 = vector.multi_reduction <maximumf>, %139, %cst_57 [2] : vector<2x8x8xf32> to vector<2x8xf32>
    %141 = vector.shape_cast %140 : vector<2x8xf32> to vector<2x8x1xf32>
    %142 = vector.broadcast %141 : vector<2x8x1xf32> to vector<2x8x8xf32>
    %143 = arith.subf %139, %142 : vector<2x8x8xf32>
    %144 = math.exp %143 : vector<2x8x8xf32>
    %cst_58 = arith.constant dense<0.000000e+00> : vector<2x8xf32>
    %145 = vector.multi_reduction <add>, %144, %cst_58 [2] : vector<2x8x8xf32> to vector<2x8xf32>
    %146 = vector.shape_cast %145 : vector<2x8xf32> to vector<2x8x1xf32>
    %147 = tpu.reciprocal %146 {approx = true} : vector<2x8x1xf32> -> vector<2x8x1xf32>
    %148 = vector.broadcast %147 : vector<2x8x1xf32> to vector<2x8x8xf32>
    %149 = arith.mulf %144, %148 : vector<2x8x8xf32>
    %150 = arith.truncf %149 : vector<2x8x8xf32> to vector<2x8x8xbf16>
    "tpu.trace_start"() <{level = 10 : i32, message = "bqk,bkd->bqd"}> : () -> ()
    %cst_59 = arith.constant dense<0.000000e+00> : vector<2x8x16xf32>
    %151 = tpu.matmul %150, %138, %cst_59 {dimension_numbers = #tpu.dot_dimension_numbers<[2], [1], [1], [2], [0, 0, 0, 1, 1, 2], [0], [0]>} : vector<2x8x8xbf16>, vector<2x8x16xbf16>, vector<2x8x16xf32> -> vector<2x8x16xf32>
    "tpu.trace_stop"() : () -> ()
    %152 = vector.extract_strided_slice %109 {offsets = [0, 0, 32], sizes = [2, 8, 16], strides = [1, 1, 1]} : vector<2x8x128xf32> to vector<2x8x16xf32>
    %153 = arith.truncf %152 : vector<2x8x16xf32> to vector<2x8x16xbf16>
    %154 = vector.extract_strided_slice %111 {offsets = [0, 0, 32], sizes = [2, 8, 16], strides = [1, 1, 1]} : vector<2x8x128xf32> to vector<2x8x16xf32>
    %155 = arith.truncf %154 : vector<2x8x16xf32> to vector<2x8x16xbf16>
    %156 = vector.extract_strided_slice %113 {offsets = [0, 0, 32], sizes = [2, 8, 16], strides = [1, 1, 1]} : vector<2x8x128xf32> to vector<2x8x16xf32>
    %157 = arith.truncf %156 : vector<2x8x16xf32> to vector<2x8x16xbf16>
    "tpu.trace_start"() <{level = 10 : i32, message = "bqd,bkd->bqk"}> : () -> ()
    %cst_60 = arith.constant dense<0.000000e+00> : vector<2x8x8xf32>
    %158 = tpu.matmul %153, %155, %cst_60 {dimension_numbers = #tpu.dot_dimension_numbers<[2], [2], [1], [1], [0, 0, 0, 1, 1, 1], [0], [0]>} : vector<2x8x16xbf16>, vector<2x8x16xbf16>, vector<2x8x8xf32> -> vector<2x8x8xf32>
    "tpu.trace_stop"() : () -> ()
    %cst_61 = arith.constant dense<0xFF800000> : vector<2x8xf32>
    %159 = vector.multi_reduction <maximumf>, %158, %cst_61 [2] : vector<2x8x8xf32> to vector<2x8xf32>
    %160 = vector.shape_cast %159 : vector<2x8xf32> to vector<2x8x1xf32>
    %161 = vector.broadcast %160 : vector<2x8x1xf32> to vector<2x8x8xf32>
    %162 = arith.subf %158, %161 : vector<2x8x8xf32>
    %163 = math.exp %162 : vector<2x8x8xf32>
    %cst_62 = arith.constant dense<0.000000e+00> : vector<2x8xf32>
    %164 = vector.multi_reduction <add>, %163, %cst_62 [2] : vector<2x8x8xf32> to vector<2x8xf32>
    %165 = vector.shape_cast %164 : vector<2x8xf32> to vector<2x8x1xf32>
    %166 = tpu.reciprocal %165 {approx = true} : vector<2x8x1xf32> -> vector<2x8x1xf32>
    %167 = vector.broadcast %166 : vector<2x8x1xf32> to vector<2x8x8xf32>
    %168 = arith.mulf %163, %167 : vector<2x8x8xf32>
    %169 = arith.truncf %168 : vector<2x8x8xf32> to vector<2x8x8xbf16>
    "tpu.trace_start"() <{level = 10 : i32, message = "bqk,bkd->bqd"}> : () -> ()
    %cst_63 = arith.constant dense<0.000000e+00> : vector<2x8x16xf32>
    %170 = tpu.matmul %169, %157, %cst_63 {dimension_numbers = #tpu.dot_dimension_numbers<[2], [1], [1], [2], [0, 0, 0, 1, 1, 2], [0], [0]>} : vector<2x8x8xbf16>, vector<2x8x16xbf16>, vector<2x8x16xf32> -> vector<2x8x16xf32>
    "tpu.trace_stop"() : () -> ()
    %171 = vector.extract_strided_slice %109 {offsets = [0, 0, 48], sizes = [2, 8, 16], strides = [1, 1, 1]} : vector<2x8x128xf32> to vector<2x8x16xf32>
    %172 = arith.truncf %171 : vector<2x8x16xf32> to vector<2x8x16xbf16>
    %173 = vector.extract_strided_slice %111 {offsets = [0, 0, 48], sizes = [2, 8, 16], strides = [1, 1, 1]} : vector<2x8x128xf32> to vector<2x8x16xf32>
    %174 = arith.truncf %173 : vector<2x8x16xf32> to vector<2x8x16xbf16>
    %175 = vector.extract_strided_slice %113 {offsets = [0, 0, 48], sizes = [2, 8, 16], strides = [1, 1, 1]} : vector<2x8x128xf32> to vector<2x8x16xf32>
    %176 = arith.truncf %175 : vector<2x8x16xf32> to vector<2x8x16xbf16>
    "tpu.trace_start"() <{level = 10 : i32, message = "bqd,bkd->bqk"}> : () -> ()
    %cst_64 = arith.constant dense<0.000000e+00> : vector<2x8x8xf32>
    %177 = tpu.matmul %172, %174, %cst_64 {dimension_numbers = #tpu.dot_dimension_numbers<[2], [2], [1], [1], [0, 0, 0, 1, 1, 1], [0], [0]>} : vector<2x8x16xbf16>, vector<2x8x16xbf16>, vector<2x8x8xf32> -> vector<2x8x8xf32>
    "tpu.trace_stop"() : () -> ()
    %cst_65 = arith.constant dense<0xFF800000> : vector<2x8xf32>
    %178 = vector.multi_reduction <maximumf>, %177, %cst_65 [2] : vector<2x8x8xf32> to vector<2x8xf32>
    %179 = vector.shape_cast %178 : vector<2x8xf32> to vector<2x8x1xf32>
    %180 = vector.broadcast %179 : vector<2x8x1xf32> to vector<2x8x8xf32>
    %181 = arith.subf %177, %180 : vector<2x8x8xf32>
    %182 = math.exp %181 : vector<2x8x8xf32>
    %cst_66 = arith.constant dense<0.000000e+00> : vector<2x8xf32>
    %183 = vector.multi_reduction <add>, %182, %cst_66 [2] : vector<2x8x8xf32> to vector<2x8xf32>
    %184 = vector.shape_cast %183 : vector<2x8xf32> to vector<2x8x1xf32>
    %185 = tpu.reciprocal %184 {approx = true} : vector<2x8x1xf32> -> vector<2x8x1xf32>
    %186 = vector.broadcast %185 : vector<2x8x1xf32> to vector<2x8x8xf32>
    %187 = arith.mulf %182, %186 : vector<2x8x8xf32>
    %188 = arith.truncf %187 : vector<2x8x8xf32> to vector<2x8x8xbf16>
    "tpu.trace_start"() <{level = 10 : i32, message = "bqk,bkd->bqd"}> : () -> ()
    %cst_67 = arith.constant dense<0.000000e+00> : vector<2x8x16xf32>
    %189 = tpu.matmul %188, %176, %cst_67 {dimension_numbers = #tpu.dot_dimension_numbers<[2], [1], [1], [2], [0, 0, 0, 1, 1, 2], [0], [0]>} : vector<2x8x8xbf16>, vector<2x8x16xbf16>, vector<2x8x16xf32> -> vector<2x8x16xf32>
    "tpu.trace_stop"() : () -> ()
    %190 = vector.extract_strided_slice %109 {offsets = [0, 0, 64], sizes = [2, 8, 16], strides = [1, 1, 1]} : vector<2x8x128xf32> to vector<2x8x16xf32>
    %191 = arith.truncf %190 : vector<2x8x16xf32> to vector<2x8x16xbf16>
    %192 = vector.extract_strided_slice %111 {offsets = [0, 0, 64], sizes = [2, 8, 16], strides = [1, 1, 1]} : vector<2x8x128xf32> to vector<2x8x16xf32>
    %193 = arith.truncf %192 : vector<2x8x16xf32> to vector<2x8x16xbf16>
    %194 = vector.extract_strided_slice %113 {offsets = [0, 0, 64], sizes = [2, 8, 16], strides = [1, 1, 1]} : vector<2x8x128xf32> to vector<2x8x16xf32>
    %195 = arith.truncf %194 : vector<2x8x16xf32> to vector<2x8x16xbf16>
    "tpu.trace_start"() <{level = 10 : i32, message = "bqd,bkd->bqk"}> : () -> ()
    %cst_68 = arith.constant dense<0.000000e+00> : vector<2x8x8xf32>
    %196 = tpu.matmul %191, %193, %cst_68 {dimension_numbers = #tpu.dot_dimension_numbers<[2], [2], [1], [1], [0, 0, 0, 1, 1, 1], [0], [0]>} : vector<2x8x16xbf16>, vector<2x8x16xbf16>, vector<2x8x8xf32> -> vector<2x8x8xf32>
    "tpu.trace_stop"() : () -> ()
    %cst_69 = arith.constant dense<0xFF800000> : vector<2x8xf32>
    %197 = vector.multi_reduction <maximumf>, %196, %cst_69 [2] : vector<2x8x8xf32> to vector<2x8xf32>
    %198 = vector.shape_cast %197 : vector<2x8xf32> to vector<2x8x1xf32>
    %199 = vector.broadcast %198 : vector<2x8x1xf32> to vector<2x8x8xf32>
    %200 = arith.subf %196, %199 : vector<2x8x8xf32>
    %201 = math.exp %200 : vector<2x8x8xf32>
    %cst_70 = arith.constant dense<0.000000e+00> : vector<2x8xf32>
    %202 = vector.multi_reduction <add>, %201, %cst_70 [2] : vector<2x8x8xf32> to vector<2x8xf32>
    %203 = vector.shape_cast %202 : vector<2x8xf32> to vector<2x8x1xf32>
    %204 = tpu.reciprocal %203 {approx = true} : vector<2x8x1xf32> -> vector<2x8x1xf32>
    %205 = vector.broadcast %204 : vector<2x8x1xf32> to vector<2x8x8xf32>
    %206 = arith.mulf %201, %205 : vector<2x8x8xf32>
    %207 = arith.truncf %206 : vector<2x8x8xf32> to vector<2x8x8xbf16>
    "tpu.trace_start"() <{level = 10 : i32, message = "bqk,bkd->bqd"}> : () -> ()
    %cst_71 = arith.constant dense<0.000000e+00> : vector<2x8x16xf32>
    %208 = tpu.matmul %207, %195, %cst_71 {dimension_numbers = #tpu.dot_dimension_numbers<[2], [1], [1], [2], [0, 0, 0, 1, 1, 2], [0], [0]>} : vector<2x8x8xbf16>, vector<2x8x16xbf16>, vector<2x8x16xf32> -> vector<2x8x16xf32>
    "tpu.trace_stop"() : () -> ()
    %209 = vector.extract_strided_slice %109 {offsets = [0, 0, 80], sizes = [2, 8, 16], strides = [1, 1, 1]} : vector<2x8x128xf32> to vector<2x8x16xf32>
    %210 = arith.truncf %209 : vector<2x8x16xf32> to vector<2x8x16xbf16>
    %211 = vector.extract_strided_slice %111 {offsets = [0, 0, 80], sizes = [2, 8, 16], strides = [1, 1, 1]} : vector<2x8x128xf32> to vector<2x8x16xf32>
    %212 = arith.truncf %211 : vector<2x8x16xf32> to vector<2x8x16xbf16>
    %213 = vector.extract_strided_slice %113 {offsets = [0, 0, 80], sizes = [2, 8, 16], strides = [1, 1, 1]} : vector<2x8x128xf32> to vector<2x8x16xf32>
    %214 = arith.truncf %213 : vector<2x8x16xf32> to vector<2x8x16xbf16>
    "tpu.trace_start"() <{level = 10 : i32, message = "bqd,bkd->bqk"}> : () -> ()
    %cst_72 = arith.constant dense<0.000000e+00> : vector<2x8x8xf32>
    %215 = tpu.matmul %210, %212, %cst_72 {dimension_numbers = #tpu.dot_dimension_numbers<[2], [2], [1], [1], [0, 0, 0, 1, 1, 1], [0], [0]>} : vector<2x8x16xbf16>, vector<2x8x16xbf16>, vector<2x8x8xf32> -> vector<2x8x8xf32>
    "tpu.trace_stop"() : () -> ()
    %cst_73 = arith.constant dense<0xFF800000> : vector<2x8xf32>
    %216 = vector.multi_reduction <maximumf>, %215, %cst_73 [2] : vector<2x8x8xf32> to vector<2x8xf32>
    %217 = vector.shape_cast %216 : vector<2x8xf32> to vector<2x8x1xf32>
    %218 = vector.broadcast %217 : vector<2x8x1xf32> to vector<2x8x8xf32>
    %219 = arith.subf %215, %218 : vector<2x8x8xf32>
    %220 = math.exp %219 : vector<2x8x8xf32>
    %cst_74 = arith.constant dense<0.000000e+00> : vector<2x8xf32>
    %221 = vector.multi_reduction <add>, %220, %cst_74 [2] : vector<2x8x8xf32> to vector<2x8xf32>
    %222 = vector.shape_cast %221 : vector<2x8xf32> to vector<2x8x1xf32>
    %223 = tpu.reciprocal %222 {approx = true} : vector<2x8x1xf32> -> vector<2x8x1xf32>
    %224 = vector.broadcast %223 : vector<2x8x1xf32> to vector<2x8x8xf32>
    %225 = arith.mulf %220, %224 : vector<2x8x8xf32>
    %226 = arith.truncf %225 : vector<2x8x8xf32> to vector<2x8x8xbf16>
    "tpu.trace_start"() <{level = 10 : i32, message = "bqk,bkd->bqd"}> : () -> ()
    %cst_75 = arith.constant dense<0.000000e+00> : vector<2x8x16xf32>
    %227 = tpu.matmul %226, %214, %cst_75 {dimension_numbers = #tpu.dot_dimension_numbers<[2], [1], [1], [2], [0, 0, 0, 1, 1, 2], [0], [0]>} : vector<2x8x8xbf16>, vector<2x8x16xbf16>, vector<2x8x16xf32> -> vector<2x8x16xf32>
    "tpu.trace_stop"() : () -> ()
    %228 = vector.extract_strided_slice %109 {offsets = [0, 0, 96], sizes = [2, 8, 16], strides = [1, 1, 1]} : vector<2x8x128xf32> to vector<2x8x16xf32>
    %229 = arith.truncf %228 : vector<2x8x16xf32> to vector<2x8x16xbf16>
    %230 = vector.extract_strided_slice %111 {offsets = [0, 0, 96], sizes = [2, 8, 16], strides = [1, 1, 1]} : vector<2x8x128xf32> to vector<2x8x16xf32>
    %231 = arith.truncf %230 : vector<2x8x16xf32> to vector<2x8x16xbf16>
    %232 = vector.extract_strided_slice %113 {offsets = [0, 0, 96], sizes = [2, 8, 16], strides = [1, 1, 1]} : vector<2x8x128xf32> to vector<2x8x16xf32>
    %233 = arith.truncf %232 : vector<2x8x16xf32> to vector<2x8x16xbf16>
    "tpu.trace_start"() <{level = 10 : i32, message = "bqd,bkd->bqk"}> : () -> ()
    %cst_76 = arith.constant dense<0.000000e+00> : vector<2x8x8xf32>
    %234 = tpu.matmul %229, %231, %cst_76 {dimension_numbers = #tpu.dot_dimension_numbers<[2], [2], [1], [1], [0, 0, 0, 1, 1, 1], [0], [0]>} : vector<2x8x16xbf16>, vector<2x8x16xbf16>, vector<2x8x8xf32> -> vector<2x8x8xf32>
    "tpu.trace_stop"() : () -> ()
    %cst_77 = arith.constant dense<0xFF800000> : vector<2x8xf32>
    %235 = vector.multi_reduction <maximumf>, %234, %cst_77 [2] : vector<2x8x8xf32> to vector<2x8xf32>
    %236 = vector.shape_cast %235 : vector<2x8xf32> to vector<2x8x1xf32>
    %237 = vector.broadcast %236 : vector<2x8x1xf32> to vector<2x8x8xf32>
    %238 = arith.subf %234, %237 : vector<2x8x8xf32>
    %239 = math.exp %238 : vector<2x8x8xf32>
    %cst_78 = arith.constant dense<0.000000e+00> : vector<2x8xf32>
    %240 = vector.multi_reduction <add>, %239, %cst_78 [2] : vector<2x8x8xf32> to vector<2x8xf32>
    %241 = vector.shape_cast %240 : vector<2x8xf32> to vector<2x8x1xf32>
    %242 = tpu.reciprocal %241 {approx = true} : vector<2x8x1xf32> -> vector<2x8x1xf32>
    %243 = vector.broadcast %242 : vector<2x8x1xf32> to vector<2x8x8xf32>
    %244 = arith.mulf %239, %243 : vector<2x8x8xf32>
    %245 = arith.truncf %244 : vector<2x8x8xf32> to vector<2x8x8xbf16>
    "tpu.trace_start"() <{level = 10 : i32, message = "bqk,bkd->bqd"}> : () -> ()
    %cst_79 = arith.constant dense<0.000000e+00> : vector<2x8x16xf32>
    %246 = tpu.matmul %245, %233, %cst_79 {dimension_numbers = #tpu.dot_dimension_numbers<[2], [1], [1], [2], [0, 0, 0, 1, 1, 2], [0], [0]>} : vector<2x8x8xbf16>, vector<2x8x16xbf16>, vector<2x8x16xf32> -> vector<2x8x16xf32>
    "tpu.trace_stop"() : () -> ()
    %247 = vector.extract_strided_slice %109 {offsets = [0, 0, 112], sizes = [2, 8, 16], strides = [1, 1, 1]} : vector<2x8x128xf32> to vector<2x8x16xf32>
    %248 = arith.truncf %247 : vector<2x8x16xf32> to vector<2x8x16xbf16>
    %249 = vector.extract_strided_slice %111 {offsets = [0, 0, 112], sizes = [2, 8, 16], strides = [1, 1, 1]} : vector<2x8x128xf32> to vector<2x8x16xf32>
    %250 = arith.truncf %249 : vector<2x8x16xf32> to vector<2x8x16xbf16>
    %251 = vector.extract_strided_slice %113 {offsets = [0, 0, 112], sizes = [2, 8, 16], strides = [1, 1, 1]} : vector<2x8x128xf32> to vector<2x8x16xf32>
    %252 = arith.truncf %251 : vector<2x8x16xf32> to vector<2x8x16xbf16>
    "tpu.trace_start"() <{level = 10 : i32, message = "bqd,bkd->bqk"}> : () -> ()
    %cst_80 = arith.constant dense<0.000000e+00> : vector<2x8x8xf32>
    %253 = tpu.matmul %248, %250, %cst_80 {dimension_numbers = #tpu.dot_dimension_numbers<[2], [2], [1], [1], [0, 0, 0, 1, 1, 1], [0], [0]>} : vector<2x8x16xbf16>, vector<2x8x16xbf16>, vector<2x8x8xf32> -> vector<2x8x8xf32>
    "tpu.trace_stop"() : () -> ()
    %cst_81 = arith.constant dense<0xFF800000> : vector<2x8xf32>
    %254 = vector.multi_reduction <maximumf>, %253, %cst_81 [2] : vector<2x8x8xf32> to vector<2x8xf32>
    %255 = vector.shape_cast %254 : vector<2x8xf32> to vector<2x8x1xf32>
    %256 = vector.broadcast %255 : vector<2x8x1xf32> to vector<2x8x8xf32>
    %257 = arith.subf %253, %256 : vector<2x8x8xf32>
    %258 = math.exp %257 : vector<2x8x8xf32>
    %cst_82 = arith.constant dense<0.000000e+00> : vector<2x8xf32>
    %259 = vector.multi_reduction <add>, %258, %cst_82 [2] : vector<2x8x8xf32> to vector<2x8xf32>
    %260 = vector.shape_cast %259 : vector<2x8xf32> to vector<2x8x1xf32>
    %261 = tpu.reciprocal %260 {approx = true} : vector<2x8x1xf32> -> vector<2x8x1xf32>
    %262 = vector.broadcast %261 : vector<2x8x1xf32> to vector<2x8x8xf32>
    %263 = arith.mulf %258, %262 : vector<2x8x8xf32>
    %264 = arith.truncf %263 : vector<2x8x8xf32> to vector<2x8x8xbf16>
    "tpu.trace_start"() <{level = 10 : i32, message = "bqk,bkd->bqd"}> : () -> ()
    %cst_83 = arith.constant dense<0.000000e+00> : vector<2x8x16xf32>
    %265 = tpu.matmul %264, %252, %cst_83 {dimension_numbers = #tpu.dot_dimension_numbers<[2], [1], [1], [2], [0, 0, 0, 1, 1, 2], [0], [0]>} : vector<2x8x8xbf16>, vector<2x8x16xbf16>, vector<2x8x16xf32> -> vector<2x8x16xf32>
    "tpu.trace_stop"() : () -> ()
    %266 = tpu.concatenate %132, %151, %170, %189, %208, %227, %246, %265 in 2 : vector<2x8x16xf32>, vector<2x8x16xf32>, vector<2x8x16xf32>, vector<2x8x16xf32>, vector<2x8x16xf32>, vector<2x8x16xf32>, vector<2x8x16xf32>, vector<2x8x16xf32> -> vector<2x8x128xf32>
    %267 = vector.shape_cast %266 : vector<2x8x128xf32> to vector<16x128xf32>
    %268 = arith.truncf %267 : vector<16x128xf32> to vector<16x128xbf16>
    %c0_84 = arith.constant 0 : index
    %c0_85 = arith.constant 0 : index
    %269 = vector.load %arg16[%c0_84, %c0_85] : memref<128x128xbf16, #tpu.memory_space<vmem>>, vector<128x128xbf16>
    %cst_86 = arith.constant dense<0.000000e+00> : vector<16x128xf32>
    %270 = tpu.matmul %268, %269, %cst_86 {dimension_numbers = #tpu.dot_dimension_numbers<[1], [0], [0], [1], [0, 0, 1, 1], [], []>} : vector<16x128xbf16>, vector<128x128xbf16>, vector<16x128xf32> -> vector<16x128xf32>
    %c0_87 = arith.constant 0 : index
    %c0_88 = arith.constant 0 : index
    %271 = vector.load %arg17[%c0_87, %c0_88] : memref<1x128xf32, #tpu.memory_space<vmem>>, vector<1x128xf32>
    %272 = vector.broadcast %271 : vector<1x128xf32> to vector<16x128xf32>
    %273 = arith.addf %270, %272 : vector<16x128xf32>
    %274 = arith.addf %101, %273 : vector<16x128xf32>
    %cst_89 = arith.constant dense<0.000000e+00> : vector<16xf32>
    %275 = vector.multi_reduction <add>, %274, %cst_89 [1] : vector<16x128xf32> to vector<16xf32>
    %276 = vector.shape_cast %275 : vector<16xf32> to vector<16x1xf32>
    %cst_90 = arith.constant 1.280000e+02 : f32
    %277 = vector.broadcast %cst_90 : f32 to vector<16x1xf32>
    %278 = arith.divf %276, %277 : vector<16x1xf32>
    %279 = vector.broadcast %278 : vector<16x1xf32> to vector<16x128xf32>
    %280 = arith.subf %274, %279 : vector<16x128xf32>
    %281 = arith.mulf %280, %280 : vector<16x128xf32>
    %cst_91 = arith.constant dense<0.000000e+00> : vector<16xf32>
    %282 = vector.multi_reduction <add>, %281, %cst_91 [1] : vector<16x128xf32> to vector<16xf32>
    %283 = vector.shape_cast %282 : vector<16xf32> to vector<16x1xf32>
    %cst_92 = arith.constant 1.280000e+02 : f32
    %284 = vector.broadcast %cst_92 : f32 to vector<16x1xf32>
    %285 = arith.divf %283, %284 : vector<16x1xf32>
    %286 = vector.broadcast %278 : vector<16x1xf32> to vector<16x128xf32>
    %287 = arith.subf %274, %286 : vector<16x128xf32>
    %cst_93 = arith.constant 9.99999974E-6 : f32
    %288 = vector.broadcast %cst_93 : f32 to vector<16x1xf32>
    %289 = arith.addf %285, %288 : vector<16x1xf32>
    %290 = math.rsqrt %289 : vector<16x1xf32>
    %291 = vector.broadcast %290 : vector<16x1xf32> to vector<16x128xf32>
    %292 = arith.mulf %287, %291 : vector<16x128xf32>
    %c0_94 = arith.constant 0 : index
    %c0_95 = arith.constant 0 : index
    %293 = vector.load %arg18[%c0_94, %c0_95] : memref<1x128xf32, #tpu.memory_space<vmem>>, vector<1x128xf32>
    %294 = vector.broadcast %293 : vector<1x128xf32> to vector<16x128xf32>
    %295 = arith.mulf %292, %294 : vector<16x128xf32>
    %c0_96 = arith.constant 0 : index
    %c0_97 = arith.constant 0 : index
    %296 = vector.load %arg19[%c0_96, %c0_97] : memref<1x128xf32, #tpu.memory_space<vmem>>, vector<1x128xf32>
    %297 = vector.broadcast %296 : vector<1x128xf32> to vector<16x128xf32>
    %298 = arith.addf %295, %297 : vector<16x128xf32>
    %299 = arith.truncf %298 : vector<16x128xf32> to vector<16x128xbf16>
    %c0_98 = arith.constant 0 : index
    %c0_99 = arith.constant 0 : index
    %300 = vector.load %arg20[%c0_98, %c0_99] : memref<128x2048xbf16, #tpu.memory_space<vmem>>, vector<128x2048xbf16>
    %cst_100 = arith.constant dense<0.000000e+00> : vector<16x2048xf32>
    %301 = tpu.matmul %299, %300, %cst_100 {dimension_numbers = #tpu.dot_dimension_numbers<[1], [0], [0], [1], [0, 0, 1, 1], [], []>} : vector<16x128xbf16>, vector<128x2048xbf16>, vector<16x2048xf32> -> vector<16x2048xf32>
    %c0_101 = arith.constant 0 : index
    %c0_102 = arith.constant 0 : index
    %302 = vector.load %arg21[%c0_101, %c0_102] : memref<1x2048xf32, #tpu.memory_space<vmem>>, vector<1x2048xf32>
    %303 = vector.broadcast %302 : vector<1x2048xf32> to vector<16x2048xf32>
    %304 = arith.addf %301, %303 : vector<16x2048xf32>
    %cst_103 = arith.constant 0.000000e+00 : f32
    %305 = vector.broadcast %cst_103 : f32 to vector<16x2048xf32>
    %306 = arith.maximumf %304, %305 : vector<16x2048xf32>
    %307 = arith.truncf %306 : vector<16x2048xf32> to vector<16x2048xbf16>
    %c0_104 = arith.constant 0 : index
    %c0_105 = arith.constant 0 : index
    %308 = vector.load %arg22[%c0_104, %c0_105] : memref<2048x128xbf16, #tpu.memory_space<vmem>>, vector<2048x128xbf16>
    %cst_106 = arith.constant dense<0.000000e+00> : vector<16x128xf32>
    %309 = tpu.matmul %307, %308, %cst_106 {dimension_numbers = #tpu.dot_dimension_numbers<[1], [0], [0], [1], [0, 0, 1, 1], [], []>} : vector<16x2048xbf16>, vector<2048x128xbf16>, vector<16x128xf32> -> vector<16x128xf32>
    %c0_107 = arith.constant 0 : index
    %c0_108 = arith.constant 0 : index
    %310 = vector.load %arg23[%c0_107, %c0_108] : memref<1x128xf32, #tpu.memory_space<vmem>>, vector<1x128xf32>
    %311 = vector.broadcast %310 : vector<1x128xf32> to vector<16x128xf32>
    %312 = arith.addf %309, %311 : vector<16x128xf32>
    %313 = arith.addf %298, %312 : vector<16x128xf32>
    %cst_109 = arith.constant dense<0.000000e+00> : vector<16xf32>
    %314 = vector.multi_reduction <add>, %313, %cst_109 [1] : vector<16x128xf32> to vector<16xf32>
    %315 = vector.shape_cast %314 : vector<16xf32> to vector<16x1xf32>
    %cst_110 = arith.constant 1.280000e+02 : f32
    %316 = vector.broadcast %cst_110 : f32 to vector<16x1xf32>
    %317 = arith.divf %315, %316 : vector<16x1xf32>
    %318 = vector.broadcast %317 : vector<16x1xf32> to vector<16x128xf32>
    %319 = arith.subf %313, %318 : vector<16x128xf32>
    %320 = arith.mulf %319, %319 : vector<16x128xf32>
    %cst_111 = arith.constant dense<0.000000e+00> : vector<16xf32>
    %321 = vector.multi_reduction <add>, %320, %cst_111 [1] : vector<16x128xf32> to vector<16xf32>
    %322 = vector.shape_cast %321 : vector<16xf32> to vector<16x1xf32>
    %cst_112 = arith.constant 1.280000e+02 : f32
    %323 = vector.broadcast %cst_112 : f32 to vector<16x1xf32>
    %324 = arith.divf %322, %323 : vector<16x1xf32>
    %325 = vector.broadcast %317 : vector<16x1xf32> to vector<16x128xf32>
    %326 = arith.subf %313, %325 : vector<16x128xf32>
    %cst_113 = arith.constant 9.99999974E-6 : f32
    %327 = vector.broadcast %cst_113 : f32 to vector<16x1xf32>
    %328 = arith.addf %324, %327 : vector<16x1xf32>
    %329 = math.rsqrt %328 : vector<16x1xf32>
    %330 = vector.broadcast %329 : vector<16x1xf32> to vector<16x128xf32>
    %331 = arith.mulf %326, %330 : vector<16x128xf32>
    %c0_114 = arith.constant 0 : index
    %c0_115 = arith.constant 0 : index
    %332 = vector.load %arg24[%c0_114, %c0_115] : memref<1x128xf32, #tpu.memory_space<vmem>>, vector<1x128xf32>
    %333 = vector.broadcast %332 : vector<1x128xf32> to vector<16x128xf32>
    %334 = arith.mulf %331, %333 : vector<16x128xf32>
    %c0_116 = arith.constant 0 : index
    %c0_117 = arith.constant 0 : index
    %335 = vector.load %arg25[%c0_116, %c0_117] : memref<1x128xf32, #tpu.memory_space<vmem>>, vector<1x128xf32>
    %336 = vector.broadcast %335 : vector<1x128xf32> to vector<16x128xf32>
    %337 = arith.addf %334, %336 : vector<16x128xf32>
    %338 = arith.truncf %337 : vector<16x128xf32> to vector<16x128xbf16>
    %c0_118 = arith.constant 0 : index
    %c0_119 = arith.constant 0 : index
    %339 = vector.load %arg26[%c0_118, %c0_119] : memref<128x384xbf16, #tpu.memory_space<vmem>>, vector<128x384xbf16>
    %cst_120 = arith.constant dense<0.000000e+00> : vector<16x384xf32>
    %340 = tpu.matmul %338, %339, %cst_120 {dimension_numbers = #tpu.dot_dimension_numbers<[1], [0], [0], [1], [0, 0, 1, 1], [], []>} : vector<16x128xbf16>, vector<128x384xbf16>, vector<16x384xf32> -> vector<16x384xf32>
    %c0_121 = arith.constant 0 : index
    %c0_122 = arith.constant 0 : index
    %341 = vector.load %arg27[%c0_121, %c0_122] : memref<1x384xf32, #tpu.memory_space<vmem>>, vector<1x384xf32>
    %342 = vector.broadcast %341 : vector<1x384xf32> to vector<16x384xf32>
    %343 = arith.addf %340, %342 : vector<16x384xf32>
    %344 = vector.extract_strided_slice %343 {offsets = [0, 0], sizes = [16, 128], strides = [1, 1]} : vector<16x384xf32> to vector<16x128xf32>
    %345 = vector.shape_cast %344 : vector<16x128xf32> to vector<2x8x128xf32>
    %346 = vector.extract_strided_slice %343 {offsets = [0, 128], sizes = [16, 128], strides = [1, 1]} : vector<16x384xf32> to vector<16x128xf32>
    %347 = vector.shape_cast %346 : vector<16x128xf32> to vector<2x8x128xf32>
    %348 = vector.extract_strided_slice %343 {offsets = [0, 256], sizes = [16, 128], strides = [1, 1]} : vector<16x384xf32> to vector<16x128xf32>
    %349 = vector.shape_cast %348 : vector<16x128xf32> to vector<2x8x128xf32>
    %350 = vector.extract_strided_slice %345 {offsets = [0, 0, 0], sizes = [2, 8, 16], strides = [1, 1, 1]} : vector<2x8x128xf32> to vector<2x8x16xf32>
    %351 = arith.truncf %350 : vector<2x8x16xf32> to vector<2x8x16xbf16>
    %352 = vector.extract_strided_slice %347 {offsets = [0, 0, 0], sizes = [2, 8, 16], strides = [1, 1, 1]} : vector<2x8x128xf32> to vector<2x8x16xf32>
    %353 = arith.truncf %352 : vector<2x8x16xf32> to vector<2x8x16xbf16>
    %354 = vector.extract_strided_slice %349 {offsets = [0, 0, 0], sizes = [2, 8, 16], strides = [1, 1, 1]} : vector<2x8x128xf32> to vector<2x8x16xf32>
    %355 = arith.truncf %354 : vector<2x8x16xf32> to vector<2x8x16xbf16>
    "tpu.trace_start"() <{level = 10 : i32, message = "bqd,bkd->bqk"}> : () -> ()
    %cst_123 = arith.constant dense<0.000000e+00> : vector<2x8x8xf32>
    %356 = tpu.matmul %351, %353, %cst_123 {dimension_numbers = #tpu.dot_dimension_numbers<[2], [2], [1], [1], [0, 0, 0, 1, 1, 1], [0], [0]>} : vector<2x8x16xbf16>, vector<2x8x16xbf16>, vector<2x8x8xf32> -> vector<2x8x8xf32>
    "tpu.trace_stop"() : () -> ()
    %cst_124 = arith.constant dense<0xFF800000> : vector<2x8xf32>
    %357 = vector.multi_reduction <maximumf>, %356, %cst_124 [2] : vector<2x8x8xf32> to vector<2x8xf32>
    %358 = vector.shape_cast %357 : vector<2x8xf32> to vector<2x8x1xf32>
    %359 = vector.broadcast %358 : vector<2x8x1xf32> to vector<2x8x8xf32>
    %360 = arith.subf %356, %359 : vector<2x8x8xf32>
    %361 = math.exp %360 : vector<2x8x8xf32>
    %cst_125 = arith.constant dense<0.000000e+00> : vector<2x8xf32>
    %362 = vector.multi_reduction <add>, %361, %cst_125 [2] : vector<2x8x8xf32> to vector<2x8xf32>
    %363 = vector.shape_cast %362 : vector<2x8xf32> to vector<2x8x1xf32>
    %364 = tpu.reciprocal %363 {approx = true} : vector<2x8x1xf32> -> vector<2x8x1xf32>
    %365 = vector.broadcast %364 : vector<2x8x1xf32> to vector<2x8x8xf32>
    %366 = arith.mulf %361, %365 : vector<2x8x8xf32>
    %367 = arith.truncf %366 : vector<2x8x8xf32> to vector<2x8x8xbf16>
    "tpu.trace_start"() <{level = 10 : i32, message = "bqk,bkd->bqd"}> : () -> ()
    %cst_126 = arith.constant dense<0.000000e+00> : vector<2x8x16xf32>
    %368 = tpu.matmul %367, %355, %cst_126 {dimension_numbers = #tpu.dot_dimension_numbers<[2], [1], [1], [2], [0, 0, 0, 1, 1, 2], [0], [0]>} : vector<2x8x8xbf16>, vector<2x8x16xbf16>, vector<2x8x16xf32> -> vector<2x8x16xf32>
    "tpu.trace_stop"() : () -> ()
    %369 = vector.extract_strided_slice %345 {offsets = [0, 0, 16], sizes = [2, 8, 16], strides = [1, 1, 1]} : vector<2x8x128xf32> to vector<2x8x16xf32>
    %370 = arith.truncf %369 : vector<2x8x16xf32> to vector<2x8x16xbf16>
    %371 = vector.extract_strided_slice %347 {offsets = [0, 0, 16], sizes = [2, 8, 16], strides = [1, 1, 1]} : vector<2x8x128xf32> to vector<2x8x16xf32>
    %372 = arith.truncf %371 : vector<2x8x16xf32> to vector<2x8x16xbf16>
    %373 = vector.extract_strided_slice %349 {offsets = [0, 0, 16], sizes = [2, 8, 16], strides = [1, 1, 1]} : vector<2x8x128xf32> to vector<2x8x16xf32>
    %374 = arith.truncf %373 : vector<2x8x16xf32> to vector<2x8x16xbf16>
    "tpu.trace_start"() <{level = 10 : i32, message = "bqd,bkd->bqk"}> : () -> ()
    %cst_127 = arith.constant dense<0.000000e+00> : vector<2x8x8xf32>
    %375 = tpu.matmul %370, %372, %cst_127 {dimension_numbers = #tpu.dot_dimension_numbers<[2], [2], [1], [1], [0, 0, 0, 1, 1, 1], [0], [0]>} : vector<2x8x16xbf16>, vector<2x8x16xbf16>, vector<2x8x8xf32> -> vector<2x8x8xf32>
    "tpu.trace_stop"() : () -> ()
    %cst_128 = arith.constant dense<0xFF800000> : vector<2x8xf32>
    %376 = vector.multi_reduction <maximumf>, %375, %cst_128 [2] : vector<2x8x8xf32> to vector<2x8xf32>
    %377 = vector.shape_cast %376 : vector<2x8xf32> to vector<2x8x1xf32>
    %378 = vector.broadcast %377 : vector<2x8x1xf32> to vector<2x8x8xf32>
    %379 = arith.subf %375, %378 : vector<2x8x8xf32>
    %380 = math.exp %379 : vector<2x8x8xf32>
    %cst_129 = arith.constant dense<0.000000e+00> : vector<2x8xf32>
    %381 = vector.multi_reduction <add>, %380, %cst_129 [2] : vector<2x8x8xf32> to vector<2x8xf32>
    %382 = vector.shape_cast %381 : vector<2x8xf32> to vector<2x8x1xf32>
    %383 = tpu.reciprocal %382 {approx = true} : vector<2x8x1xf32> -> vector<2x8x1xf32>
    %384 = vector.broadcast %383 : vector<2x8x1xf32> to vector<2x8x8xf32>
    %385 = arith.mulf %380, %384 : vector<2x8x8xf32>
    %386 = arith.truncf %385 : vector<2x8x8xf32> to vector<2x8x8xbf16>
    "tpu.trace_start"() <{level = 10 : i32, message = "bqk,bkd->bqd"}> : () -> ()
    %cst_130 = arith.constant dense<0.000000e+00> : vector<2x8x16xf32>
    %387 = tpu.matmul %386, %374, %cst_130 {dimension_numbers = #tpu.dot_dimension_numbers<[2], [1], [1], [2], [0, 0, 0, 1, 1, 2], [0], [0]>} : vector<2x8x8xbf16>, vector<2x8x16xbf16>, vector<2x8x16xf32> -> vector<2x8x16xf32>
    "tpu.trace_stop"() : () -> ()
    %388 = vector.extract_strided_slice %345 {offsets = [0, 0, 32], sizes = [2, 8, 16], strides = [1, 1, 1]} : vector<2x8x128xf32> to vector<2x8x16xf32>
    %389 = arith.truncf %388 : vector<2x8x16xf32> to vector<2x8x16xbf16>
    %390 = vector.extract_strided_slice %347 {offsets = [0, 0, 32], sizes = [2, 8, 16], strides = [1, 1, 1]} : vector<2x8x128xf32> to vector<2x8x16xf32>
    %391 = arith.truncf %390 : vector<2x8x16xf32> to vector<2x8x16xbf16>
    %392 = vector.extract_strided_slice %349 {offsets = [0, 0, 32], sizes = [2, 8, 16], strides = [1, 1, 1]} : vector<2x8x128xf32> to vector<2x8x16xf32>
    %393 = arith.truncf %392 : vector<2x8x16xf32> to vector<2x8x16xbf16>
    "tpu.trace_start"() <{level = 10 : i32, message = "bqd,bkd->bqk"}> : () -> ()
    %cst_131 = arith.constant dense<0.000000e+00> : vector<2x8x8xf32>
    %394 = tpu.matmul %389, %391, %cst_131 {dimension_numbers = #tpu.dot_dimension_numbers<[2], [2], [1], [1], [0, 0, 0, 1, 1, 1], [0], [0]>} : vector<2x8x16xbf16>, vector<2x8x16xbf16>, vector<2x8x8xf32> -> vector<2x8x8xf32>
    "tpu.trace_stop"() : () -> ()
    %cst_132 = arith.constant dense<0xFF800000> : vector<2x8xf32>
    %395 = vector.multi_reduction <maximumf>, %394, %cst_132 [2] : vector<2x8x8xf32> to vector<2x8xf32>
    %396 = vector.shape_cast %395 : vector<2x8xf32> to vector<2x8x1xf32>
    %397 = vector.broadcast %396 : vector<2x8x1xf32> to vector<2x8x8xf32>
    %398 = arith.subf %394, %397 : vector<2x8x8xf32>
    %399 = math.exp %398 : vector<2x8x8xf32>
    %cst_133 = arith.constant dense<0.000000e+00> : vector<2x8xf32>
    %400 = vector.multi_reduction <add>, %399, %cst_133 [2] : vector<2x8x8xf32> to vector<2x8xf32>
    %401 = vector.shape_cast %400 : vector<2x8xf32> to vector<2x8x1xf32>
    %402 = tpu.reciprocal %401 {approx = true} : vector<2x8x1xf32> -> vector<2x8x1xf32>
    %403 = vector.broadcast %402 : vector<2x8x1xf32> to vector<2x8x8xf32>
    %404 = arith.mulf %399, %403 : vector<2x8x8xf32>
    %405 = arith.truncf %404 : vector<2x8x8xf32> to vector<2x8x8xbf16>
    "tpu.trace_start"() <{level = 10 : i32, message = "bqk,bkd->bqd"}> : () -> ()
    %cst_134 = arith.constant dense<0.000000e+00> : vector<2x8x16xf32>
    %406 = tpu.matmul %405, %393, %cst_134 {dimension_numbers = #tpu.dot_dimension_numbers<[2], [1], [1], [2], [0, 0, 0, 1, 1, 2], [0], [0]>} : vector<2x8x8xbf16>, vector<2x8x16xbf16>, vector<2x8x16xf32> -> vector<2x8x16xf32>
    "tpu.trace_stop"() : () -> ()
    %407 = vector.extract_strided_slice %345 {offsets = [0, 0, 48], sizes = [2, 8, 16], strides = [1, 1, 1]} : vector<2x8x128xf32> to vector<2x8x16xf32>
    %408 = arith.truncf %407 : vector<2x8x16xf32> to vector<2x8x16xbf16>
    %409 = vector.extract_strided_slice %347 {offsets = [0, 0, 48], sizes = [2, 8, 16], strides = [1, 1, 1]} : vector<2x8x128xf32> to vector<2x8x16xf32>
    %410 = arith.truncf %409 : vector<2x8x16xf32> to vector<2x8x16xbf16>
    %411 = vector.extract_strided_slice %349 {offsets = [0, 0, 48], sizes = [2, 8, 16], strides = [1, 1, 1]} : vector<2x8x128xf32> to vector<2x8x16xf32>
    %412 = arith.truncf %411 : vector<2x8x16xf32> to vector<2x8x16xbf16>
    "tpu.trace_start"() <{level = 10 : i32, message = "bqd,bkd->bqk"}> : () -> ()
    %cst_135 = arith.constant dense<0.000000e+00> : vector<2x8x8xf32>
    %413 = tpu.matmul %408, %410, %cst_135 {dimension_numbers = #tpu.dot_dimension_numbers<[2], [2], [1], [1], [0, 0, 0, 1, 1, 1], [0], [0]>} : vector<2x8x16xbf16>, vector<2x8x16xbf16>, vector<2x8x8xf32> -> vector<2x8x8xf32>
    "tpu.trace_stop"() : () -> ()
    %cst_136 = arith.constant dense<0xFF800000> : vector<2x8xf32>
    %414 = vector.multi_reduction <maximumf>, %413, %cst_136 [2] : vector<2x8x8xf32> to vector<2x8xf32>
    %415 = vector.shape_cast %414 : vector<2x8xf32> to vector<2x8x1xf32>
    %416 = vector.broadcast %415 : vector<2x8x1xf32> to vector<2x8x8xf32>
    %417 = arith.subf %413, %416 : vector<2x8x8xf32>
    %418 = math.exp %417 : vector<2x8x8xf32>
    %cst_137 = arith.constant dense<0.000000e+00> : vector<2x8xf32>
    %419 = vector.multi_reduction <add>, %418, %cst_137 [2] : vector<2x8x8xf32> to vector<2x8xf32>
    %420 = vector.shape_cast %419 : vector<2x8xf32> to vector<2x8x1xf32>
    %421 = tpu.reciprocal %420 {approx = true} : vector<2x8x1xf32> -> vector<2x8x1xf32>
    %422 = vector.broadcast %421 : vector<2x8x1xf32> to vector<2x8x8xf32>
    %423 = arith.mulf %418, %422 : vector<2x8x8xf32>
    %424 = arith.truncf %423 : vector<2x8x8xf32> to vector<2x8x8xbf16>
    "tpu.trace_start"() <{level = 10 : i32, message = "bqk,bkd->bqd"}> : () -> ()
    %cst_138 = arith.constant dense<0.000000e+00> : vector<2x8x16xf32>
    %425 = tpu.matmul %424, %412, %cst_138 {dimension_numbers = #tpu.dot_dimension_numbers<[2], [1], [1], [2], [0, 0, 0, 1, 1, 2], [0], [0]>} : vector<2x8x8xbf16>, vector<2x8x16xbf16>, vector<2x8x16xf32> -> vector<2x8x16xf32>
    "tpu.trace_stop"() : () -> ()
    %426 = vector.extract_strided_slice %345 {offsets = [0, 0, 64], sizes = [2, 8, 16], strides = [1, 1, 1]} : vector<2x8x128xf32> to vector<2x8x16xf32>
    %427 = arith.truncf %426 : vector<2x8x16xf32> to vector<2x8x16xbf16>
    %428 = vector.extract_strided_slice %347 {offsets = [0, 0, 64], sizes = [2, 8, 16], strides = [1, 1, 1]} : vector<2x8x128xf32> to vector<2x8x16xf32>
    %429 = arith.truncf %428 : vector<2x8x16xf32> to vector<2x8x16xbf16>
    %430 = vector.extract_strided_slice %349 {offsets = [0, 0, 64], sizes = [2, 8, 16], strides = [1, 1, 1]} : vector<2x8x128xf32> to vector<2x8x16xf32>
    %431 = arith.truncf %430 : vector<2x8x16xf32> to vector<2x8x16xbf16>
    "tpu.trace_start"() <{level = 10 : i32, message = "bqd,bkd->bqk"}> : () -> ()
    %cst_139 = arith.constant dense<0.000000e+00> : vector<2x8x8xf32>
    %432 = tpu.matmul %427, %429, %cst_139 {dimension_numbers = #tpu.dot_dimension_numbers<[2], [2], [1], [1], [0, 0, 0, 1, 1, 1], [0], [0]>} : vector<2x8x16xbf16>, vector<2x8x16xbf16>, vector<2x8x8xf32> -> vector<2x8x8xf32>
    "tpu.trace_stop"() : () -> ()
    %cst_140 = arith.constant dense<0xFF800000> : vector<2x8xf32>
    %433 = vector.multi_reduction <maximumf>, %432, %cst_140 [2] : vector<2x8x8xf32> to vector<2x8xf32>
    %434 = vector.shape_cast %433 : vector<2x8xf32> to vector<2x8x1xf32>
    %435 = vector.broadcast %434 : vector<2x8x1xf32> to vector<2x8x8xf32>
    %436 = arith.subf %432, %435 : vector<2x8x8xf32>
    %437 = math.exp %436 : vector<2x8x8xf32>
    %cst_141 = arith.constant dense<0.000000e+00> : vector<2x8xf32>
    %438 = vector.multi_reduction <add>, %437, %cst_141 [2] : vector<2x8x8xf32> to vector<2x8xf32>
    %439 = vector.shape_cast %438 : vector<2x8xf32> to vector<2x8x1xf32>
    %440 = tpu.reciprocal %439 {approx = true} : vector<2x8x1xf32> -> vector<2x8x1xf32>
    %441 = vector.broadcast %440 : vector<2x8x1xf32> to vector<2x8x8xf32>
    %442 = arith.mulf %437, %441 : vector<2x8x8xf32>
    %443 = arith.truncf %442 : vector<2x8x8xf32> to vector<2x8x8xbf16>
    "tpu.trace_start"() <{level = 10 : i32, message = "bqk,bkd->bqd"}> : () -> ()
    %cst_142 = arith.constant dense<0.000000e+00> : vector<2x8x16xf32>
    %444 = tpu.matmul %443, %431, %cst_142 {dimension_numbers = #tpu.dot_dimension_numbers<[2], [1], [1], [2], [0, 0, 0, 1, 1, 2], [0], [0]>} : vector<2x8x8xbf16>, vector<2x8x16xbf16>, vector<2x8x16xf32> -> vector<2x8x16xf32>
    "tpu.trace_stop"() : () -> ()
    %445 = vector.extract_strided_slice %345 {offsets = [0, 0, 80], sizes = [2, 8, 16], strides = [1, 1, 1]} : vector<2x8x128xf32> to vector<2x8x16xf32>
    %446 = arith.truncf %445 : vector<2x8x16xf32> to vector<2x8x16xbf16>
    %447 = vector.extract_strided_slice %347 {offsets = [0, 0, 80], sizes = [2, 8, 16], strides = [1, 1, 1]} : vector<2x8x128xf32> to vector<2x8x16xf32>
    %448 = arith.truncf %447 : vector<2x8x16xf32> to vector<2x8x16xbf16>
    %449 = vector.extract_strided_slice %349 {offsets = [0, 0, 80], sizes = [2, 8, 16], strides = [1, 1, 1]} : vector<2x8x128xf32> to vector<2x8x16xf32>
    %450 = arith.truncf %449 : vector<2x8x16xf32> to vector<2x8x16xbf16>
    "tpu.trace_start"() <{level = 10 : i32, message = "bqd,bkd->bqk"}> : () -> ()
    %cst_143 = arith.constant dense<0.000000e+00> : vector<2x8x8xf32>
    %451 = tpu.matmul %446, %448, %cst_143 {dimension_numbers = #tpu.dot_dimension_numbers<[2], [2], [1], [1], [0, 0, 0, 1, 1, 1], [0], [0]>} : vector<2x8x16xbf16>, vector<2x8x16xbf16>, vector<2x8x8xf32> -> vector<2x8x8xf32>
    "tpu.trace_stop"() : () -> ()
    %cst_144 = arith.constant dense<0xFF800000> : vector<2x8xf32>
    %452 = vector.multi_reduction <maximumf>, %451, %cst_144 [2] : vector<2x8x8xf32> to vector<2x8xf32>
    %453 = vector.shape_cast %452 : vector<2x8xf32> to vector<2x8x1xf32>
    %454 = vector.broadcast %453 : vector<2x8x1xf32> to vector<2x8x8xf32>
    %455 = arith.subf %451, %454 : vector<2x8x8xf32>
    %456 = math.exp %455 : vector<2x8x8xf32>
    %cst_145 = arith.constant dense<0.000000e+00> : vector<2x8xf32>
    %457 = vector.multi_reduction <add>, %456, %cst_145 [2] : vector<2x8x8xf32> to vector<2x8xf32>
    %458 = vector.shape_cast %457 : vector<2x8xf32> to vector<2x8x1xf32>
    %459 = tpu.reciprocal %458 {approx = true} : vector<2x8x1xf32> -> vector<2x8x1xf32>
    %460 = vector.broadcast %459 : vector<2x8x1xf32> to vector<2x8x8xf32>
    %461 = arith.mulf %456, %460 : vector<2x8x8xf32>
    %462 = arith.truncf %461 : vector<2x8x8xf32> to vector<2x8x8xbf16>
    "tpu.trace_start"() <{level = 10 : i32, message = "bqk,bkd->bqd"}> : () -> ()
    %cst_146 = arith.constant dense<0.000000e+00> : vector<2x8x16xf32>
    %463 = tpu.matmul %462, %450, %cst_146 {dimension_numbers = #tpu.dot_dimension_numbers<[2], [1], [1], [2], [0, 0, 0, 1, 1, 2], [0], [0]>} : vector<2x8x8xbf16>, vector<2x8x16xbf16>, vector<2x8x16xf32> -> vector<2x8x16xf32>
    "tpu.trace_stop"() : () -> ()
    %464 = vector.extract_strided_slice %345 {offsets = [0, 0, 96], sizes = [2, 8, 16], strides = [1, 1, 1]} : vector<2x8x128xf32> to vector<2x8x16xf32>
    %465 = arith.truncf %464 : vector<2x8x16xf32> to vector<2x8x16xbf16>
    %466 = vector.extract_strided_slice %347 {offsets = [0, 0, 96], sizes = [2, 8, 16], strides = [1, 1, 1]} : vector<2x8x128xf32> to vector<2x8x16xf32>
    %467 = arith.truncf %466 : vector<2x8x16xf32> to vector<2x8x16xbf16>
    %468 = vector.extract_strided_slice %349 {offsets = [0, 0, 96], sizes = [2, 8, 16], strides = [1, 1, 1]} : vector<2x8x128xf32> to vector<2x8x16xf32>
    %469 = arith.truncf %468 : vector<2x8x16xf32> to vector<2x8x16xbf16>
    "tpu.trace_start"() <{level = 10 : i32, message = "bqd,bkd->bqk"}> : () -> ()
    %cst_147 = arith.constant dense<0.000000e+00> : vector<2x8x8xf32>
    %470 = tpu.matmul %465, %467, %cst_147 {dimension_numbers = #tpu.dot_dimension_numbers<[2], [2], [1], [1], [0, 0, 0, 1, 1, 1], [0], [0]>} : vector<2x8x16xbf16>, vector<2x8x16xbf16>, vector<2x8x8xf32> -> vector<2x8x8xf32>
    "tpu.trace_stop"() : () -> ()
    %cst_148 = arith.constant dense<0xFF800000> : vector<2x8xf32>
    %471 = vector.multi_reduction <maximumf>, %470, %cst_148 [2] : vector<2x8x8xf32> to vector<2x8xf32>
    %472 = vector.shape_cast %471 : vector<2x8xf32> to vector<2x8x1xf32>
    %473 = vector.broadcast %472 : vector<2x8x1xf32> to vector<2x8x8xf32>
    %474 = arith.subf %470, %473 : vector<2x8x8xf32>
    %475 = math.exp %474 : vector<2x8x8xf32>
    %cst_149 = arith.constant dense<0.000000e+00> : vector<2x8xf32>
    %476 = vector.multi_reduction <add>, %475, %cst_149 [2] : vector<2x8x8xf32> to vector<2x8xf32>
    %477 = vector.shape_cast %476 : vector<2x8xf32> to vector<2x8x1xf32>
    %478 = tpu.reciprocal %477 {approx = true} : vector<2x8x1xf32> -> vector<2x8x1xf32>
    %479 = vector.broadcast %478 : vector<2x8x1xf32> to vector<2x8x8xf32>
    %480 = arith.mulf %475, %479 : vector<2x8x8xf32>
    %481 = arith.truncf %480 : vector<2x8x8xf32> to vector<2x8x8xbf16>
    "tpu.trace_start"() <{level = 10 : i32, message = "bqk,bkd->bqd"}> : () -> ()
    %cst_150 = arith.constant dense<0.000000e+00> : vector<2x8x16xf32>
    %482 = tpu.matmul %481, %469, %cst_150 {dimension_numbers = #tpu.dot_dimension_numbers<[2], [1], [1], [2], [0, 0, 0, 1, 1, 2], [0], [0]>} : vector<2x8x8xbf16>, vector<2x8x16xbf16>, vector<2x8x16xf32> -> vector<2x8x16xf32>
    "tpu.trace_stop"() : () -> ()
    %483 = vector.extract_strided_slice %345 {offsets = [0, 0, 112], sizes = [2, 8, 16], strides = [1, 1, 1]} : vector<2x8x128xf32> to vector<2x8x16xf32>
    %484 = arith.truncf %483 : vector<2x8x16xf32> to vector<2x8x16xbf16>
    %485 = vector.extract_strided_slice %347 {offsets = [0, 0, 112], sizes = [2, 8, 16], strides = [1, 1, 1]} : vector<2x8x128xf32> to vector<2x8x16xf32>
    %486 = arith.truncf %485 : vector<2x8x16xf32> to vector<2x8x16xbf16>
    %487 = vector.extract_strided_slice %349 {offsets = [0, 0, 112], sizes = [2, 8, 16], strides = [1, 1, 1]} : vector<2x8x128xf32> to vector<2x8x16xf32>
    %488 = arith.truncf %487 : vector<2x8x16xf32> to vector<2x8x16xbf16>
    "tpu.trace_start"() <{level = 10 : i32, message = "bqd,bkd->bqk"}> : () -> ()
    %cst_151 = arith.constant dense<0.000000e+00> : vector<2x8x8xf32>
    %489 = tpu.matmul %484, %486, %cst_151 {dimension_numbers = #tpu.dot_dimension_numbers<[2], [2], [1], [1], [0, 0, 0, 1, 1, 1], [0], [0]>} : vector<2x8x16xbf16>, vector<2x8x16xbf16>, vector<2x8x8xf32> -> vector<2x8x8xf32>
    "tpu.trace_stop"() : () -> ()
    %cst_152 = arith.constant dense<0xFF800000> : vector<2x8xf32>
    %490 = vector.multi_reduction <maximumf>, %489, %cst_152 [2] : vector<2x8x8xf32> to vector<2x8xf32>
    %491 = vector.shape_cast %490 : vector<2x8xf32> to vector<2x8x1xf32>
    %492 = vector.broadcast %491 : vector<2x8x1xf32> to vector<2x8x8xf32>
    %493 = arith.subf %489, %492 : vector<2x8x8xf32>
    %494 = math.exp %493 : vector<2x8x8xf32>
    %cst_153 = arith.constant dense<0.000000e+00> : vector<2x8xf32>
    %495 = vector.multi_reduction <add>, %494, %cst_153 [2] : vector<2x8x8xf32> to vector<2x8xf32>
    %496 = vector.shape_cast %495 : vector<2x8xf32> to vector<2x8x1xf32>
    %497 = tpu.reciprocal %496 {approx = true} : vector<2x8x1xf32> -> vector<2x8x1xf32>
    %498 = vector.broadcast %497 : vector<2x8x1xf32> to vector<2x8x8xf32>
    %499 = arith.mulf %494, %498 : vector<2x8x8xf32>
    %500 = arith.truncf %499 : vector<2x8x8xf32> to vector<2x8x8xbf16>
    "tpu.trace_start"() <{level = 10 : i32, message = "bqk,bkd->bqd"}> : () -> ()
    %cst_154 = arith.constant dense<0.000000e+00> : vector<2x8x16xf32>
    %501 = tpu.matmul %500, %488, %cst_154 {dimension_numbers = #tpu.dot_dimension_numbers<[2], [1], [1], [2], [0, 0, 0, 1, 1, 2], [0], [0]>} : vector<2x8x8xbf16>, vector<2x8x16xbf16>, vector<2x8x16xf32> -> vector<2x8x16xf32>
    "tpu.trace_stop"() : () -> ()
    %502 = tpu.concatenate %368, %387, %406, %425, %444, %463, %482, %501 in 2 : vector<2x8x16xf32>, vector<2x8x16xf32>, vector<2x8x16xf32>, vector<2x8x16xf32>, vector<2x8x16xf32>, vector<2x8x16xf32>, vector<2x8x16xf32>, vector<2x8x16xf32> -> vector<2x8x128xf32>
    %503 = vector.shape_cast %502 : vector<2x8x128xf32> to vector<16x128xf32>
    %504 = arith.truncf %503 : vector<16x128xf32> to vector<16x128xbf16>
    %c0_155 = arith.constant 0 : index
    %c0_156 = arith.constant 0 : index
    %505 = vector.load %arg28[%c0_155, %c0_156] : memref<128x128xbf16, #tpu.memory_space<vmem>>, vector<128x128xbf16>
    %cst_157 = arith.constant dense<0.000000e+00> : vector<16x128xf32>
    %506 = tpu.matmul %504, %505, %cst_157 {dimension_numbers = #tpu.dot_dimension_numbers<[1], [0], [0], [1], [0, 0, 1, 1], [], []>} : vector<16x128xbf16>, vector<128x128xbf16>, vector<16x128xf32> -> vector<16x128xf32>
    %c0_158 = arith.constant 0 : index
    %c0_159 = arith.constant 0 : index
    %507 = vector.load %arg29[%c0_158, %c0_159] : memref<1x128xf32, #tpu.memory_space<vmem>>, vector<1x128xf32>
    %508 = vector.broadcast %507 : vector<1x128xf32> to vector<16x128xf32>
    %509 = arith.addf %506, %508 : vector<16x128xf32>
    %510 = arith.addf %337, %509 : vector<16x128xf32>
    %cst_160 = arith.constant dense<0.000000e+00> : vector<16xf32>
    %511 = vector.multi_reduction <add>, %510, %cst_160 [1] : vector<16x128xf32> to vector<16xf32>
    %512 = vector.shape_cast %511 : vector<16xf32> to vector<16x1xf32>
    %cst_161 = arith.constant 1.280000e+02 : f32
    %513 = vector.broadcast %cst_161 : f32 to vector<16x1xf32>
    %514 = arith.divf %512, %513 : vector<16x1xf32>
    %515 = vector.broadcast %514 : vector<16x1xf32> to vector<16x128xf32>
    %516 = arith.subf %510, %515 : vector<16x128xf32>
    %517 = arith.mulf %516, %516 : vector<16x128xf32>
    %cst_162 = arith.constant dense<0.000000e+00> : vector<16xf32>
    %518 = vector.multi_reduction <add>, %517, %cst_162 [1] : vector<16x128xf32> to vector<16xf32>
    %519 = vector.shape_cast %518 : vector<16xf32> to vector<16x1xf32>
    %cst_163 = arith.constant 1.280000e+02 : f32
    %520 = vector.broadcast %cst_163 : f32 to vector<16x1xf32>
    %521 = arith.divf %519, %520 : vector<16x1xf32>
    %522 = vector.broadcast %514 : vector<16x1xf32> to vector<16x128xf32>
    %523 = arith.subf %510, %522 : vector<16x128xf32>
    %cst_164 = arith.constant 9.99999974E-6 : f32
    %524 = vector.broadcast %cst_164 : f32 to vector<16x1xf32>
    %525 = arith.addf %521, %524 : vector<16x1xf32>
    %526 = math.rsqrt %525 : vector<16x1xf32>
    %527 = vector.broadcast %526 : vector<16x1xf32> to vector<16x128xf32>
    %528 = arith.mulf %523, %527 : vector<16x128xf32>
    %c0_165 = arith.constant 0 : index
    %c0_166 = arith.constant 0 : index
    %529 = vector.load %arg30[%c0_165, %c0_166] : memref<1x128xf32, #tpu.memory_space<vmem>>, vector<1x128xf32>
    %530 = vector.broadcast %529 : vector<1x128xf32> to vector<16x128xf32>
    %531 = arith.mulf %528, %530 : vector<16x128xf32>
    %c0_167 = arith.constant 0 : index
    %c0_168 = arith.constant 0 : index
    %532 = vector.load %arg31[%c0_167, %c0_168] : memref<1x128xf32, #tpu.memory_space<vmem>>, vector<1x128xf32>
    %533 = vector.broadcast %532 : vector<1x128xf32> to vector<16x128xf32>
    %534 = arith.addf %531, %533 : vector<16x128xf32>
    %535 = arith.truncf %534 : vector<16x128xf32> to vector<16x128xbf16>
    %c0_169 = arith.constant 0 : index
    %c0_170 = arith.constant 0 : index
    %536 = vector.load %arg32[%c0_169, %c0_170] : memref<128x2048xbf16, #tpu.memory_space<vmem>>, vector<128x2048xbf16>
    %cst_171 = arith.constant dense<0.000000e+00> : vector<16x2048xf32>
    %537 = tpu.matmul %535, %536, %cst_171 {dimension_numbers = #tpu.dot_dimension_numbers<[1], [0], [0], [1], [0, 0, 1, 1], [], []>} : vector<16x128xbf16>, vector<128x2048xbf16>, vector<16x2048xf32> -> vector<16x2048xf32>
    %c0_172 = arith.constant 0 : index
    %c0_173 = arith.constant 0 : index
    %538 = vector.load %arg33[%c0_172, %c0_173] : memref<1x2048xf32, #tpu.memory_space<vmem>>, vector<1x2048xf32>
    %539 = vector.broadcast %538 : vector<1x2048xf32> to vector<16x2048xf32>
    %540 = arith.addf %537, %539 : vector<16x2048xf32>
    %cst_174 = arith.constant 0.000000e+00 : f32
    %541 = vector.broadcast %cst_174 : f32 to vector<16x2048xf32>
    %542 = arith.maximumf %540, %541 : vector<16x2048xf32>
    %543 = arith.truncf %542 : vector<16x2048xf32> to vector<16x2048xbf16>
    %c0_175 = arith.constant 0 : index
    %c0_176 = arith.constant 0 : index
    %544 = vector.load %arg34[%c0_175, %c0_176] : memref<2048x128xbf16, #tpu.memory_space<vmem>>, vector<2048x128xbf16>
    %cst_177 = arith.constant dense<0.000000e+00> : vector<16x128xf32>
    %545 = tpu.matmul %543, %544, %cst_177 {dimension_numbers = #tpu.dot_dimension_numbers<[1], [0], [0], [1], [0, 0, 1, 1], [], []>} : vector<16x2048xbf16>, vector<2048x128xbf16>, vector<16x128xf32> -> vector<16x128xf32>
    %c0_178 = arith.constant 0 : index
    %c0_179 = arith.constant 0 : index
    %546 = vector.load %arg35[%c0_178, %c0_179] : memref<1x128xf32, #tpu.memory_space<vmem>>, vector<1x128xf32>
    %547 = vector.broadcast %546 : vector<1x128xf32> to vector<16x128xf32>
    %548 = arith.addf %545, %547 : vector<16x128xf32>
    %549 = arith.addf %534, %548 : vector<16x128xf32>
    %cst_180 = arith.constant dense<0.000000e+00> : vector<16xf32>
    %550 = vector.multi_reduction <add>, %549, %cst_180 [1] : vector<16x128xf32> to vector<16xf32>
    %551 = vector.shape_cast %550 : vector<16xf32> to vector<16x1xf32>
    %cst_181 = arith.constant 1.280000e+02 : f32
    %552 = vector.broadcast %cst_181 : f32 to vector<16x1xf32>
    %553 = arith.divf %551, %552 : vector<16x1xf32>
    %554 = vector.broadcast %553 : vector<16x1xf32> to vector<16x128xf32>
    %555 = arith.subf %549, %554 : vector<16x128xf32>
    %556 = arith.mulf %555, %555 : vector<16x128xf32>
    %cst_182 = arith.constant dense<0.000000e+00> : vector<16xf32>
    %557 = vector.multi_reduction <add>, %556, %cst_182 [1] : vector<16x128xf32> to vector<16xf32>
    %558 = vector.shape_cast %557 : vector<16xf32> to vector<16x1xf32>
    %cst_183 = arith.constant 1.280000e+02 : f32
    %559 = vector.broadcast %cst_183 : f32 to vector<16x1xf32>
    %560 = arith.divf %558, %559 : vector<16x1xf32>
    %561 = vector.broadcast %553 : vector<16x1xf32> to vector<16x128xf32>
    %562 = arith.subf %549, %561 : vector<16x128xf32>
    %cst_184 = arith.constant 9.99999974E-6 : f32
    %563 = vector.broadcast %cst_184 : f32 to vector<16x1xf32>
    %564 = arith.addf %560, %563 : vector<16x1xf32>
    %565 = math.rsqrt %564 : vector<16x1xf32>
    %566 = vector.broadcast %565 : vector<16x1xf32> to vector<16x128xf32>
    %567 = arith.mulf %562, %566 : vector<16x128xf32>
    %c0_185 = arith.constant 0 : index
    %c0_186 = arith.constant 0 : index
    %568 = vector.load %arg36[%c0_185, %c0_186] : memref<1x128xf32, #tpu.memory_space<vmem>>, vector<1x128xf32>
    %569 = vector.broadcast %568 : vector<1x128xf32> to vector<16x128xf32>
    %570 = arith.mulf %567, %569 : vector<16x128xf32>
    %c0_187 = arith.constant 0 : index
    %c0_188 = arith.constant 0 : index
    %571 = vector.load %arg37[%c0_187, %c0_188] : memref<1x128xf32, #tpu.memory_space<vmem>>, vector<1x128xf32>
    %572 = vector.broadcast %571 : vector<1x128xf32> to vector<16x128xf32>
    %573 = arith.addf %570, %572 : vector<16x128xf32>
    %574 = vector.shape_cast %573 : vector<16x128xf32> to vector<2x8x128xf32>
    %cst_189 = arith.constant dense<0.000000e+00> : vector<2x128xf32>
    %575 = vector.multi_reduction <add>, %574, %cst_189 [1] : vector<2x8x128xf32> to vector<2x128xf32>
    %cst_190 = arith.constant 8.000000e+00 : f32
    %576 = vector.broadcast %cst_190 : f32 to vector<2x128xf32>
    %577 = arith.divf %575, %576 : vector<2x128xf32>
    %578 = arith.truncf %577 : vector<2x128xf32> to vector<2x128xbf16>
    %c0_191 = arith.constant 0 : index
    %c0_192 = arith.constant 0 : index
    %579 = vector.load %arg38[%c0_191, %c0_192] : memref<128x64xbf16, #tpu.memory_space<vmem>>, vector<128x64xbf16>
    %cst_193 = arith.constant dense<0.000000e+00> : vector<2x64xf32>
    %580 = tpu.matmul %578, %579, %cst_193 {dimension_numbers = #tpu.dot_dimension_numbers<[1], [0], [0], [1], [0, 0, 1, 1], [], []>} : vector<2x128xbf16>, vector<128x64xbf16>, vector<2x64xf32> -> vector<2x64xf32>
    %c0_194 = arith.constant 0 : index
    %c0_195 = arith.constant 0 : index
    %581 = vector.load %arg39[%c0_194, %c0_195] : memref<1x64xf32, #tpu.memory_space<vmem>>, vector<1x64xf32>
    %582 = vector.broadcast %581 : vector<1x64xf32> to vector<2x64xf32>
    %583 = arith.addf %580, %582 : vector<2x64xf32>
    %cst_196 = arith.constant dense<0.000000e+00> : vector<2xf32>
    %584 = vector.multi_reduction <add>, %583, %cst_196 [1] : vector<2x64xf32> to vector<2xf32>
    %585 = vector.shape_cast %584 : vector<2xf32> to vector<2x1xf32>
    %cst_197 = arith.constant 6.400000e+01 : f32
    %586 = vector.broadcast %cst_197 : f32 to vector<2x1xf32>
    %587 = arith.divf %585, %586 : vector<2x1xf32>
    %588 = vector.broadcast %587 : vector<2x1xf32> to vector<2x64xf32>
    %589 = arith.subf %583, %588 : vector<2x64xf32>
    %590 = arith.mulf %589, %589 : vector<2x64xf32>
    %cst_198 = arith.constant dense<0.000000e+00> : vector<2xf32>
    %591 = vector.multi_reduction <add>, %590, %cst_198 [1] : vector<2x64xf32> to vector<2xf32>
    %592 = vector.shape_cast %591 : vector<2xf32> to vector<2x1xf32>
    %cst_199 = arith.constant 6.400000e+01 : f32
    %593 = vector.broadcast %cst_199 : f32 to vector<2x1xf32>
    %594 = arith.divf %592, %593 : vector<2x1xf32>
    %595 = vector.broadcast %587 : vector<2x1xf32> to vector<2x64xf32>
    %596 = arith.subf %583, %595 : vector<2x64xf32>
    %cst_200 = arith.constant 9.99999974E-6 : f32
    %597 = vector.broadcast %cst_200 : f32 to vector<2x1xf32>
    %598 = arith.addf %594, %597 : vector<2x1xf32>
    %599 = math.rsqrt %598 : vector<2x1xf32>
    %600 = vector.broadcast %599 : vector<2x1xf32> to vector<2x64xf32>
    %601 = arith.mulf %596, %600 : vector<2x64xf32>
    %c0_201 = arith.constant 0 : index
    %c0_202 = arith.constant 0 : index
    %602 = vector.load %arg40[%c0_201, %c0_202] : memref<1x64xf32, #tpu.memory_space<vmem>>, vector<1x64xf32>
    %603 = vector.broadcast %602 : vector<1x64xf32> to vector<2x64xf32>
    %604 = arith.mulf %601, %603 : vector<2x64xf32>
    %c0_203 = arith.constant 0 : index
    %c0_204 = arith.constant 0 : index
    %605 = vector.load %arg41[%c0_203, %c0_204] : memref<1x64xf32, #tpu.memory_space<vmem>>, vector<1x64xf32>
    %606 = vector.broadcast %605 : vector<1x64xf32> to vector<2x64xf32>
    %607 = arith.addf %604, %606 : vector<2x64xf32>
    %cst_205 = arith.constant 0.000000e+00 : f32
    %608 = vector.broadcast %cst_205 : f32 to vector<2x64xf32>
    %609 = arith.maximumf %607, %608 : vector<2x64xf32>
    %c0_206 = arith.constant 0 : index
    %c0_207 = arith.constant 0 : index
    %610 = vector.load %arg42[%c0_206, %c0_207] : memref<1x64xf32, #tpu.memory_space<vmem>>, vector<1x64xf32>
    %611 = vector.broadcast %610 : vector<1x64xf32> to vector<2x64xf32>
    %612 = arith.mulf %609, %611 : vector<2x64xf32>
    %cst_208 = arith.constant dense<0.000000e+00> : vector<2xf32>
    %613 = vector.multi_reduction <add>, %612, %cst_208 [1] : vector<2x64xf32> to vector<2xf32>
    %614 = vector.shape_cast %613 : vector<2xf32> to vector<2x1xf32>
    %c0_209 = arith.constant 0 : index
    %c0_210 = arith.constant 0 : index
    %615 = vector.load %arg43[%c0_209, %c0_210] : memref<1x1xf32, #tpu.memory_space<vmem>>, vector<1x1xf32>
    %616 = vector.broadcast %615 : vector<1x1xf32> to vector<2x1xf32>
    %617 = arith.addf %614, %616 : vector<2x1xf32>
    %c0_211 = arith.constant 0 : index
    %c0_212 = arith.constant 0 : index
    %618 = vector.load %arg44[%c0_211, %c0_212] : memref<2x1xf32, #tpu.memory_space<vmem>>, vector<2x1xf32>
    tpu.vector_store %arg44[%c0_211, %c0_212], %617 {strides = array<i32>} : memref<2x1xf32, #tpu.memory_space<vmem>>, vector<2x1xf32>,
    return
  }
}

</mosaic_0001>

<bundles_post_ra>
// kernel: prefab_forward.1
= control target key start
LH: loop header
LB: loop body
LE: loop exit
PB: predicated region body
PF: predicated region fallthrough
CT: control target
= control target key end

     0   :  { %s13381_s6 = smov 1   ;;  %s13382_s10 = smov 2   ;;  %s14789_s0 = inlined_call_operand.smem [shape: u32[45], index: -1, kind: input, shape index: {}] }
   0x1   :  { %s13461_s5 = sld [smem:[%s14789_s0]]   ;;  %s13383_s14 = smov 3  }
   0x2   :  { %s13466_s9 = sld [smem:[%s14789_s0 + %s13381_s6]]   ;;  %s13384_s18 = smov 4  }
   0x3   :  { %s13471_s13 = sld [smem:[%s14789_s0 + %s13382_s10]]   ;;  %s13385_s22 = smov 5  }
   0x4   :  { %s13476_s17 = sld [smem:[%s14789_s0 + %s13383_s14]]   ;;  %s13386_s26 = smov 6  }
   0x5   :  { %s13481_s21 = sld [smem:[%s14789_s0 + %s13384_s18]]   ;;  %s13387_s30 = smov 7  }
   0x6   :  { %s13486_s25 = sld [smem:[%s14789_s0 + %s13385_s22]]   ;;  %s13388_s4 = smov 8  }
   0x7   :  { %s13491_s29 = sld [smem:[%s14789_s0 + %s13386_s26]]   ;;  %s13389_s10 = smov 9  }
   0x8   :  { %s13496_s3 = sld [smem:[%s14789_s0 + %s13387_s30]]   ;;  %s13390_s15 = smov 10  }
   0x9   :  { %s13501_s8 = sld [smem:[%s14789_s0 + %s13388_s4]]   ;;  %s13391_s20 = smov 11  }
   0xa   :  { %s13506_s14 = sld [smem:[%s14789_s0 + %s13389_s10]]   ;;  %s13392_s26 = smov 12  }
   0xb   :  { %14793 = sst [smem:[#allocation29_spill]] %s13481_s21  ;;  %s13393_s1 = smov 13  }
   0xc   :  { %14794 = sst [smem:[#allocation30_spill]] %s13486_s25  ;;  %s13394_s7 = smov 14  }
   0xd   :  { %s13511_s19 = sld [smem:[%s14789_s0 + %s13390_s15]]   ;;  %s13395_s15 = smov 15  }
   0xe   :  { %14795 = sst [smem:[#allocation31_spill]] %s13496_s3  ;;  %s13396_s22 = smov 16  }
   0xf   :  { %14796 = sst [smem:[#allocation32_spill]] %s13501_s8  ;;  %s13397_s28 = smov 17  }
  0x10   :  { %14797 = sst [smem:[#allocation33_spill]] %s13506_s14  ;;  %s13424_s23 = smov 44  }
  0x11   :  { %s13516_s24 = sld [smem:[%s14789_s0 + %s13391_s20]]  }
  0x12   :  { %s13521_s30 = sld [smem:[%s14789_s0 + %s13392_s26]]  }
  0x13   :  { %14798 = sst [smem:[#allocation34_spill]] %s13511_s19 }
  0x14   :  { %s13526_s6 = sld [smem:[%s14789_s0 + %s13393_s1]]  }
  0x15   :  { %s13531_s12 = sld [smem:[%s14789_s0 + %s13394_s7]]   ;;  %s13398_s7 = smov 18  }
  0x16   :  { %s13536_s20 = sld [smem:[%s14789_s0 + %s13395_s15]]   ;;  %s13399_s15 = smov 19  }
  0x17   :  { %14799 = sst [smem:[#allocation35_spill]] %s13516_s24 }
  0x18   :  { %14800 = sst [smem:[#allocation36_spill]] %s13521_s30 }
  0x19   :  { %s13541_s27 = sld [smem:[%s14789_s0 + %s13396_s22]]   ;;  %s13400_s22 = smov 20  }
  0x1a   :  { %14801 = sst [smem:[#allocation37_spill]] %s13526_s6 }
  0x1b   :  { %s13546_s4 = sld [smem:[%s14789_s0 + %s13397_s28]]   ;;  %s13401_s28 = smov 21  }
  0x1c   :  { %14802 = sst [smem:[#allocation38_spill]] %s13536_s20 }
  0x1d   :  { %s13551_s6 = sld [smem:[%s14789_s0 + %s13398_s7]]   ;;  %s13402_s7 = smov 22  }
  0x1e   :  { %s13556_s20 = sld [smem:[%s14789_s0 + %s13399_s15]]   ;;  %s13403_s15 = smov 23  }
  0x1f   :  { %s13561_s30 = sld [smem:[%s14789_s0 + %s13400_s22]]   ;;  %s13404_s22 = smov 24  }
  0x20   :  { %s13581_s24 = sld [smem:[%s14789_s0 + %s13404_s22]]   ;;  %s13408_s22 = smov 28  }
  0x21   :  { %14803 = sst [smem:[#allocation39_spill]] %s13546_s4 }
  0x22   :  { %s13566_s4 = sld [smem:[%s14789_s0 + %s13401_s28]]   ;;  %s13405_s28 = smov 25  }
  0x23   :  { %14804 = sst [smem:[#allocation40_spill]] %s13551_s6 }
  0x24   :  { %14805 = sst [smem:[#allocation41_spill]] %s13556_s20 }
  0x25   :  { %s13571_s6 = sld [smem:[%s14789_s0 + %s13402_s7]]   ;;  %s13406_s7 = smov 26  }
  0x26   :  { %s13576_s20 = sld [smem:[%s14789_s0 + %s13403_s15]]   ;;  %s13407_s15 = smov 27  }
  0x27   :  { %14808 = sst [smem:[#allocation44_spill]] %s13581_s24 }
  0x28   :  { %14806 = sst [smem:[#allocation42_spill]] %s13566_s4 }
  0x29   :  { %s13586_s4 = sld [smem:[%s14789_s0 + %s13405_s28]]   ;;  %s13409_s28 = smov 29  }
  0x2a   :  { %s13591_s14 = sld [smem:[%s14789_s0 + %s13406_s7]]   ;;  %s13410_s7 = smov 30  }
  0x2b   :  { %s13601_s24 = sld [smem:[%s14789_s0 + %s13408_s22]]   ;;  %s13412_s22 = smov 32  }
  0x2c   :  { %14807 = sst [smem:[#allocation43_spill]] %s13576_s20 }
  0x2d   :  { %s13596_s20 = sld [smem:[%s14789_s0 + %s13407_s15]]   ;;  %s13411_s15 = smov 31  }
  0x2e   :  { %s13611_s8 = sld [smem:[%s14789_s0 + %s13410_s7]]   ;;  %s13414_s7 = smov 34  }
  0x2f   :  { %14809 = sst [smem:[#allocation45_spill]] %s13586_s4 }
  0x30   :  { %s13606_s4 = sld [smem:[%s14789_s0 + %s13409_s28]]   ;;  %s13413_s28 = smov 33  }
  0x31   :  { %s13621_s19 = sld [smem:[%s14789_s0 + %s13412_s22]]   ;;  %s13416_s22 = smov 36  }
  0x32   :  { %s13641_s3 = sld [smem:[%s14789_s0 + %s13416_s22]]   ;;  %s13420_s22 = smov 40  }
  0x33   :  { %14810 = sst [smem:[#allocation46_spill]] %s13596_s20 }
  0x34   :  { %14812 = sst [smem:[#allocation48_spill]] %s13611_s8 }
  0x35   :  { %s13616_s20 = sld [smem:[%s14789_s0 + %s13411_s15]]   ;;  %s13415_s15 = smov 35  }
  0x36   :  { %14811 = sst [smem:[#allocation47_spill]] %s13606_s4 }
  0x37   :  { %s13626_s4 = sld [smem:[%s14789_s0 + %s13413_s28]]   ;;  %s13417_s28 = smov 37  }
  0x38   :  { %s13631_s8 = sld [smem:[%s14789_s0 + %s13414_s7]]   ;;  %s13418_s7 = smov 38  }
  0x39   :  { %14816 = sst [smem:[#allocation52_spill]] %s13641_s3 }
  0x3a   :  { %s13651_s25 = sld [smem:[%s14789_s0 + %s13418_s7]]   ;;  %s13422_s7 = smov 42  }
  0x3b   :  { %14813 = sst [smem:[#allocation49_spill]] %s13616_s20 }
  0x3c   :  { %s13636_s20 = sld [smem:[%s14789_s0 + %s13415_s15]]   ;;  %s13419_s15 = smov 39  }
  0x3d   :  { %14814 = sst [smem:[#allocation50_spill]] %s13626_s4 }
  0x3e   :  { %s13646_s4 = sld [smem:[%s14789_s0 + %s13417_s28]]   ;;  %s13421_s28 = smov 41  }
  0x3f   :  { %s13661_s3 = sld [smem:[%s14789_s0 + %s13420_s22]]  }
  0x40   :  { %s13671_s21 = sld [smem:[%s14789_s0 + %s13422_s7]]  }
  0x42   :  { %14815 = sst [smem:[#allocation51_spill]] %s13636_s20 }
  0x43   :  { %s13656_s20 = sld [smem:[%s14789_s0 + %s13419_s15]]   ;;  %s13423_s15 = smov 43  }
  0x44   :  { %14817 = sst [smem:[#allocation53_spill]] %s13646_s4 }
  0x45   :  { %14819 = sst [smem:[#allocation55_spill]] %s13661_s3 }
  0x46   :  { %s13666_s4 = sld [smem:[%s14789_s0 + %s13421_s28]]  }
  0x47   :  { %s13679_s3 = sld [smem:[%s14789_s0 + %s13424_s23]]  }
  0x49   :  { %14818 = sst [smem:[#allocation54_spill]] %s13656_s20 }
  0x4a   :  { %s10745_s20 = sld [smem:[%s14789_s0 + %s13423_s15]]  }
  0x50   :  { %v94_v0 = vstv %s10745_s20 }
  0x51   :  { %95 = vst [vmem:[#allocation2] sm:$0x1] %v94_v0 }
  0x52   :  { %96 = vsyncpa [#allocation4], 0 }
  0x53   :  { %97 = vsyncpa [#allocation6], 0 }
  0x54   :  { %98 = vsyncpa [#allocation9], 0 }
  0x55   :  { %99 = vsyncpa [#allocation12], 0 }
  0x56   :  { %100 = vsyncpa [#allocation15], 0 }
  0x57   :  { %101 = vsyncpa [#allocation18], 0 }
  0x58   :  { %102 = vsyncpa [#allocation21], 0  ;;  %s13425_s28 = smov [#allocation5]   ;;  %s13426_s2 = smov [#allocation8]  }
  0x59   :  { %s120_s1 = sshll.u32 %s13425_s28, 4  ;;  %s166_s7 = sshll.u32 %s13426_s2, 4  ;;  %s121_s1 = int_to_ptr.vmem [resolvable:$true] %s120_s1  ;;  %s167_s7 = int_to_ptr.vmem [resolvable:$true] %s166_s7 }
  0x5a   :  { %s13135_s10 = scalar_lea.vmem %s121_s1, 256  ;;  %p13140_p1 = scmp.lt.s32.totalorder %s121_s1, %s121_s1 }
  0x5b   :  { %p13136_p0 = scmp.ne.s32.totalorder %s121_s1, %s13135_s10  ;;  %p13141_p2 = scmp.lt.s32.totalorder %s13135_s10, %s13135_s10 }
  0x5d   :  { %p13142_p3 = por %p13141_p2, %p13140_p1 }
  0x5f   :  { %p13143_p4 = pnand %p13142_p3, %p13136_p0 }
  0x61   :  { %13146 = shalt.err (!%p13143_p4)
}
  0x62   :  { %s13427_s0 = smov 128   ;;  %s13428_s20 = smov 8  }
  0x63   :  { %126 = dma.hbm_to_vmem [thread:$0]  %s13466_s9, 256, %s121_s1, [#allocation6], %s13427_s0, %s13427_s0, %s13428_s20  }
  0x64   :  { %s13155_s11 = scalar_lea.vmem %s167_s7, 3072  ;;  %p13160_p6 = scmp.lt.s32.totalorder %s167_s7, %s167_s7 }
  0x65   :  { %p13156_p5 = scmp.ne.s32.totalorder %s167_s7, %s13155_s11  ;;  %p13161_p7 = scmp.lt.s32.totalorder %s13155_s11, %s13155_s11 }
  0x67   :  { %p13162_p8 = por %p13161_p7, %p13160_p6 }
  0x69   :  { %p13163_p9 = pnand %p13162_p8, %p13156_p5 }
  0x6b   :  { %13166 = shalt.err (!%p13163_p9)
}
  0x6c   :  { %s13429_s15 = smov 192   ;;  %s13430_s16 = smov 12  }
  0x6d   :  { %172 = dma.hbm_to_vmem [thread:$0]  %s13531_s12, 3072, %s167_s7, [#allocation9], %s13429_s15, %s13429_s15, %s13430_s16  }
  0x6e   :  { %s13431_s18 = smov [#allocation11]  }
  0x6f   :  { %s198_s23 = sshll.u32 %s13431_s18, 4  ;;  %s199_s23 = int_to_ptr.vmem [resolvable:$true] %s198_s23 }
  0x70   :  { %s13175_s22 = scalar_lea.vmem %s199_s23, 16384  ;;  %p13180_p11 = scmp.lt.s32.totalorder %s199_s23, %s199_s23 }
  0x71   :  { %p13176_p10 = scmp.ne.s32.totalorder %s199_s23, %s13175_s22  ;;  %p13181_p12 = scmp.lt.s32.totalorder %s13175_s22, %s13175_s22 }
  0x73   :  { %p13182_p13 = por %p13181_p12, %p13180_p11 }
  0x75   :  { %p13183_p0 = pnand %p13182_p13, %p13176_p10 }
  0x77   :  { %13186 = shalt.err (!%p13183_p0)
}
  0x78   :  { %s13432_s9 = smov 1024   ;;  %s13433_s26 = smov 64  }
  0x79   :  { %204 = dma.hbm_to_vmem [thread:$0]  %s13561_s30, 16384, %s199_s23, [#allocation12], %s13432_s9, %s13432_s9, %s13433_s26  }
  0x7a   :  { %s13434_s28 = smov [#allocation14]   ;;  %s13435_s2 = smov [#allocation17]  }
  0x7b   :  { %s230_s1 = sshll.u32 %s13434_s28, 4  ;;  %s262_s12 = sshll.u32 %s13435_s2, 4  ;;  %s231_s1 = int_to_ptr.vmem [resolvable:$true] %s230_s1  ;;  %s263_s12 = int_to_ptr.vmem [resolvable:$true] %s262_s12 }
  0x7c   :  { %s13195_s7 = scalar_lea.vmem %s231_s1, 3072  ;;  %p13200_p2 = scmp.lt.s32.totalorder %s231_s1, %s231_s1 }
  0x7d   :  { %p13196_p1 = scmp.ne.s32.totalorder %s231_s1, %s13195_s7  ;;  %p13201_p3 = scmp.lt.s32.totalorder %s13195_s7, %s13195_s7 }
  0x7f   :  { %p13202_p4 = por %p13201_p3, %p13200_p2 }
  0x81   :  { %p13203_p5 = pnand %p13202_p4, %p13196_p1 }
  0x83   :  { %13206 = shalt.err (!%p13203_p5)
}
  0x84   :  { %236 = dma.hbm_to_vmem [thread:$0]  %s13591_s14, 3072, %s231_s1, [#allocation15], %s13429_s15, %s13429_s15, %s13430_s16  }
  0x85   :  { %s13215_s10 = scalar_lea.vmem %s263_s12, 16384  ;;  %p13220_p7 = scmp.lt.s32.totalorder %s263_s12, %s263_s12 }
  0x86   :  { %p13216_p6 = scmp.ne.s32.totalorder %s263_s12, %s13215_s10  ;;  %p13221_p8 = scmp.lt.s32.totalorder %s13215_s10, %s13215_s10 }
  0x88   :  { %p13222_p9 = por %p13221_p8, %p13220_p7 }
  0x8a   :  { %p13223_p10 = pnand %p13222_p9, %p13216_p6 }
  0x8c   :  { %13226 = shalt.err (!%p13223_p10)
}
  0x8d   :  { %268 = dma.hbm_to_vmem [thread:$0]  %s13621_s19, 16384, %s263_s12, [#allocation18], %s13432_s9, %s13432_s9, %s13433_s26  }
  0x8e   :  { %s13436_s30 = smov [#allocation3]   ;;  %s13437_s18 = smov [#allocation7]  }
  0x8f   :  { %s108_s11 = sshll.u32 %s13436_s30, 4  ;;  %s140_s23 = sshll.u32 %s13437_s18, 4  ;;  %s109_s11 = int_to_ptr.vmem [resolvable:$true] %s108_s11  ;;  %s141_s23 = int_to_ptr.vmem [resolvable:$true] %s140_s23 }
  0x90   :  { %s13235_s22 = scalar_lea.vmem %s109_s11, 256  ;;  %p13240_p12 = scmp.lt.s32.totalorder %s109_s11, %s109_s11 }
  0x91   :  { %p13236_p11 = scmp.ne.s32.totalorder %s109_s11, %s13235_s22  ;;  %p13241_p13 = scmp.lt.s32.totalorder %s13235_s22, %s13235_s22 }
  0x93   :  { %p13242_p0 = por %p13241_p13, %p13240_p12 }
  0x95   :  { %p13243_p1 = pnand %p13242_p0, %p13236_p11 }
  0x97   :  { %13246 = shalt.err (!%p13243_p1)
}
  0x98   :  { %114 = dma.hbm_to_vmem [thread:$0]  %s13461_s5, 256, %s109_s11, [#allocation4], %s13427_s0, %s13427_s0, %s13428_s20  }
  0x99   :  { %s13255_s14 = scalar_lea.vmem %s141_s23, 256  ;;  %p13260_p3 = scmp.lt.s32.totalorder %s141_s23, %s141_s23 }
  0x9a   :  { %p13256_p2 = scmp.ne.s32.totalorder %s141_s23, %s13255_s14  ;;  %p13261_p4 = scmp.lt.s32.totalorder %s13255_s14, %s13255_s14 }
  0x9c   :  { %p13262_p5 = por %p13261_p4, %p13260_p3 }
  0x9e   :  { %p13263_p6 = pnand %p13262_p5, %p13256_p2 }
  0xa0   :  { %13266 = shalt.err (!%p13263_p6)
}
  0xa1   :  { %s13438_s19 = smov 4   ;;  %s13439_s15 = smov [#allocation10]  }
  0xa2   :  { %146 = dma.hbm_to_vmem [thread:$0]  %s13491_s29, 256, %s141_s23, [#allocation6], %s13433_s26, %s13433_s26, %s13438_s19  }
  0xa3   :  { %s180_s16 = sshll.u32 %s13439_s15, 4  ;;  %s13440_s9 = smov [#allocation13]   ;;  %s181_s16 = int_to_ptr.vmem [resolvable:$true] %s180_s16 }
  0xa4   :  { %s212_s28 = sshll.u32 %s13440_s9, 4  ;;  %s13275_s5 = scalar_lea.vmem %s181_s16, 1024  ;;  %s213_s28 = int_to_ptr.vmem [resolvable:$true] %s212_s28 }
  0xa5   :  { %p13276_p7 = scmp.ne.s32.totalorder %s181_s16, %s13275_s5  ;;  %p13280_p8 = scmp.lt.s32.totalorder %s181_s16, %s181_s16 }
  0xa6   :  { %p13281_p9 = scmp.lt.s32.totalorder %s13275_s5, %s13275_s5 }
  0xa8   :  { %p13282_p10 = por %p13281_p9, %p13280_p8 }
  0xaa   :  { %p13283_p11 = pnand %p13282_p10, %p13276_p7 }
  0xac   :  { %13286 = shalt.err (!%p13283_p11)
}
  0xad   :  { %186 = dma.hbm_to_vmem [thread:$0]  %s13541_s27, 1024, %s181_s16, [#allocation9], %s13433_s26, %s13433_s26, %s13438_s19  }
  0xae   :  { %s13295_s0 = scalar_lea.vmem %s213_s28, 16384  ;;  %p13300_p13 = scmp.lt.s32.totalorder %s213_s28, %s213_s28 }
  0xaf   :  { %p13296_p12 = scmp.ne.s32.totalorder %s213_s28, %s13295_s0  ;;  %p13301_p0 = scmp.lt.s32.totalorder %s13295_s0, %s13295_s0 }
  0xb1   :  { %p13302_p1 = por %p13301_p0, %p13300_p13 }
  0xb3   :  { %p13303_p2 = pnand %p13302_p1, %p13296_p12 }
  0xb5   :  { %13306 = shalt.err (!%p13303_p2)
}
  0xb6   :  { %218 = dma.hbm_to_vmem [thread:$0]  %s13571_s6, 16384, %s213_s28, [#allocation12], %s13433_s26, %s13433_s26, %s13438_s19  }
  0xb7   :  { %s13441_s29 = smov [#allocation16]   ;;  %s13442_s1 = smov [#allocation19]  }
  0xb8   :  { %s244_s20 = sshll.u32 %s13441_s29, 4  ;;  %s276_s2 = sshll.u32 %s13442_s1, 4  ;;  %s245_s20 = int_to_ptr.vmem [resolvable:$true] %s244_s20  ;;  %s277_s2 = int_to_ptr.vmem [resolvable:$true] %s276_s2 }
  0xb9   :  { %s13315_s12 = scalar_lea.vmem %s245_s20, 1024  ;;  %p13320_p4 = scmp.lt.s32.totalorder %s245_s20, %s245_s20 }
  0xba   :  { %p13316_p3 = scmp.ne.s32.totalorder %s245_s20, %s13315_s12  ;;  %p13321_p5 = scmp.lt.s32.totalorder %s13315_s12, %s13315_s12 }
  0xbc   :  { %p13322_p6 = por %p13321_p5, %p13320_p4 }
  0xbe   :  { %p13323_p7 = pnand %p13322_p6, %p13316_p3 }
  0xc0   :  { %13326 = shalt.err (!%p13323_p7)
}
  0xc1   :  { %250 = dma.hbm_to_vmem [thread:$0]  %s13601_s24, 1024, %s245_s20, [#allocation15], %s13433_s26, %s13433_s26, %s13438_s19  }
  0xc2   :  { %s13335_s27 = scalar_lea.vmem %s277_s2, 16384  ;;  %p13340_p9 = scmp.lt.s32.totalorder %s277_s2, %s277_s2 }
  0xc3   :  { %p13336_p8 = scmp.ne.s32.totalorder %s277_s2, %s13335_s27  ;;  %p13341_p10 = scmp.lt.s32.totalorder %s13335_s27, %s13335_s27 }
  0xc5   :  { %p13342_p11 = por %p13341_p10, %p13340_p9 }
  0xc7   :  { %p13343_p12 = pnand %p13342_p11, %p13336_p8 }
  0xc9   :  { %13346 = shalt.err (!%p13343_p12)
}
  0xca   :  { %282 = dma.hbm_to_vmem [thread:$0]  %s13631_s8, 16384, %s277_s2, [#allocation18], %s13433_s26, %s13433_s26, %s13438_s19  }
  0xcb   :  { %s13443_s6 = smov [#allocation20]  }
  0xcc   :  { %s294_s7 = sshll.u32 %s13443_s6, 4  ;;  %s295_s7 = int_to_ptr.vmem [resolvable:$true] %s294_s7 }
  0xcd   :  { %s13355_s10 = scalar_lea.vmem %s295_s7, 1024  ;;  %p13360_p0 = scmp.lt.s32.totalorder %s295_s7, %s295_s7 }
  0xce   :  { %p13356_p13 = scmp.ne.s32.totalorder %s295_s7, %s13355_s10  ;;  %p13361_p1 = scmp.lt.s32.totalorder %s13355_s10, %s13355_s10 }
  0xd0   :  { %p13362_p2 = por %p13361_p1, %p13360_p0 }
  0xd2   :  { %p13363_p3 = pnand %p13362_p2, %p13356_p13 }
  0xd4   :  { %13366 = shalt.err (!%p13363_p3)
}
  0xd5   :  { %300 = dma.hbm_to_vmem [thread:$0]  %s13651_s25, 1024, %s295_s7, [#allocation21], %s13433_s26, %s13433_s26, %s13438_s19  }
  0xd6   :  { %13367 = dma.done.wait [#allocation4], 256  }
  0xd7   :  { %13368 = vsyncadd [#allocation4], 4294967040 }
  0xd8   :  { %13369 = dma.done.wait [#allocation6], 512  }
  0xd9   :  { %13370 = vsyncadd [#allocation6], 4294966784 }
  0xda   :  { %13371 = dma.done.wait [#allocation9], 4096  }
  0xdb   :  { %13372 = vsyncadd [#allocation9], 4294963200 }
  0xdc   :  { %13373 = dma.done.wait [#allocation12], 32768  }
  0xdd   :  { %13374 = vsyncadd [#allocation12], 4294934528 }
  0xde   :  { %13375 = dma.done.wait [#allocation15], 4096  }
  0xdf   :  { %13376 = vsyncadd [#allocation15], 4294963200 }
  0xe0   :  { %13377 = dma.done.wait [#allocation18], 32768  }
  0xe1   :  { %13378 = vsyncadd [#allocation18], 4294934528 }
  0xe2   :  { %13379 = dma.done.wait [#allocation21], 1024  }
  0xe3   :  { %13380 = vsyncadd [#allocation21], 4294966272  ;;  %v13444_v1 = vmov 0.0   ;;  %vm13445_vm0 = vmmov 0   ;;  %v12618_v2 = vld [vmem:[%s13471_s13] sm:$0xff]   ;;  %v349_v4 = vld [vmem:[#allocation3 + $0x8] sm:$0xff] }
  0xe4   :  { %11966 = vmatprep.subr.bf16.mxu0 %v13444_v1  ;;  %11968 = vmatprep.mubr.msk.bf16.mxu0 %vm13445_vm0, %v13444_v1  ;;  %v348_v3 = vld [vmem:[#allocation3] sm:$0xff]  ;;  %vm366_vm1 = vcmask 130048   ;;  %vm411_vm2 = vcmask 261120   ;;  %v10747_v6 = vld [vmem:[%s13476_s17] ss:$0 sm:$0xff]  ;;  %s14820_s13 = sld [smem:[#allocation29_spill]] }
  0xe5   :  { %11972 = vmatprep.subr.bf16.mxu1 %v13444_v1  ;;  %11976 = vmatprep.mubr.msk.bf16.mxu1 %vm13445_vm0, %v13444_v1  ;;  %v350_v5 = vpack.c.bf16 %v349_v4, %v348_v3  ;;  %v12619_v25 = vld [vmem:[#allocation7 + $0x8] sm:$0xff]   ;;  %s14821_s17 = sld [smem:[#allocation30_spill]]  ;;  %v12620_v26 = vld [vmem:[#allocation7] sm:$0xff]   ;;  %vm529_vm3 = vcmask 523264   ;;  %vm1100_vm4 = vcmask 1043456   ;;  %vm1072_vm5 = vcmask 64512  }
  0xe6   :  { %11967 = vmatpush3.bf16.msra.mxu0 %v12618_v2  ;;  %11973 = vmatpush3.bf16.msra.mxu1 %v12619_v25  ;;  %s14822_s25 = sld [smem:[#allocation31_spill]]  ;;  %s13447_s14 = smov 112   ;;  %vm2796_vm6 = vcmask 392192   ;;  %vm2801_vm7 = vcmask 654336   ;;  %vm2804_vm8 = vcmask 785408   ;;  %vm2807_vm9 = vcmask 916480  }
  0xe7   :  { %11980 = vmatprep.subr.bf16.mxu0 %v13444_v1  ;;  %11974 = vmatprep.subr.bf16.mxu1 %v13444_v1  ;;  %s14823_s8 = sld [smem:[#allocation34_spill]]  ;;  %s13448_s19 = smov 96   ;;  %vm10548_vm10 = vcmask 1041409   ;;  %vm10640_vm11 = vcmask 517120   ;;  %vm10690_vm12 = vcmask 1024  }
  0xe8   :  { %s14824_s24 = sld [smem:[#allocation32_spill]]  ;;  %s13449_s15 = smov 80  }
  0xe9   :  { %11969 = vmatmul.mubr.msk.bf16.vlgmr.msra.gmra.mxu0 %vm366_vm1, %v350_v5  ;;  %s14825_s30 = sld [smem:[#allocation33_spill]]  ;;  %s13450_s16 = smov 48  }
  0xea   :  { %11988 = vmatprep.mubr.msk.bf16.mxu0 %vm13445_vm0, %v13444_v1  ;;  %11975 = vmatpush3.bf16.msra.mxu1 %v12620_v26  ;;  %v10750_v34 = vld [vmem:[%s14820_s13] ss:$0 sm:$0xff]  ;;  %s14826_s11 = sld [smem:[#allocation35_spill]]  ;;  %s13451_s9 = smov 32  }
  0xeb   :  { %v10751_v36 = vld [vmem:[%s14821_s17] ss:$0 sm:$0xff]  ;;  %s14827_s18 = sld [smem:[#allocation36_spill]]  ;;  %s13452_s28 = smov 16  }
  0xec   :  { %v10752_v48 = vld [vmem:[%s14822_s25] ss:$0 sm:$0xff]  ;;  %s14828_s23 = sld [smem:[#allocation37_spill]] }
  0xed   :  { %v12621_v4 = vld [vmem:[%s14823_s8 + $0x18] sm:$0xff]   ;;  %v12622_v5 = vld [vmem:[%s14823_s8 + $0x10] sm:$0xff]   ;;  %s14829_s22 = sld [smem:[#allocation38_spill]] }
  0xee   :  { %11981 = vmatpush3.bf16.msra.mxu0 %v12621_v4  ;;  %v12653_v4 = vld [vmem:[#allocation8] ss:$12 sps:$4 sm:$0xff]   ;;  %s14830_s5 = sld [smem:[#allocation39_spill]] }
  0xef   :  { %11982 = vmatprep.subr.bf16.mxu0 %v13444_v1  ;;  %s14831_s0 = sld [smem:[#allocation40_spill]] }
  0xf0   :  { %s14832_s29 = sld [smem:[#allocation41_spill]] }
  0xf1   :  { %s14833_s20 = sld [smem:[#allocation42_spill]] }
  0xf2   :  { %11983 = vmatpush3.bf16.msra.mxu0 %v12622_v5  ;;  %v12656_v5 = vld [vmem:[#allocation8 + $0x8] ss:$12 sps:$4 sm:$0xff]   ;;  %s14834_s1 = sld [smem:[#allocation43_spill]] }
  0xf3   :  { %11984 = vmatprep.subr.bf16.mxu0 %v13444_v1  ;;  %s14835_s2 = sld [smem:[#allocation44_spill]] }
  0xf4   :  { %s14836_s12 = sld [smem:[#allocation45_spill]] }
  0xf5   :  { %s14837_s27 = sld [smem:[#allocation46_spill]] }
  0xf6   :  { %s14839_s6 = sld [smem:[#allocation48_spill]] }
  0xf7   :  { %s14840_s7 = sld [smem:[#allocation49_spill]] }
  0xf8   :  { %s14841_s10 = sld [smem:[#allocation50_spill]] }
  0xf9   :  { %s14842_s13 = sld [smem:[#allocation51_spill]] }
  0xfa   :  { %s14843_s17 = sld [smem:[#allocation52_spill]] }
  0xfb   :  { %s14844_s25 = sld [smem:[#allocation53_spill]] }
 0x1a9   :  { %v404_v7 = vpop.f32.mrf.mxu0 }
 0x1aa   :  { %v405_v8 = vadd.f32 %v10747_v6, %v404_v7  ;;  %v12624_v7 = vld [vmem:[%s14823_s8] sm:$0xff]  }
 0x1ab   :  { %v11970_v9 = vpop.f32.mrf.mxu0 }
 0x1ac   :  { %v412_v10 = vsel %vm411_vm2, %v405_v8, 0.0 }
 0x1ad   :  { %413 = vadd.xlane.f32.xlu0 %v412_v10  ;;  %v407_v11 = vpop.f32.mrf.mxu0 }
 0x1ae   :  { %v408_v12 = vadd.f32 %v10747_v6, %v407_v11  ;;  %v12623_v6 = vld [vmem:[%s14823_s8 + $0x8] sm:$0xff]   ;;  %s14845_s8 = sld [smem:[#allocation54_spill]] }
 0x1af   :  { %v11971_v13 = vpop.f32.mrf.mxu0  ;;  %11985 = vmatpush3.bf16.msra.mxu0 %v12623_v6 }
 0x1b0   :  { %v415_v14 = vsel %vm411_vm2, %v408_v12, 0.0  ;;  %11986 = vmatprep.subr.bf16.mxu0 %v13444_v1 }
 0x1b1   :  { %416 = vadd.xlane.f32.xlu0 %v415_v14 }
 0x1b3   :  { %11987 = vmatpush3.bf16.msra.mxu0 %v12624_v7 }
 0x1b4   :  { %11992 = vmatprep.subr.bf16.mxu0 %v13444_v1 }
 0x236   :  { %v414_v15 = vpop.xlane.xlu0 %413 }
 0x237   :  { %v419_v16 = vmul.f32 0.03125, %v414_v15  ;;  %v10756_v15 = vld [vmem:[%s14824_s24] ss:$0 sm:$0xff]  ;;  %s14846_s24 = sld [smem:[#allocation55_spill]] }
 0x239   :  { %v421_v17 = vsub.f32 %v405_v8, %v419_v16 }
 0x23a   :  { %v417_v18 = vpop.xlane.xlu0 %416 }
 0x23b   :  { %v420_v19 = vmul.f32 0.03125, %v417_v18  ;;  %v423_v20 = vmul.f32 %v421_v17, %v421_v17 }
 0x23d   :  { %v422_v21 = vsub.f32 %v408_v12, %v420_v19  ;;  %v425_v22 = vsel %vm411_vm2, %v423_v20, 0.0 }
 0x23e   :  { %426 = vadd.xlane.f32.xlu1 %v425_v22 }
 0x23f   :  { %v424_v23 = vmul.f32 %v422_v21, %v422_v21 }
 0x241   :  { %v428_v24 = vsel %vm411_vm2, %v424_v23, 0.0 }
 0x242   :  { %429 = vadd.xlane.f32.xlu1 %v428_v24 }
 0x2c7   :  { %v427_v27 = vpop.xlane.xlu1 %426 }
 0x2c8   :  { %v431_v28 = vmul.f32 0.03125, %v427_v27 }
 0x2ca   :  { %v433_v29 = vadd.f32 1e-05, %v431_v28 }
 0x2cb   :  { %v430_v30 = vpop.xlane.xlu1 %429 }
 0x2cc   :  { %12969 = vrsqrt.f32 %v433_v29  ;;  %v432_v31 = vmul.f32 0.03125, %v430_v30  ;;  %v10758_v29 = vld [vmem:[%s14826_s11] ss:$0 sm:$0xff] }
 0x2ce   :  { %v434_v32 = vadd.f32 1e-05, %v432_v31 }
 0x2d0   :  { %12971 = vrsqrt.f32 %v434_v32 }
 0x2d9   :  { %v12970_v33 = vpop.eup %12969 }
 0x2da   :  { %v437_v35 = vmul.f32 %v12970_v33, %v421_v17  ;;  %v10757_v17 = vld [vmem:[%s14825_s30] ss:$0 sm:$0xff] }
 0x2dc   :  { %v446_v37 = vmul.f32 %v10750_v34, %v437_v35 }
 0x2dd   :  { %v12972_v38 = vpop.eup %12971 }
 0x2de   :  { %v438_v39 = vmul.f32 %v12972_v38, %v422_v21  ;;  %v455_v40 = vadd.f32 %v10751_v36, %v446_v37 }
 0x2e0   :  { %v447_v41 = vmul.f32 %v10750_v34, %v438_v39  ;;  %v457_v43 = vmul.f32 0.01, %v455_v40 }
 0x2e2   :  { %v456_v42 = vadd.f32 %v10751_v36, %v447_v41  ;;  %v459_v45 = vmax.f32 %v455_v40, %v457_v43 }
 0x2e4   :  { %v458_v44 = vmul.f32 0.01, %v456_v42 }
 0x2e6   :  { %v460_v46 = vmax.f32 %v456_v42, %v458_v44  ;;  %v12627_v44 = vld [vmem:[#allocation8 + $0xac] ss:$12 sps:$4 sm:$0xff]  }
 0x2e7   :  { %890 = vmatprep.subr.bf16.mxu1 %v12627_v44 }
 0x2e8   :  { %v461_v47 = vpack.c.bf16 %v460_v46, %v459_v45  ;;  %v12625_v45 = vld [vmem:[#allocation8 + $0xa8] ss:$12 sps:$4 sm:$0xff]   ;;  %v12628_v46 = vld [vmem:[#allocation8 + $0xb0] ss:$12 sps:$4 sm:$0xff]  }
 0x2ea   :  { %11977 = vmatmul.mubr.msk.bf16.vlgmr.msra.gmra.mxu1 %vm411_vm2, %v461_v47  ;;  %v12631_v47 = vld [vmem:[#allocation8 + $0x94] ss:$12 sps:$4 sm:$0xff]  }
 0x2eb   :  { %891 = vmatpush1.bf16.msra.mxu1 %v12625_v45 }
 0x2ec   :  { %892 = vmatprep.subr.bf16.mxu1 %v12631_v47 }
 0x3aa   :  { %v522_v49 = vpop.f32.mrf.mxu1 }
 0x3ab   :  { %v523_v50 = vadd.f32 %v10752_v48, %v522_v49  ;;  %v12632_v49 = vld [vmem:[#allocation8 + $0x98] ss:$12 sps:$4 sm:$0xff]  }
 0x3ac   :  { %v11978_v51 = vpop.f32.mrf.mxu1 }
 0x3ad   :  { %v530_v52 = vsel %vm529_vm3, %v523_v50, 0.0  ;;  %v12633_v51 = vld [vmem:[#allocation8 + $0x78] ss:$12 sps:$4 sm:$0xff]  }
 0x3ae   :  { %531 = vadd.xlane.f32.xlu0 %v530_v52  ;;  %v525_v53 = vpop.f32.mrf.mxu1  ;;  %v12636_v52 = vld [vmem:[#allocation8 + $0x80] ss:$12 sps:$4 sm:$0xff]  }
 0x3af   :  { %v526_v54 = vadd.f32 %v10752_v48, %v525_v53  ;;  %v12629_v48 = vld [vmem:[#allocation8 + $0x90] ss:$12 sps:$4 sm:$0xff]  }
 0x3b0   :  { %v11979_v55 = vpop.f32.mrf.mxu1  ;;  %893 = vmatpush1.bf16.msra.mxu1 %v12629_v48  ;;  %v12639_v53 = vld [vmem:[#allocation8 + $0x64] ss:$12 sps:$4 sm:$0xff]  }
 0x3b1   :  { %v533_v56 = vsel %vm529_vm3, %v526_v54, 0.0  ;;  %v12640_v55 = vld [vmem:[#allocation8 + $0x68] ss:$12 sps:$4 sm:$0xff]  }
 0x3b2   :  { %534 = vadd.xlane.f32.xlu1 %v533_v56  ;;  %v12643_v56 = vld [vmem:[#allocation8 + $0x4c] ss:$12 sps:$4 sm:$0xff]  }
 0x437   :  { %v532_v57 = vpop.xlane.xlu0 %531 }
 0x438   :  { %v537_v58 = vmul.f32 0.015625, %v532_v57  ;;  %v12641_v57 = vld [vmem:[#allocation8 + $0x48] ss:$12 sps:$4 sm:$0xff]  }
 0x43a   :  { %v539_v59 = vsub.f32 %v523_v50, %v537_v58  ;;  %v12635_v50 = vld [vmem:[#allocation8 + $0x7c] ss:$12 sps:$4 sm:$0xff]  }
 0x43b   :  { %v535_v60 = vpop.xlane.xlu1 %534  ;;  %894 = vmatprep.subr.bf16.mxu1 %v12635_v50  ;;  %v12644_v58 = vld [vmem:[#allocation8 + $0x50] ss:$12 sps:$4 sm:$0xff]  }
 0x43c   :  { %v538_v61 = vmul.f32 0.015625, %v535_v60  ;;  %v541_v62 = vmul.f32 %v539_v59, %v539_v59  ;;  %895 = vmatpush1.bf16.msra.mxu1 %v12633_v51  ;;  %v12647_v60 = vld [vmem:[#allocation8 + $0x34] ss:$12 sps:$4 sm:$0xff]  }
 0x43d   :  { %896 = vmatprep.subr.bf16.mxu1 %v12639_v53 }
 0x43e   :  { %v540_v63 = vsub.f32 %v526_v54, %v538_v61  ;;  %v543_v0 = vsel %vm529_vm3, %v541_v62, 0.0  ;;  %v12637_v54 = vld [vmem:[#allocation8 + $0x60] ss:$12 sps:$4 sm:$0xff]   ;;  %v12648_v61 = vld [vmem:[#allocation8 + $0x38] ss:$12 sps:$4 sm:$0xff]  }
 0x43f   :  { %544 = vadd.xlane.f32.xlu0 %v543_v0  ;;  %v12651_v62 = vld [vmem:[#allocation8 + $0x1c] ss:$12 sps:$4 sm:$0xff]   ;;  %v12652_v0 = vld [vmem:[#allocation8 + $0x20] ss:$12 sps:$4 sm:$0xff]  }
 0x440   :  { %v542_v2 = vmul.f32 %v540_v63, %v540_v63  ;;  %897 = vmatpush1.bf16.msra.mxu1 %v12637_v54 }
 0x441   :  { %898 = vmatprep.subr.bf16.mxu1 %v12643_v56 }
 0x442   :  { %v546_v3 = vsel %vm529_vm3, %v542_v2, 0.0  ;;  %v12655_v2 = vld [vmem:[#allocation8 + $0x4] ss:$12 sps:$4 sm:$0xff]  }
 0x443   :  { %547 = vadd.xlane.f32.xlu1 %v546_v3  ;;  %v13446_v3 = vmov 0  }
 0x444   :  { %899 = vmatpush1.bf16.msra.mxu1 %v12641_v57  ;;  %922 = vmatprep.mubr.bf16.mxu1 %v13446_v3 }
 0x445   :  { %900 = vmatprep.subr.bf16.mxu1 %v12647_v60 }
 0x4c8   :  { %v545_v8 = vpop.xlane.xlu0 %544 }
 0x4c9   :  { %v549_v9 = vmul.f32 0.015625, %v545_v8 }
 0x4cb   :  { %v551_v10 = vadd.f32 1e-05, %v549_v9 }
 0x4cc   :  { %v548_v11 = vpop.xlane.xlu1 %547 }
 0x4cd   :  { %12973 = vrsqrt.f32 %v551_v10  ;;  %v550_v12 = vmul.f32 0.015625, %v548_v11 }
 0x4cf   :  { %v552_v13 = vadd.f32 1e-05, %v550_v12 }
 0x4d1   :  { %12975 = vrsqrt.f32 %v552_v13  ;;  %v10764_v13 = vld [vmem:[%s14827_s18] ss:$0 sm:$0xff] }
 0x4da   :  { %v12974_v14 = vpop.eup %12973 }
 0x4db   :  { %v555_v16 = vmul.f32 %v12974_v14, %v539_v59  ;;  %v12645_v59 = vld [vmem:[#allocation8 + $0x30] ss:$12 sps:$4 sm:$0xff]  }
 0x4dc   :  { %901 = vmatpush1.bf16.msra.mxu1 %v12645_v59 }
 0x4dd   :  { %v564_v18 = vmul.f32 %v10756_v15, %v555_v16  ;;  %902 = vmatprep.subr.bf16.mxu1 %v12651_v62 }
 0x4de   :  { %v12976_v19 = vpop.eup %12975 }
 0x4df   :  { %v556_v20 = vmul.f32 %v12976_v19, %v540_v63  ;;  %v573_v21 = vadd.f32 %v10757_v17, %v564_v18  ;;  %v12649_v63 = vld [vmem:[#allocation8 + $0x18] ss:$12 sps:$4 sm:$0xff]  }
 0x4e0   :  { %903 = vmatpush1.bf16.msra.mxu1 %v12649_v63 }
 0x4e1   :  { %v565_v22 = vmul.f32 %v10756_v15, %v556_v20  ;;  %v575_v24 = vmul.f32 0.01, %v573_v21  ;;  %904 = vmatprep.subr.bf16.mxu1 %v12655_v2  ;;  %v10765_v15 = vld [vmem:[%s14828_s23] ss:$0 sm:$0xff] }
 0x4e3   :  { %v574_v23 = vadd.f32 %v10757_v17, %v565_v22  ;;  %v577_v26 = vmax.f32 %v573_v21, %v575_v24 }
 0x4e4   :  { %905 = vmatpush1.bf16.msra.mxu1 %v12653_v4 }
 0x4e5   :  { %v576_v25 = vmul.f32 0.01, %v574_v23  ;;  %12012 = vmatprep.subr.bf16.mxu1 %v13444_v1 }
 0x4e7   :  { %v578_v27 = vmax.f32 %v574_v23, %v576_v25  ;;  %v708_v25 = vld [vmem:[#allocation5] sm:$0xff] }
 0x4e9   :  { %v579_v28 = vpack.c.bf16 %v578_v27, %v577_v26  ;;  %v709_v26 = vld [vmem:[#allocation5 + $0x8] sm:$0xff] }
 0x4eb   :  { %11989 = vmatmul.mubr.msk.bf16.vlgmr.msra.gmra.mxu0 %vm529_vm3, %v579_v28 }
 0x4ec   :  { %12008 = vmatprep.mubr.msk.bf16.mxu0 %vm13445_vm0, %v13444_v1  ;;  %11993 = vmatpush3.bf16.msra.mxu0 %v12628_v46 }
 0x4ed   :  { %11994 = vmatprep.subr.bf16.mxu0 %v13444_v1 }
 0x4f0   :  { %11995 = vmatpush3.bf16.msra.mxu0 %v12632_v49 }
 0x4f1   :  { %11996 = vmatprep.subr.bf16.mxu0 %v13444_v1 }
 0x4f4   :  { %11997 = vmatpush3.bf16.msra.mxu0 %v12636_v52 }
 0x4f5   :  { %11998 = vmatprep.subr.bf16.mxu0 %v13444_v1 }
 0x4f8   :  { %11999 = vmatpush3.bf16.msra.mxu0 %v12640_v55 }
 0x4f9   :  { %12000 = vmatprep.subr.bf16.mxu0 %v13444_v1 }
 0x4fc   :  { %12001 = vmatpush3.bf16.msra.mxu0 %v12644_v58 }
 0x4fd   :  { %12002 = vmatprep.subr.bf16.mxu0 %v13444_v1 }
 0x500   :  { %12003 = vmatpush3.bf16.msra.mxu0 %v12648_v61 }
 0x501   :  { %12004 = vmatprep.subr.bf16.mxu0 %v13444_v1 }
 0x504   :  { %12005 = vmatpush3.bf16.msra.mxu0 %v12652_v0 }
 0x505   :  { %12006 = vmatprep.subr.bf16.mxu0 %v13444_v1 }
 0x508   :  { %12007 = vmatpush3.bf16.msra.mxu0 %v12656_v5 }
 0x509   :  { %12024 = vmatprep.subr.bf16.mxu0 %v13444_v1 }
 0x5ab   :  { %v656_v30 = vpop.f32.mrf.mxu0 }
 0x5ac   :  { %v657_v31 = vadd.f32 %v10758_v29, %v656_v30 }
 0x5ad   :  { %v11990_v32 = vpop.f32.mrf.mxu0 }
 0x5ae   :  { %663 = vadd.xlane.f32.xlu0 %v657_v31 }
 0x5af   :  { %v659_v33 = vpop.f32.mrf.mxu0 }
 0x5b0   :  { %v660_v34 = vadd.f32 %v10758_v29, %v659_v33 }
 0x5b1   :  { %v11991_v35 = vpop.f32.mrf.mxu0 }
 0x5b2   :  { %665 = vadd.xlane.f32.xlu1 %v660_v34 }
 0x637   :  { %v664_v36 = vpop.xlane.xlu0 %663 }
 0x638   :  { %v668_v37 = vmul.f32 0.0078125, %v664_v36 }
 0x63a   :  { %v13764_v38 = vsub.f32 %v657_v31, %v668_v37  ;;  %v747_v31 = vlaneseq }
 0x63b   :  { %v666_v39 = vpop.xlane.xlu1 %665 }
 0x63c   :  { %v669_v40 = vmul.f32 0.0078125, %v666_v39  ;;  %v672_v41 = vmul.f32 %v13764_v38, %v13764_v38  ;;  %v13796_v32 = vshrl.u32 %v747_v31, 7 }
 0x63e   :  { %674 = vadd.xlane.f32.xlu0 %v672_v41  ;;  %v13768_v42 = vsub.f32 %v660_v34, %v669_v40  ;;  %v13799_v33 = vsub.s32 2, %v13796_v32  ;;  %v745_v34 = vld [vmem:[%s14829_s22] sm:$0x7]  ;;  %v13803_v35 = vsub.s32 1, %v13796_v32  ;;  %v13808_v40 = vsub.s32 0, %v13796_v32 }
 0x640   :  { %v673_v43 = vmul.f32 %v13768_v42, %v13768_v42  ;;  %v758_v36 = vrot.slane %v745_v34, %v13799_v33  ;;  %v754_v37 = vrot.slane %v745_v34, %v13803_v35  ;;  %v750_v48 = vrot.slane %v745_v34, %v13808_v40 }
 0x642   :  { %676 = vadd.xlane.f32.xlu1 %v673_v43 }
 0x6c7   :  { %v675_v6 = vpop.xlane.xlu0 %674 }
 0x6c8   :  { %v678_v7 = vmul.f32 0.0078125, %v675_v6 }
 0x6ca   :  { %v680_v8 = vadd.f32 1e-05, %v678_v7 }
 0x6cb   :  { %v677_v9 = vpop.xlane.xlu1 %676 }
 0x6cc   :  { %12977 = vrsqrt.f32 %v680_v8  ;;  %v679_v10 = vmul.f32 0.0078125, %v677_v9 }
 0x6ce   :  { %v681_v11 = vadd.f32 1e-05, %v679_v10 }
 0x6d0   :  { %12979 = vrsqrt.f32 %v681_v11 }
 0x6d9   :  { %v12978_v12 = vpop.eup %12977 }
 0x6da   :  { %v684_v14 = vmul.f32 %v12978_v12, %v13764_v38 }
 0x6dc   :  { %v693_v16 = vmul.f32 %v10764_v13, %v684_v14 }
 0x6dd   :  { %v12980_v17 = vpop.eup %12979 }
 0x6de   :  { %v685_v18 = vmul.f32 %v12980_v17, %v13768_v42  ;;  %v702_v19 = vadd.f32 %v10765_v15, %v693_v16 }
 0x6e0   :  { %v694_v20 = vmul.f32 %v10764_v13, %v685_v18  ;;  %v704_v21 = vmul.f32 0.01, %v702_v19 }
 0x6e2   :  { %v703_v22 = vadd.f32 %v10765_v15, %v694_v20  ;;  %v706_v24 = vmax.f32 %v702_v19, %v704_v21 }
 0x6e4   :  { %v705_v23 = vmul.f32 0.01, %v703_v22  ;;  %v13786_v28 = vadd.f32 %v708_v25, %v706_v24 }
 0x6e6   :  { %v707_v27 = vmax.f32 %v703_v22, %v705_v23 }
 0x6e8   :  { %v13788_v29 = vadd.f32 %v709_v26, %v707_v27 }
 0x6ea   :  { %v712_v30 = vpack.c.bf16 %v13788_v29, %v13786_v28 }
 0x6ec   :  { %923 = vmatmul.mubr.bf16.vlgmr.msra.gmra.mxu1 %v712_v30  ;;  %12009 = vmatmul.mubr.bf16.vlgmr.msra.gmra.mxu0 %v712_v30 }
 0x6ed   :  { %12014 = vmatprep.mubr.msk.bf16.mxu1 %vm13445_vm0, %v13444_v1  ;;  %12026 = vmatprep.mubr.msk.bf16.mxu0 %vm13445_vm0, %v13444_v1 }
 0x7ac   :  { %v924_v38 = vpop.f32.mrf.mxu1  ;;  %v967_v39 = vpop.f32.mrf.mxu0 }
 0x7ad   :  { %v968_v41 = vadd.f32 %v967_v39, %v758_v36  ;;  %v925_v55 = vadd.f32 %v924_v38, %v750_v48 }
 0x7ae   :  { %v926_v42 = vpop.f32.mrf.mxu1  ;;  %v12010_v43 = vpop.f32.mrf.mxu0 }
 0x7af   :  { %v13810_v44 = vpack.c.bf16 %v968_v41, %v968_v41  ;;  %v927_v45 = vadd.f32 %v926_v42, %v754_v37  ;;  %v13823_v57 = vpack.c.bf16 %v925_v55, %v925_v55 }
 0x7b0   :  { %v928_v46 = vpop.f32.mrf.mxu1  ;;  %v970_v47 = vpop.f32.mrf.mxu0 }
 0x7b1   :  { %v13813_v49 = vpack.c.bf16 %v927_v45, %v927_v45  ;;  %v1102_v50 = vsel %vm1100_vm4, %v13810_v44, 0  ;;  %v971_v58 = vadd.f32 %v970_v47, %v758_v36  ;;  %v929_v60 = vadd.f32 %v928_v46, %v750_v48 }
 0x7b2   :  { %v930_v51 = vpop.f32.mrf.mxu1  ;;  %v12011_v52 = vpop.f32.mrf.mxu0  ;;  %12025 = vmatpush3.bf16.msra.mxu0 %v1102_v50 }
 0x7b3   :  { %v931_v53 = vadd.f32 %v930_v51, %v754_v37  ;;  %v984_v54 = vsel %vm366_vm1, %v13813_v49, 0  ;;  %12036 = vmatprep.subr.bf16.mxu0 %v13444_v1  ;;  %v13832_v61 = vpack.c.bf16 %v971_v58, %v971_v58  ;;  %v13834_v62 = vpack.c.bf16 %v929_v60, %v929_v60 }
 0x7b4   :  { %12013 = vmatpush3.bf16.xpose.msra.mxu1 %v984_v54 }
 0x7b5   :  { %12018 = vmatprep.subr.bf16.mxu1 %v13444_v1  ;;  %v13821_v56 = vpack.c.bf16 %v931_v53, %v931_v53  ;;  %v1148_v63 = vsel %vm1100_vm4, %v13832_v61, 0 }
 0x7b7   :  { %v1030_v59 = vsel %vm366_vm1, %v13821_v56, 0 }
 0x7bb   :  { %12015 = vmatmul.mubr.msk.bf16.vlgmr.msra.gmra.mxu1 %vm366_vm1, %v13823_v57 }
 0x7bc   :  { %12019 = vmatpush3.bf16.xpose.msra.mxu1 %v1030_v59  ;;  %12020 = vmatprep.mubr.msk.bf16.mxu1 %vm13445_vm0, %v13444_v1 }
 0x7bd   :  { %12030 = vmatprep.subr.bf16.mxu1 %v13444_v1 }
 0x7c3   :  { %12021 = vmatmul.mubr.msk.bf16.vlgmr.msra.gmra.mxu1 %vm366_vm1, %v13834_v62 }
 0x7c4   :  { %12031 = vmatpush3.bf16.msra.mxu1 %v1148_v63  ;;  %12032 = vmatprep.mubr.msk.bf16.mxu1 %vm13445_vm0, %v13444_v1 }
 0x7c5   :  { %12042 = vmatprep.subr.bf16.mxu1 %v13444_v1 }
 0x87b   :  { %v1020_v0 = vpop.f32.mrf.mxu1 }
 0x87c   :  { %v1073_v2 = vsel %vm1072_vm5, %v1020_v0, -inf }
 0x87d   :  { %1074 = vmax.xlane.f32.xlu0 %v1073_v2  ;;  %v12016_v4 = vpop.f32.mrf.mxu1 }
 0x87f   :  { %v1023_v5 = vpop.f32.mrf.mxu1 }
 0x881   :  { %v12017_v6 = vpop.f32.mrf.mxu1 }
 0x883   :  { %v1066_v7 = vpop.f32.mrf.mxu1 }
 0x884   :  { %v1076_v8 = vsel %vm1072_vm5, %v1066_v7, -inf }
 0x885   :  { %1077 = vmax.xlane.f32.xlu1 %v1076_v8  ;;  %v12022_v9 = vpop.f32.mrf.mxu1 }
 0x887   :  { %v1069_v10 = vpop.f32.mrf.mxu1 }
 0x889   :  { %v12023_v11 = vpop.f32.mrf.mxu1 }
 0x896   :  { %1246 = vrot.lane.b32.xlu1 %v13821_v56, %s13447_s14 }
 0x906   :  { %v1075_v12 = vpop.xlane.xlu0 %1074 }
 0x907   :  { %v1079_v13 = vsub.f32 %v1020_v0, %v1075_v12 }
 0x909   :  { %v1081_v14 = vmul.f32 1.442695, %v1079_v13 }
 0x90b   :  { %12981 = vpow2.f32 %v1081_v14 }
 0x90e   :  { %v1078_v15 = vpop.xlane.xlu1 %1077 }
 0x90f   :  { %v1080_v16 = vsub.f32 %v1066_v7, %v1078_v15 }
 0x911   :  { %v1083_v17 = vmul.f32 1.442695, %v1080_v16 }
 0x912   :  { %v1247_v23 = vpop.permute.xlu1 %1246 }
 0x913   :  { %12983 = vpow2.f32 %v1083_v17  ;;  %v1252_v39 = vsel %vm366_vm1, %v1247_v23, 0 }
 0x918   :  { %v12982_v18 = vpop.eup %12981 }
 0x919   :  { %v1085_v19 = vsel %vm1072_vm5, %v12982_v18, 0.0 }
 0x91a   :  { %1086 = vadd.xlane.f32.xlu0 %v1085_v19 }
 0x920   :  { %v12984_v20 = vpop.eup %12983 }
 0x921   :  { %v1088_v21 = vsel %vm1072_vm5, %v12984_v20, 0.0 }
 0x922   :  { %1089 = vadd.xlane.f32.xlu1 %v1088_v21 }
 0x930   :  { %1194 = vrot.lane.b32.xlu0 %v13813_v49, %s13447_s14 }
 0x933   :  { %1191 = vrot.lane.b32.xlu1 %v13823_v57, %s13447_s14 }
 0x937   :  { %1243 = vrot.lane.b32.xlu1 %v13834_v62, %s13447_s14 }
 0x9a3   :  { %v1087_v22 = vpop.xlane.xlu0 %1086 }
 0x9a4   :  { %12985 = vrcp.f32 %v1087_v22 }
 0x9a7   :  { %v1195_v27 = vpop.permute.xlu0 %1194 }
 0x9a8   :  { %v1200_v31 = vsel %vm366_vm1, %v1195_v27, 0 }
 0x9ab   :  { %v1090_v24 = vpop.xlane.xlu1 %1089 }
 0x9ac   :  { %12987 = vrcp.f32 %v1090_v24 }
 0x9af   :  { %v1192_v38 = vpop.permute.xlu1 %1191 }
 0x9b1   :  { %v12986_v25 = vpop.eup %12985 }
 0x9b2   :  { %v1093_v26 = vmul.f32 %v12986_v25, %v12982_v18 }
 0x9b3   :  { %v1244_v41 = vpop.permute.xlu1 %1243 }
 0x9b4   :  { %v1095_v30 = vpack.c.bf16 %v1093_v26, %v1093_v26 }
 0x9b6   :  { %12027 = vmatmul.mubr.msk.bf16.vlgmr.msra.gmra.mxu0 %vm1072_vm5, %v1095_v30 }
 0x9b7   :  { %12037 = vmatpush3.bf16.xpose.msra.mxu0 %v1200_v31  ;;  %12038 = vmatprep.mubr.msk.bf16.mxu0 %vm13445_vm0, %v13444_v1 }
 0x9b8   :  { %12048 = vmatprep.subr.bf16.mxu0 %v13444_v1 }
 0x9b9   :  { %v12988_v34 = vpop.eup %12987 }
 0x9ba   :  { %v1094_v36 = vmul.f32 %v12988_v34, %v12984_v20 }
 0x9bc   :  { %v1096_v37 = vpack.c.bf16 %v1094_v36, %v1094_v36 }
 0x9be   :  { %12033 = vmatmul.mubr.msk.bf16.vlgmr.msra.gmra.mxu1 %vm1072_vm5, %v1096_v37  ;;  %12039 = vmatmul.mubr.msk.bf16.vlgmr.msra.gmra.mxu0 %vm366_vm1, %v1192_v38 }
 0x9bf   :  { %12043 = vmatpush3.bf16.xpose.msra.mxu1 %v1252_v39  ;;  %12044 = vmatprep.mubr.msk.bf16.mxu1 %vm13445_vm0, %v13444_v1 }
 0x9c0   :  { %12054 = vmatprep.subr.bf16.mxu1 %v13444_v1  ;;  %12050 = vmatprep.mubr.msk.bf16.mxu0 %vm13445_vm0, %v13444_v1 }
 0x9c6   :  { %12045 = vmatmul.mubr.msk.bf16.vlgmr.msra.gmra.mxu1 %vm366_vm1, %v1244_v41 }
 0x9c7   :  { %12056 = vmatprep.mubr.msk.bf16.mxu1 %vm13445_vm0, %v13444_v1 }
 0xa76   :  { %v13871_v42 = vpop.f32.mrf.mxu0 }
 0xa78   :  { %v12028_v43 = vpop.f32.mrf.mxu0 }
 0xa7a   :  { %v1141_v45 = vpop.f32.mrf.mxu0 }
 0xa7c   :  { %v12029_v46 = vpop.f32.mrf.mxu0 }
 0xa7e   :  { %v13873_v47 = vpop.f32.mrf.mxu1  ;;  %v1236_v48 = vpop.f32.mrf.mxu0 }
 0xa7f   :  { %v1294_v50 = vsel %vm1072_vm5, %v1236_v48, -inf }
 0xa80   :  { %v12034_v51 = vpop.f32.mrf.mxu1  ;;  %1295 = vmax.xlane.f32.xlu0 %v1294_v50  ;;  %v12040_v52 = vpop.f32.mrf.mxu0 }
 0xa82   :  { %v1187_v53 = vpop.f32.mrf.mxu1  ;;  %v1239_v54 = vpop.f32.mrf.mxu0 }
 0xa84   :  { %v12035_v55 = vpop.f32.mrf.mxu1  ;;  %v12041_v58 = vpop.f32.mrf.mxu0 }
 0xa86   :  { %v1288_v59 = vpop.f32.mrf.mxu1 }
 0xa87   :  { %v1297_v60 = vsel %vm1072_vm5, %v1288_v59, -inf }
 0xa88   :  { %1298 = vmax.xlane.f32.xlu1 %v1297_v60  ;;  %v12046_v63 = vpop.f32.mrf.mxu1 }
 0xa8a   :  { %v1291_v0 = vpop.f32.mrf.mxu1 }
 0xa8c   :  { %v12047_v2 = vpop.f32.mrf.mxu1 }
 0xa99   :  { %1368 = vrot.lane.b32.xlu1 %v13832_v61, %s13447_s14 }
 0xa9d   :  { %1418 = vrot.lane.b32.xlu1 %v13813_v49, %s13448_s19 }
 0xaa1   :  { %1468 = vrot.lane.b32.xlu1 %v13821_v56, %s13448_s19 }
 0xaa5   :  { %1466 = vrot.lane.b32.xlu1 %v13834_v62, %s13448_s19 }
 0xb09   :  { %v1296_v4 = vpop.xlane.xlu0 %1295 }
 0xb0a   :  { %v1300_v5 = vsub.f32 %v1236_v48, %v1296_v4 }
 0xb0c   :  { %v1302_v6 = vmul.f32 1.442695, %v1300_v5 }
 0xb0e   :  { %12989 = vpow2.f32 %v1302_v6 }
 0xb11   :  { %v1299_v7 = vpop.xlane.xlu1 %1298 }
 0xb12   :  { %v1301_v8 = vsub.f32 %v1288_v59, %v1299_v7 }
 0xb14   :  { %v1304_v9 = vmul.f32 1.442695, %v1301_v8 }
 0xb15   :  { %v1369_v10 = vpop.permute.xlu1 %1368 }
 0xb16   :  { %12991 = vpow2.f32 %v1304_v9  ;;  %v1374_v11 = vsel %vm1100_vm4, %v1369_v10, 0 }
 0xb17   :  { %12055 = vmatpush3.bf16.msra.mxu1 %v1374_v11 }
 0xb18   :  { %12066 = vmatprep.subr.bf16.mxu1 %v13444_v1 }
 0xb19   :  { %v1419_v22 = vpop.permute.xlu1 %1418 }
 0xb1a   :  { %v1424_v24 = vsel %vm366_vm1, %v1419_v22, 0 }
 0xb1b   :  { %v12990_v12 = vpop.eup %12989 }
 0xb1c   :  { %v1306_v13 = vsel %vm1072_vm5, %v12990_v12, 0.0 }
 0xb1d   :  { %1307 = vadd.xlane.f32.xlu0 %v1306_v13  ;;  %v1469_v27 = vpop.permute.xlu1 %1468 }
 0xb1e   :  { %v1474_v34 = vsel %vm366_vm1, %v1469_v27, 0 }
 0xb21   :  { %v1467_v36 = vpop.permute.xlu1 %1466 }
 0xb23   :  { %v12992_v14 = vpop.eup %12991 }
 0xb24   :  { %v1309_v15 = vsel %vm1072_vm5, %v12992_v14, 0.0 }
 0xb25   :  { %1310 = vadd.xlane.f32.xlu0 %v1309_v15 }
 0xb3b   :  { %1319 = vrot.lane.b32.xlu0 %v13810_v44, %s13447_s14 }
 0xb3f   :  { %1416 = vrot.lane.b32.xlu0 %v13823_v57, %s13448_s19 }
 0xba6   :  { %v1308_v16 = vpop.xlane.xlu0 %1307 }
 0xba7   :  { %12993 = vrcp.f32 %v1308_v16 }
 0xbae   :  { %v1311_v17 = vpop.xlane.xlu0 %1310 }
 0xbaf   :  { %12995 = vrcp.f32 %v1311_v17 }
 0xbb2   :  { %v1320_v18 = vpop.permute.xlu0 %1319 }
 0xbb3   :  { %v1325_v19 = vsel %vm1100_vm4, %v1320_v18, 0 }
 0xbb4   :  { %v12994_v20 = vpop.eup %12993  ;;  %12049 = vmatpush3.bf16.msra.mxu0 %v1325_v19 }
 0xbb5   :  { %12060 = vmatprep.subr.bf16.mxu0 %v13444_v1  ;;  %v1314_v21 = vmul.f32 %v12994_v20, %v12990_v12 }
 0xbb6   :  { %v1417_v31 = vpop.permute.xlu0 %1416 }
 0xbb7   :  { %v1316_v23 = vpack.c.bf16 %v1314_v21, %v1314_v21 }
 0xbb9   :  { %12051 = vmatmul.mubr.msk.bf16.vlgmr.msra.gmra.mxu0 %vm1072_vm5, %v1316_v23 }
 0xbba   :  { %12061 = vmatpush3.bf16.xpose.msra.mxu0 %v1424_v24  ;;  %12062 = vmatprep.mubr.msk.bf16.mxu0 %vm13445_vm0, %v13444_v1 }
 0xbbb   :  { %12072 = vmatprep.subr.bf16.mxu0 %v13444_v1 }
 0xbbc   :  { %v12996_v25 = vpop.eup %12995 }
 0xbbd   :  { %v1315_v26 = vmul.f32 %v12996_v25, %v12992_v14 }
 0xbbf   :  { %v1317_v30 = vpack.c.bf16 %v1315_v26, %v1315_v26 }
 0xbc1   :  { %12057 = vmatmul.mubr.msk.bf16.vlgmr.msra.gmra.mxu1 %vm1072_vm5, %v1317_v30  ;;  %12063 = vmatmul.mubr.msk.bf16.vlgmr.msra.gmra.mxu0 %vm366_vm1, %v1417_v31 }
 0xbc2   :  { %12067 = vmatpush3.bf16.xpose.msra.mxu1 %v1474_v34  ;;  %12068 = vmatprep.mubr.msk.bf16.mxu1 %vm13445_vm0, %v13444_v1 }
 0xbc3   :  { %12078 = vmatprep.subr.bf16.mxu1 %v13444_v1  ;;  %12074 = vmatprep.mubr.msk.bf16.mxu0 %vm13445_vm0, %v13444_v1 }
 0xbc9   :  { %12069 = vmatmul.mubr.msk.bf16.vlgmr.msra.gmra.mxu1 %vm366_vm1, %v1467_v36 }
 0xbca   :  { %12080 = vmatprep.mubr.msk.bf16.mxu1 %vm13445_vm0, %v13444_v1 }
 0xc79   :  { %v13911_v37 = vpop.f32.mrf.mxu0 }
 0xc7b   :  { %v12052_v38 = vpop.f32.mrf.mxu0 }
 0xc7d   :  { %v1364_v39 = vpop.f32.mrf.mxu0 }
 0xc7f   :  { %v12053_v41 = vpop.f32.mrf.mxu0 }
 0xc81   :  { %v13913_v43 = vpop.f32.mrf.mxu1  ;;  %v1460_v45 = vpop.f32.mrf.mxu0 }
 0xc82   :  { %v12548_v46 = vpack.i.bf16 %v13913_v43, %v13911_v37  ;;  %v1516_v48 = vsel %vm1072_vm5, %v1460_v45, -inf }
 0xc83   :  { %v12058_v50 = vpop.f32.mrf.mxu1  ;;  %1517 = vmax.xlane.f32.xlu0 %v1516_v48  ;;  %v12064_v51 = vpop.f32.mrf.mxu0 }
 0xc85   :  { %v1413_v52 = vpop.f32.mrf.mxu1  ;;  %v1463_v53 = vpop.f32.mrf.mxu0 }
 0xc87   :  { %v12059_v54 = vpop.f32.mrf.mxu1  ;;  %v12065_v55 = vpop.f32.mrf.mxu0 }
 0xc89   :  { %v1510_v58 = vpop.f32.mrf.mxu1 }
 0xc8a   :  { %v1519_v59 = vsel %vm1072_vm5, %v1510_v58, -inf }
 0xc8b   :  { %1520 = vmax.xlane.f32.xlu1 %v1519_v59  ;;  %v12070_v60 = vpop.f32.mrf.mxu1 }
 0xc8d   :  { %v1513_v63 = vpop.f32.mrf.mxu1 }
 0xc8f   :  { %v12071_v0 = vpop.f32.mrf.mxu1 }
 0xc9c   :  { %1588 = vrot.lane.b32.xlu1 %v13832_v61, %s13448_s19 }
 0xca0   :  { %1638 = vrot.lane.b32.xlu1 %v13813_v49, %s13449_s15 }
 0xca4   :  { %1688 = vrot.lane.b32.xlu1 %v13821_v56, %s13449_s15 }
 0xca8   :  { %1686 = vrot.lane.b32.xlu1 %v13834_v62, %s13449_s15 }
 0xd0c   :  { %v1518_v2 = vpop.xlane.xlu0 %1517 }
 0xd0d   :  { %v1522_v4 = vsub.f32 %v1460_v45, %v1518_v2 }
 0xd0f   :  { %v1524_v5 = vmul.f32 1.442695, %v1522_v4 }
 0xd11   :  { %12997 = vpow2.f32 %v1524_v5 }
 0xd14   :  { %v1521_v6 = vpop.xlane.xlu1 %1520 }
 0xd15   :  { %v1523_v7 = vsub.f32 %v1510_v58, %v1521_v6 }
 0xd17   :  { %v1526_v8 = vmul.f32 1.442695, %v1523_v7 }
 0xd18   :  { %v1589_v9 = vpop.permute.xlu1 %1588 }
 0xd19   :  { %12999 = vpow2.f32 %v1526_v8  ;;  %v1594_v10 = vsel %vm1100_vm4, %v1589_v9, 0 }
 0xd1a   :  { %12079 = vmatpush3.bf16.msra.mxu1 %v1594_v10 }
 0xd1b   :  { %12090 = vmatprep.subr.bf16.mxu1 %v13444_v1 }
 0xd1c   :  { %v1639_v21 = vpop.permute.xlu1 %1638 }
 0xd1d   :  { %v1644_v23 = vsel %vm366_vm1, %v1639_v21, 0 }
 0xd1e   :  { %v12998_v11 = vpop.eup %12997 }
 0xd1f   :  { %v1528_v12 = vsel %vm1072_vm5, %v12998_v11, 0.0 }
 0xd20   :  { %1529 = vadd.xlane.f32.xlu0 %v1528_v12  ;;  %v1689_v26 = vpop.permute.xlu1 %1688 }
 0xd21   :  { %v1694_v31 = vsel %vm366_vm1, %v1689_v26, 0 }
 0xd24   :  { %v1687_v34 = vpop.permute.xlu1 %1686 }
 0xd26   :  { %v13000_v13 = vpop.eup %12999 }
 0xd27   :  { %v1531_v14 = vsel %vm1072_vm5, %v13000_v13, 0.0 }
 0xd28   :  { %1532 = vadd.xlane.f32.xlu0 %v1531_v14 }
 0xd3e   :  { %1540 = vrot.lane.b32.xlu0 %v13810_v44, %s13448_s19 }
 0xd42   :  { %1636 = vrot.lane.b32.xlu0 %v13823_v57, %s13449_s15 }
 0xda9   :  { %v1530_v15 = vpop.xlane.xlu0 %1529 }
 0xdaa   :  { %13001 = vrcp.f32 %v1530_v15 }
 0xdb1   :  { %v1533_v16 = vpop.xlane.xlu0 %1532 }
 0xdb2   :  { %13003 = vrcp.f32 %v1533_v16 }
 0xdb5   :  { %v1541_v17 = vpop.permute.xlu0 %1540 }
 0xdb6   :  { %v1546_v18 = vsel %vm1100_vm4, %v1541_v17, 0 }
 0xdb7   :  { %v13002_v19 = vpop.eup %13001  ;;  %12073 = vmatpush3.bf16.msra.mxu0 %v1546_v18 }
 0xdb8   :  { %12084 = vmatprep.subr.bf16.mxu0 %v13444_v1  ;;  %v1536_v20 = vmul.f32 %v13002_v19, %v12998_v11 }
 0xdb9   :  { %v1637_v30 = vpop.permute.xlu0 %1636 }
 0xdba   :  { %v1538_v22 = vpack.c.bf16 %v1536_v20, %v1536_v20 }
 0xdbc   :  { %12075 = vmatmul.mubr.msk.bf16.vlgmr.msra.gmra.mxu0 %vm1072_vm5, %v1538_v22 }
 0xdbd   :  { %12085 = vmatpush3.bf16.xpose.msra.mxu0 %v1644_v23  ;;  %12086 = vmatprep.mubr.msk.bf16.mxu0 %vm13445_vm0, %v13444_v1 }
 0xdbe   :  { %12096 = vmatprep.subr.bf16.mxu0 %v13444_v1 }
 0xdbf   :  { %v13004_v24 = vpop.eup %13003 }
 0xdc0   :  { %v1537_v25 = vmul.f32 %v13004_v24, %v13000_v13 }
 0xdc2   :  { %v1539_v27 = vpack.c.bf16 %v1537_v25, %v1537_v25 }
 0xdc4   :  { %12081 = vmatmul.mubr.msk.bf16.vlgmr.msra.gmra.mxu1 %vm1072_vm5, %v1539_v27  ;;  %12087 = vmatmul.mubr.msk.bf16.vlgmr.msra.gmra.mxu0 %vm366_vm1, %v1637_v30 }
 0xdc5   :  { %12091 = vmatpush3.bf16.xpose.msra.mxu1 %v1694_v31  ;;  %12092 = vmatprep.mubr.msk.bf16.mxu1 %vm13445_vm0, %v13444_v1 }
 0xdc6   :  { %12102 = vmatprep.subr.bf16.mxu1 %v13444_v1  ;;  %12098 = vmatprep.mubr.msk.bf16.mxu0 %vm13445_vm0, %v13444_v1 }
 0xdcc   :  { %12093 = vmatmul.mubr.msk.bf16.vlgmr.msra.gmra.mxu1 %vm366_vm1, %v1687_v34 }
 0xdcd   :  { %12104 = vmatprep.mubr.msk.bf16.mxu1 %vm13445_vm0, %v13444_v1 }
 0xe7c   :  { %v13953_v36 = vpop.f32.mrf.mxu0 }
 0xe7e   :  { %v12076_v38 = vpop.f32.mrf.mxu0 }
 0xe80   :  { %v1585_v39 = vpop.f32.mrf.mxu0 }
 0xe82   :  { %v12077_v41 = vpop.f32.mrf.mxu0 }
 0xe84   :  { %v13955_v45 = vpop.f32.mrf.mxu1  ;;  %v1680_v48 = vpop.f32.mrf.mxu0 }
 0xe85   :  { %v12553_v50 = vpack.i.bf16 %v13955_v45, %v13953_v36  ;;  %v1736_v51 = vsel %vm1072_vm5, %v1680_v48, -inf }
 0xe86   :  { %v12082_v52 = vpop.f32.mrf.mxu1  ;;  %1737 = vmax.xlane.f32.xlu0 %v1736_v51  ;;  %v12088_v53 = vpop.f32.mrf.mxu0 }
 0xe88   :  { %v1633_v54 = vpop.f32.mrf.mxu1  ;;  %v1683_v55 = vpop.f32.mrf.mxu0 }
 0xe8a   :  { %v12083_v58 = vpop.f32.mrf.mxu1  ;;  %v12089_v59 = vpop.f32.mrf.mxu0 }
 0xe8c   :  { %v1730_v60 = vpop.f32.mrf.mxu1 }
 0xe8d   :  { %v1739_v63 = vsel %vm1072_vm5, %v1730_v60, -inf }
 0xe8e   :  { %1740 = vmax.xlane.f32.xlu1 %v1739_v63  ;;  %v12094_v0 = vpop.f32.mrf.mxu1 }
 0xe90   :  { %v1733_v2 = vpop.f32.mrf.mxu1 }
 0xe92   :  { %v12095_v4 = vpop.f32.mrf.mxu1 }
 0xe9f   :  { %1808 = vrot.lane.b32.xlu1 %v13832_v61, %s13449_s15 }
 0xea3   :  { %1858 = vrot.lane.b32.xlu1 %v13813_v49, %s13433_s26 }
 0xea7   :  { %1908 = vrot.lane.b32.xlu1 %v13821_v56, %s13433_s26 }
 0xeab   :  { %1906 = vrot.lane.b32.xlu1 %v13834_v62, %s13433_s26 }
 0xf0f   :  { %v1738_v5 = vpop.xlane.xlu0 %1737 }
 0xf10   :  { %v1742_v6 = vsub.f32 %v1680_v48, %v1738_v5 }
 0xf12   :  { %v1744_v7 = vmul.f32 1.442695, %v1742_v6 }
 0xf14   :  { %13005 = vpow2.f32 %v1744_v7 }
 0xf17   :  { %v1741_v8 = vpop.xlane.xlu1 %1740 }
 0xf18   :  { %v1743_v9 = vsub.f32 %v1730_v60, %v1741_v8 }
 0xf1a   :  { %v1746_v10 = vmul.f32 1.442695, %v1743_v9 }
 0xf1b   :  { %v1809_v11 = vpop.permute.xlu1 %1808 }
 0xf1c   :  { %13007 = vpow2.f32 %v1746_v10  ;;  %v1814_v12 = vsel %vm1100_vm4, %v1809_v11, 0 }
 0xf1d   :  { %12103 = vmatpush3.bf16.msra.mxu1 %v1814_v12 }
 0xf1e   :  { %12114 = vmatprep.subr.bf16.mxu1 %v13444_v1 }
 0xf1f   :  { %v1859_v23 = vpop.permute.xlu1 %1858 }
 0xf20   :  { %v1864_v25 = vsel %vm366_vm1, %v1859_v23, 0 }
 0xf21   :  { %v13006_v13 = vpop.eup %13005 }
 0xf22   :  { %v1748_v14 = vsel %vm1072_vm5, %v13006_v13, 0.0 }
 0xf23   :  { %1749 = vadd.xlane.f32.xlu0 %v1748_v14  ;;  %v1909_v30 = vpop.permute.xlu1 %1908 }
 0xf24   :  { %v1914_v38 = vsel %vm366_vm1, %v1909_v30, 0 }
 0xf27   :  { %v1907_v39 = vpop.permute.xlu1 %1906 }
 0xf29   :  { %v13008_v15 = vpop.eup %13007 }
 0xf2a   :  { %v1751_v16 = vsel %vm1072_vm5, %v13008_v15, 0.0 }
 0xf2b   :  { %1752 = vadd.xlane.f32.xlu0 %v1751_v16 }
 0xf41   :  { %1760 = vrot.lane.b32.xlu0 %v13810_v44, %s13449_s15 }
 0xf45   :  { %1856 = vrot.lane.b32.xlu0 %v13823_v57, %s13433_s26 }
 0xfac   :  { %v1750_v17 = vpop.xlane.xlu0 %1749 }
 0xfad   :  { %13009 = vrcp.f32 %v1750_v17 }
 0xfb4   :  { %v1753_v18 = vpop.xlane.xlu0 %1752 }
 0xfb5   :  { %13011 = vrcp.f32 %v1753_v18 }
 0xfb8   :  { %v1761_v19 = vpop.permute.xlu0 %1760 }
 0xfb9   :  { %v1766_v20 = vsel %vm1100_vm4, %v1761_v19, 0 }
 0xfba   :  { %v13010_v21 = vpop.eup %13009  ;;  %12097 = vmatpush3.bf16.msra.mxu0 %v1766_v20 }
 0xfbb   :  { %12108 = vmatprep.subr.bf16.mxu0 %v13444_v1  ;;  %v1756_v22 = vmul.f32 %v13010_v21, %v13006_v13 }
 0xfbc   :  { %v1857_v34 = vpop.permute.xlu0 %1856 }
 0xfbd   :  { %v1758_v24 = vpack.c.bf16 %v1756_v22, %v1756_v22 }
 0xfbf   :  { %12099 = vmatmul.mubr.msk.bf16.vlgmr.msra.gmra.mxu0 %vm1072_vm5, %v1758_v24 }
 0xfc0   :  { %12109 = vmatpush3.bf16.xpose.msra.mxu0 %v1864_v25  ;;  %12110 = vmatprep.mubr.msk.bf16.mxu0 %vm13445_vm0, %v13444_v1 }
 0xfc1   :  { %12120 = vmatprep.subr.bf16.mxu0 %v13444_v1 }
 0xfc2   :  { %v13012_v26 = vpop.eup %13011 }
 0xfc3   :  { %v1757_v27 = vmul.f32 %v13012_v26, %v13008_v15 }
 0xfc5   :  { %v1759_v31 = vpack.c.bf16 %v1757_v27, %v1757_v27 }
 0xfc7   :  { %12105 = vmatmul.mubr.msk.bf16.vlgmr.msra.gmra.mxu1 %vm1072_vm5, %v1759_v31  ;;  %12111 = vmatmul.mubr.msk.bf16.vlgmr.msra.gmra.mxu0 %vm366_vm1, %v1857_v34 }
 0xfc8   :  { %12115 = vmatpush3.bf16.xpose.msra.mxu1 %v1914_v38  ;;  %12116 = vmatprep.mubr.msk.bf16.mxu1 %vm13445_vm0, %v13444_v1 }
 0xfc9   :  { %12126 = vmatprep.subr.bf16.mxu1 %v13444_v1  ;;  %12122 = vmatprep.mubr.msk.bf16.mxu0 %vm13445_vm0, %v13444_v1 }
 0xfcf   :  { %12117 = vmatmul.mubr.msk.bf16.vlgmr.msra.gmra.mxu1 %vm366_vm1, %v1907_v39 }
 0xfd0   :  { %12128 = vmatprep.mubr.msk.bf16.mxu1 %vm13445_vm0, %v13444_v1 }
0x107f   :  { %v13995_v41 = vpop.f32.mrf.mxu0 }
0x1081   :  { %v12100_v48 = vpop.f32.mrf.mxu0 }
0x1083   :  { %v1805_v51 = vpop.f32.mrf.mxu0 }
0x1085   :  { %v12101_v52 = vpop.f32.mrf.mxu0 }
0x1087   :  { %v13997_v53 = vpop.f32.mrf.mxu1  ;;  %v1900_v54 = vpop.f32.mrf.mxu0 }
0x1088   :  { %v12558_v55 = vpack.i.bf16 %v13997_v53, %v13995_v41  ;;  %v1956_v58 = vsel %vm1072_vm5, %v1900_v54, -inf }
0x1089   :  { %v12106_v59 = vpop.f32.mrf.mxu1  ;;  %1957 = vmax.xlane.f32.xlu0 %v1956_v58  ;;  %v12112_v60 = vpop.f32.mrf.mxu0 }
0x108b   :  { %v1853_v63 = vpop.f32.mrf.mxu1  ;;  %v1903_v0 = vpop.f32.mrf.mxu0 }
0x108d   :  { %v12107_v2 = vpop.f32.mrf.mxu1  ;;  %v12113_v4 = vpop.f32.mrf.mxu0 }
0x108f   :  { %v1950_v5 = vpop.f32.mrf.mxu1 }
0x1090   :  { %v1959_v6 = vsel %vm1072_vm5, %v1950_v5, -inf }
0x1091   :  { %1960 = vmax.xlane.f32.xlu1 %v1959_v6  ;;  %v12118_v7 = vpop.f32.mrf.mxu1 }
0x1093   :  { %v1953_v8 = vpop.f32.mrf.mxu1 }
0x1095   :  { %v12119_v9 = vpop.f32.mrf.mxu1 }
0x10a2   :  { %2028 = vrot.lane.b32.xlu1 %v13832_v61, %s13433_s26 }
0x10a6   :  { %2078 = vrot.lane.b32.xlu1 %v13813_v49, %s13450_s16 }
0x10aa   :  { %2128 = vrot.lane.b32.xlu1 %v13821_v56, %s13450_s16 }
0x10ae   :  { %2126 = vrot.lane.b32.xlu1 %v13834_v62, %s13450_s16 }
0x1112   :  { %v1958_v10 = vpop.xlane.xlu0 %1957 }
0x1113   :  { %v1962_v11 = vsub.f32 %v1900_v54, %v1958_v10 }
0x1115   :  { %v1964_v12 = vmul.f32 1.442695, %v1962_v11 }
0x1117   :  { %13013 = vpow2.f32 %v1964_v12 }
0x111a   :  { %v1961_v13 = vpop.xlane.xlu1 %1960 }
0x111b   :  { %v1963_v14 = vsub.f32 %v1950_v5, %v1961_v13 }
0x111d   :  { %v1966_v15 = vmul.f32 1.442695, %v1963_v14 }
0x111e   :  { %v2029_v16 = vpop.permute.xlu1 %2028 }
0x111f   :  { %13015 = vpow2.f32 %v1966_v15  ;;  %v2034_v17 = vsel %vm1100_vm4, %v2029_v16, 0 }
0x1120   :  { %12127 = vmatpush3.bf16.msra.mxu1 %v2034_v17 }
0x1121   :  { %12138 = vmatprep.subr.bf16.mxu1 %v13444_v1 }
0x1122   :  { %v2079_v30 = vpop.permute.xlu1 %2078 }
0x1123   :  { %v2084_v34 = vsel %vm366_vm1, %v2079_v30, 0 }
0x1124   :  { %v13014_v18 = vpop.eup %13013 }
0x1125   :  { %v1968_v19 = vsel %vm1072_vm5, %v13014_v18, 0.0 }
0x1126   :  { %1969 = vadd.xlane.f32.xlu0 %v1968_v19  ;;  %v2129_v48 = vpop.permute.xlu1 %2128 }
0x1127   :  { %v2134_v54 = vsel %vm366_vm1, %v2129_v48, 0 }
0x112a   :  { %v2127_v58 = vpop.permute.xlu1 %2126 }
0x112c   :  { %v13016_v20 = vpop.eup %13015 }
0x112d   :  { %v1971_v21 = vsel %vm1072_vm5, %v13016_v20, 0.0 }
0x112e   :  { %1972 = vadd.xlane.f32.xlu0 %v1971_v21 }
0x1144   :  { %1980 = vrot.lane.b32.xlu0 %v13810_v44, %s13433_s26 }
0x1148   :  { %2076 = vrot.lane.b32.xlu0 %v13823_v57, %s13450_s16 }
0x11af   :  { %v1970_v22 = vpop.xlane.xlu0 %1969 }
0x11b0   :  { %13017 = vrcp.f32 %v1970_v22 }
0x11b7   :  { %v1973_v23 = vpop.xlane.xlu0 %1972 }
0x11b8   :  { %13019 = vrcp.f32 %v1973_v23 }
0x11bb   :  { %v1981_v24 = vpop.permute.xlu0 %1980 }
0x11bc   :  { %v1986_v25 = vsel %vm1100_vm4, %v1981_v24, 0 }
0x11bd   :  { %v13018_v26 = vpop.eup %13017  ;;  %12121 = vmatpush3.bf16.msra.mxu0 %v1986_v25 }
0x11be   :  { %12132 = vmatprep.subr.bf16.mxu0 %v13444_v1  ;;  %v1976_v27 = vmul.f32 %v13018_v26, %v13014_v18 }
0x11bf   :  { %v2077_v52 = vpop.permute.xlu0 %2076 }
0x11c0   :  { %v1978_v31 = vpack.c.bf16 %v1976_v27, %v1976_v27 }
0x11c2   :  { %12123 = vmatmul.mubr.msk.bf16.vlgmr.msra.gmra.mxu0 %vm1072_vm5, %v1978_v31 }
0x11c3   :  { %12133 = vmatpush3.bf16.xpose.msra.mxu0 %v2084_v34  ;;  %12134 = vmatprep.mubr.msk.bf16.mxu0 %vm13445_vm0, %v13444_v1 }
0x11c4   :  { %12144 = vmatprep.subr.bf16.mxu0 %v13444_v1 }
0x11c5   :  { %v13020_v38 = vpop.eup %13019 }
0x11c6   :  { %v1977_v39 = vmul.f32 %v13020_v38, %v13016_v20 }
0x11c8   :  { %v1979_v51 = vpack.c.bf16 %v1977_v39, %v1977_v39 }
0x11ca   :  { %12129 = vmatmul.mubr.msk.bf16.vlgmr.msra.gmra.mxu1 %vm1072_vm5, %v1979_v51  ;;  %12135 = vmatmul.mubr.msk.bf16.vlgmr.msra.gmra.mxu0 %vm366_vm1, %v2077_v52 }
0x11cb   :  { %12139 = vmatpush3.bf16.xpose.msra.mxu1 %v2134_v54  ;;  %12140 = vmatprep.mubr.msk.bf16.mxu1 %vm13445_vm0, %v13444_v1 }
0x11cc   :  { %12150 = vmatprep.subr.bf16.mxu1 %v13444_v1  ;;  %12146 = vmatprep.mubr.msk.bf16.mxu0 %vm13445_vm0, %v13444_v1 }
0x11d2   :  { %12141 = vmatmul.mubr.msk.bf16.vlgmr.msra.gmra.mxu1 %vm366_vm1, %v2127_v58 }
0x11d3   :  { %12152 = vmatprep.mubr.msk.bf16.mxu1 %vm13445_vm0, %v13444_v1 }
0x1282   :  { %v14037_v59 = vpop.f32.mrf.mxu0 }
0x1284   :  { %v12124_v60 = vpop.f32.mrf.mxu0 }
0x1286   :  { %v2025_v63 = vpop.f32.mrf.mxu0 }
0x1288   :  { %v12125_v0 = vpop.f32.mrf.mxu0 }
0x128a   :  { %v14039_v2 = vpop.f32.mrf.mxu1  ;;  %v2120_v4 = vpop.f32.mrf.mxu0 }
0x128b   :  { %v12563_v5 = vpack.i.bf16 %v14039_v2, %v14037_v59  ;;  %v2176_v6 = vsel %vm1072_vm5, %v2120_v4, -inf }
0x128c   :  { %v12130_v7 = vpop.f32.mrf.mxu1  ;;  %2177 = vmax.xlane.f32.xlu0 %v2176_v6  ;;  %v12136_v8 = vpop.f32.mrf.mxu0 }
0x128e   :  { %v2073_v9 = vpop.f32.mrf.mxu1  ;;  %v2123_v10 = vpop.f32.mrf.mxu0 }
0x1290   :  { %v12131_v11 = vpop.f32.mrf.mxu1  ;;  %v12137_v12 = vpop.f32.mrf.mxu0 }
0x1292   :  { %v2170_v13 = vpop.f32.mrf.mxu1 }
0x1293   :  { %v2179_v14 = vsel %vm1072_vm5, %v2170_v13, -inf }
0x1294   :  { %2180 = vmax.xlane.f32.xlu1 %v2179_v14  ;;  %v12142_v15 = vpop.f32.mrf.mxu1 }
0x1296   :  { %v2173_v16 = vpop.f32.mrf.mxu1 }
0x1298   :  { %v12143_v17 = vpop.f32.mrf.mxu1 }
0x12a5   :  { %2248 = vrot.lane.b32.xlu1 %v13832_v61, %s13450_s16 }
0x12a9   :  { %2298 = vrot.lane.b32.xlu1 %v13813_v49, %s13451_s9 }
0x12ad   :  { %2348 = vrot.lane.b32.xlu1 %v13821_v56, %s13451_s9 }
0x12b1   :  { %2346 = vrot.lane.b32.xlu1 %v13834_v62, %s13451_s9 }
0x1315   :  { %v2178_v18 = vpop.xlane.xlu0 %2177 }
0x1316   :  { %v2182_v19 = vsub.f32 %v2120_v4, %v2178_v18 }
0x1318   :  { %v2184_v20 = vmul.f32 1.442695, %v2182_v19 }
0x131a   :  { %13021 = vpow2.f32 %v2184_v20 }
0x131d   :  { %v2181_v21 = vpop.xlane.xlu1 %2180 }
0x131e   :  { %v2183_v22 = vsub.f32 %v2170_v13, %v2181_v21 }
0x1320   :  { %v2186_v23 = vmul.f32 1.442695, %v2183_v22 }
0x1321   :  { %v2249_v24 = vpop.permute.xlu1 %2248 }
0x1322   :  { %13023 = vpow2.f32 %v2186_v23  ;;  %v2254_v25 = vsel %vm1100_vm4, %v2249_v24, 0 }
0x1323   :  { %12151 = vmatpush3.bf16.msra.mxu1 %v2254_v25 }
0x1324   :  { %12162 = vmatprep.subr.bf16.mxu1 %v13444_v1 }
0x1325   :  { %v2299_v54 = vpop.permute.xlu1 %2298 }
0x1326   :  { %v2304_v60 = vsel %vm366_vm1, %v2299_v54, 0 }
0x1327   :  { %v13022_v26 = vpop.eup %13021 }
0x1328   :  { %v2188_v27 = vsel %vm1072_vm5, %v13022_v26, 0.0 }
0x1329   :  { %2189 = vadd.xlane.f32.xlu0 %v2188_v27  ;;  %v2349_v4 = vpop.permute.xlu1 %2348 }
0x132a   :  { %v2354_v8 = vsel %vm366_vm1, %v2349_v4, 0 }
0x132d   :  { %v2347_v9 = vpop.permute.xlu1 %2346 }
0x132f   :  { %v13024_v30 = vpop.eup %13023 }
0x1330   :  { %v2191_v31 = vsel %vm1072_vm5, %v13024_v30, 0.0 }
0x1331   :  { %2192 = vadd.xlane.f32.xlu0 %v2191_v31 }
0x1347   :  { %2200 = vrot.lane.b32.xlu0 %v13810_v44, %s13450_s16 }
0x134b   :  { %2296 = vrot.lane.b32.xlu0 %v13823_v57, %s13451_s9 }
0x13b2   :  { %v2190_v34 = vpop.xlane.xlu0 %2189 }
0x13b3   :  { %13025 = vrcp.f32 %v2190_v34 }
0x13ba   :  { %v2193_v38 = vpop.xlane.xlu0 %2192 }
0x13bb   :  { %13027 = vrcp.f32 %v2193_v38 }
0x13be   :  { %v2201_v39 = vpop.permute.xlu0 %2200 }
0x13bf   :  { %v2206_v48 = vsel %vm1100_vm4, %v2201_v39, 0 }
0x13c0   :  { %v13026_v51 = vpop.eup %13025  ;;  %12145 = vmatpush3.bf16.msra.mxu0 %v2206_v48 }
0x13c1   :  { %12156 = vmatprep.subr.bf16.mxu0 %v13444_v1  ;;  %v2196_v52 = vmul.f32 %v13026_v51, %v13022_v26 }
0x13c2   :  { %v2297_v7 = vpop.permute.xlu0 %2296 }
0x13c3   :  { %v2198_v58 = vpack.c.bf16 %v2196_v52, %v2196_v52 }
0x13c5   :  { %12147 = vmatmul.mubr.msk.bf16.vlgmr.msra.gmra.mxu0 %vm1072_vm5, %v2198_v58 }
0x13c6   :  { %12157 = vmatpush3.bf16.xpose.msra.mxu0 %v2304_v60  ;;  %12158 = vmatprep.mubr.msk.bf16.mxu0 %vm13445_vm0, %v13444_v1 }
0x13c7   :  { %12168 = vmatprep.subr.bf16.mxu0 %v13444_v1 }
0x13c8   :  { %v13028_v63 = vpop.eup %13027 }
0x13c9   :  { %v2197_v0 = vmul.f32 %v13028_v63, %v13024_v30 }
0x13cb   :  { %v2199_v6 = vpack.c.bf16 %v2197_v0, %v2197_v0 }
0x13cd   :  { %12153 = vmatmul.mubr.msk.bf16.vlgmr.msra.gmra.mxu1 %vm1072_vm5, %v2199_v6  ;;  %12159 = vmatmul.mubr.msk.bf16.vlgmr.msra.gmra.mxu0 %vm366_vm1, %v2297_v7 }
0x13ce   :  { %12163 = vmatpush3.bf16.xpose.msra.mxu1 %v2354_v8  ;;  %12164 = vmatprep.mubr.msk.bf16.mxu1 %vm13445_vm0, %v13444_v1 }
0x13cf   :  { %12174 = vmatprep.subr.bf16.mxu1 %v13444_v1  ;;  %12170 = vmatprep.mubr.msk.bf16.mxu0 %vm13445_vm0, %v13444_v1 }
0x13d5   :  { %12165 = vmatmul.mubr.msk.bf16.vlgmr.msra.gmra.mxu1 %vm366_vm1, %v2347_v9 }
0x13d6   :  { %12176 = vmatprep.mubr.msk.bf16.mxu1 %vm13445_vm0, %v13444_v1 }
0x1485   :  { %v14079_v10 = vpop.f32.mrf.mxu0 }
0x1487   :  { %v12148_v11 = vpop.f32.mrf.mxu0 }
0x1489   :  { %v2245_v12 = vpop.f32.mrf.mxu0 }
0x148b   :  { %v12149_v13 = vpop.f32.mrf.mxu0 }
0x148d   :  { %v14081_v14 = vpop.f32.mrf.mxu1  ;;  %v2340_v15 = vpop.f32.mrf.mxu0 }
0x148e   :  { %v12568_v16 = vpack.i.bf16 %v14081_v14, %v14079_v10  ;;  %v2396_v17 = vsel %vm1072_vm5, %v2340_v15, -inf  ;;  %v12657_v10 = vld [vmem:[#allocation10 + $0x38] sm:$0xff]   ;;  %v12658_v14 = vld [vmem:[#allocation10 + $0x30] sm:$0xff]  }
0x148f   :  { %v12154_v18 = vpop.f32.mrf.mxu1  ;;  %2397 = vmax.xlane.f32.xlu0 %v2396_v17  ;;  %v12160_v19 = vpop.f32.mrf.mxu0 }
0x1491   :  { %v2293_v20 = vpop.f32.mrf.mxu1  ;;  %v2343_v21 = vpop.f32.mrf.mxu0 }
0x1493   :  { %v12155_v22 = vpop.f32.mrf.mxu1  ;;  %v12161_v23 = vpop.f32.mrf.mxu0 }
0x1495   :  { %v2390_v24 = vpop.f32.mrf.mxu1 }
0x1496   :  { %v2399_v25 = vsel %vm1072_vm5, %v2390_v24, -inf }
0x1497   :  { %2400 = vmax.xlane.f32.xlu1 %v2399_v25  ;;  %v12166_v26 = vpop.f32.mrf.mxu1 }
0x1499   :  { %v2393_v27 = vpop.f32.mrf.mxu1 }
0x149b   :  { %v12167_v30 = vpop.f32.mrf.mxu1 }
0x14a8   :  { %2468 = vrot.lane.b32.xlu1 %v13832_v61, %s13451_s9 }
0x14ac   :  { %2518 = vrot.lane.b32.xlu1 %v13813_v49, %s13452_s28 }
0x14b0   :  { %2568 = vrot.lane.b32.xlu1 %v13821_v56, %s13452_s28 }
0x14b4   :  { %2566 = vrot.lane.b32.xlu1 %v13834_v62, %s13452_s28 }
0x1518   :  { %v2398_v31 = vpop.xlane.xlu0 %2397 }
0x1519   :  { %v2402_v34 = vsub.f32 %v2340_v15, %v2398_v31 }
0x151b   :  { %v2404_v38 = vmul.f32 1.442695, %v2402_v34 }
0x151d   :  { %13029 = vpow2.f32 %v2404_v38 }
0x1520   :  { %v2401_v39 = vpop.xlane.xlu1 %2400 }
0x1521   :  { %v2403_v48 = vsub.f32 %v2390_v24, %v2401_v39 }
0x1523   :  { %v2406_v51 = vmul.f32 1.442695, %v2403_v48 }
0x1524   :  { %v2469_v52 = vpop.permute.xlu1 %2468 }
0x1525   :  { %13031 = vpow2.f32 %v2406_v51  ;;  %v2474_v54 = vsel %vm1100_vm4, %v2469_v52, 0 }
0x1526   :  { %12175 = vmatpush3.bf16.msra.mxu1 %v2474_v54 }
0x1527   :  { %12186 = vmatprep.subr.bf16.mxu1 %v13444_v1 }
0x1528   :  { %v2519_v8 = vpop.permute.xlu1 %2518 }
0x1529   :  { %v2524_v11 = vsel %vm366_vm1, %v2519_v8, 0  ;;  %v12660_v8 = vld [vmem:[#allocation10 + $0x20] sm:$0xff]  }
0x152a   :  { %v13030_v49 = vpop.eup %13029 }
0x152b   :  { %v2408_v56 = vsel %vm1072_vm5, %v13030_v49, 0.0 }
0x152c   :  { %2409 = vadd.xlane.f32.xlu0 %v2408_v56  ;;  %v2569_v13 = vpop.permute.xlu1 %2568 }
0x152d   :  { %v2574_v18 = vsel %vm366_vm1, %v2569_v13, 0 }
0x1530   :  { %v2567_v19 = vpop.permute.xlu1 %2566 }
0x1532   :  { %v13032_v58 = vpop.eup %13031 }
0x1533   :  { %v2411_v62 = vsel %vm1072_vm5, %v13032_v58, 0.0 }
0x1534   :  { %2412 = vadd.xlane.f32.xlu0 %v2411_v62 }
0x154a   :  { %2420 = vrot.lane.b32.xlu0 %v13810_v44, %s13451_s9 }
0x154e   :  { %2516 = vrot.lane.b32.xlu0 %v13823_v57, %s13452_s28 }
0x15b5   :  { %v2410_v60 = vpop.xlane.xlu0 %2409 }
0x15b6   :  { %13033 = vrcp.f32 %v2410_v60 }
0x15bd   :  { %v2413_v63 = vpop.xlane.xlu0 %2412 }
0x15be   :  { %13035 = vrcp.f32 %v2413_v63 }
0x15c1   :  { %v2421_v0 = vpop.permute.xlu0 %2420 }
0x15c2   :  { %v2426_v4 = vsel %vm1100_vm4, %v2421_v0, 0 }
0x15c3   :  { %v13034_v6 = vpop.eup %13033  ;;  %12169 = vmatpush3.bf16.msra.mxu0 %v2426_v4 }
0x15c4   :  { %12180 = vmatprep.subr.bf16.mxu0 %v13444_v1  ;;  %v2416_v7 = vmul.f32 %v13034_v6, %v13030_v49 }
0x15c5   :  { %v2517_v17 = vpop.permute.xlu0 %2516 }
0x15c6   :  { %v2418_v9 = vpack.c.bf16 %v2416_v7, %v2416_v7 }
0x15c8   :  { %12171 = vmatmul.mubr.msk.bf16.vlgmr.msra.gmra.mxu0 %vm1072_vm5, %v2418_v9  ;;  %v12661_v9 = vld [vmem:[#allocation10 + $0x18] sm:$0xff]  }
0x15c9   :  { %12181 = vmatpush3.bf16.xpose.msra.mxu0 %v2524_v11  ;;  %12182 = vmatprep.mubr.msk.bf16.mxu0 %vm13445_vm0, %v13444_v1  ;;  %v12662_v11 = vld [vmem:[#allocation10 + $0x10] sm:$0xff]  }
0x15ca   :  { %12192 = vmatprep.subr.bf16.mxu0 %v13444_v1 }
0x15cb   :  { %v13036_v57 = vpop.eup %13035 }
0x15cc   :  { %v2417_v12 = vmul.f32 %v13036_v57, %v13032_v58  ;;  %v12663_v57 = vld [vmem:[#allocation10 + $0x8] sm:$0xff]  }
0x15ce   :  { %v2419_v15 = vpack.c.bf16 %v2417_v12, %v2417_v12  ;;  %v12664_v12 = vld [vmem:[#allocation10] sm:$0xff]  }
0x15d0   :  { %12177 = vmatmul.mubr.msk.bf16.vlgmr.msra.gmra.mxu1 %vm1072_vm5, %v2419_v15  ;;  %12183 = vmatmul.mubr.msk.bf16.vlgmr.msra.gmra.mxu0 %vm366_vm1, %v2517_v17 }
0x15d1   :  { %12187 = vmatpush3.bf16.xpose.msra.mxu1 %v2574_v18  ;;  %12188 = vmatprep.mubr.msk.bf16.mxu1 %vm13445_vm0, %v13444_v1 }
0x15d2   :  { %12198 = vmatprep.subr.bf16.mxu1 %v13444_v1  ;;  %12194 = vmatprep.mubr.msk.bf16.mxu0 %vm13445_vm0, %v13444_v1 }
0x15d8   :  { %12189 = vmatmul.mubr.msk.bf16.vlgmr.msra.gmra.mxu1 %vm366_vm1, %v2567_v19 }
0x15d9   :  { %12200 = vmatprep.mubr.msk.bf16.mxu1 %vm13445_vm0, %v13444_v1 }
0x1688   :  { %v2462_v20 = vpop.f32.mrf.mxu0 }
0x168a   :  { %v12172_v21 = vpop.f32.mrf.mxu0 }
0x168c   :  { %v2465_v22 = vpop.f32.mrf.mxu0 }
0x168e   :  { %v12173_v23 = vpop.f32.mrf.mxu0 }
0x1690   :  { %v2510_v24 = vpop.f32.mrf.mxu1  ;;  %v2560_v25 = vpop.f32.mrf.mxu0 }
0x1691   :  { %v2616_v26 = vsel %vm1072_vm5, %v2560_v25, -inf  ;;  %v12573_v56 = vpack.i.bf16 %v2510_v24, %v2462_v20 }
0x1692   :  { %v12178_v27 = vpop.f32.mrf.mxu1  ;;  %2617 = vmax.xlane.f32.xlu0 %v2616_v26  ;;  %v12184_v30 = vpop.f32.mrf.mxu0 }
0x1694   :  { %v2513_v31 = vpop.f32.mrf.mxu1  ;;  %v2563_v34 = vpop.f32.mrf.mxu0 }
0x1696   :  { %v12179_v38 = vpop.f32.mrf.mxu1  ;;  %v12185_v39 = vpop.f32.mrf.mxu0 }
0x1698   :  { %v2610_v48 = vpop.f32.mrf.mxu1 }
0x1699   :  { %v2619_v51 = vsel %vm1072_vm5, %v2610_v48, -inf }
0x169a   :  { %2620 = vmax.xlane.f32.xlu1 %v2619_v51  ;;  %v12190_v52 = vpop.f32.mrf.mxu1 }
0x169c   :  { %v2613_v54 = vpop.f32.mrf.mxu1 }
0x169e   :  { %v12191_v49 = vpop.f32.mrf.mxu1 }
0x16ab   :  { %2688 = vrot.lane.b32.xlu1 %v13832_v61, %s13452_s28 }
0x16af   :  { %12549 = vrot.lane.b32.xlu1 %v12548_v46, %s13452_s28 }
0x16b3   :  { %12554 = vrot.lane.b32.xlu1 %v12553_v50, %s13451_s9 }
0x16b7   :  { %12564 = vrot.lane.b32.xlu1 %v12563_v5, %s13433_s26 }
0x16bb   :  { %12574 = vrot.lane.b32.xlu1 %v12573_v56, %s13448_s19 }
0x171b   :  { %v2618_v58 = vpop.xlane.xlu0 %2617 }
0x171c   :  { %v2622_v61 = vsub.f32 %v2560_v25, %v2618_v58 }
0x171e   :  { %v2624_v62 = vmul.f32 1.442695, %v2622_v61 }
0x1720   :  { %13037 = vpow2.f32 %v2624_v62 }
0x1723   :  { %v2621_v60 = vpop.xlane.xlu1 %2620 }
0x1724   :  { %v2623_v37 = vsub.f32 %v2610_v48, %v2621_v60 }
0x1726   :  { %v2626_v43 = vmul.f32 1.442695, %v2623_v37 }
0x1727   :  { %v2689_v46 = vpop.permute.xlu1 %2688 }
0x1728   :  { %13039 = vpow2.f32 %v2626_v43  ;;  %v2694_v36 = vsel %vm1100_vm4, %v2689_v46, 0 }
0x1729   :  { %12199 = vmatpush3.bf16.msra.mxu1 %v2694_v36 }
0x172b   :  { %v12550_v24 = vpop.permute.xlu1 %12549 }
0x172c   :  { %v12552_v27 = vunpack.i.h.bf16 %v12550_v24  ;;  %v12551_v30 = vunpack.i.l.bf16 %v12550_v24 }
0x172d   :  { %v13038_v45 = vpop.eup %13037 }
0x172e   :  { %v2628_v50 = vsel %vm1072_vm5, %v13038_v45, 0.0  ;;  %v2793_v52 = vsel %vm366_vm1, %v13873_v47, %v12552_v27  ;;  %v2792_v54 = vsel %vm366_vm1, %v13871_v42, %v12551_v30  ;;  %v3062_v27 = vld [vmem:[#allocation11 + $0x300] sm:$0xff] }
0x172f   :  { %2629 = vadd.xlane.f32.xlu0 %v2628_v50  ;;  %v12555_v25 = vpop.permute.xlu1 %12554  ;;  %v3070_v30 = vld [vmem:[#allocation11 + $0x340] sm:$0xff] }
0x1730   :  { %v12557_v31 = vunpack.i.h.bf16 %v12555_v25  ;;  %v12556_v34 = vunpack.i.l.bf16 %v12555_v25 }
0x1732   :  { %v2794_v49 = vsel %vm411_vm2, %v2792_v54, %v12556_v34  ;;  %v2795_v56 = vsel %vm411_vm2, %v2793_v52, %v12557_v31  ;;  %v3063_v31 = vld [vmem:[#allocation11 + $0x308] sm:$0xff]  ;;  %v10930_v34 = vcombine.high %v3062_v27, %v3070_v30  ;;  %v3046_v52 = vld [vmem:[#allocation11 + $0x280] sm:$0xff] }
0x1733   :  { %v12565_v38 = vpop.permute.xlu1 %12564  ;;  %v3054_v54 = vld [vmem:[#allocation11 + $0x2c0] sm:$0xff] }
0x1734   :  { %v12567_v37 = vunpack.i.h.bf16 %v12565_v38  ;;  %v12566_v43 = vunpack.i.l.bf16 %v12565_v38  ;;  %v3071_v38 = vld [vmem:[#allocation11 + $0x348] sm:$0xff] }
0x1735   :  { %v13040_v59 = vpop.eup %13039 }
0x1736   :  { %v2631_v2 = vsel %vm1072_vm5, %v13040_v59, 0.0 }
0x1737   :  { %2632 = vadd.xlane.f32.xlu0 %v2631_v2  ;;  %v12575_v46 = vpop.permute.xlu1 %12574 }
0x1738   :  { %v12577_v50 = vunpack.i.h.bf16 %v12575_v46 }
0x174d   :  { %2640 = vrot.lane.b32.xlu0 %v13810_v44, %s13452_s28 }
0x1751   :  { %12559 = vrot.lane.b32.xlu0 %v12558_v55, %s13450_s16 }
0x1755   :  { %12569 = vrot.lane.b32.xlu0 %v12568_v16, %s13449_s15  ;;  %v12659_v16 = vld [vmem:[#allocation10 + $0x28] sm:$0xff]  }
0x17b8   :  { %v2630_v5 = vpop.xlane.xlu0 %2629 }
0x17b9   :  { %13041 = vrcp.f32 %v2630_v5 }
0x17c0   :  { %v2633_v63 = vpop.xlane.xlu0 %2632 }
0x17c1   :  { %13043 = vrcp.f32 %v2633_v63 }
0x17c4   :  { %v2641_v0 = vpop.permute.xlu0 %2640 }
0x17c5   :  { %v2646_v4 = vsel %vm1100_vm4, %v2641_v0, 0 }
0x17c6   :  { %v13042_v6 = vpop.eup %13041  ;;  %12193 = vmatpush3.bf16.msra.mxu0 %v2646_v4 }
0x17c7   :  { %v2636_v44 = vmul.f32 %v13042_v6, %v13038_v45  ;;  %12204 = vmatprep.subr.bf16.mxu0 %v13444_v1 }
0x17c8   :  { %v12560_v26 = vpop.permute.xlu0 %12559 }
0x17c9   :  { %v2638_v7 = vpack.c.bf16 %v2636_v44, %v2636_v44  ;;  %v12562_v39 = vunpack.i.h.bf16 %v12560_v26  ;;  %v12561_v48 = vunpack.i.l.bf16 %v12560_v26 }
0x17cb   :  { %12195 = vmatmul.mubr.msk.bf16.vlgmr.msra.gmra.mxu0 %vm1072_vm5, %v2638_v7  ;;  %v2798_v58 = vsel %vm2796_vm6, %v2795_v56, %v12562_v39  ;;  %v2797_v61 = vsel %vm2796_vm6, %v2794_v49, %v12561_v48  ;;  %v10929_v39 = vcombine.low %v3062_v27, %v3070_v30  ;;  %v10931_v48 = vcombine.low %v3063_v31, %v3071_v38  ;;  %v3047_v49 = vld [vmem:[#allocation11 + $0x288] sm:$0xff]  ;;  %v3080_v27 = vld [vmem:[#allocation11 + $0x390] sm:$0xff] }
0x17cc   :  { %12220 = vmatprep.mubr.msk.bf16.mxu0 %vm13445_vm0, %v13444_v1  ;;  %12205 = vmatpush3.bf16.msra.mxu0 %v12657_v10  ;;  %v12570_v51 = vpop.permute.xlu0 %12569  ;;  %v2799_v36 = vsel %vm529_vm3, %v2797_v61, %v12566_v43  ;;  %v2800_v47 = vsel %vm529_vm3, %v2798_v58, %v12567_v37  ;;  %v10914_v56 = vcombine.high %v3046_v52, %v3054_v54  ;;  %v3055_v58 = vld [vmem:[#allocation11 + $0x2c8] sm:$0xff]  ;;  %v3030_v37 = vld [vmem:[#allocation11 + $0x200] sm:$0xff]  ;;  %v3088_v30 = vld [vmem:[#allocation11 + $0x3d0] sm:$0xff] }
0x17cd   :  { %12206 = vmatprep.subr.bf16.mxu0 %v13444_v1  ;;  %v12572_v62 = vunpack.i.h.bf16 %v12570_v51  ;;  %v12571_v60 = vunpack.i.l.bf16 %v12570_v51  ;;  %v10932_v51 = vcombine.high %v3063_v31, %v3071_v38  ;;  %v10913_v61 = vcombine.low %v3046_v52, %v3054_v54  ;;  %v3038_v43 = vld [vmem:[#allocation11 + $0x240] sm:$0xff]  ;;  %v3081_v31 = vld [vmem:[#allocation11 + $0x398] sm:$0xff] }
0x17ce   :  { %v13044_v41 = vpop.eup %13043  ;;  %v10950_v38 = vcombine.high %v3080_v27, %v3088_v30 }
0x17cf   :  { %v2637_v53 = vmul.f32 %v13044_v41, %v13040_v59  ;;  %v2802_v42 = vsel %vm2801_vm7, %v2799_v36, %v12571_v60  ;;  %v2803_v45 = vsel %vm2801_vm7, %v2800_v47, %v12572_v62  ;;  %v12576_v59 = vunpack.i.l.bf16 %v12575_v46  ;;  %v10822_v41 = vld [vmem:[%s14830_s5] ss:$0 sm:$0xff] }
0x17d0   :  { %12207 = vmatpush3.bf16.msra.mxu0 %v12658_v14  ;;  %v2806_v4 = vsel %vm2804_vm8, %v2803_v45, %v12577_v50  ;;  %v10915_v62 = vcombine.low %v3047_v49, %v3055_v58  ;;  %v10916_v60 = vcombine.high %v3047_v49, %v3055_v58  ;;  %v3031_v46 = vld [vmem:[#allocation11 + $0x208] sm:$0xff]  ;;  %v10898_v36 = vcombine.high %v3030_v37, %v3038_v43 }
0x17d1   :  { %v2639_v55 = vpack.c.bf16 %v2637_v53, %v2637_v53  ;;  %12208 = vmatprep.subr.bf16.mxu0 %v13444_v1  ;;  %v2805_v0 = vsel %vm2804_vm8, %v2802_v42, %v12576_v59  ;;  %v3039_v47 = vld [vmem:[#allocation11 + $0x248] sm:$0xff]  ;;  %v10897_v42 = vcombine.low %v3030_v37, %v3038_v43  ;;  %v3014_v59 = vld [vmem:[#allocation11 + $0x180] sm:$0xff] }
0x17d2   :  { %v10899_v45 = vcombine.low %v3031_v46, %v3039_v47  ;;  %v10900_v50 = vcombine.high %v3031_v46, %v3039_v47  ;;  %v10831_v37 = vld [vmem:[%s14831_s0] ss:$0 sm:$0xff] }
0x17d3   :  { %12201 = vmatmul.mubr.msk.bf16.vlgmr.msra.gmra.mxu1 %vm1072_vm5, %v2639_v55  ;;  %v10832_v47 = vld [vmem:[%s14832_s29] ss:$0 sm:$0xff] }
0x17d4   :  { %3850 = vmatprep.mubr.bf16.mxu1 %v13446_v3  ;;  %12209 = vmatpush3.bf16.msra.mxu0 %v12659_v16 }
0x17d5   :  { %12210 = vmatprep.subr.bf16.mxu0 %v13444_v1 }
0x17d8   :  { %12211 = vmatpush3.bf16.msra.mxu0 %v12660_v8 }
0x17d9   :  { %12212 = vmatprep.subr.bf16.mxu0 %v13444_v1 }
0x17dc   :  { %12213 = vmatpush3.bf16.msra.mxu0 %v12661_v9 }
0x17dd   :  { %12214 = vmatprep.subr.bf16.mxu0 %v13444_v1 }
0x17e0   :  { %12215 = vmatpush3.bf16.msra.mxu0 %v12662_v11 }
0x17e1   :  { %12216 = vmatprep.subr.bf16.mxu0 %v13444_v1 }
0x17e4   :  { %12217 = vmatpush3.bf16.msra.mxu0 %v12663_v57  ;;  %v3078_v57 = vld [vmem:[#allocation11 + $0x380] sm:$0xff] }
0x17e5   :  { %12218 = vmatprep.subr.bf16.mxu0 %v13444_v1 }
0x17e8   :  { %12219 = vmatpush3.bf16.msra.mxu0 %v12664_v12  ;;  %v3086_v12 = vld [vmem:[#allocation11 + $0x3c0] sm:$0xff] }
0x188b   :  { %v2682_v13 = vpop.f32.mrf.mxu0 }
0x188d   :  { %v12196_v15 = vpop.f32.mrf.mxu0 }
0x188e   :  { %v10945_v15 = vcombine.low %v3078_v57, %v3086_v12 }
0x188f   :  { %v2685_v17 = vpop.f32.mrf.mxu0 }
0x1890   :  { %v10946_v17 = vcombine.high %v3078_v57, %v3086_v12  ;;  %v2983_v57 = vld [vmem:[#allocation11 + $0x88] sm:$0xff] }
0x1891   :  { %v12197_v18 = vpop.f32.mrf.mxu0 }
0x1892   :  { %v3087_v18 = vld [vmem:[#allocation11 + $0x3c8] sm:$0xff]  ;;  %3818 = vmatprep.subr.bf16.mxu1 %v10946_v17 }
0x1893   :  { %v2730_v19 = vpop.f32.mrf.mxu1  ;;  %3819 = vmatpush1.bf16.msra.mxu1 %v10945_v15 }
0x1894   :  { %v12578_v20 = vpack.i.bf16 %v2730_v19, %v2682_v13  ;;  %v3079_v13 = vld [vmem:[#allocation11 + $0x388] sm:$0xff]  ;;  %3820 = vmatprep.subr.bf16.mxu1 %v10930_v34  ;;  %v10949_v34 = vcombine.low %v3080_v27, %v3088_v30  ;;  %v3009_v27 = vld [vmem:[#allocation11 + $0x158] sm:$0xff] }
0x1895   :  { %v12202_v21 = vpop.f32.mrf.mxu1  ;;  %v10947_v19 = vcombine.low %v3079_v13, %v3087_v18 }
0x1896   :  { %12579 = vrot.lane.b32.xlu0 %v12578_v20, %s13447_s14  ;;  %v10948_v20 = vcombine.high %v3079_v13, %v3087_v18  ;;  %v2991_v13 = vld [vmem:[#allocation11 + $0xc8] sm:$0xff] }
0x1897   :  { %v2733_v22 = vpop.f32.mrf.mxu1  ;;  %3821 = vmatpush1.bf16.msra.mxu1 %v10929_v39  ;;  %v10851_v17 = vcombine.low %v2983_v57, %v2991_v13  ;;  %v10852_v18 = vcombine.high %v2983_v57, %v2991_v13  ;;  %v3089_v39 = vld [vmem:[#allocation11 + $0x3d8] sm:$0xff] }
0x1898   :  { %3861 = vmatprep.subr.bf16.mxu0 %v10948_v20  ;;  %3822 = vmatprep.subr.bf16.mxu1 %v10914_v56  ;;  %v2974_v20 = vld [vmem:[#allocation11 + $0x40] sm:$0xff] }
0x1899   :  { %v12203_v23 = vpop.f32.mrf.mxu1 }
0x189b   :  { %3823 = vmatpush1.bf16.msra.mxu1 %v10913_v61 }
0x189c   :  { %3824 = vmatprep.subr.bf16.mxu1 %v10898_v36 }
0x189f   :  { %3825 = vmatpush1.bf16.msra.mxu1 %v10897_v42 }
0x1908   :  { %v12580_v2 = vpop.permute.xlu0 %12579 }
0x1909   :  { %v12582_v5 = vunpack.i.h.bf16 %v12580_v2  ;;  %v12581_v63 = vunpack.i.l.bf16 %v12580_v2  ;;  %v3022_v2 = vld [vmem:[#allocation11 + $0x1c0] sm:$0xff] }
0x190b   :  { %v2809_v6 = vsel %vm2807_vm9, %v2806_v4, %v12582_v5  ;;  %v2808_v44 = vsel %vm2807_vm9, %v2805_v0, %v12581_v63  ;;  %v3015_v5 = vld [vmem:[#allocation11 + $0x188] sm:$0xff]  ;;  %v10882_v63 = vcombine.high %v3014_v59, %v3022_v2  ;;  %v10881_v4 = vcombine.low %v3014_v59, %v3022_v2  ;;  %v3065_v59 = vld [vmem:[#allocation11 + $0x318] sm:$0xff] }
0x190c   :  { %v2810_v7 = vpack.c.bf16 %v2809_v6, %v2808_v44  ;;  %v3023_v0 = vld [vmem:[#allocation11 + $0x1c8] sm:$0xff]  ;;  %v3073_v2 = vld [vmem:[#allocation11 + $0x358] sm:$0xff] }
0x190d   :  { %v10883_v6 = vcombine.low %v3015_v5, %v3023_v0  ;;  %v10884_v44 = vcombine.high %v3015_v5, %v3023_v0  ;;  %3826 = vmatprep.subr.bf16.mxu1 %v10882_v63 }
0x190e   :  { %12221 = vmatmul.mubr.bf16.vlgmr.msra.gmra.mxu0 %v2810_v7  ;;  %3827 = vmatpush1.bf16.msra.mxu1 %v10881_v4  ;;  %v2998_v7 = vld [vmem:[#allocation11 + $0x100] sm:$0xff]  ;;  %v10936_v4 = vcombine.high %v3065_v59, %v3073_v2 }
0x190f   :  { %3893 = vmatprep.mubr.bf16.mxu0 %v13446_v3  ;;  %3862 = vmatpush1.bf16.msra.mxu0 %v10947_v19  ;;  %v2966_v19 = vld [vmem:[#allocation11] sm:$0xff] }
0x1910   :  { %3863 = vmatprep.subr.bf16.mxu0 %v10932_v51  ;;  %v10952_v51 = vcombine.high %v3081_v31, %v3089_v39 }
0x1913   :  { %3864 = vmatpush1.bf16.msra.mxu0 %v10931_v48  ;;  %v10951_v48 = vcombine.low %v3081_v31, %v3089_v39  ;;  %v2984_v39 = vld [vmem:[#allocation11 + $0x90] sm:$0xff] }
0x1914   :  { %3865 = vmatprep.subr.bf16.mxu0 %v10916_v60 }
0x1917   :  { %3866 = vmatpush1.bf16.msra.mxu0 %v10915_v62 }
0x1918   :  { %3867 = vmatprep.subr.bf16.mxu0 %v10900_v50  ;;  %v3072_v50 = vld [vmem:[#allocation11 + $0x350] sm:$0xff] }
0x191b   :  { %3868 = vmatpush1.bf16.msra.mxu0 %v10899_v45  ;;  %v3064_v45 = vld [vmem:[#allocation11 + $0x310] sm:$0xff] }
0x191c   :  { %3869 = vmatprep.subr.bf16.mxu0 %v10884_v44  ;;  %v3056_v44 = vld [vmem:[#allocation11 + $0x2d0] sm:$0xff] }
0x191f   :  { %3870 = vmatpush1.bf16.msra.mxu0 %v10883_v6  ;;  %v3048_v6 = vld [vmem:[#allocation11 + $0x290] sm:$0xff] }
0x19ce   :  { %v2916_v53 = vpop.f32.mrf.mxu0 }
0x19cf   :  { %v2917_v55 = vadd.f32 %v10822_v41, %v2916_v53  ;;  %v2999_v53 = vld [vmem:[#allocation11 + $0x108] sm:$0xff] }
0x19d0   :  { %v12222_v10 = vpop.f32.mrf.mxu0 }
0x19d1   :  { %v2923_v14 = vadd.f32 %v2917_v55, %v13786_v28  ;;  %v3007_v10 = vld [vmem:[#allocation11 + $0x148] sm:$0xff] }
0x19d2   :  { %v2919_v16 = vpop.f32.mrf.mxu0 }
0x19d3   :  { %v2920_v8 = vadd.f32 %v10822_v41, %v2919_v16  ;;  %2925 = vadd.xlane.f32.xlu1 %v2923_v14  ;;  %v3006_v41 = vld [vmem:[#allocation11 + $0x140] sm:$0xff]  ;;  %v10867_v16 = vcombine.low %v2999_v53, %v3007_v10 }
0x19d4   :  { %v12223_v9 = vpop.f32.mrf.mxu0  ;;  %v10866_v55 = vcombine.high %v2998_v7, %v3006_v41 }
0x19d5   :  { %v2924_v11 = vadd.f32 %v2920_v8, %v13788_v29  ;;  %v10868_v8 = vcombine.high %v2999_v53, %v3007_v10  ;;  %v2982_v9 = vld [vmem:[#allocation11 + $0x80] sm:$0xff]  ;;  %v10935_v53 = vcombine.low %v3065_v59, %v3073_v2  ;;  %v3091_v59 = vld [vmem:[#allocation11 + $0x3e8] sm:$0xff] }
0x19d6   :  { %3828 = vmatprep.subr.bf16.mxu1 %v10866_v55  ;;  %v10918_v55 = vcombine.high %v3048_v6, %v3056_v44 }
0x19d7   :  { %2927 = vadd.xlane.f32.xlu0 %v2924_v11  ;;  %3871 = vmatprep.subr.bf16.mxu0 %v10868_v8  ;;  %v3033_v8 = vld [vmem:[#allocation11 + $0x218] sm:$0xff] }
0x19d8   :  { %3872 = vmatpush1.bf16.msra.mxu0 %v10867_v16  ;;  %v3040_v16 = vld [vmem:[#allocation11 + $0x250] sm:$0xff] }
0x19d9   :  { %3873 = vmatprep.subr.bf16.mxu0 %v10852_v18  ;;  %v3017_v18 = vld [vmem:[#allocation11 + $0x198] sm:$0xff] }
0x19dc   :  { %3874 = vmatpush1.bf16.msra.mxu0 %v10851_v17  ;;  %v3024_v17 = vld [vmem:[#allocation11 + $0x1d0] sm:$0xff] }
0x1a5c   :  { %v2926_v28 = vpop.xlane.xlu1 %2925 }
0x1a5d   :  { %v2929_v21 = vmul.f32 0.0078125, %v2926_v28  ;;  %v2967_v28 = vld [vmem:[#allocation11 + $0x8] sm:$0xff] }
0x1a5f   :  { %v14186_v22 = vsub.f32 %v2923_v14, %v2929_v21  ;;  %v10865_v14 = vcombine.low %v2998_v7, %v3006_v41  ;;  %v10834_v21 = vcombine.high %v2966_v19, %v2974_v20  ;;  %v3049_v7 = vld [vmem:[#allocation11 + $0x298] sm:$0xff]  ;;  %v10933_v41 = vcombine.low %v3064_v45, %v3072_v50 }
0x1a60   :  { %v2928_v23 = vpop.xlane.xlu0 %2927 }
0x1a61   :  { %v2930_v24 = vmul.f32 0.0078125, %v2928_v23  ;;  %v2933_v29 = vmul.f32 %v14186_v22, %v14186_v22  ;;  %3829 = vmatpush1.bf16.msra.mxu1 %v10865_v14  ;;  %v2975_v23 = vld [vmem:[#allocation11 + $0x48] sm:$0xff]  ;;  %v3032_v14 = vld [vmem:[#allocation11 + $0x210] sm:$0xff] }
0x1a63   :  { %2935 = vadd.xlane.f32.xlu0 %v2933_v29  ;;  %v14190_v25 = vsub.f32 %v2924_v11, %v2930_v24  ;;  %v2990_v11 = vld [vmem:[#allocation11 + $0xc0] sm:$0xff]  ;;  %v10833_v24 = vcombine.low %v2966_v19, %v2974_v20  ;;  %v10835_v29 = vcombine.low %v2967_v28, %v2975_v23  ;;  %v3025_v19 = vld [vmem:[#allocation11 + $0x1d8] sm:$0xff]  ;;  %v10901_v20 = vcombine.low %v3032_v14, %v3040_v16 }
0x1a64   :  { %v10850_v12 = vcombine.high %v2982_v9, %v2990_v11  ;;  %v10849_v15 = vcombine.low %v2982_v9, %v2990_v11  ;;  %v3041_v9 = vld [vmem:[#allocation11 + $0x258] sm:$0xff]  ;;  %v10917_v11 = vcombine.low %v3048_v6, %v3056_v44  ;;  %v10887_v31 = vcombine.low %v3017_v18, %v3025_v19  ;;  %v3066_v44 = vld [vmem:[#allocation11 + $0x320] sm:$0xff] }
0x1a65   :  { %v2934_v26 = vmul.f32 %v14190_v25, %v14190_v25  ;;  %v10904_v13 = vcombine.high %v3033_v8, %v3041_v9 }
0x1a66   :  { %3830 = vmatprep.subr.bf16.mxu1 %v10850_v12  ;;  %v10902_v12 = vcombine.high %v3032_v14, %v3040_v16  ;;  %v3050_v16 = vld [vmem:[#allocation11 + $0x2a0] sm:$0xff] }
0x1a67   :  { %2937 = vadd.xlane.f32.xlu0 %v2934_v26  ;;  %3831 = vmatpush1.bf16.msra.mxu1 %v10849_v15  ;;  %v10836_v26 = vcombine.high %v2967_v28, %v2975_v23  ;;  %v3016_v15 = vld [vmem:[#allocation11 + $0x190] sm:$0xff]  ;;  %v10903_v28 = vcombine.low %v3033_v8, %v3041_v9  ;;  %v10888_v23 = vcombine.high %v3017_v18, %v3025_v19  ;;  %v3058_v8 = vld [vmem:[#allocation11 + $0x2e0] sm:$0xff]  ;;  %v3051_v9 = vld [vmem:[#allocation11 + $0x2a8] sm:$0xff] }
0x1a68   :  { %3832 = vmatprep.subr.bf16.mxu1 %v10834_v21  ;;  %v10886_v21 = vcombine.high %v3016_v15, %v3024_v17  ;;  %v10885_v30 = vcombine.low %v3016_v15, %v3024_v17  ;;  %v3034_v17 = vld [vmem:[#allocation11 + $0x220] sm:$0xff]  ;;  %v3035_v19 = vld [vmem:[#allocation11 + $0x228] sm:$0xff] }
0x1a69   :  { %3875 = vmatprep.subr.bf16.mxu0 %v10836_v26  ;;  %v3001_v26 = vld [vmem:[#allocation11 + $0x118] sm:$0xff]  ;;  %v3042_v18 = vld [vmem:[#allocation11 + $0x260] sm:$0xff] }
0x1a6a   :  { %3876 = vmatpush1.bf16.msra.mxu0 %v10835_v29  ;;  %v3008_v29 = vld [vmem:[#allocation11 + $0x150] sm:$0xff] }
0x1a6b   :  { %3833 = vmatpush1.bf16.msra.mxu1 %v10833_v24  ;;  %3947 = vmatprep.subr.bf16.mxu0 %v10952_v51  ;;  %v3000_v24 = vld [vmem:[#allocation11 + $0x110] sm:$0xff]  ;;  %v2985_v51 = vld [vmem:[#allocation11 + $0x98] sm:$0xff] }
0x1a6c   :  { %3904 = vmatprep.subr.bf16.mxu1 %v10950_v38  ;;  %v10872_v38 = vcombine.high %v3001_v26, %v3009_v27 }
0x1aec   :  { %v2936_v52 = vpop.xlane.xlu0 %2935 }
0x1aed   :  { %v2939_v54 = vmul.f32 0.0078125, %v2936_v52  ;;  %v2993_v52 = vld [vmem:[#allocation11 + $0xd8] sm:$0xff] }
0x1aef   :  { %v2941_v49 = vadd.f32 1e-05, %v2939_v54  ;;  %v10869_v54 = vcombine.low %v3000_v24, %v3008_v29 }
0x1af0   :  { %v2938_v56 = vpop.xlane.xlu0 %2937 }
0x1af1   :  { %13045 = vrsqrt.f32 %v2941_v49  ;;  %v2940_v58 = vmul.f32 0.0078125, %v2938_v56  ;;  %v10871_v49 = vcombine.low %v3001_v26, %v3009_v27  ;;  %v3026_v26 = vld [vmem:[#allocation11 + $0x1e0] sm:$0xff]  ;;  %v3019_v27 = vld [vmem:[#allocation11 + $0x1a8] sm:$0xff] }
0x1af3   :  { %v2942_v61 = vadd.f32 1e-05, %v2940_v58  ;;  %v10856_v58 = vcombine.high %v2985_v51, %v2993_v52 }
0x1af5   :  { %13047 = vrsqrt.f32 %v2942_v61  ;;  %v2968_v61 = vld [vmem:[#allocation11 + $0x10] sm:$0xff] }
0x1afe   :  { %v13046_v62 = vpop.eup %13045 }
0x1aff   :  { %v2945_v60 = vmul.f32 %v13046_v62, %v14186_v22  ;;  %v10934_v22 = vcombine.high %v3064_v45, %v3072_v50  ;;  %v2976_v62 = vld [vmem:[#allocation11 + $0x50] sm:$0xff]  ;;  %v3090_v45 = vld [vmem:[#allocation11 + $0x3e0] sm:$0xff]  ;;  %v3083_v50 = vld [vmem:[#allocation11 + $0x3a8] sm:$0xff] }
0x1b00   :  { %v10837_v2 = vcombine.low %v2968_v61, %v2976_v62  ;;  %v10956_v6 = vcombine.high %v3083_v50, %v3091_v59 }
0x1b01   :  { %v2954_v46 = vmul.f32 %v10831_v37, %v2945_v60  ;;  %v2969_v60 = vld [vmem:[#allocation11 + $0x18] sm:$0xff] }
0x1b02   :  { %v13048_v43 = vpop.eup %13047 }
0x1b03   :  { %v2946_v36 = vmul.f32 %v13048_v43, %v14190_v25  ;;  %v14198_v5 = vadd.f32 %v10832_v47, %v2954_v46  ;;  %v3057_v25 = vld [vmem:[#allocation11 + $0x2d8] sm:$0xff]  ;;  %v10855_v46 = vcombine.low %v2985_v51, %v2993_v52  ;;  %v3010_v51 = vld [vmem:[#allocation11 + $0x160] sm:$0xff]  ;;  %v3003_v52 = vld [vmem:[#allocation11 + $0x128] sm:$0xff] }
0x1b04   :  { %v10920_v10 = vcombine.high %v3049_v7, %v3057_v25  ;;  %v10919_v57 = vcombine.low %v3049_v7, %v3057_v25  ;;  %v3074_v7 = vld [vmem:[#allocation11 + $0x360] sm:$0xff]  ;;  %v3067_v25 = vld [vmem:[#allocation11 + $0x328] sm:$0xff] }
0x1b05   :  { %v2955_v42 = vmul.f32 %v10831_v37, %v2946_v36  ;;  %v2977_v37 = vld [vmem:[#allocation11 + $0x58] sm:$0xff]  ;;  %v10838_v36 = vcombine.high %v2968_v61, %v2976_v62  ;;  %v2986_v62 = vld [vmem:[#allocation11 + $0xa0] sm:$0xff] }
0x1b07   :  { %v14200_v63 = vadd.f32 %v10832_v47, %v2955_v42  ;;  %v10840_v47 = vcombine.high %v2969_v60, %v2977_v37  ;;  %v3082_v42 = vld [vmem:[#allocation11 + $0x3a0] sm:$0xff] }
0x1b09   :  { %v14204_v0 = vpack.c.bf16 %v14200_v63, %v14198_v5 }
0x1b0b   :  { %3851 = vmatmul.mubr.bf16.vlgmr.msra.gmra.mxu1 %v14204_v0  ;;  %3894 = vmatmul.mubr.bf16.vlgmr.msra.gmra.mxu0 %v14204_v0 }
0x1b0c   :  { %3905 = vmatpush1.bf16.msra.mxu1 %v10949_v34  ;;  %3948 = vmatpush1.bf16.msra.mxu0 %v10951_v48  ;;  %v10870_v34 = vcombine.high %v3000_v24, %v3008_v29  ;;  %v2992_v48 = vld [vmem:[#allocation11 + $0xd0] sm:$0xff]  ;;  %v3018_v29 = vld [vmem:[#allocation11 + $0x1a0] sm:$0xff] }
0x1b0d   :  { %3906 = vmatprep.subr.bf16.mxu1 %v10934_v22  ;;  %3949 = vmatprep.subr.bf16.mxu0 %v10936_v4  ;;  %v10854_v56 = vcombine.high %v2984_v39, %v2992_v48  ;;  %v10853_v43 = vcombine.low %v2984_v39, %v2992_v48  ;;  %v10839_v22 = vcombine.low %v2969_v60, %v2977_v37  ;;  %v3002_v48 = vld [vmem:[#allocation11 + $0x120] sm:$0xff]  ;;  %v2987_v37 = vld [vmem:[#allocation11 + $0xa8] sm:$0xff] }
0x1b0e   :  { %3936 = vmatprep.mubr.bf16.mxu1 %v13446_v3  ;;  %3979 = vmatprep.mubr.bf16.mxu0 %v13446_v3  ;;  %v10954_v4 = vcombine.high %v3082_v42, %v3090_v45  ;;  %v2994_v60 = vld [vmem:[#allocation11 + $0xe0] sm:$0xff] }
0x1b10   :  { %3907 = vmatpush1.bf16.msra.mxu1 %v10933_v41  ;;  %3950 = vmatpush1.bf16.msra.mxu0 %v10935_v53  ;;  %v3075_v41 = vld [vmem:[#allocation11 + $0x368] sm:$0xff]  ;;  %v10953_v53 = vcombine.low %v3082_v42, %v3090_v45  ;;  %v2970_v45 = vld [vmem:[#allocation11 + $0x20] sm:$0xff] }
0x1b11   :  { %3908 = vmatprep.subr.bf16.mxu1 %v10918_v55  ;;  %3951 = vmatprep.subr.bf16.mxu0 %v10920_v10  ;;  %v10955_v55 = vcombine.low %v3083_v50, %v3091_v59  ;;  %v10938_v10 = vcombine.high %v3066_v44, %v3074_v7  ;;  %v10940_v14 = vcombine.high %v3067_v25, %v3075_v41  ;;  %v2978_v50 = vld [vmem:[#allocation11 + $0x60] sm:$0xff]  ;;  %v2971_v59 = vld [vmem:[#allocation11 + $0x28] sm:$0xff] }
0x1b14   :  { %3909 = vmatpush1.bf16.msra.mxu1 %v10917_v11  ;;  %3952 = vmatpush1.bf16.msra.mxu0 %v10919_v57  ;;  %v3059_v11 = vld [vmem:[#allocation11 + $0x2e8] sm:$0xff]  ;;  %v10937_v57 = vcombine.low %v3066_v44, %v3074_v7  ;;  %v3084_v7 = vld [vmem:[#allocation11 + $0x3b0] sm:$0xff] }
0x1b15   :  { %3910 = vmatprep.subr.bf16.mxu1 %v10902_v12  ;;  %3953 = vmatprep.subr.bf16.mxu0 %v10904_v13  ;;  %v10939_v12 = vcombine.low %v3067_v25, %v3075_v41  ;;  %v10922_v13 = vcombine.high %v3050_v16, %v3058_v8  ;;  %v10924_v15 = vcombine.high %v3051_v9, %v3059_v11  ;;  %v3092_v25 = vld [vmem:[#allocation11 + $0x3f0] sm:$0xff]  ;;  %v3085_v41 = vld [vmem:[#allocation11 + $0x3b8] sm:$0xff] }
0x1b18   :  { %3911 = vmatpush1.bf16.msra.mxu1 %v10901_v20  ;;  %3954 = vmatpush1.bf16.msra.mxu0 %v10903_v28  ;;  %v3043_v20 = vld [vmem:[#allocation11 + $0x268] sm:$0xff]  ;;  %v10921_v28 = vcombine.low %v3050_v16, %v3058_v8  ;;  %v3068_v8 = vld [vmem:[#allocation11 + $0x330] sm:$0xff] }
0x1b19   :  { %3912 = vmatprep.subr.bf16.mxu1 %v10886_v21  ;;  %3955 = vmatprep.subr.bf16.mxu0 %v10888_v23  ;;  %v10923_v21 = vcombine.low %v3051_v9, %v3059_v11  ;;  %v10906_v23 = vcombine.high %v3034_v17, %v3042_v18  ;;  %v10908_v24 = vcombine.high %v3035_v19, %v3043_v20  ;;  %v3076_v9 = vld [vmem:[#allocation11 + $0x370] sm:$0xff]  ;;  %v3069_v11 = vld [vmem:[#allocation11 + $0x338] sm:$0xff] }
0x1b1c   :  { %3913 = vmatpush1.bf16.msra.mxu1 %v10885_v30  ;;  %3956 = vmatpush1.bf16.msra.mxu0 %v10887_v31  ;;  %v3027_v30 = vld [vmem:[#allocation11 + $0x1e8] sm:$0xff]  ;;  %v10905_v31 = vcombine.low %v3034_v17, %v3042_v18  ;;  %v3052_v18 = vld [vmem:[#allocation11 + $0x2b0] sm:$0xff] }
0x1b1d   :  { %3914 = vmatprep.subr.bf16.mxu1 %v10870_v34  ;;  %3957 = vmatprep.subr.bf16.mxu0 %v10872_v38  ;;  %v10907_v34 = vcombine.low %v3035_v19, %v3043_v20  ;;  %v10890_v38 = vcombine.high %v3018_v29, %v3026_v26  ;;  %v10892_v39 = vcombine.high %v3019_v27, %v3027_v30  ;;  %v3060_v19 = vld [vmem:[#allocation11 + $0x2f0] sm:$0xff]  ;;  %v3053_v20 = vld [vmem:[#allocation11 + $0x2b8] sm:$0xff] }
0x1b20   :  { %3915 = vmatpush1.bf16.msra.mxu1 %v10869_v54  ;;  %3958 = vmatpush1.bf16.msra.mxu0 %v10871_v49  ;;  %v3011_v54 = vld [vmem:[#allocation11 + $0x168] sm:$0xff]  ;;  %v10889_v49 = vcombine.low %v3018_v29, %v3026_v26  ;;  %v3036_v26 = vld [vmem:[#allocation11 + $0x230] sm:$0xff] }
0x1b21   :  { %3916 = vmatprep.subr.bf16.mxu1 %v10854_v56  ;;  %3959 = vmatprep.subr.bf16.mxu0 %v10856_v58  ;;  %v10891_v56 = vcombine.low %v3019_v27, %v3027_v30  ;;  %v10874_v58 = vcombine.high %v3002_v48, %v3010_v51  ;;  %v10876_v61 = vcombine.high %v3003_v52, %v3011_v54  ;;  %v3044_v27 = vld [vmem:[#allocation11 + $0x270] sm:$0xff]  ;;  %v3037_v30 = vld [vmem:[#allocation11 + $0x238] sm:$0xff] }
0x1b24   :  { %3917 = vmatpush1.bf16.msra.mxu1 %v10853_v43  ;;  %3960 = vmatpush1.bf16.msra.mxu0 %v10855_v46  ;;  %v2995_v43 = vld [vmem:[#allocation11 + $0xe8] sm:$0xff]  ;;  %v10873_v46 = vcombine.low %v3002_v48, %v3010_v51  ;;  %v3020_v51 = vld [vmem:[#allocation11 + $0x1b0] sm:$0xff] }
0x1b25   :  { %3918 = vmatprep.subr.bf16.mxu1 %v10838_v36  ;;  %3961 = vmatprep.subr.bf16.mxu0 %v10840_v47  ;;  %v10875_v36 = vcombine.low %v3003_v52, %v3011_v54  ;;  %v10858_v47 = vcombine.high %v2986_v62, %v2994_v60  ;;  %v10860_v42 = vcombine.high %v2987_v37, %v2995_v43  ;;  %v3028_v52 = vld [vmem:[#allocation11 + $0x1f0] sm:$0xff]  ;;  %v3021_v54 = vld [vmem:[#allocation11 + $0x1b8] sm:$0xff] }
0x1b28   :  { %3919 = vmatpush1.bf16.msra.mxu1 %v10837_v2  ;;  %3962 = vmatpush1.bf16.msra.mxu0 %v10839_v22  ;;  %v2979_v2 = vld [vmem:[#allocation11 + $0x68] sm:$0xff]  ;;  %v10857_v22 = vcombine.low %v2986_v62, %v2994_v60  ;;  %v3004_v60 = vld [vmem:[#allocation11 + $0x130] sm:$0xff] }
0x1b29   :  { %3990 = vmatprep.subr.bf16.mxu1 %v10954_v4  ;;  %4033 = vmatprep.subr.bf16.mxu0 %v10956_v6  ;;  %v10859_v4 = vcombine.low %v2987_v37, %v2995_v43  ;;  %v10842_v6 = vcombine.high %v2970_v45, %v2978_v50  ;;  %v10844_v44 = vcombine.high %v2971_v59, %v2979_v2  ;;  %v3012_v37 = vld [vmem:[#allocation11 + $0x170] sm:$0xff]  ;;  %v3005_v43 = vld [vmem:[#allocation11 + $0x138] sm:$0xff] }
0x1b2b   :  { %3937 = vmatmul.mubr.bf16.vlgmr.msra.gmra.mxu1 %v14204_v0  ;;  %3980 = vmatmul.mubr.bf16.vlgmr.msra.gmra.mxu0 %v14204_v0 }
0x1b2c   :  { %3991 = vmatpush1.bf16.msra.mxu1 %v10953_v53  ;;  %4034 = vmatpush1.bf16.msra.mxu0 %v10955_v55  ;;  %v3093_v53 = vld [vmem:[#allocation11 + $0x3f8] sm:$0xff]  ;;  %v10841_v55 = vcombine.low %v2970_v45, %v2978_v50  ;;  %v2988_v50 = vld [vmem:[#allocation11 + $0xb0] sm:$0xff] }
0x1b2d   :  { %3992 = vmatprep.subr.bf16.mxu1 %v10938_v10  ;;  %4035 = vmatprep.subr.bf16.mxu0 %v10940_v14  ;;  %v10843_v10 = vcombine.low %v2971_v59, %v2979_v2  ;;  %v10958_v14 = vcombine.high %v3084_v7, %v3092_v25  ;;  %v10960_v16 = vcombine.high %v3085_v41, %v3093_v53  ;;  %v2996_v59 = vld [vmem:[#allocation11 + $0xf0] sm:$0xff]  ;;  %v2989_v2 = vld [vmem:[#allocation11 + $0xb8] sm:$0xff] }
0x1b2e   :  { %4022 = vmatprep.mubr.bf16.mxu1 %v13446_v3  ;;  %4065 = vmatprep.mubr.bf16.mxu0 %v13446_v3 }
0x1b30   :  { %3993 = vmatpush1.bf16.msra.mxu1 %v10937_v57  ;;  %4036 = vmatpush1.bf16.msra.mxu0 %v10939_v12  ;;  %v3077_v57 = vld [vmem:[#allocation11 + $0x378] sm:$0xff]  ;;  %v10957_v12 = vcombine.low %v3084_v7, %v3092_v25  ;;  %v2972_v25 = vld [vmem:[#allocation11 + $0x30] sm:$0xff] }
0x1b31   :  { %3994 = vmatprep.subr.bf16.mxu1 %v10922_v13  ;;  %4037 = vmatprep.subr.bf16.mxu0 %v10924_v15  ;;  %v10959_v13 = vcombine.low %v3085_v41, %v3093_v53  ;;  %v10942_v15 = vcombine.high %v3068_v8, %v3076_v9  ;;  %v10944_v17 = vcombine.high %v3069_v11, %v3077_v57  ;;  %v2980_v41 = vld [vmem:[#allocation11 + $0x70] sm:$0xff]  ;;  %v2973_v53 = vld [vmem:[#allocation11 + $0x38] sm:$0xff] }
0x1b34   :  { %3995 = vmatpush1.bf16.msra.mxu1 %v10921_v28  ;;  %4038 = vmatpush1.bf16.msra.mxu0 %v10923_v21  ;;  %v3061_v28 = vld [vmem:[#allocation11 + $0x2f8] sm:$0xff]  ;;  %v10941_v21 = vcombine.low %v3068_v8, %v3076_v9  ;;  %v10845_v9 = vcombine.low %v2972_v25, %v2980_v41 }
0x1b35   :  { %3996 = vmatprep.subr.bf16.mxu1 %v10906_v23  ;;  %4039 = vmatprep.subr.bf16.mxu0 %v10908_v24  ;;  %v10943_v23 = vcombine.low %v3069_v11, %v3077_v57  ;;  %v10926_v24 = vcombine.high %v3052_v18, %v3060_v19  ;;  %v10928_v29 = vcombine.high %v3053_v20, %v3061_v28  ;;  %v12665_v57 = vld [vmem:[#allocation13 + $0x78] sm:$0xff]  }
0x1b38   :  { %3997 = vmatpush1.bf16.msra.mxu1 %v10905_v31  ;;  %4040 = vmatpush1.bf16.msra.mxu0 %v10907_v34  ;;  %v3045_v31 = vld [vmem:[#allocation11 + $0x278] sm:$0xff]  ;;  %v10925_v34 = vcombine.low %v3052_v18, %v3060_v19  ;;  %v12670_v18 = vld [vmem:[#allocation13 + $0xf0] sm:$0xff]  }
0x1b39   :  { %3998 = vmatprep.subr.bf16.mxu1 %v10890_v38  ;;  %4041 = vmatprep.subr.bf16.mxu0 %v10892_v39  ;;  %v10927_v38 = vcombine.low %v3053_v20, %v3061_v28  ;;  %v10910_v39 = vcombine.high %v3036_v26, %v3044_v27  ;;  %v10912_v48 = vcombine.high %v3037_v30, %v3045_v31  ;;  %v12671_v19 = vld [vmem:[#allocation13 + $0x30] sm:$0xff]   ;;  %v12673_v28 = vld [vmem:[#allocation13 + $0x68] sm:$0xff]  }
0x1b3a   :  { %v12672_v20 = vld [vmem:[#allocation13 + $0xb0] sm:$0xff]  }
0x1b3c   :  { %3999 = vmatpush1.bf16.msra.mxu1 %v10889_v49  ;;  %4042 = vmatpush1.bf16.msra.mxu0 %v10891_v56  ;;  %v3029_v49 = vld [vmem:[#allocation11 + $0x1f8] sm:$0xff]  ;;  %v10909_v56 = vcombine.low %v3036_v26, %v3044_v27  ;;  %v12678_v26 = vld [vmem:[#allocation13 + $0xe0] sm:$0xff]  }
0x1b3d   :  { %4000 = vmatprep.subr.bf16.mxu1 %v10874_v58  ;;  %4043 = vmatprep.subr.bf16.mxu0 %v10876_v61  ;;  %v10911_v58 = vcombine.low %v3037_v30, %v3045_v31  ;;  %v10894_v61 = vcombine.high %v3020_v51, %v3028_v52  ;;  %v10896_v62 = vcombine.high %v3021_v54, %v3029_v49  ;;  %v12679_v27 = vld [vmem:[#allocation13 + $0x20] sm:$0xff]   ;;  %v12681_v30 = vld [vmem:[#allocation13 + $0x58] sm:$0xff]  }
0x1b3e   :  { %v12682_v31 = vld [vmem:[#allocation13 + $0xd8] sm:$0xff]  }
0x1b40   :  { %4001 = vmatpush1.bf16.msra.mxu1 %v10873_v46  ;;  %4044 = vmatpush1.bf16.msra.mxu0 %v10875_v36  ;;  %v3013_v46 = vld [vmem:[#allocation11 + $0x178] sm:$0xff]  ;;  %v10893_v36 = vcombine.low %v3020_v51, %v3028_v52  ;;  %v12687_v51 = vld [vmem:[#allocation13 + $0x10] sm:$0xff]  }
0x1b41   :  { %4002 = vmatprep.subr.bf16.mxu1 %v10858_v47  ;;  %4045 = vmatprep.subr.bf16.mxu0 %v10860_v42  ;;  %v10895_v47 = vcombine.low %v3021_v54, %v3029_v49  ;;  %v10878_v42 = vcombine.high %v3004_v60, %v3012_v37  ;;  %v10880_v45 = vcombine.high %v3005_v43, %v3013_v46  ;;  %v12688_v52 = vld [vmem:[#allocation13 + $0x90] sm:$0xff]   ;;  %v12689_v54 = vld [vmem:[#allocation13 + $0x48] sm:$0xff]  }
0x1b42   :  { %v12690_v49 = vld [vmem:[#allocation13 + $0xc8] sm:$0xff]  }
0x1b44   :  { %4003 = vmatpush1.bf16.msra.mxu1 %v10857_v22  ;;  %4046 = vmatpush1.bf16.msra.mxu0 %v10859_v4  ;;  %v2997_v22 = vld [vmem:[#allocation11 + $0xf8] sm:$0xff]  ;;  %v10877_v4 = vcombine.low %v3004_v60, %v3012_v37  ;;  %v12695_v60 = vld [vmem:[#allocation13] sm:$0xff]  }
0x1b45   :  { %4004 = vmatprep.subr.bf16.mxu1 %v10842_v6  ;;  %4047 = vmatprep.subr.bf16.mxu0 %v10844_v44  ;;  %v10879_v6 = vcombine.low %v3005_v43, %v3013_v46  ;;  %v10862_v44 = vcombine.high %v2988_v50, %v2996_v59  ;;  %v10864_v7 = vcombine.high %v2989_v2, %v2997_v22  ;;  %v12696_v37 = vld [vmem:[#allocation13 + $0x80] sm:$0xff]   ;;  %v12697_v43 = vld [vmem:[#allocation13 + $0x178] sm:$0xff]  }
0x1b46   :  { %v12698_v46 = vld [vmem:[#allocation13 + $0x1f8] sm:$0xff]  }
0x1b48   :  { %4005 = vmatpush1.bf16.msra.mxu1 %v10841_v55  ;;  %4048 = vmatpush1.bf16.msra.mxu0 %v10843_v10  ;;  %v2981_v55 = vld [vmem:[#allocation11 + $0x78] sm:$0xff]  ;;  %v10861_v10 = vcombine.low %v2988_v50, %v2996_v59 }
0x1b49   :  { %4076 = vmatprep.subr.bf16.mxu1 %v10958_v14  ;;  %4119 = vmatprep.subr.bf16.mxu0 %v10960_v16  ;;  %v10863_v14 = vcombine.low %v2989_v2, %v2997_v22  ;;  %v10846_v16 = vcombine.high %v2972_v25, %v2980_v41  ;;  %v10848_v8 = vcombine.high %v2973_v53, %v2981_v55 }
0x1b4a   :  { %v10847_v11 = vcombine.low %v2973_v53, %v2981_v55 }
0x1b4b   :  { %4023 = vmatmul.mubr.bf16.vlgmr.msra.gmra.mxu1 %v14204_v0  ;;  %4066 = vmatmul.mubr.bf16.vlgmr.msra.gmra.mxu0 %v14204_v0 }
0x1b4c   :  { %4077 = vmatpush1.bf16.msra.mxu1 %v10957_v12  ;;  %4120 = vmatpush1.bf16.msra.mxu0 %v10959_v13  ;;  %v12666_v12 = vld [vmem:[#allocation13 + $0xf8] sm:$0xff]  }
0x1b4d   :  { %4078 = vmatprep.subr.bf16.mxu1 %v10942_v15  ;;  %4121 = vmatprep.subr.bf16.mxu0 %v10944_v17  ;;  %v12667_v13 = vld [vmem:[#allocation13 + $0x38] sm:$0xff]   ;;  %v12669_v17 = vld [vmem:[#allocation13 + $0x70] sm:$0xff]  }
0x1b4e   :  { %4108 = vmatprep.mubr.bf16.mxu1 %v13446_v3  ;;  %4151 = vmatprep.mubr.bf16.mxu0 %v13446_v3  ;;  %v12668_v15 = vld [vmem:[#allocation13 + $0xb8] sm:$0xff]  }
0x1b50   :  { %4079 = vmatpush1.bf16.msra.mxu1 %v10941_v21  ;;  %4122 = vmatpush1.bf16.msra.mxu0 %v10943_v23  ;;  %v12674_v21 = vld [vmem:[#allocation13 + $0xe8] sm:$0xff]  }
0x1b51   :  { %4080 = vmatprep.subr.bf16.mxu1 %v10926_v24  ;;  %4123 = vmatprep.subr.bf16.mxu0 %v10928_v29  ;;  %v12675_v23 = vld [vmem:[#allocation13 + $0x28] sm:$0xff]   ;;  %v12677_v29 = vld [vmem:[#allocation13 + $0x60] sm:$0xff]  }
0x1b52   :  { %v12676_v24 = vld [vmem:[#allocation13 + $0xa8] sm:$0xff]  }
0x1b54   :  { %4081 = vmatpush1.bf16.msra.mxu1 %v10925_v34  ;;  %4124 = vmatpush1.bf16.msra.mxu0 %v10927_v38  ;;  %v12683_v34 = vld [vmem:[#allocation13 + $0x18] sm:$0xff]  }
0x1b55   :  { %4082 = vmatprep.subr.bf16.mxu1 %v10910_v39  ;;  %4125 = vmatprep.subr.bf16.mxu0 %v10912_v48  ;;  %v12684_v38 = vld [vmem:[#allocation13 + $0x98] sm:$0xff]   ;;  %v12685_v39 = vld [vmem:[#allocation13 + $0x50] sm:$0xff]  }
0x1b56   :  { %v12686_v48 = vld [vmem:[#allocation13 + $0xd0] sm:$0xff]  }
0x1b58   :  { %4083 = vmatpush1.bf16.msra.mxu1 %v10909_v56  ;;  %4126 = vmatpush1.bf16.msra.mxu0 %v10911_v58  ;;  %v12691_v56 = vld [vmem:[#allocation13 + $0x8] sm:$0xff]  }
0x1b59   :  { %4084 = vmatprep.subr.bf16.mxu1 %v10894_v61  ;;  %4127 = vmatprep.subr.bf16.mxu0 %v10896_v62  ;;  %v12692_v58 = vld [vmem:[#allocation13 + $0x88] sm:$0xff]   ;;  %v12693_v61 = vld [vmem:[#allocation13 + $0x40] sm:$0xff]  }
0x1b5a   :  { %v12694_v62 = vld [vmem:[#allocation13 + $0xc0] sm:$0xff]  }
0x1b5c   :  { %4085 = vmatpush1.bf16.msra.mxu1 %v10893_v36  ;;  %4128 = vmatpush1.bf16.msra.mxu0 %v10895_v47  ;;  %v14221_v36 = vsub.s32 3, %v13796_v32  ;;  %v14224_v47 = vld [vmem:[%s14833_s20] sm:$0xff] }
0x1b5d   :  { %4086 = vmatprep.subr.bf16.mxu1 %v10878_v42  ;;  %4129 = vmatprep.subr.bf16.mxu0 %v10880_v45  ;;  %v3105_v50 = vrot.slane %v14224_v47, %v13803_v35  ;;  %v3101_v2 = vrot.slane %v14224_v47, %v13808_v40  ;;  %v3109_v22 = vrot.slane %v14224_v47, %v13799_v33 }
0x1b5e   :  { %v3113_v59 = vrot.slane %v14224_v47, %v14221_v36 }
0x1b60   :  { %4087 = vmatpush1.bf16.msra.mxu1 %v10877_v4  ;;  %4130 = vmatpush1.bf16.msra.mxu0 %v10879_v6 }
0x1b61   :  { %4088 = vmatprep.subr.bf16.mxu1 %v10862_v44  ;;  %4131 = vmatprep.subr.bf16.mxu0 %v10864_v7 }
0x1b64   :  { %4089 = vmatpush1.bf16.msra.mxu1 %v10861_v10  ;;  %4132 = vmatpush1.bf16.msra.mxu0 %v10863_v14 }
0x1b65   :  { %4090 = vmatprep.subr.bf16.mxu1 %v10846_v16  ;;  %4133 = vmatprep.subr.bf16.mxu0 %v10848_v8 }
0x1b68   :  { %4091 = vmatpush1.bf16.msra.mxu1 %v10845_v9  ;;  %4134 = vmatpush1.bf16.msra.mxu0 %v10847_v11 }
0x1b69   :  { %11523 = vmatprep.subr.bf16.mxu1 %v12665_v57  ;;  %11545 = vmatprep.subr.bf16.mxu0 %v12666_v12 }
0x1b6b   :  { %4109 = vmatmul.mubr.bf16.vlgmr.msra.gmra.mxu1 %v14204_v0  ;;  %4152 = vmatmul.mubr.bf16.vlgmr.msra.gmra.mxu0 %v14204_v0  ;;  %v12680_v0 = vld [vmem:[#allocation13 + $0xa0] sm:$0xff]  }
0x1b6c   :  { %11524 = vmatpush3.bf16.msra.mxu1 %v12667_v13  ;;  %11546 = vmatpush3.bf16.msra.mxu0 %v12668_v15 }
0x1b6d   :  { %11525 = vmatprep.subr.bf16.mxu1 %v12669_v17  ;;  %11547 = vmatprep.subr.bf16.mxu0 %v12670_v18 }
0x1b70   :  { %11526 = vmatpush3.bf16.msra.mxu1 %v12671_v19  ;;  %11548 = vmatpush3.bf16.msra.mxu0 %v12672_v20 }
0x1b71   :  { %11527 = vmatprep.subr.bf16.mxu1 %v12673_v28  ;;  %11549 = vmatprep.subr.bf16.mxu0 %v12674_v21 }
0x1b74   :  { %11528 = vmatpush3.bf16.msra.mxu1 %v12675_v23  ;;  %11550 = vmatpush3.bf16.msra.mxu0 %v12676_v24  ;;  %v12699_v23 = vld [vmem:[#allocation13 + $0x138] sm:$0xff]  }
0x1b75   :  { %11529 = vmatprep.subr.bf16.mxu1 %v12677_v29  ;;  %11551 = vmatprep.subr.bf16.mxu0 %v12678_v26  ;;  %v12700_v24 = vld [vmem:[#allocation13 + $0x1b8] sm:$0xff]  }
0x1b78   :  { %11530 = vmatpush3.bf16.msra.mxu1 %v12679_v27  ;;  %11552 = vmatpush3.bf16.msra.mxu0 %v12680_v0  ;;  %v12701_v27 = vld [vmem:[#allocation13 + $0x170] sm:$0xff]  }
0x1b79   :  { %11531 = vmatprep.subr.bf16.mxu1 %v12681_v30  ;;  %11553 = vmatprep.subr.bf16.mxu0 %v12682_v31  ;;  %v12702_v0 = vld [vmem:[#allocation13 + $0x1f0] sm:$0xff]  }
0x1b7a   :  { %v12703_v30 = vld [vmem:[#allocation13 + $0x130] sm:$0xff]  }
0x1b7b   :  { %v12704_v31 = vld [vmem:[#allocation13 + $0x1b0] sm:$0xff]  }
0x1b7c   :  { %11532 = vmatpush3.bf16.msra.mxu1 %v12683_v34  ;;  %11554 = vmatpush3.bf16.msra.mxu0 %v12684_v38  ;;  %v12705_v34 = vld [vmem:[#allocation13 + $0x168] sm:$0xff]  }
0x1b7d   :  { %11533 = vmatprep.subr.bf16.mxu1 %v12685_v39  ;;  %11555 = vmatprep.subr.bf16.mxu0 %v12686_v48  ;;  %v12706_v38 = vld [vmem:[#allocation13 + $0x1e8] sm:$0xff]  }
0x1b7e   :  { %v12707_v39 = vld [vmem:[#allocation13 + $0x128] sm:$0xff]  }
0x1b7f   :  { %v12708_v48 = vld [vmem:[#allocation13 + $0x1a8] sm:$0xff]  }
0x1b80   :  { %11534 = vmatpush3.bf16.msra.mxu1 %v12687_v51  ;;  %11556 = vmatpush3.bf16.msra.mxu0 %v12688_v52  ;;  %v12709_v51 = vld [vmem:[#allocation13 + $0x160] sm:$0xff]  }
0x1b81   :  { %11535 = vmatprep.subr.bf16.mxu1 %v12689_v54  ;;  %11557 = vmatprep.subr.bf16.mxu0 %v12690_v49  ;;  %v12710_v52 = vld [vmem:[#allocation13 + $0x1e0] sm:$0xff]  }
0x1b82   :  { %v12711_v54 = vld [vmem:[#allocation13 + $0x120] sm:$0xff]  }
0x1b83   :  { %v12712_v49 = vld [vmem:[#allocation13 + $0x1a0] sm:$0xff]  }
0x1b84   :  { %11536 = vmatpush3.bf16.msra.mxu1 %v12691_v56  ;;  %11558 = vmatpush3.bf16.msra.mxu0 %v12692_v58  ;;  %v12713_v56 = vld [vmem:[#allocation13 + $0x158] sm:$0xff]  }
0x1b85   :  { %11537 = vmatprep.subr.bf16.mxu1 %v12693_v61  ;;  %11559 = vmatprep.subr.bf16.mxu0 %v12694_v62  ;;  %v12714_v58 = vld [vmem:[#allocation13 + $0x1d8] sm:$0xff]  }
0x1b86   :  { %v12715_v61 = vld [vmem:[#allocation13 + $0x118] sm:$0xff]  }
0x1b87   :  { %v12716_v62 = vld [vmem:[#allocation13 + $0x198] sm:$0xff]  }
0x1b88   :  { %11538 = vmatpush3.bf16.msra.mxu1 %v12695_v60  ;;  %11560 = vmatpush3.bf16.msra.mxu0 %v12696_v37  ;;  %v12717_v60 = vld [vmem:[#allocation13 + $0x150] sm:$0xff]  }
0x1b89   :  { %11567 = vmatprep.subr.bf16.mxu1 %v12697_v43  ;;  %11589 = vmatprep.subr.bf16.mxu0 %v12698_v46  ;;  %v12718_v37 = vld [vmem:[#allocation13 + $0x1d0] sm:$0xff]   ;;  %v14235_v43 = vsub.s32 5, %v13796_v32  ;;  %v14238_v46 = vsub.s32 7, %v13796_v32 }
0x1bcb   :  { %v3852_v42 = vpop.f32.mrf.mxu1  ;;  %v3895_v45 = vpop.f32.mrf.mxu0 }
0x1bcc   :  { %v3853_v10 = vadd.f32 %v3852_v42, %v3101_v2  ;;  %v3896_v14 = vadd.f32 %v3895_v45, %v3109_v22  ;;  %v14241_v42 = vsub.s32 4, %v13796_v32  ;;  %v14244_v45 = vsub.s32 6, %v13796_v32 }
0x1bcd   :  { %v3854_v4 = vpop.f32.mrf.mxu1  ;;  %v3897_v6 = vpop.f32.mrf.mxu0 }
0x1bce   :  { %v3855_v25 = vadd.f32 %v3854_v4, %v3105_v50  ;;  %v3898_v41 = vadd.f32 %v3897_v6, %v3113_v59  ;;  %v4162_v19 = vmax.f32 %v3853_v10, 0.0  ;;  %v4164_v20 = vmax.f32 %v3896_v14, 0.0  ;;  %v12721_v4 = vld [vmem:[#allocation13 + $0x148] sm:$0xff]  }
0x1bcf   :  { %v3856_v44 = vpop.f32.mrf.mxu1  ;;  %v3899_v7 = vpop.f32.mrf.mxu0  ;;  %v12722_v6 = vld [vmem:[#allocation13 + $0x1c8] sm:$0xff]   ;;  %v3117_v32 = vrot.slane %v14224_v47, %v14241_v42 }
0x1bd0   :  { %v3857_v53 = vadd.f32 %v3856_v44, %v3101_v2  ;;  %v3900_v55 = vadd.f32 %v3899_v7, %v3109_v22  ;;  %v4163_v13 = vmax.f32 %v3855_v25, 0.0  ;;  %v4165_v15 = vmax.f32 %v3898_v41, 0.0  ;;  %v12724_v10 = vld [vmem:[#allocation13 + $0x188] sm:$0xff]  }
0x1bd1   :  { %v3858_v16 = vpop.f32.mrf.mxu1  ;;  %v3901_v8 = vpop.f32.mrf.mxu0  ;;  %v3121_v44 = vrot.slane %v14224_v47, %v14235_v43  ;;  %v3129_v7 = vrot.slane %v14224_v47, %v14238_v46  ;;  %v3125_v25 = vrot.slane %v14224_v47, %v14244_v45 }
0x1bd2   :  { %v3859_v9 = vadd.f32 %v3858_v16, %v3105_v50  ;;  %v3902_v11 = vadd.f32 %v3901_v8, %v3113_v59  ;;  %v4178_v57 = vmax.f32 %v3857_v53, 0.0  ;;  %v4180_v12 = vmax.f32 %v3900_v55, 0.0  ;;  %v12719_v50 = vld [vmem:[#allocation13 + $0x110] sm:$0xff]   ;;  %v12723_v55 = vld [vmem:[#allocation13 + $0x108] sm:$0xff]   ;;  %v12725_v8 = vld [vmem:[#allocation13 + $0x140] sm:$0xff]  }
0x1bd3   :  { %v12720_v59 = vld [vmem:[#allocation13 + $0x190] sm:$0xff]  }
0x1bd4   :  { %v4179_v17 = vmax.f32 %v3859_v9, 0.0  ;;  %v4181_v18 = vmax.f32 %v3902_v11, 0.0  ;;  %v4194_v29 = vpack.c.bf16 %v4178_v57, %v4162_v19  ;;  %v4196_v26 = vpack.c.bf16 %v4180_v12, %v4164_v20  ;;  %v12726_v9 = vld [vmem:[#allocation13 + $0x1c0] sm:$0xff]  }
0x1bd6   :  { %v4195_v28 = vpack.c.bf16 %v4179_v17, %v4163_v13  ;;  %v4197_v21 = vpack.c.bf16 %v4181_v18, %v4165_v15 }
0x1bd8   :  { %5273 = vmatprep.mubr.bf16.mxu1 %v4195_v28  ;;  %5314 = vmatprep.mubr.bf16.mxu0 %v4197_v21  ;;  %v12727_v28 = vld [vmem:[#allocation13 + $0x100] sm:$0xff]  }
0x1bd9   :  { %5274 = vmatmul.mubr.bf16.vlgmr.msra.gmra.mxu1 %v4194_v29  ;;  %5315 = vmatmul.mubr.bf16.vlgmr.msra.gmra.mxu0 %v4196_v26  ;;  %v12728_v21 = vld [vmem:[#allocation13 + $0x180] sm:$0xff]   ;;  %v12729_v29 = vld [vmem:[#allocation13 + $0x278] sm:$0xff]  }
0x1bda   :  { %11568 = vmatpush3.bf16.msra.mxu1 %v12699_v23  ;;  %11590 = vmatpush3.bf16.msra.mxu0 %v12700_v24  ;;  %v12730_v26 = vld [vmem:[#allocation13 + $0x2f8] sm:$0xff]  }
0x1bdb   :  { %11569 = vmatprep.subr.bf16.mxu1 %v12701_v27  ;;  %11591 = vmatprep.subr.bf16.mxu0 %v12702_v0 }
0x1bde   :  { %11570 = vmatpush3.bf16.msra.mxu1 %v12703_v30  ;;  %11592 = vmatpush3.bf16.msra.mxu0 %v12704_v31 }
0x1bdf   :  { %11571 = vmatprep.subr.bf16.mxu1 %v12705_v34  ;;  %11593 = vmatprep.subr.bf16.mxu0 %v12706_v38 }
0x1be2   :  { %11572 = vmatpush3.bf16.msra.mxu1 %v12707_v39  ;;  %11594 = vmatpush3.bf16.msra.mxu0 %v12708_v48 }
0x1be3   :  { %11573 = vmatprep.subr.bf16.mxu1 %v12709_v51  ;;  %11595 = vmatprep.subr.bf16.mxu0 %v12710_v52  ;;  %v12731_v51 = vld [vmem:[#allocation13 + $0x238] sm:$0xff]  }
0x1be4   :  { %v12732_v52 = vld [vmem:[#allocation13 + $0x2b8] sm:$0xff]  }
0x1be6   :  { %11574 = vmatpush3.bf16.msra.mxu1 %v12711_v54  ;;  %11596 = vmatpush3.bf16.msra.mxu0 %v12712_v49 }
0x1be7   :  { %11575 = vmatprep.subr.bf16.mxu1 %v12713_v56  ;;  %11597 = vmatprep.subr.bf16.mxu0 %v12714_v58  ;;  %v12733_v56 = vld [vmem:[#allocation13 + $0x270] sm:$0xff]  }
0x1be8   :  { %v12734_v58 = vld [vmem:[#allocation13 + $0x2f0] sm:$0xff]  }
0x1bea   :  { %11576 = vmatpush3.bf16.msra.mxu1 %v12715_v61  ;;  %11598 = vmatpush3.bf16.msra.mxu0 %v12716_v62  ;;  %v12735_v61 = vld [vmem:[#allocation13 + $0x230] sm:$0xff]  }
0x1beb   :  { %v3938_v2 = vpop.f32.mrf.mxu1  ;;  %v3981_v22 = vpop.f32.mrf.mxu0  ;;  %11577 = vmatprep.subr.bf16.mxu1 %v12717_v60  ;;  %11599 = vmatprep.subr.bf16.mxu0 %v12718_v37  ;;  %v12736_v62 = vld [vmem:[#allocation13 + $0x2b0] sm:$0xff]   ;;  %v12737_v60 = vld [vmem:[#allocation13 + $0x268] sm:$0xff]  }
0x1bec   :  { %v3939_v15 = vadd.f32 %v3938_v2, %v3117_v32  ;;  %v3982_v17 = vadd.f32 %v3981_v22, %v3125_v25  ;;  %v12738_v37 = vld [vmem:[#allocation13 + $0x2e8] sm:$0xff]   ;;  %v12741_v2 = vld [vmem:[#allocation13 + $0x260] sm:$0xff]  }
0x1bed   :  { %v3940_v41 = vpop.f32.mrf.mxu1  ;;  %v3983_v53 = vpop.f32.mrf.mxu0  ;;  %v12742_v22 = vld [vmem:[#allocation13 + $0x2e0] sm:$0xff]  }
0x1bee   :  { %11578 = vmatpush3.bf16.msra.mxu1 %v12719_v50  ;;  %11600 = vmatpush3.bf16.msra.mxu0 %v12720_v59  ;;  %v3941_v11 = vadd.f32 %v3940_v41, %v3121_v44  ;;  %v3984_v57 = vadd.f32 %v3983_v53, %v3129_v7  ;;  %v4166_v34 = vmax.f32 %v3939_v15, 0.0  ;;  %v4168_v38 = vmax.f32 %v3982_v17, 0.0  ;;  %v12739_v50 = vld [vmem:[#allocation13 + $0x228] sm:$0xff]   ;;  %v12749_v41 = vld [vmem:[#allocation13 + $0x250] sm:$0xff]  }
0x1bef   :  { %v3942_v14 = vpop.f32.mrf.mxu1  ;;  %v3985_v16 = vpop.f32.mrf.mxu0  ;;  %11579 = vmatprep.subr.bf16.mxu1 %v12721_v4  ;;  %11601 = vmatprep.subr.bf16.mxu0 %v12722_v6  ;;  %v12740_v59 = vld [vmem:[#allocation13 + $0x2a8] sm:$0xff]   ;;  %v12743_v4 = vld [vmem:[#allocation13 + $0x220] sm:$0xff]   ;;  %v12750_v53 = vld [vmem:[#allocation13 + $0x2d0] sm:$0xff]  }
0x1bf0   :  { %v3943_v12 = vadd.f32 %v3942_v14, %v3117_v32  ;;  %v3986_v13 = vadd.f32 %v3985_v16, %v3125_v25  ;;  %v4167_v27 = vmax.f32 %v3941_v11, 0.0  ;;  %v4169_v0 = vmax.f32 %v3984_v57, 0.0  ;;  %v12744_v6 = vld [vmem:[#allocation13 + $0x2a0] sm:$0xff]   ;;  %v12747_v32 = vld [vmem:[#allocation13 + $0x218] sm:$0xff]   ;;  %v12752_v14 = vld [vmem:[#allocation13 + $0x290] sm:$0xff]  }
0x1bf1   :  { %v3944_v18 = vpop.f32.mrf.mxu1  ;;  %v3987_v47 = vpop.f32.mrf.mxu0  ;;  %v12748_v25 = vld [vmem:[#allocation13 + $0x298] sm:$0xff]   ;;  %v12754_v11 = vld [vmem:[#allocation13 + $0x2c8] sm:$0xff]  }
0x1bf2   :  { %v3945_v19 = vadd.f32 %v3944_v18, %v3121_v44  ;;  %v3988_v20 = vadd.f32 %v3987_v47, %v3129_v7  ;;  %11580 = vmatpush3.bf16.msra.mxu1 %v12723_v55  ;;  %11602 = vmatpush3.bf16.msra.mxu0 %v12724_v10  ;;  %v4182_v23 = vmax.f32 %v3943_v12, 0.0  ;;  %v4184_v24 = vmax.f32 %v3986_v13, 0.0  ;;  %v12745_v44 = vld [vmem:[#allocation13 + $0x258] sm:$0xff]   ;;  %v12751_v10 = vld [vmem:[#allocation13 + $0x210] sm:$0xff]   ;;  %v12755_v47 = vld [vmem:[#allocation13 + $0x208] sm:$0xff]  }
0x1bf3   :  { %11581 = vmatprep.subr.bf16.mxu1 %v12725_v8  ;;  %11603 = vmatprep.subr.bf16.mxu0 %v12726_v9  ;;  %v12746_v7 = vld [vmem:[#allocation13 + $0x2d8] sm:$0xff]   ;;  %v12753_v9 = vld [vmem:[#allocation13 + $0x248] sm:$0xff]  }
0x1bf4   :  { %v4183_v30 = vmax.f32 %v3945_v19, 0.0  ;;  %v4185_v31 = vmax.f32 %v3988_v20, 0.0  ;;  %v4198_v54 = vpack.c.bf16 %v4182_v23, %v4166_v34  ;;  %v4200_v49 = vpack.c.bf16 %v4184_v24, %v4168_v38  ;;  %v14255_v55 = vld [vmem:[%s14833_s20 + $0x8] sm:$0xff]  ;;  %v12756_v19 = vld [vmem:[#allocation13 + $0x288] sm:$0xff]   ;;  %v12758_v23 = vld [vmem:[#allocation13 + $0x2c0] sm:$0xff]  }
0x1bf5   :  { %v3137_v57 = vrot.slane %v14255_v55, %v13803_v35  ;;  %v3145_v12 = vrot.slane %v14255_v55, %v14221_v36  ;;  %v3133_v13 = vrot.slane %v14255_v55, %v13808_v40  ;;  %v3141_v15 = vrot.slane %v14255_v55, %v13799_v33 }
0x1bf6   :  { %11582 = vmatpush3.bf16.msra.mxu1 %v12727_v28  ;;  %11604 = vmatpush3.bf16.msra.mxu0 %v12728_v21  ;;  %v4199_v39 = vpack.c.bf16 %v4183_v30, %v4167_v27  ;;  %v4201_v48 = vpack.c.bf16 %v4185_v31, %v4169_v0  ;;  %v12757_v21 = vld [vmem:[#allocation13 + $0x240] sm:$0xff]  }
0x1bf7   :  { %11611 = vmatprep.subr.bf16.mxu1 %v12729_v29  ;;  %11633 = vmatprep.subr.bf16.mxu0 %v12730_v26 }
0x1bf8   :  { %5355 = vmatprep.mubr.bf16.mxu1 %v4199_v39  ;;  %5396 = vmatprep.mubr.bf16.mxu0 %v4201_v48  ;;  %v12759_v48 = vld [vmem:[#allocation13 + $0x200] sm:$0xff]  }
0x1bf9   :  { %5356 = vmatmul.mubr.bf16.vlgmr.msra.gmra.mxu1 %v4198_v54  ;;  %5397 = vmatmul.mubr.bf16.vlgmr.msra.gmra.mxu0 %v4200_v49  ;;  %v12761_v49 = vld [vmem:[#allocation13 + $0x378] sm:$0xff]  }
0x1bfa   :  { %11612 = vmatpush3.bf16.msra.mxu1 %v12731_v51  ;;  %11634 = vmatpush3.bf16.msra.mxu0 %v12732_v52  ;;  %v12760_v51 = vld [vmem:[#allocation13 + $0x280] sm:$0xff]  }
0x1bfb   :  { %11613 = vmatprep.subr.bf16.mxu1 %v12733_v56  ;;  %11635 = vmatprep.subr.bf16.mxu0 %v12734_v58  ;;  %v12762_v56 = vld [vmem:[#allocation13 + $0x3f8] sm:$0xff]  }
0x1bfe   :  { %11614 = vmatpush3.bf16.msra.mxu1 %v12735_v61  ;;  %11636 = vmatpush3.bf16.msra.mxu0 %v12736_v62 }
0x1bff   :  { %11615 = vmatprep.subr.bf16.mxu1 %v12737_v60  ;;  %11637 = vmatprep.subr.bf16.mxu0 %v12738_v37 }
0x1c02   :  { %11616 = vmatpush3.bf16.msra.mxu1 %v12739_v50  ;;  %11638 = vmatpush3.bf16.msra.mxu0 %v12740_v59 }
0x1c03   :  { %11617 = vmatprep.subr.bf16.mxu1 %v12741_v2  ;;  %11639 = vmatprep.subr.bf16.mxu0 %v12742_v22  ;;  %v12763_v22 = vld [vmem:[#allocation13 + $0x338] sm:$0xff]  }
0x1c06   :  { %11618 = vmatpush3.bf16.msra.mxu1 %v12743_v4  ;;  %11640 = vmatpush3.bf16.msra.mxu0 %v12744_v6  ;;  %v12764_v4 = vld [vmem:[#allocation13 + $0x3b8] sm:$0xff]  }
0x1c07   :  { %11619 = vmatprep.subr.bf16.mxu1 %v12745_v44  ;;  %11641 = vmatprep.subr.bf16.mxu0 %v12746_v7  ;;  %v12765_v7 = vld [vmem:[#allocation13 + $0x370] sm:$0xff]  }
0x1c0a   :  { %11620 = vmatpush3.bf16.msra.mxu1 %v12747_v32  ;;  %11642 = vmatpush3.bf16.msra.mxu0 %v12748_v25  ;;  %v12766_v32 = vld [vmem:[#allocation13 + $0x3f0] sm:$0xff]  }
0x1c0b   :  { %v4024_v16 = vpop.f32.mrf.mxu1  ;;  %v4067_v8 = vpop.f32.mrf.mxu0  ;;  %11621 = vmatprep.subr.bf16.mxu1 %v12749_v41  ;;  %11643 = vmatprep.subr.bf16.mxu0 %v12750_v53  ;;  %v12767_v25 = vld [vmem:[#allocation13 + $0x330] sm:$0xff]   ;;  %v12769_v53 = vld [vmem:[#allocation13 + $0x368] sm:$0xff]  }
0x1c0c   :  { %v4025_v0 = vadd.f32 %v4024_v16, %v3133_v13  ;;  %v4068_v30 = vadd.f32 %v4067_v8, %v3141_v15  ;;  %v12768_v41 = vld [vmem:[#allocation13 + $0x3b0] sm:$0xff]   ;;  %v12772_v16 = vld [vmem:[#allocation13 + $0x3a8] sm:$0xff]   ;;  %v12773_v8 = vld [vmem:[#allocation13 + $0x360] sm:$0xff]  }
0x1c0d   :  { %v4026_v17 = vpop.f32.mrf.mxu1  ;;  %v4069_v18 = vpop.f32.mrf.mxu0 }
0x1c0e   :  { %11622 = vmatpush3.bf16.msra.mxu1 %v12751_v10  ;;  %11644 = vmatpush3.bf16.msra.mxu0 %v12752_v14  ;;  %v4027_v24 = vadd.f32 %v4026_v17, %v3137_v57  ;;  %v4070_v29 = vadd.f32 %v4069_v18, %v3145_v12  ;;  %v4170_v37 = vmax.f32 %v4025_v0, 0.0  ;;  %v4172_v50 = vmax.f32 %v4068_v30, 0.0  ;;  %v12770_v10 = vld [vmem:[#allocation13 + $0x3e8] sm:$0xff]   ;;  %v12780_v17 = vld [vmem:[#allocation13 + $0x398] sm:$0xff]   ;;  %v12781_v18 = vld [vmem:[#allocation13 + $0x350] sm:$0xff]  }
0x1c0f   :  { %v4028_v20 = vpop.f32.mrf.mxu1  ;;  %v4071_v28 = vpop.f32.mrf.mxu0  ;;  %11623 = vmatprep.subr.bf16.mxu1 %v12753_v9  ;;  %11645 = vmatprep.subr.bf16.mxu0 %v12754_v11  ;;  %v12771_v14 = vld [vmem:[#allocation13 + $0x328] sm:$0xff]   ;;  %v12774_v9 = vld [vmem:[#allocation13 + $0x3e0] sm:$0xff]   ;;  %v3157_v0 = vrot.slane %v14255_v55, %v14244_v45 }
0x1c10   :  { %v4029_v26 = vadd.f32 %v4028_v20, %v3133_v13  ;;  %v4072_v27 = vadd.f32 %v4071_v28, %v3141_v15  ;;  %v4171_v58 = vmax.f32 %v4027_v24, 0.0  ;;  %v4173_v61 = vmax.f32 %v4070_v29, 0.0  ;;  %v12775_v11 = vld [vmem:[#allocation13 + $0x320] sm:$0xff]   ;;  %v12778_v13 = vld [vmem:[#allocation13 + $0x3d8] sm:$0xff]   ;;  %v12784_v20 = vld [vmem:[#allocation13 + $0x390] sm:$0xff]  }
0x1c11   :  { %v4030_v31 = vpop.f32.mrf.mxu1  ;;  %v4073_v34 = vpop.f32.mrf.mxu0  ;;  %v12779_v15 = vld [vmem:[#allocation13 + $0x318] sm:$0xff]   ;;  %v12786_v24 = vld [vmem:[#allocation13 + $0x3c8] sm:$0xff]   ;;  %v3153_v29 = vrot.slane %v14255_v55, %v14235_v43 }
0x1c12   :  { %v4031_v38 = vadd.f32 %v4030_v31, %v3137_v57  ;;  %v4074_v39 = vadd.f32 %v4073_v34, %v3145_v12  ;;  %11624 = vmatpush3.bf16.msra.mxu1 %v12755_v47  ;;  %11646 = vmatpush3.bf16.msra.mxu0 %v12756_v19  ;;  %v4186_v52 = vmax.f32 %v4029_v26, 0.0  ;;  %v4188_v54 = vmax.f32 %v4072_v27, 0.0  ;;  %v12776_v57 = vld [vmem:[#allocation13 + $0x3a0] sm:$0xff]   ;;  %v12777_v12 = vld [vmem:[#allocation13 + $0x358] sm:$0xff]   ;;  %v12782_v47 = vld [vmem:[#allocation13 + $0x3d0] sm:$0xff]  }
0x1c13   :  { %11625 = vmatprep.subr.bf16.mxu1 %v12757_v21  ;;  %11647 = vmatprep.subr.bf16.mxu0 %v12758_v23  ;;  %v12783_v19 = vld [vmem:[#allocation13 + $0x310] sm:$0xff]   ;;  %v12785_v23 = vld [vmem:[#allocation13 + $0x348] sm:$0xff]   ;;  %v3161_v26 = vrot.slane %v14255_v55, %v14238_v46  ;;  %v3149_v27 = vrot.slane %v14255_v55, %v14241_v42 }
0x1c14   :  { %v4187_v62 = vmax.f32 %v4031_v38, 0.0  ;;  %v4189_v60 = vmax.f32 %v4074_v39, 0.0  ;;  %v4202_v6 = vpack.c.bf16 %v4186_v52, %v4170_v37  ;;  %v4204_v44 = vpack.c.bf16 %v4188_v54, %v4172_v50  ;;  %v12787_v34 = vld [vmem:[#allocation13 + $0x308] sm:$0xff]   ;;  %v12790_v52 = vld [vmem:[#allocation13 + $0x3c0] sm:$0xff]  }
0x1c15   :  { %v12788_v38 = vld [vmem:[#allocation13 + $0x388] sm:$0xff]  }
0x1c16   :  { %11626 = vmatpush3.bf16.msra.mxu1 %v12759_v48  ;;  %11648 = vmatpush3.bf16.msra.mxu0 %v12760_v51  ;;  %v4203_v59 = vpack.c.bf16 %v4187_v62, %v4171_v58  ;;  %v4205_v2 = vpack.c.bf16 %v4189_v60, %v4173_v61  ;;  %v12789_v51 = vld [vmem:[#allocation13 + $0x340] sm:$0xff]  }
0x1c17   :  { %11655 = vmatprep.subr.bf16.mxu1 %v12761_v49  ;;  %11677 = vmatprep.subr.bf16.mxu0 %v12762_v56 }
0x1c18   :  { %5437 = vmatprep.mubr.bf16.mxu1 %v4203_v59  ;;  %5478 = vmatprep.mubr.bf16.mxu0 %v4205_v2  ;;  %v12791_v59 = vld [vmem:[#allocation13 + $0x300] sm:$0xff]  }
0x1c19   :  { %5438 = vmatmul.mubr.bf16.vlgmr.msra.gmra.mxu1 %v4202_v6  ;;  %5479 = vmatmul.mubr.bf16.vlgmr.msra.gmra.mxu0 %v4204_v44  ;;  %v12792_v2 = vld [vmem:[#allocation13 + $0x380] sm:$0xff]  }
0x1c1a   :  { %11656 = vmatpush3.bf16.msra.mxu1 %v12763_v22  ;;  %11678 = vmatpush3.bf16.msra.mxu0 %v12764_v4 }
0x1c1b   :  { %11657 = vmatprep.subr.bf16.mxu1 %v12765_v7  ;;  %11679 = vmatprep.subr.bf16.mxu0 %v12766_v32 }
0x1c1e   :  { %11658 = vmatpush3.bf16.msra.mxu1 %v12767_v25  ;;  %11680 = vmatpush3.bf16.msra.mxu0 %v12768_v41 }
0x1c1f   :  { %11659 = vmatprep.subr.bf16.mxu1 %v12769_v53  ;;  %11681 = vmatprep.subr.bf16.mxu0 %v12770_v10 }
0x1c22   :  { %11660 = vmatpush3.bf16.msra.mxu1 %v12771_v14  ;;  %11682 = vmatpush3.bf16.msra.mxu0 %v12772_v16 }
0x1c23   :  { %11661 = vmatprep.subr.bf16.mxu1 %v12773_v8  ;;  %11683 = vmatprep.subr.bf16.mxu0 %v12774_v9 }
0x1c26   :  { %11662 = vmatpush3.bf16.msra.mxu1 %v12775_v11  ;;  %11684 = vmatpush3.bf16.msra.mxu0 %v12776_v57 }
0x1c27   :  { %11663 = vmatprep.subr.bf16.mxu1 %v12777_v12  ;;  %11685 = vmatprep.subr.bf16.mxu0 %v12778_v13 }
0x1c2a   :  { %11664 = vmatpush3.bf16.msra.mxu1 %v12779_v15  ;;  %11686 = vmatpush3.bf16.msra.mxu0 %v12780_v17 }
0x1c2b   :  { %v4110_v28 = vpop.f32.mrf.mxu1  ;;  %v4153_v21 = vpop.f32.mrf.mxu0  ;;  %11665 = vmatprep.subr.bf16.mxu1 %v12781_v18  ;;  %11687 = vmatprep.subr.bf16.mxu0 %v12782_v47 }
0x1c2c   :  { %v4111_v61 = vadd.f32 %v4110_v28, %v3149_v27  ;;  %v4154_v62 = vadd.f32 %v4153_v21, %v3157_v0 }
0x1c2d   :  { %v4112_v30 = vpop.f32.mrf.mxu1  ;;  %v4155_v31 = vpop.f32.mrf.mxu0 }
0x1c2e   :  { %11666 = vmatpush3.bf16.msra.mxu1 %v12783_v19  ;;  %11688 = vmatpush3.bf16.msra.mxu0 %v12784_v20  ;;  %v4113_v54 = vadd.f32 %v4112_v30, %v3153_v29  ;;  %v4156_v49 = vadd.f32 %v4155_v31, %v3161_v26  ;;  %v4174_v25 = vmax.f32 %v4111_v61, 0.0  ;;  %v4176_v41 = vmax.f32 %v4154_v62, 0.0 }
0x1c2f   :  { %v4114_v39 = vpop.f32.mrf.mxu1  ;;  %v4157_v48 = vpop.f32.mrf.mxu0  ;;  %11667 = vmatprep.subr.bf16.mxu1 %v12785_v23  ;;  %11689 = vmatprep.subr.bf16.mxu0 %v12786_v24 }
0x1c30   :  { %v4115_v56 = vadd.f32 %v4114_v39, %v3149_v27  ;;  %v4158_v58 = vadd.f32 %v4157_v48, %v3157_v0  ;;  %v4175_v6 = vmax.f32 %v4113_v54, 0.0  ;;  %v4177_v44 = vmax.f32 %v4156_v49, 0.0 }
0x1c31   :  { %v4116_v60 = vpop.f32.mrf.mxu1  ;;  %v4159_v55 = vpop.f32.mrf.mxu0 }
0x1c32   :  { %v4117_v37 = vadd.f32 %v4116_v60, %v3153_v29  ;;  %v4160_v50 = vadd.f32 %v4159_v55, %v3161_v26  ;;  %11668 = vmatpush3.bf16.msra.mxu1 %v12787_v34  ;;  %11690 = vmatpush3.bf16.msra.mxu0 %v12788_v38  ;;  %v4190_v22 = vmax.f32 %v4115_v56, 0.0  ;;  %v4192_v4 = vmax.f32 %v4158_v58, 0.0  ;;  %v10961_v29 = vld [vmem:[%s14834_s1] ss:$0 sm:$0xff] }
0x1c33   :  { %11669 = vmatprep.subr.bf16.mxu1 %v12789_v51  ;;  %11691 = vmatprep.subr.bf16.mxu0 %v12790_v52 }
0x1c34   :  { %v4191_v7 = vmax.f32 %v4117_v37, 0.0  ;;  %v4193_v32 = vmax.f32 %v4160_v50, 0.0  ;;  %v4206_v14 = vpack.c.bf16 %v4190_v22, %v4174_v25  ;;  %v4208_v16 = vpack.c.bf16 %v4192_v4, %v4176_v41 }
0x1c36   :  { %11670 = vmatpush3.bf16.msra.mxu1 %v12791_v59  ;;  %11692 = vmatpush3.bf16.msra.mxu0 %v12792_v2  ;;  %v4207_v53 = vpack.c.bf16 %v4191_v7, %v4175_v6  ;;  %v4209_v10 = vpack.c.bf16 %v4193_v32, %v4177_v44 }
0x1c37   :  { %12224 = vmatprep.subr.bf16.mxu0 %v13444_v1 }
0x1c38   :  { %5519 = vmatprep.mubr.bf16.mxu1 %v4207_v53  ;;  %5560 = vmatprep.mubr.bf16.mxu0 %v4209_v10 }
0x1c39   :  { %5520 = vmatmul.mubr.bf16.vlgmr.msra.gmra.mxu1 %v4206_v14  ;;  %5561 = vmatmul.mubr.bf16.vlgmr.msra.gmra.mxu0 %v4208_v16 }
0x1c3a   :  { %5821 = vmatprep.mubr.bf16.mxu1 %v13446_v3  ;;  %12240 = vmatprep.mubr.msk.bf16.mxu0 %vm13445_vm0, %v13444_v1 }
0x1c99   :  { %v11539_v8 = vpop.f32.mrf.mxu1  ;;  %v11561_v9 = vpop.f32.mrf.mxu0 }
0x1c9b   :  { %v11540_v11 = vpop.f32.mrf.mxu1  ;;  %v11562_v57 = vpop.f32.mrf.mxu0 }
0x1c9c   :  { %v11541_v24 = vadd.f32 %v11540_v11, %v11539_v8  ;;  %v11563_v38 = vadd.f32 %v11562_v57, %v11561_v9 }
0x1c9d   :  { %v11542_v12 = vpop.f32.mrf.mxu1  ;;  %v11564_v13 = vpop.f32.mrf.mxu0 }
0x1c9e   :  { %v5276_v30 = vadd.f32 %v11541_v24, %v10961_v29  ;;  %v12793_v24 = vld [vmem:[#allocation14 + $0xa8] ss:$12 sps:$4 sm:$0xff]  }
0x1c9f   :  { %v11543_v15 = vpop.f32.mrf.mxu1  ;;  %v11565_v17 = vpop.f32.mrf.mxu0 }
0x1ca0   :  { %v11544_v31 = vadd.f32 %v11543_v15, %v11542_v12  ;;  %v5317_v51 = vadd.f32 %v11563_v38, %v5276_v30  ;;  %v11566_v49 = vadd.f32 %v11565_v17, %v11564_v13 }
0x1ca2   :  { %v5279_v52 = vadd.f32 %v11544_v31, %v10961_v29  ;;  %v12795_v29 = vld [vmem:[#allocation14 + $0xac] ss:$12 sps:$4 sm:$0xff]  }
0x1ca3   :  { %5789 = vmatprep.subr.bf16.mxu1 %v12795_v29 }
0x1ca4   :  { %v5320_v62 = vadd.f32 %v11566_v49, %v5279_v52  ;;  %5790 = vmatpush1.bf16.msra.mxu1 %v12793_v24  ;;  %v12803_v52 = vld [vmem:[#allocation14 + $0x7c] ss:$12 sps:$4 sm:$0xff]   ;;  %v12804_v49 = vld [vmem:[#allocation14 + $0x80] ss:$12 sps:$4 sm:$0xff]  }
0x1cb9   :  { %v11583_v18 = vpop.f32.mrf.mxu1  ;;  %v11605_v47 = vpop.f32.mrf.mxu0 }
0x1cbb   :  { %v11584_v19 = vpop.f32.mrf.mxu1  ;;  %v11606_v20 = vpop.f32.mrf.mxu0 }
0x1cbc   :  { %v11585_v39 = vadd.f32 %v11584_v19, %v11583_v18  ;;  %v11607_v60 = vadd.f32 %v11606_v20, %v11605_v47 }
0x1cbd   :  { %v11586_v28 = vpop.f32.mrf.mxu1  ;;  %v11608_v21 = vpop.f32.mrf.mxu0 }
0x1cbe   :  { %v5358_v56 = vadd.f32 %v11585_v39, %v5317_v51  ;;  %v12799_v39 = vld [vmem:[#allocation14 + $0x94] ss:$12 sps:$4 sm:$0xff]   ;;  %v12800_v51 = vld [vmem:[#allocation14 + $0x98] ss:$12 sps:$4 sm:$0xff]  }
0x1cbf   :  { %v11587_v23 = vpop.f32.mrf.mxu1  ;;  %v11609_v26 = vpop.f32.mrf.mxu0  ;;  %5791 = vmatprep.subr.bf16.mxu1 %v12799_v39 }
0x1cc0   :  { %v11588_v58 = vadd.f32 %v11587_v23, %v11586_v28  ;;  %v5399_v50 = vadd.f32 %v11607_v60, %v5358_v56  ;;  %v11610_v22 = vadd.f32 %v11609_v26, %v11608_v21  ;;  %v12796_v26 = vld [vmem:[#allocation14 + $0xb0] ss:$12 sps:$4 sm:$0xff]   ;;  %v12805_v56 = vld [vmem:[#allocation14 + $0x60] ss:$12 sps:$4 sm:$0xff]   ;;  %v12809_v60 = vld [vmem:[#allocation14 + $0x48] ss:$12 sps:$4 sm:$0xff]  }
0x1cc1   :  { %12225 = vmatpush3.bf16.msra.mxu0 %v12796_v26 }
0x1cc2   :  { %v5361_v59 = vadd.f32 %v11588_v58, %v5320_v62  ;;  %12226 = vmatprep.subr.bf16.mxu0 %v13444_v1  ;;  %v12807_v58 = vld [vmem:[#allocation14 + $0x64] ss:$12 sps:$4 sm:$0xff]   ;;  %v12811_v62 = vld [vmem:[#allocation14 + $0x4c] ss:$12 sps:$4 sm:$0xff]  }
0x1cc4   :  { %v5402_v32 = vadd.f32 %v11610_v22, %v5361_v59  ;;  %v12816_v59 = vld [vmem:[#allocation14 + $0x38] ss:$12 sps:$4 sm:$0xff]  }
0x1cc5   :  { %12227 = vmatpush3.bf16.msra.mxu0 %v12800_v51  ;;  %v12817_v22 = vld [vmem:[#allocation14 + $0x18] ss:$12 sps:$4 sm:$0xff]  }
0x1cc6   :  { %12228 = vmatprep.subr.bf16.mxu0 %v13444_v1 }
0x1cc9   :  { %12229 = vmatpush3.bf16.msra.mxu0 %v12804_v49 }
0x1cca   :  { %12230 = vmatprep.subr.bf16.mxu0 %v13444_v1 }
0x1cd9   :  { %v11627_v27 = vpop.f32.mrf.mxu1  ;;  %v11649_v0 = vpop.f32.mrf.mxu0 }
0x1cdb   :  { %v11628_v34 = vpop.f32.mrf.mxu1  ;;  %v11650_v48 = vpop.f32.mrf.mxu0 }
0x1cdc   :  { %v11629_v55 = vadd.f32 %v11628_v34, %v11627_v27  ;;  %v11651_v25 = vadd.f32 %v11650_v48, %v11649_v0  ;;  %v12797_v48 = vld [vmem:[#allocation14 + $0x90] ss:$12 sps:$4 sm:$0xff]  }
0x1cdd   :  { %v11630_v54 = vpop.f32.mrf.mxu1  ;;  %v11652_v61 = vpop.f32.mrf.mxu0  ;;  %5792 = vmatpush1.bf16.msra.mxu1 %v12797_v48 }
0x1cde   :  { %v5440_v4 = vadd.f32 %v11629_v55, %v5399_v50  ;;  %5793 = vmatprep.subr.bf16.mxu1 %v12803_v52  ;;  %v12812_v55 = vld [vmem:[#allocation14 + $0x50] ss:$12 sps:$4 sm:$0xff]  }
0x1cdf   :  { %v11631_v37 = vpop.f32.mrf.mxu1  ;;  %v11653_v2 = vpop.f32.mrf.mxu0  ;;  %v12813_v50 = vld [vmem:[#allocation14 + $0x30] ss:$12 sps:$4 sm:$0xff]  }
0x1ce0   :  { %v11632_v6 = vadd.f32 %v11631_v37, %v11630_v54  ;;  %v5481_v10 = vadd.f32 %v11651_v25, %v5440_v4  ;;  %v11654_v11 = vadd.f32 %v11653_v2, %v11652_v61  ;;  %v12801_v54 = vld [vmem:[#allocation14 + $0x78] ss:$12 sps:$4 sm:$0xff]   ;;  %v12808_v61 = vld [vmem:[#allocation14 + $0x68] ss:$12 sps:$4 sm:$0xff]   ;;  %v12820_v4 = vld [vmem:[#allocation14 + $0x20] ss:$12 sps:$4 sm:$0xff]  }
0x1ce1   :  { %5794 = vmatpush1.bf16.msra.mxu1 %v12801_v54  ;;  %12231 = vmatpush3.bf16.msra.mxu0 %v12808_v61  ;;  %v12815_v37 = vld [vmem:[#allocation14 + $0x34] ss:$12 sps:$4 sm:$0xff]   ;;  %v12819_v2 = vld [vmem:[#allocation14 + $0x1c] ss:$12 sps:$4 sm:$0xff]  }
0x1ce2   :  { %v5443_v14 = vadd.f32 %v11632_v6, %v5402_v32  ;;  %5795 = vmatprep.subr.bf16.mxu1 %v12807_v58  ;;  %12232 = vmatprep.subr.bf16.mxu0 %v13444_v1  ;;  %v12823_v6 = vld [vmem:[#allocation14 + $0x4] ss:$12 sps:$4 sm:$0xff]  }
0x1ce4   :  { %v5484_v17 = vadd.f32 %v11654_v11, %v5443_v14 }
0x1ce5   :  { %5796 = vmatpush1.bf16.msra.mxu1 %v12805_v56  ;;  %12233 = vmatpush3.bf16.msra.mxu0 %v12812_v55 }
0x1ce6   :  { %5797 = vmatprep.subr.bf16.mxu1 %v12811_v62  ;;  %12234 = vmatprep.subr.bf16.mxu0 %v13444_v1 }
0x1ce9   :  { %5798 = vmatpush1.bf16.msra.mxu1 %v12809_v60  ;;  %12235 = vmatpush3.bf16.msra.mxu0 %v12816_v59 }
0x1cea   :  { %5799 = vmatprep.subr.bf16.mxu1 %v12815_v37  ;;  %12236 = vmatprep.subr.bf16.mxu0 %v13444_v1 }
0x1ced   :  { %5800 = vmatpush1.bf16.msra.mxu1 %v12813_v50  ;;  %12237 = vmatpush3.bf16.msra.mxu0 %v12820_v4 }
0x1cee   :  { %5801 = vmatprep.subr.bf16.mxu1 %v12819_v2  ;;  %12238 = vmatprep.subr.bf16.mxu0 %v13444_v1 }
0x1cf1   :  { %5802 = vmatpush1.bf16.msra.mxu1 %v12817_v22 }
0x1cf2   :  { %5803 = vmatprep.subr.bf16.mxu1 %v12823_v6 }
0x1cf9   :  { %v11671_v44 = vpop.f32.mrf.mxu1  ;;  %v11693_v7 = vpop.f32.mrf.mxu0 }
0x1cfb   :  { %v11672_v41 = vpop.f32.mrf.mxu1  ;;  %v11694_v53 = vpop.f32.mrf.mxu0 }
0x1cfc   :  { %v11673_v16 = vadd.f32 %v11672_v41, %v11671_v44  ;;  %v11695_v12 = vadd.f32 %v11694_v53, %v11693_v7  ;;  %v12821_v44 = vld [vmem:[#allocation14] ss:$12 sps:$4 sm:$0xff]   ;;  %v12824_v7 = vld [vmem:[#allocation14 + $0x8] ss:$12 sps:$4 sm:$0xff]  }
0x1cfd   :  { %v11674_v8 = vpop.f32.mrf.mxu1  ;;  %v11696_v9 = vpop.f32.mrf.mxu0  ;;  %5804 = vmatpush1.bf16.msra.mxu1 %v12821_v44  ;;  %12239 = vmatpush3.bf16.msra.mxu0 %v12824_v7 }
0x1cfe   :  { %v5522_v57 = vadd.f32 %v11673_v16, %v5481_v10  ;;  %12244 = vmatprep.subr.bf16.mxu1 %v13444_v1  ;;  %12268 = vmatprep.subr.bf16.mxu0 %v13444_v1 }
0x1cff   :  { %v11675_v13 = vpop.f32.mrf.mxu1  ;;  %v11697_v15 = vpop.f32.mrf.mxu0 }
0x1d00   :  { %v5563_v18 = vadd.f32 %v11695_v12, %v5522_v57  ;;  %v11676_v47 = vadd.f32 %v11675_v13, %v11674_v8  ;;  %v11698_v20 = vadd.f32 %v11697_v15, %v11696_v9  ;;  %v11090_v9 = vld [vmem:[%s14835_s2] ss:$0 sm:$0xff] }
0x1d01   :  { %v11091_v13 = vld [vmem:[%s14836_s12] ss:$0 sm:$0xff] }
0x1d02   :  { %v5525_v19 = vadd.f32 %v11676_v47, %v5484_v17  ;;  %v5569_v28 = vadd.f32 %v5563_v18, %v14198_v5 }
0x1d04   :  { %v5566_v21 = vadd.f32 %v11698_v20, %v5525_v19  ;;  %5571 = vadd.xlane.f32.xlu1 %v5569_v28  ;;  %v5644_v19 = vld [vmem:[%s14837_s27] sm:$0x7] }
0x1d05   :  { %v5653_v20 = vrot.slane %v5644_v19, %v13803_v35  ;;  %v5657_v29 = vrot.slane %v5644_v19, %v13799_v33 }
0x1d06   :  { %v5570_v23 = vadd.f32 %v5566_v21, %v14200_v63 }
0x1d08   :  { %5573 = vadd.xlane.f32.xlu0 %v5570_v23 }
0x1d8d   :  { %v5572_v27 = vpop.xlane.xlu1 %5571 }
0x1d8e   :  { %v5575_v0 = vmul.f32 0.0078125, %v5572_v27 }
0x1d90   :  { %v14281_v30 = vsub.f32 %v5569_v28, %v5575_v0 }
0x1d91   :  { %v5574_v31 = vpop.xlane.xlu0 %5573 }
0x1d92   :  { %v5576_v34 = vmul.f32 0.0078125, %v5574_v31  ;;  %v5579_v5 = vmul.f32 %v14281_v30, %v14281_v30 }
0x1d94   :  { %v14285_v38 = vsub.f32 %v5570_v23, %v5576_v34  ;;  %5581 = vadd.xlane.f32.xlu1 %v5579_v5 }
0x1d96   :  { %v5580_v63 = vmul.f32 %v14285_v38, %v14285_v38 }
0x1d98   :  { %5583 = vadd.xlane.f32.xlu0 %v5580_v63 }
0x1e1d   :  { %v5582_v32 = vpop.xlane.xlu1 %5581 }
0x1e1e   :  { %v5585_v25 = vmul.f32 0.0078125, %v5582_v32 }
0x1e20   :  { %v5587_v41 = vadd.f32 1e-05, %v5585_v25 }
0x1e21   :  { %v5584_v53 = vpop.xlane.xlu0 %5583 }
0x1e22   :  { %13049 = vrsqrt.f32 %v5587_v41  ;;  %v5586_v10 = vmul.f32 0.0078125, %v5584_v53 }
0x1e24   :  { %v5588_v14 = vadd.f32 1e-05, %v5586_v10 }
0x1e26   :  { %13051 = vrsqrt.f32 %v5588_v14 }
0x1e2f   :  { %v13050_v16 = vpop.eup %13049 }
0x1e30   :  { %v5591_v8 = vmul.f32 %v13050_v16, %v14281_v30  ;;  %v5649_v30 = vrot.slane %v5644_v19, %v13808_v40 }
0x1e32   :  { %v5600_v12 = vmul.f32 %v11090_v9, %v5591_v8 }
0x1e33   :  { %v13052_v11 = vpop.eup %13051 }
0x1e34   :  { %v5592_v57 = vmul.f32 %v13052_v11, %v14285_v38  ;;  %v14301_v17 = vadd.f32 %v11091_v13, %v5600_v12 }
0x1e36   :  { %v5601_v15 = vmul.f32 %v11090_v9, %v5592_v57 }
0x1e38   :  { %v14303_v18 = vadd.f32 %v11091_v13, %v5601_v15 }
0x1e3a   :  { %v5611_v47 = vpack.c.bf16 %v14303_v18, %v14301_v17 }
0x1e3c   :  { %5822 = vmatmul.mubr.bf16.vlgmr.msra.gmra.mxu1 %v5611_v47  ;;  %12241 = vmatmul.mubr.bf16.vlgmr.msra.gmra.mxu0 %v5611_v47 }
0x1e3d   :  { %12246 = vmatprep.mubr.msk.bf16.mxu1 %vm13445_vm0, %v13444_v1  ;;  %12270 = vmatprep.mubr.msk.bf16.mxu0 %vm13445_vm0, %v13444_v1 }
0x1efc   :  { %v5823_v28 = vpop.f32.mrf.mxu1  ;;  %v5866_v21 = vpop.f32.mrf.mxu0 }
0x1efd   :  { %v5824_v48 = vadd.f32 %v5823_v28, %v5649_v30  ;;  %v5867_v54 = vadd.f32 %v5866_v21, %v5657_v29 }
0x1efe   :  { %v5825_v23 = vpop.f32.mrf.mxu1  ;;  %v12242_v24 = vpop.f32.mrf.mxu0 }
0x1eff   :  { %v5826_v26 = vadd.f32 %v5825_v23, %v5653_v20  ;;  %v14324_v52 = vpack.c.bf16 %v5824_v48, %v5824_v48  ;;  %v14333_v58 = vpack.c.bf16 %v5867_v54, %v5867_v54 }
0x1f00   :  { %v5827_v27 = vpop.f32.mrf.mxu1  ;;  %v5869_v0 = vpop.f32.mrf.mxu0 }
0x1f01   :  { %v14315_v31 = vpack.c.bf16 %v5826_v26, %v5826_v26  ;;  %v14317_v34 = vadd.f32 %v5869_v0, %v5657_v29  ;;  %v5828_v56 = vadd.f32 %v5827_v27, %v5649_v30  ;;  %v5999_v62 = vsel %vm1100_vm4, %v14333_v58, 0 }
0x1f02   :  { %v5829_v5 = vpop.f32.mrf.mxu1  ;;  %v12243_v38 = vpop.f32.mrf.mxu0 }
0x1f03   :  { %v5830_v63 = vadd.f32 %v5829_v5, %v5653_v20  ;;  %v5883_v39 = vsel %vm366_vm1, %v14315_v31, 0  ;;  %v14335_v61 = vpack.c.bf16 %v5828_v56, %v5828_v56  ;;  %v14363_v19 = vpack.c.bf16 %v14317_v34, %v14317_v34 }
0x1f04   :  { %12245 = vmatpush3.bf16.xpose.msra.mxu1 %v5883_v39 }
0x1f05   :  { %12250 = vmatprep.subr.bf16.mxu1 %v13444_v1  ;;  %v14322_v51 = vpack.c.bf16 %v5830_v63, %v5830_v63  ;;  %v6045_v21 = vsel %vm1100_vm4, %v14363_v19, 0 }
0x1f07   :  { %v5929_v49 = vsel %vm366_vm1, %v14322_v51, 0 }
0x1f0b   :  { %12247 = vmatmul.mubr.msk.bf16.vlgmr.msra.gmra.mxu1 %vm366_vm1, %v14324_v52 }
0x1f0c   :  { %12251 = vmatpush3.bf16.xpose.msra.mxu1 %v5929_v49  ;;  %12252 = vmatprep.mubr.msk.bf16.mxu1 %vm13445_vm0, %v13444_v1 }
0x1f0d   :  { %12256 = vmatprep.subr.bf16.mxu1 %v13444_v1 }
0x1f13   :  { %12253 = vmatmul.mubr.msk.bf16.vlgmr.msra.gmra.mxu1 %vm366_vm1, %v14335_v61 }
0x1f14   :  { %12257 = vmatpush3.bf16.msra.mxu1 %v5999_v62  ;;  %12258 = vmatprep.mubr.msk.bf16.mxu1 %vm13445_vm0, %v13444_v1 }
0x1f15   :  { %12262 = vmatprep.subr.bf16.mxu1 %v13444_v1 }
0x1fcb   :  { %v5919_v60 = vpop.f32.mrf.mxu1 }
0x1fcc   :  { %v5971_v55 = vsel %vm1072_vm5, %v5919_v60, -inf }
0x1fcd   :  { %5972 = vmax.xlane.f32.xlu1 %v5971_v55  ;;  %v12248_v37 = vpop.f32.mrf.mxu1 }
0x1fcf   :  { %v5922_v50 = vpop.f32.mrf.mxu1 }
0x1fd1   :  { %v12249_v59 = vpop.f32.mrf.mxu1 }
0x1fd3   :  { %v5965_v2 = vpop.f32.mrf.mxu1 }
0x1fd4   :  { %v5974_v22 = vsel %vm1072_vm5, %v5965_v2, -inf }
0x1fd5   :  { %5975 = vmax.xlane.f32.xlu0 %v5974_v22  ;;  %v12254_v4 = vpop.f32.mrf.mxu1 }
0x1fd7   :  { %v5968_v6 = vpop.f32.mrf.mxu1 }
0x1fd9   :  { %v12255_v44 = vpop.f32.mrf.mxu1 }
0x2056   :  { %v5973_v7 = vpop.xlane.xlu1 %5972 }
0x2057   :  { %v5977_v32 = vsub.f32 %v5919_v60, %v5973_v7 }
0x2059   :  { %v5979_v25 = vmul.f32 1.442695, %v5977_v32 }
0x205b   :  { %13053 = vpow2.f32 %v5979_v25 }
0x205e   :  { %v5976_v41 = vpop.xlane.xlu0 %5975 }
0x205f   :  { %v5978_v53 = vsub.f32 %v5965_v2, %v5976_v41 }
0x2061   :  { %v5981_v10 = vmul.f32 1.442695, %v5978_v53 }
0x2063   :  { %13055 = vpow2.f32 %v5981_v10 }
0x2068   :  { %v13054_v14 = vpop.eup %13053 }
0x2069   :  { %v5983_v16 = vsel %vm1072_vm5, %v13054_v14, 0.0 }
0x206a   :  { %5984 = vadd.xlane.f32.xlu1 %v5983_v16 }
0x2070   :  { %v13056_v8 = vpop.eup %13055 }
0x2071   :  { %v5986_v9 = vsel %vm1072_vm5, %v13056_v8, 0.0 }
0x2072   :  { %5987 = vadd.xlane.f32.xlu0 %v5986_v9 }
0x207b   :  { %6091 = vrot.lane.b32.xlu1 %v14315_v31, %s13447_s14 }
0x207f   :  { %6088 = vrot.lane.b32.xlu1 %v14324_v52, %s13447_s14 }
0x2083   :  { %6140 = vrot.lane.b32.xlu1 %v14335_v61, %s13447_s14 }
0x2088   :  { %6143 = vrot.lane.b32.xlu0 %v14322_v51, %s13447_s14 }
0x20f3   :  { %v5985_v11 = vpop.xlane.xlu1 %5984 }
0x20f4   :  { %13057 = vrcp.f32 %v5985_v11 }
0x20f7   :  { %v6092_v57 = vpop.permute.xlu1 %6091 }
0x20f8   :  { %v6097_v12 = vsel %vm366_vm1, %v6092_v57, 0 }
0x20f9   :  { %12269 = vmatpush3.bf16.xpose.msra.mxu0 %v6097_v12 }
0x20fa   :  { %12280 = vmatprep.subr.bf16.mxu0 %v13444_v1 }
0x20fb   :  { %v5988_v13 = vpop.xlane.xlu0 %5987  ;;  %v6089_v15 = vpop.permute.xlu1 %6088 }
0x20fc   :  { %13059 = vrcp.f32 %v5988_v13 }
0x20ff   :  { %v6144_v29 = vpop.permute.xlu0 %6143  ;;  %v6141_v0 = vpop.permute.xlu1 %6140 }
0x2100   :  { %12271 = vmatmul.mubr.msk.bf16.vlgmr.msra.gmra.mxu0 %vm366_vm1, %v6089_v15  ;;  %v6149_v27 = vsel %vm366_vm1, %v6144_v29, 0 }
0x2101   :  { %v13058_v47 = vpop.eup %13057  ;;  %12282 = vmatprep.mubr.msk.bf16.mxu0 %vm13445_vm0, %v13444_v1 }
0x2102   :  { %v5991_v20 = vmul.f32 %v13058_v47, %v13054_v14 }
0x2104   :  { %v5993_v28 = vpack.c.bf16 %v5991_v20, %v5991_v20 }
0x2106   :  { %12259 = vmatmul.mubr.msk.bf16.vlgmr.msra.gmra.mxu1 %vm1072_vm5, %v5993_v28 }
0x2107   :  { %12263 = vmatpush3.bf16.msra.mxu1 %v6045_v21  ;;  %12264 = vmatprep.mubr.msk.bf16.mxu1 %vm13445_vm0, %v13444_v1 }
0x2108   :  { %12274 = vmatprep.subr.bf16.mxu1 %v13444_v1 }
0x2109   :  { %v13060_v23 = vpop.eup %13059 }
0x210a   :  { %v5992_v24 = vmul.f32 %v13060_v23, %v13056_v8 }
0x210c   :  { %v5994_v26 = vpack.c.bf16 %v5992_v24, %v5992_v24 }
0x210e   :  { %12265 = vmatmul.mubr.msk.bf16.vlgmr.msra.gmra.mxu1 %vm1072_vm5, %v5994_v26 }
0x210f   :  { %12275 = vmatpush3.bf16.xpose.msra.mxu1 %v6149_v27  ;;  %12276 = vmatprep.mubr.msk.bf16.mxu1 %vm13445_vm0, %v13444_v1 }
0x2110   :  { %12286 = vmatprep.subr.bf16.mxu1 %v13444_v1 }
0x2116   :  { %12277 = vmatmul.mubr.msk.bf16.vlgmr.msra.gmra.mxu1 %vm366_vm1, %v6141_v0 }
0x2117   :  { %12288 = vmatprep.mubr.msk.bf16.mxu1 %vm13445_vm0, %v13444_v1 }
0x21c0   :  { %v6133_v30 = vpop.f32.mrf.mxu0 }
0x21c1   :  { %v6191_v34 = vsel %vm1072_vm5, %v6133_v30, -inf }
0x21c2   :  { %6192 = vmax.xlane.f32.xlu1 %v6191_v34  ;;  %v12272_v5 = vpop.f32.mrf.mxu0 }
0x21c4   :  { %v6136_v38 = vpop.f32.mrf.mxu0 }
0x21c6   :  { %v14380_v63 = vpop.f32.mrf.mxu1  ;;  %v12273_v39 = vpop.f32.mrf.mxu0 }
0x21c8   :  { %v12260_v48 = vpop.f32.mrf.mxu1 }
0x21ca   :  { %v6038_v54 = vpop.f32.mrf.mxu1 }
0x21cc   :  { %v12261_v49 = vpop.f32.mrf.mxu1 }
0x21ce   :  { %v14382_v56 = vpop.f32.mrf.mxu1 }
0x21d0   :  { %v12266_v62 = vpop.f32.mrf.mxu1 }
0x21d2   :  { %v6084_v60 = vpop.f32.mrf.mxu1 }
0x21d3   :  { %6216 = vrot.lane.b32.xlu1 %v14333_v58, %s13447_s14 }
0x21d4   :  { %v12267_v55 = vpop.f32.mrf.mxu1 }
0x21d6   :  { %v6185_v37 = vpop.f32.mrf.mxu1 }
0x21d7   :  { %6315 = vrot.lane.b32.xlu1 %v14315_v31, %s13448_s19  ;;  %v6194_v50 = vsel %vm1072_vm5, %v6185_v37, -inf }
0x21d8   :  { %6195 = vmax.xlane.f32.xlu0 %v6194_v50  ;;  %v12278_v59 = vpop.f32.mrf.mxu1 }
0x21da   :  { %v6188_v2 = vpop.f32.mrf.mxu1 }
0x21db   :  { %6365 = vrot.lane.b32.xlu1 %v14322_v51, %s13448_s19 }
0x21dc   :  { %v12279_v22 = vpop.f32.mrf.mxu1 }
0x21df   :  { %6313 = vrot.lane.b32.xlu1 %v14324_v52, %s13448_s19 }
0x224b   :  { %v6193_v4 = vpop.xlane.xlu1 %6192 }
0x224c   :  { %v6197_v6 = vsub.f32 %v6133_v30, %v6193_v4 }
0x224e   :  { %v6199_v44 = vmul.f32 1.442695, %v6197_v6 }
0x224f   :  { %v6217_v7 = vpop.permute.xlu1 %6216 }
0x2250   :  { %13061 = vpow2.f32 %v6199_v44  ;;  %v6222_v32 = vsel %vm1100_vm4, %v6217_v7, 0 }
0x2251   :  { %12281 = vmatpush3.bf16.msra.mxu0 %v6222_v32 }
0x2252   :  { %12292 = vmatprep.subr.bf16.mxu0 %v13444_v1 }
0x2253   :  { %v6316_v57 = vpop.permute.xlu1 %6315 }
0x2254   :  { %v6321_v15 = vsel %vm366_vm1, %v6316_v57, 0 }
0x2257   :  { %v6366_v47 = vpop.permute.xlu1 %6365 }
0x2258   :  { %v6371_v27 = vsel %vm366_vm1, %v6366_v47, 0 }
0x225b   :  { %v6314_v28 = vpop.permute.xlu1 %6313 }
0x225d   :  { %v13062_v25 = vpop.eup %13061 }
0x225e   :  { %v6203_v41 = vsel %vm1072_vm5, %v13062_v25, 0.0 }
0x225f   :  { %6204 = vadd.xlane.f32.xlu0 %v6203_v41 }
0x2261   :  { %v6196_v53 = vpop.xlane.xlu0 %6195 }
0x2262   :  { %v6198_v10 = vsub.f32 %v6185_v37, %v6196_v53 }
0x2264   :  { %v6201_v14 = vmul.f32 1.442695, %v6198_v10 }
0x2266   :  { %13063 = vpow2.f32 %v6201_v14 }
0x2273   :  { %v13064_v16 = vpop.eup %13063 }
0x2274   :  { %v6206_v8 = vsel %vm1072_vm5, %v13064_v16, 0.0 }
0x2275   :  { %6207 = vadd.xlane.f32.xlu0 %v6206_v8 }
0x228b   :  { %6265 = vrot.lane.b32.xlu0 %v14363_v19, %s13447_s14 }
0x228f   :  { %6363 = vrot.lane.b32.xlu0 %v14335_v61, %s13448_s19 }
0x22e8   :  { %v6205_v9 = vpop.xlane.xlu0 %6204 }
0x22e9   :  { %13065 = vrcp.f32 %v6205_v9 }
0x22f6   :  { %v13066_v11 = vpop.eup %13065 }
0x22f7   :  { %v6211_v12 = vmul.f32 %v13066_v11, %v13062_v25 }
0x22f9   :  { %v6213_v13 = vpack.c.bf16 %v6211_v12, %v6211_v12 }
0x22fb   :  { %12283 = vmatmul.mubr.msk.bf16.vlgmr.msra.gmra.mxu0 %vm1072_vm5, %v6213_v13 }
0x22fc   :  { %12293 = vmatpush3.bf16.xpose.msra.mxu0 %v6321_v15  ;;  %12294 = vmatprep.mubr.msk.bf16.mxu0 %vm13445_vm0, %v13444_v1 }
0x22fd   :  { %12304 = vmatprep.subr.bf16.mxu0 %v13444_v1 }
0x22fe   :  { %v6208_v20 = vpop.xlane.xlu0 %6207 }
0x22ff   :  { %13067 = vrcp.f32 %v6208_v20 }
0x2302   :  { %v6266_v21 = vpop.permute.xlu0 %6265 }
0x2303   :  { %v6271_v23 = vsel %vm1100_vm4, %v6266_v21, 0  ;;  %12295 = vmatmul.mubr.msk.bf16.vlgmr.msra.gmra.mxu0 %vm366_vm1, %v6314_v28 }
0x2304   :  { %12287 = vmatpush3.bf16.msra.mxu1 %v6271_v23  ;;  %12306 = vmatprep.mubr.msk.bf16.mxu0 %vm13445_vm0, %v13444_v1 }
0x2305   :  { %12298 = vmatprep.subr.bf16.mxu1 %v13444_v1 }
0x2306   :  { %v6364_v0 = vpop.permute.xlu0 %6363 }
0x230c   :  { %v13068_v24 = vpop.eup %13067 }
0x230d   :  { %v6212_v29 = vmul.f32 %v13068_v24, %v13064_v16 }
0x230f   :  { %v6214_v26 = vpack.c.bf16 %v6212_v29, %v6212_v29 }
0x2311   :  { %12289 = vmatmul.mubr.msk.bf16.vlgmr.msra.gmra.mxu1 %vm1072_vm5, %v6214_v26 }
0x2312   :  { %12299 = vmatpush3.bf16.xpose.msra.mxu1 %v6371_v27  ;;  %12300 = vmatprep.mubr.msk.bf16.mxu1 %vm13445_vm0, %v13444_v1 }
0x2313   :  { %12310 = vmatprep.subr.bf16.mxu1 %v13444_v1 }
0x2319   :  { %12301 = vmatmul.mubr.msk.bf16.vlgmr.msra.gmra.mxu1 %vm366_vm1, %v6364_v0 }
0x231a   :  { %12312 = vmatprep.mubr.msk.bf16.mxu1 %vm13445_vm0, %v13444_v1 }
0x23bb   :  { %v14419_v30 = vpop.f32.mrf.mxu0 }
0x23bd   :  { %v12284_v34 = vpop.f32.mrf.mxu0 }
0x23bf   :  { %v6261_v5 = vpop.f32.mrf.mxu0 }
0x23c1   :  { %v12285_v38 = vpop.f32.mrf.mxu0 }
0x23c3   :  { %v6357_v39 = vpop.f32.mrf.mxu0 }
0x23c4   :  { %v6413_v48 = vsel %vm1072_vm5, %v6357_v39, -inf }
0x23c5   :  { %6414 = vmax.xlane.f32.xlu1 %v6413_v48  ;;  %v12296_v54 = vpop.f32.mrf.mxu0 }
0x23c7   :  { %v6360_v49 = vpop.f32.mrf.mxu0 }
0x23c9   :  { %v12297_v62 = vpop.f32.mrf.mxu0 }
0x23d1   :  { %v14422_v60 = vpop.f32.mrf.mxu1 }
0x23d2   :  { %v12583_v55 = vpack.i.bf16 %v14422_v60, %v14419_v30 }
0x23d3   :  { %v12290_v37 = vpop.f32.mrf.mxu1 }
0x23d5   :  { %v6310_v50 = vpop.f32.mrf.mxu1 }
0x23d6   :  { %6437 = vrot.lane.b32.xlu1 %v14333_v58, %s13448_s19 }
0x23d7   :  { %v12291_v59 = vpop.f32.mrf.mxu1 }
0x23d9   :  { %v6407_v2 = vpop.f32.mrf.mxu1 }
0x23da   :  { %6535 = vrot.lane.b32.xlu1 %v14315_v31, %s13449_s15  ;;  %v6416_v22 = vsel %vm1072_vm5, %v6407_v2, -inf }
0x23db   :  { %6417 = vmax.xlane.f32.xlu0 %v6416_v22  ;;  %v12302_v4 = vpop.f32.mrf.mxu1 }
0x23dd   :  { %v6410_v6 = vpop.f32.mrf.mxu1 }
0x23de   :  { %6585 = vrot.lane.b32.xlu1 %v14322_v51, %s13449_s15 }
0x23df   :  { %v12303_v44 = vpop.f32.mrf.mxu1 }
0x23e2   :  { %6533 = vrot.lane.b32.xlu1 %v14324_v52, %s13449_s15 }
0x244e   :  { %v6415_v7 = vpop.xlane.xlu1 %6414 }
0x244f   :  { %v6419_v32 = vsub.f32 %v6357_v39, %v6415_v7 }
0x2451   :  { %v6421_v25 = vmul.f32 1.442695, %v6419_v32 }
0x2452   :  { %v6438_v41 = vpop.permute.xlu1 %6437 }
0x2453   :  { %13069 = vpow2.f32 %v6421_v25  ;;  %v6443_v53 = vsel %vm1100_vm4, %v6438_v41, 0 }
0x2454   :  { %12305 = vmatpush3.bf16.msra.mxu0 %v6443_v53 }
0x2455   :  { %12316 = vmatprep.subr.bf16.mxu0 %v13444_v1 }
0x2456   :  { %v6536_v15 = vpop.permute.xlu1 %6535 }
0x2457   :  { %v6541_v28 = vsel %vm366_vm1, %v6536_v15, 0 }
0x245a   :  { %v6586_v21 = vpop.permute.xlu1 %6585 }
0x245b   :  { %v6591_v5 = vsel %vm366_vm1, %v6586_v21, 0 }
0x245e   :  { %v6534_v24 = vpop.permute.xlu1 %6533 }
0x2460   :  { %v13070_v10 = vpop.eup %13069 }
0x2461   :  { %v6425_v14 = vsel %vm1072_vm5, %v13070_v10, 0.0 }
0x2462   :  { %6426 = vadd.xlane.f32.xlu0 %v6425_v14 }
0x2464   :  { %v6418_v16 = vpop.xlane.xlu0 %6417 }
0x2465   :  { %v6420_v8 = vsub.f32 %v6407_v2, %v6418_v16 }
0x2467   :  { %v6423_v9 = vmul.f32 1.442695, %v6420_v8 }
0x2469   :  { %13071 = vpow2.f32 %v6423_v9 }
0x2476   :  { %v13072_v11 = vpop.eup %13071 }
0x2477   :  { %v6428_v57 = vsel %vm1072_vm5, %v13072_v11, 0.0 }
0x2478   :  { %6429 = vadd.xlane.f32.xlu0 %v6428_v57 }
0x248e   :  { %6485 = vrot.lane.b32.xlu0 %v14363_v19, %s13448_s19 }
0x2492   :  { %6583 = vrot.lane.b32.xlu0 %v14335_v61, %s13449_s15 }
0x24eb   :  { %v6427_v12 = vpop.xlane.xlu0 %6426 }
0x24ec   :  { %13073 = vrcp.f32 %v6427_v12 }
0x24f9   :  { %v13074_v13 = vpop.eup %13073 }
0x24fa   :  { %v6433_v47 = vmul.f32 %v13074_v13, %v13070_v10 }
0x24fc   :  { %v6435_v20 = vpack.c.bf16 %v6433_v47, %v6433_v47 }
0x24fe   :  { %12307 = vmatmul.mubr.msk.bf16.vlgmr.msra.gmra.mxu0 %vm1072_vm5, %v6435_v20 }
0x24ff   :  { %12317 = vmatpush3.bf16.xpose.msra.mxu0 %v6541_v28  ;;  %12318 = vmatprep.mubr.msk.bf16.mxu0 %vm13445_vm0, %v13444_v1 }
0x2500   :  { %12328 = vmatprep.subr.bf16.mxu0 %v13444_v1 }
0x2501   :  { %v6430_v23 = vpop.xlane.xlu0 %6429 }
0x2502   :  { %13075 = vrcp.f32 %v6430_v23 }
0x2505   :  { %v6486_v29 = vpop.permute.xlu0 %6485 }
0x2506   :  { %v6491_v26 = vsel %vm1100_vm4, %v6486_v29, 0  ;;  %12319 = vmatmul.mubr.msk.bf16.vlgmr.msra.gmra.mxu0 %vm366_vm1, %v6534_v24 }
0x2507   :  { %12311 = vmatpush3.bf16.msra.mxu1 %v6491_v26  ;;  %12330 = vmatprep.mubr.msk.bf16.mxu0 %vm13445_vm0, %v13444_v1 }
0x2508   :  { %12322 = vmatprep.subr.bf16.mxu1 %v13444_v1 }
0x2509   :  { %v6584_v38 = vpop.permute.xlu0 %6583 }
0x250f   :  { %v13076_v27 = vpop.eup %13075 }
0x2510   :  { %v6434_v0 = vmul.f32 %v13076_v27, %v13072_v11 }
0x2512   :  { %v6436_v34 = vpack.c.bf16 %v6434_v0, %v6434_v0 }
0x2514   :  { %12313 = vmatmul.mubr.msk.bf16.vlgmr.msra.gmra.mxu1 %vm1072_vm5, %v6436_v34 }
0x2515   :  { %12323 = vmatpush3.bf16.xpose.msra.mxu1 %v6591_v5  ;;  %12324 = vmatprep.mubr.msk.bf16.mxu1 %vm13445_vm0, %v13444_v1 }
0x2516   :  { %12334 = vmatprep.subr.bf16.mxu1 %v13444_v1 }
0x251c   :  { %12325 = vmatmul.mubr.msk.bf16.vlgmr.msra.gmra.mxu1 %vm366_vm1, %v6584_v38 }
0x251d   :  { %12336 = vmatprep.mubr.msk.bf16.mxu1 %vm13445_vm0, %v13444_v1 }
0x25be   :  { %v14461_v39 = vpop.f32.mrf.mxu0 }
0x25c0   :  { %v12308_v48 = vpop.f32.mrf.mxu0 }
0x25c2   :  { %v6482_v54 = vpop.f32.mrf.mxu0 }
0x25c4   :  { %v12309_v49 = vpop.f32.mrf.mxu0 }
0x25c6   :  { %v6577_v62 = vpop.f32.mrf.mxu0 }
0x25c7   :  { %v6633_v37 = vsel %vm1072_vm5, %v6577_v62, -inf }
0x25c8   :  { %6634 = vmax.xlane.f32.xlu1 %v6633_v37  ;;  %v12320_v50 = vpop.f32.mrf.mxu0 }
0x25ca   :  { %v6580_v59 = vpop.f32.mrf.mxu0 }
0x25cc   :  { %v12321_v2 = vpop.f32.mrf.mxu0 }
0x25d4   :  { %v14464_v22 = vpop.f32.mrf.mxu1 }
0x25d5   :  { %v12588_v4 = vpack.i.bf16 %v14464_v22, %v14461_v39 }
0x25d6   :  { %v12314_v6 = vpop.f32.mrf.mxu1 }
0x25d8   :  { %v6530_v44 = vpop.f32.mrf.mxu1 }
0x25d9   :  { %6657 = vrot.lane.b32.xlu1 %v14333_v58, %s13449_s15 }
0x25da   :  { %v12315_v7 = vpop.f32.mrf.mxu1 }
0x25dc   :  { %v6627_v32 = vpop.f32.mrf.mxu1 }
0x25dd   :  { %6755 = vrot.lane.b32.xlu1 %v14315_v31, %s13433_s26  ;;  %v6636_v25 = vsel %vm1072_vm5, %v6627_v32, -inf }
0x25de   :  { %6637 = vmax.xlane.f32.xlu0 %v6636_v25  ;;  %v12326_v41 = vpop.f32.mrf.mxu1 }
0x25e0   :  { %v6630_v53 = vpop.f32.mrf.mxu1 }
0x25e1   :  { %6805 = vrot.lane.b32.xlu1 %v14322_v51, %s13433_s26 }
0x25e2   :  { %v12327_v10 = vpop.f32.mrf.mxu1 }
0x25e5   :  { %6753 = vrot.lane.b32.xlu1 %v14324_v52, %s13433_s26 }
0x2651   :  { %v6635_v14 = vpop.xlane.xlu1 %6634 }
0x2652   :  { %v6639_v16 = vsub.f32 %v6577_v62, %v6635_v14 }
0x2654   :  { %v6641_v8 = vmul.f32 1.442695, %v6639_v16 }
0x2655   :  { %v6658_v9 = vpop.permute.xlu1 %6657 }
0x2656   :  { %13077 = vpow2.f32 %v6641_v8  ;;  %v6663_v11 = vsel %vm1100_vm4, %v6658_v9, 0 }
0x2657   :  { %12329 = vmatpush3.bf16.msra.mxu0 %v6663_v11 }
0x2658   :  { %12340 = vmatprep.subr.bf16.mxu0 %v13444_v1 }
0x2659   :  { %v6756_v24 = vpop.permute.xlu1 %6755 }
0x265a   :  { %v6761_v27 = vsel %vm366_vm1, %v6756_v24, 0 }
0x265d   :  { %v6806_v0 = vpop.permute.xlu1 %6805 }
0x265e   :  { %v6811_v37 = vsel %vm366_vm1, %v6806_v0, 0 }
0x2661   :  { %v6754_v5 = vpop.permute.xlu1 %6753 }
0x2663   :  { %v13078_v57 = vpop.eup %13077 }
0x2664   :  { %v6645_v12 = vsel %vm1072_vm5, %v13078_v57, 0.0 }
0x2665   :  { %6646 = vadd.xlane.f32.xlu0 %v6645_v12 }
0x2667   :  { %v6638_v13 = vpop.xlane.xlu0 %6637 }
0x2668   :  { %v6640_v15 = vsub.f32 %v6627_v32, %v6638_v13 }
0x266a   :  { %v6643_v47 = vmul.f32 1.442695, %v6640_v15 }
0x266c   :  { %13079 = vpow2.f32 %v6643_v47 }
0x2679   :  { %v13080_v20 = vpop.eup %13079 }
0x267a   :  { %v6648_v28 = vsel %vm1072_vm5, %v13080_v20, 0.0 }
0x267b   :  { %6649 = vadd.xlane.f32.xlu0 %v6648_v28 }
0x2691   :  { %6705 = vrot.lane.b32.xlu0 %v14363_v19, %s13449_s15 }
0x2695   :  { %6803 = vrot.lane.b32.xlu0 %v14335_v61, %s13433_s26 }
0x26ee   :  { %v6647_v21 = vpop.xlane.xlu0 %6646 }
0x26ef   :  { %13081 = vrcp.f32 %v6647_v21 }
0x26fc   :  { %v13082_v23 = vpop.eup %13081 }
0x26fd   :  { %v6653_v29 = vmul.f32 %v13082_v23, %v13078_v57 }
0x26ff   :  { %v6655_v26 = vpack.c.bf16 %v6653_v29, %v6653_v29 }
0x2701   :  { %12331 = vmatmul.mubr.msk.bf16.vlgmr.msra.gmra.mxu0 %vm1072_vm5, %v6655_v26 }
0x2702   :  { %12341 = vmatpush3.bf16.xpose.msra.mxu0 %v6761_v27  ;;  %12342 = vmatprep.mubr.msk.bf16.mxu0 %vm13445_vm0, %v13444_v1 }
0x2703   :  { %12352 = vmatprep.subr.bf16.mxu0 %v13444_v1 }
0x2704   :  { %v6650_v34 = vpop.xlane.xlu0 %6649 }
0x2705   :  { %13083 = vrcp.f32 %v6650_v34 }
0x2708   :  { %v6706_v38 = vpop.permute.xlu0 %6705 }
0x2709   :  { %v6711_v48 = vsel %vm1100_vm4, %v6706_v38, 0  ;;  %12343 = vmatmul.mubr.msk.bf16.vlgmr.msra.gmra.mxu0 %vm366_vm1, %v6754_v5 }
0x270a   :  { %12335 = vmatpush3.bf16.msra.mxu1 %v6711_v48  ;;  %12354 = vmatprep.mubr.msk.bf16.mxu0 %vm13445_vm0, %v13444_v1 }
0x270b   :  { %12346 = vmatprep.subr.bf16.mxu1 %v13444_v1 }
0x270c   :  { %v6804_v50 = vpop.permute.xlu0 %6803 }
0x2712   :  { %v13084_v54 = vpop.eup %13083 }
0x2713   :  { %v6654_v49 = vmul.f32 %v13084_v54, %v13080_v20 }
0x2715   :  { %v6656_v62 = vpack.c.bf16 %v6654_v49, %v6654_v49 }
0x2717   :  { %12337 = vmatmul.mubr.msk.bf16.vlgmr.msra.gmra.mxu1 %vm1072_vm5, %v6656_v62 }
0x2718   :  { %12347 = vmatpush3.bf16.xpose.msra.mxu1 %v6811_v37  ;;  %12348 = vmatprep.mubr.msk.bf16.mxu1 %vm13445_vm0, %v13444_v1 }
0x2719   :  { %12358 = vmatprep.subr.bf16.mxu1 %v13444_v1 }
0x271f   :  { %12349 = vmatmul.mubr.msk.bf16.vlgmr.msra.gmra.mxu1 %vm366_vm1, %v6804_v50 }
0x2720   :  { %12360 = vmatprep.mubr.msk.bf16.mxu1 %vm13445_vm0, %v13444_v1 }
0x27c1   :  { %v14503_v59 = vpop.f32.mrf.mxu0 }
0x27c3   :  { %v12332_v2 = vpop.f32.mrf.mxu0 }
0x27c5   :  { %v6702_v6 = vpop.f32.mrf.mxu0 }
0x27c7   :  { %v12333_v44 = vpop.f32.mrf.mxu0 }
0x27c9   :  { %v6797_v7 = vpop.f32.mrf.mxu0 }
0x27ca   :  { %v6853_v32 = vsel %vm1072_vm5, %v6797_v7, -inf }
0x27cb   :  { %6854 = vmax.xlane.f32.xlu1 %v6853_v32  ;;  %v12344_v25 = vpop.f32.mrf.mxu0 }
0x27cd   :  { %v6800_v41 = vpop.f32.mrf.mxu0 }
0x27cf   :  { %v12345_v53 = vpop.f32.mrf.mxu0 }
0x27d7   :  { %v14506_v10 = vpop.f32.mrf.mxu1 }
0x27d8   :  { %v12593_v14 = vpack.i.bf16 %v14506_v10, %v14503_v59 }
0x27d9   :  { %v12338_v16 = vpop.f32.mrf.mxu1 }
0x27db   :  { %v6750_v8 = vpop.f32.mrf.mxu1 }
0x27dc   :  { %6877 = vrot.lane.b32.xlu1 %v14333_v58, %s13433_s26 }
0x27dd   :  { %v12339_v9 = vpop.f32.mrf.mxu1 }
0x27df   :  { %v6847_v11 = vpop.f32.mrf.mxu1 }
0x27e0   :  { %6975 = vrot.lane.b32.xlu1 %v14315_v31, %s13450_s16  ;;  %v6856_v57 = vsel %vm1072_vm5, %v6847_v11, -inf }
0x27e1   :  { %6857 = vmax.xlane.f32.xlu0 %v6856_v57  ;;  %v12350_v12 = vpop.f32.mrf.mxu1 }
0x27e3   :  { %v6850_v13 = vpop.f32.mrf.mxu1 }
0x27e4   :  { %7025 = vrot.lane.b32.xlu1 %v14322_v51, %s13450_s16 }
0x27e5   :  { %v12351_v15 = vpop.f32.mrf.mxu1 }
0x27e8   :  { %6973 = vrot.lane.b32.xlu1 %v14324_v52, %s13450_s16 }
0x2854   :  { %v6855_v47 = vpop.xlane.xlu1 %6854 }
0x2855   :  { %v6859_v20 = vsub.f32 %v6797_v7, %v6855_v47 }
0x2857   :  { %v6861_v28 = vmul.f32 1.442695, %v6859_v20 }
0x2858   :  { %v6878_v21 = vpop.permute.xlu1 %6877 }
0x2859   :  { %13085 = vpow2.f32 %v6861_v28  ;;  %v6883_v23 = vsel %vm1100_vm4, %v6878_v21, 0 }
0x285a   :  { %12353 = vmatpush3.bf16.msra.mxu0 %v6883_v23 }
0x285b   :  { %12364 = vmatprep.subr.bf16.mxu0 %v13444_v1 }
0x285c   :  { %v6976_v54 = vpop.permute.xlu1 %6975 }
0x285d   :  { %v6981_v37 = vsel %vm366_vm1, %v6976_v54, 0 }
0x2860   :  { %v7026_v50 = vpop.permute.xlu1 %7025 }
0x2861   :  { %v7031_v53 = vsel %vm366_vm1, %v7026_v50, 0 }
0x2864   :  { %v6974_v6 = vpop.permute.xlu1 %6973 }
0x2866   :  { %v13086_v24 = vpop.eup %13085 }
0x2867   :  { %v6865_v29 = vsel %vm1072_vm5, %v13086_v24, 0.0 }
0x2868   :  { %6866 = vadd.xlane.f32.xlu0 %v6865_v29 }
0x286a   :  { %v6858_v26 = vpop.xlane.xlu0 %6857 }
0x286b   :  { %v6860_v27 = vsub.f32 %v6847_v11, %v6858_v26 }
0x286d   :  { %v6863_v0 = vmul.f32 1.442695, %v6860_v27 }
0x286f   :  { %13087 = vpow2.f32 %v6863_v0 }
0x287c   :  { %v13088_v34 = vpop.eup %13087 }
0x287d   :  { %v6868_v5 = vsel %vm1072_vm5, %v13088_v34, 0.0 }
0x287e   :  { %6869 = vadd.xlane.f32.xlu0 %v6868_v5 }
0x2894   :  { %6925 = vrot.lane.b32.xlu0 %v14363_v19, %s13433_s26 }
0x2898   :  { %7023 = vrot.lane.b32.xlu0 %v14335_v61, %s13450_s16 }
0x28f1   :  { %v6867_v38 = vpop.xlane.xlu0 %6866 }
0x28f2   :  { %13089 = vrcp.f32 %v6867_v38 }
0x28ff   :  { %v13090_v48 = vpop.eup %13089 }
0x2900   :  { %v6873_v49 = vmul.f32 %v13090_v48, %v13086_v24 }
0x2902   :  { %v6875_v62 = vpack.c.bf16 %v6873_v49, %v6873_v49 }
0x2904   :  { %12355 = vmatmul.mubr.msk.bf16.vlgmr.msra.gmra.mxu0 %vm1072_vm5, %v6875_v62 }
0x2905   :  { %12365 = vmatpush3.bf16.xpose.msra.mxu0 %v6981_v37  ;;  %12366 = vmatprep.mubr.msk.bf16.mxu0 %vm13445_vm0, %v13444_v1 }
0x2906   :  { %12376 = vmatprep.subr.bf16.mxu0 %v13444_v1 }
0x2907   :  { %v6870_v2 = vpop.xlane.xlu0 %6869 }
0x2908   :  { %13091 = vrcp.f32 %v6870_v2 }
0x290b   :  { %v6926_v44 = vpop.permute.xlu0 %6925 }
0x290c   :  { %v6931_v7 = vsel %vm1100_vm4, %v6926_v44, 0  ;;  %12367 = vmatmul.mubr.msk.bf16.vlgmr.msra.gmra.mxu0 %vm366_vm1, %v6974_v6 }
0x290d   :  { %12359 = vmatpush3.bf16.msra.mxu1 %v6931_v7  ;;  %12378 = vmatprep.mubr.msk.bf16.mxu0 %vm13445_vm0, %v13444_v1 }
0x290e   :  { %12370 = vmatprep.subr.bf16.mxu1 %v13444_v1 }
0x290f   :  { %v7024_v16 = vpop.permute.xlu0 %7023 }
0x2915   :  { %v13092_v32 = vpop.eup %13091 }
0x2916   :  { %v6874_v25 = vmul.f32 %v13092_v32, %v13088_v34 }
0x2918   :  { %v6876_v41 = vpack.c.bf16 %v6874_v25, %v6874_v25 }
0x291a   :  { %12361 = vmatmul.mubr.msk.bf16.vlgmr.msra.gmra.mxu1 %vm1072_vm5, %v6876_v41 }
0x291b   :  { %12371 = vmatpush3.bf16.xpose.msra.mxu1 %v7031_v53  ;;  %12372 = vmatprep.mubr.msk.bf16.mxu1 %vm13445_vm0, %v13444_v1 }
0x291c   :  { %12382 = vmatprep.subr.bf16.mxu1 %v13444_v1 }
0x2922   :  { %12373 = vmatmul.mubr.msk.bf16.vlgmr.msra.gmra.mxu1 %vm366_vm1, %v7024_v16 }
0x2923   :  { %12384 = vmatprep.mubr.msk.bf16.mxu1 %vm13445_vm0, %v13444_v1 }
0x29c4   :  { %v14545_v8 = vpop.f32.mrf.mxu0 }
0x29c6   :  { %v12356_v9 = vpop.f32.mrf.mxu0 }
0x29c8   :  { %v6922_v11 = vpop.f32.mrf.mxu0 }
0x29ca   :  { %v12357_v57 = vpop.f32.mrf.mxu0 }
0x29cc   :  { %v7017_v12 = vpop.f32.mrf.mxu0 }
0x29cd   :  { %v7073_v13 = vsel %vm1072_vm5, %v7017_v12, -inf }
0x29ce   :  { %7074 = vmax.xlane.f32.xlu1 %v7073_v13  ;;  %v12368_v15 = vpop.f32.mrf.mxu0 }
0x29d0   :  { %v7020_v47 = vpop.f32.mrf.mxu0 }
0x29d2   :  { %v12369_v20 = vpop.f32.mrf.mxu0 }
0x29da   :  { %v14548_v28 = vpop.f32.mrf.mxu1 }
0x29db   :  { %v12598_v21 = vpack.i.bf16 %v14548_v28, %v14545_v8 }
0x29dc   :  { %v12362_v23 = vpop.f32.mrf.mxu1 }
0x29de   :  { %v6970_v24 = vpop.f32.mrf.mxu1 }
0x29df   :  { %7097 = vrot.lane.b32.xlu1 %v14333_v58, %s13450_s16 }
0x29e0   :  { %v12363_v29 = vpop.f32.mrf.mxu1 }
0x29e2   :  { %v7067_v26 = vpop.f32.mrf.mxu1 }
0x29e3   :  { %7195 = vrot.lane.b32.xlu1 %v14315_v31, %s13451_s9  ;;  %v7076_v27 = vsel %vm1072_vm5, %v7067_v26, -inf }
0x29e4   :  { %7077 = vmax.xlane.f32.xlu0 %v7076_v27  ;;  %v12374_v0 = vpop.f32.mrf.mxu1 }
0x29e6   :  { %v7070_v34 = vpop.f32.mrf.mxu1 }
0x29e7   :  { %7245 = vrot.lane.b32.xlu1 %v14322_v51, %s13451_s9 }
0x29e8   :  { %v12375_v5 = vpop.f32.mrf.mxu1 }
0x29eb   :  { %7193 = vrot.lane.b32.xlu1 %v14324_v52, %s13451_s9 }
0x2a57   :  { %v7075_v38 = vpop.xlane.xlu1 %7074 }
0x2a58   :  { %v7079_v48 = vsub.f32 %v7017_v12, %v7075_v38 }
0x2a5a   :  { %v7081_v54 = vmul.f32 1.442695, %v7079_v48 }
0x2a5b   :  { %v7098_v49 = vpop.permute.xlu1 %7097 }
0x2a5c   :  { %13093 = vpow2.f32 %v7081_v54  ;;  %v7103_v62 = vsel %vm1100_vm4, %v7098_v49, 0 }
0x2a5d   :  { %12377 = vmatpush3.bf16.msra.mxu0 %v7103_v62 }
0x2a5e   :  { %12388 = vmatprep.subr.bf16.mxu0 %v13444_v1 }
0x2a5f   :  { %v7196_v53 = vpop.permute.xlu1 %7195 }
0x2a60   :  { %v7201_v11 = vsel %vm366_vm1, %v7196_v53, 0 }
0x2a63   :  { %v7246_v57 = vpop.permute.xlu1 %7245 }
0x2a64   :  { %v7251_v29 = vsel %vm366_vm1, %v7246_v57, 0 }
0x2a67   :  { %v7194_v13 = vpop.permute.xlu1 %7193 }
0x2a69   :  { %v13094_v37 = vpop.eup %13093 }
0x2a6a   :  { %v7085_v50 = vsel %vm1072_vm5, %v13094_v37, 0.0 }
0x2a6b   :  { %7086 = vadd.xlane.f32.xlu0 %v7085_v50 }
0x2a6d   :  { %v7078_v2 = vpop.xlane.xlu0 %7077 }
0x2a6e   :  { %v7080_v6 = vsub.f32 %v7067_v26, %v7078_v2 }
0x2a70   :  { %v7083_v44 = vmul.f32 1.442695, %v7080_v6 }
0x2a72   :  { %13095 = vpow2.f32 %v7083_v44 }
0x2a7f   :  { %v13096_v7 = vpop.eup %13095 }
0x2a80   :  { %v7088_v32 = vsel %vm1072_vm5, %v13096_v7, 0.0 }
0x2a81   :  { %7089 = vadd.xlane.f32.xlu0 %v7088_v32 }
0x2a97   :  { %7145 = vrot.lane.b32.xlu0 %v14363_v19, %s13450_s16 }
0x2a9b   :  { %7243 = vrot.lane.b32.xlu0 %v14335_v61, %s13451_s9 }
0x2af4   :  { %v7087_v25 = vpop.xlane.xlu0 %7086 }
0x2af5   :  { %13097 = vrcp.f32 %v7087_v25 }
0x2b02   :  { %v13098_v41 = vpop.eup %13097 }
0x2b03   :  { %v7093_v16 = vmul.f32 %v13098_v41, %v13094_v37 }
0x2b05   :  { %v7095_v9 = vpack.c.bf16 %v7093_v16, %v7093_v16 }
0x2b07   :  { %12379 = vmatmul.mubr.msk.bf16.vlgmr.msra.gmra.mxu0 %vm1072_vm5, %v7095_v9 }
0x2b08   :  { %12389 = vmatpush3.bf16.xpose.msra.mxu0 %v7201_v11  ;;  %12390 = vmatprep.mubr.msk.bf16.mxu0 %vm13445_vm0, %v13444_v1 }
0x2b09   :  { %12400 = vmatprep.subr.bf16.mxu0 %v13444_v1 }
0x2b0a   :  { %v7090_v12 = vpop.xlane.xlu0 %7089 }
0x2b0b   :  { %13099 = vrcp.f32 %v7090_v12 }
0x2b0e   :  { %v7146_v15 = vpop.permute.xlu0 %7145 }
0x2b0f   :  { %v7151_v47 = vsel %vm1100_vm4, %v7146_v15, 0  ;;  %12391 = vmatmul.mubr.msk.bf16.vlgmr.msra.gmra.mxu0 %vm366_vm1, %v7194_v13 }
0x2b10   :  { %12383 = vmatpush3.bf16.msra.mxu1 %v7151_v47  ;;  %12402 = vmatprep.mubr.msk.bf16.mxu0 %vm13445_vm0, %v13444_v1 }
0x2b11   :  { %12394 = vmatprep.subr.bf16.mxu1 %v13444_v1 }
0x2b12   :  { %v7244_v26 = vpop.permute.xlu0 %7243 }
0x2b18   :  { %v13100_v20 = vpop.eup %13099 }
0x2b19   :  { %v7094_v23 = vmul.f32 %v13100_v20, %v13096_v7 }
0x2b1b   :  { %v7096_v24 = vpack.c.bf16 %v7094_v23, %v7094_v23 }
0x2b1d   :  { %12385 = vmatmul.mubr.msk.bf16.vlgmr.msra.gmra.mxu1 %vm1072_vm5, %v7096_v24 }
0x2b1e   :  { %12395 = vmatpush3.bf16.xpose.msra.mxu1 %v7251_v29  ;;  %12396 = vmatprep.mubr.msk.bf16.mxu1 %vm13445_vm0, %v13444_v1 }
0x2b1f   :  { %12406 = vmatprep.subr.bf16.mxu1 %v13444_v1 }
0x2b25   :  { %12397 = vmatmul.mubr.msk.bf16.vlgmr.msra.gmra.mxu1 %vm366_vm1, %v7244_v26 }
0x2b26   :  { %12408 = vmatprep.mubr.msk.bf16.mxu1 %vm13445_vm0, %v13444_v1 }
0x2bc7   :  { %v14587_v27 = vpop.f32.mrf.mxu0 }
0x2bc9   :  { %v12380_v0 = vpop.f32.mrf.mxu0 }
0x2bcb   :  { %v7142_v34 = vpop.f32.mrf.mxu0 }
0x2bcd   :  { %v12381_v5 = vpop.f32.mrf.mxu0 }
0x2bcf   :  { %v7237_v38 = vpop.f32.mrf.mxu0 }
0x2bd0   :  { %v7293_v48 = vsel %vm1072_vm5, %v7237_v38, -inf }
0x2bd1   :  { %7294 = vmax.xlane.f32.xlu1 %v7293_v48  ;;  %v12392_v54 = vpop.f32.mrf.mxu0 }
0x2bd3   :  { %v7240_v49 = vpop.f32.mrf.mxu0 }
0x2bd5   :  { %v12393_v62 = vpop.f32.mrf.mxu0 }
0x2bdd   :  { %v14590_v37 = vpop.f32.mrf.mxu1 }
0x2bde   :  { %v12603_v50 = vpack.i.bf16 %v14590_v37, %v14587_v27 }
0x2bdf   :  { %v12386_v2 = vpop.f32.mrf.mxu1 }
0x2be1   :  { %v7190_v6 = vpop.f32.mrf.mxu1 }
0x2be2   :  { %7317 = vrot.lane.b32.xlu1 %v14333_v58, %s13451_s9 }
0x2be3   :  { %v12387_v44 = vpop.f32.mrf.mxu1 }
0x2be5   :  { %v7287_v7 = vpop.f32.mrf.mxu1 }
0x2be6   :  { %7415 = vrot.lane.b32.xlu1 %v14315_v31, %s13452_s28  ;;  %v7296_v32 = vsel %vm1072_vm5, %v7287_v7, -inf }
0x2be7   :  { %7297 = vmax.xlane.f32.xlu0 %v7296_v32  ;;  %v12398_v25 = vpop.f32.mrf.mxu1 }
0x2be9   :  { %v7290_v41 = vpop.f32.mrf.mxu1 }
0x2bea   :  { %7465 = vrot.lane.b32.xlu1 %v14322_v51, %s13452_s28 }
0x2beb   :  { %v12399_v53 = vpop.f32.mrf.mxu1 }
0x2bee   :  { %7413 = vrot.lane.b32.xlu1 %v14324_v52, %s13452_s28 }
0x2c5a   :  { %v7295_v16 = vpop.xlane.xlu1 %7294 }
0x2c5b   :  { %v7299_v9 = vsub.f32 %v7237_v38, %v7295_v16 }
0x2c5d   :  { %v7301_v11 = vmul.f32 1.442695, %v7299_v9 }
0x2c5e   :  { %v7318_v57 = vpop.permute.xlu1 %7317 }
0x2c5f   :  { %13101 = vpow2.f32 %v7301_v11  ;;  %v7323_v12 = vsel %vm1100_vm4, %v7318_v57, 0 }
0x2c60   :  { %12401 = vmatpush3.bf16.msra.mxu0 %v7323_v12 }
0x2c61   :  { %12412 = vmatprep.subr.bf16.mxu0 %v13444_v1 }
0x2c62   :  { %v7416_v29 = vpop.permute.xlu1 %7415 }
0x2c63   :  { %v7421_v34 = vsel %vm366_vm1, %v7416_v29, 0 }
0x2c66   :  { %v7466_v5 = vpop.permute.xlu1 %7465 }
0x2c67   :  { %v7471_v6 = vsel %vm366_vm1, %v7466_v5, 0 }
0x2c6c   :  { %v13102_v31 = vpop.eup %13101 }
0x2c6d   :  { %v7305_v13 = vsel %vm1072_vm5, %v13102_v31, 0.0 }
0x2c6e   :  { %7306 = vadd.xlane.f32.xlu0 %v7305_v13 }
0x2c70   :  { %v7298_v15 = vpop.xlane.xlu0 %7297 }
0x2c71   :  { %v7300_v51 = vsub.f32 %v7287_v7, %v7298_v15 }
0x2c73   :  { %v7303_v47 = vmul.f32 1.442695, %v7300_v51 }
0x2c75   :  { %13103 = vpow2.f32 %v7303_v47 }
0x2c82   :  { %v13104_v20 = vpop.eup %13103 }
0x2c83   :  { %v7308_v52 = vsel %vm1072_vm5, %v13104_v20, 0.0 }
0x2c84   :  { %7309 = vadd.xlane.f32.xlu0 %v7308_v52 }
0x2c9a   :  { %7365 = vrot.lane.b32.xlu0 %v14363_v19, %s13451_s9 }
0x2c9e   :  { %7463 = vrot.lane.b32.xlu0 %v14335_v61, %s13452_s28  ;;  %v7414_v61 = vpop.permute.xlu1 %7413 }
0x2cf7   :  { %v7307_v23 = vpop.xlane.xlu0 %7306 }
0x2cf8   :  { %13105 = vrcp.f32 %v7307_v23 }
0x2d05   :  { %v13106_v24 = vpop.eup %13105 }
0x2d06   :  { %v7313_v26 = vmul.f32 %v13106_v24, %v13102_v31 }
0x2d08   :  { %v7315_v0 = vpack.c.bf16 %v7313_v26, %v7313_v26 }
0x2d0a   :  { %12403 = vmatmul.mubr.msk.bf16.vlgmr.msra.gmra.mxu0 %vm1072_vm5, %v7315_v0 }
0x2d0b   :  { %12413 = vmatpush3.bf16.xpose.msra.mxu0 %v7421_v34  ;;  %12414 = vmatprep.mubr.msk.bf16.mxu0 %vm13445_vm0, %v13444_v1 }
0x2d0c   :  { %12424 = vmatprep.subr.bf16.mxu0 %v13444_v1 }
0x2d0d   :  { %v7310_v38 = vpop.xlane.xlu0 %7309 }
0x2d0e   :  { %13107 = vrcp.f32 %v7310_v38  ;;  %v12825_v38 = vld [vmem:[#allocation16 + $0x38] sm:$0xff]  }
0x2d11   :  { %v7366_v48 = vpop.permute.xlu0 %7365 }
0x2d12   :  { %v7371_v54 = vsel %vm1100_vm4, %v7366_v48, 0  ;;  %12415 = vmatmul.mubr.msk.bf16.vlgmr.msra.gmra.mxu0 %vm366_vm1, %v7414_v61  ;;  %v12826_v61 = vld [vmem:[#allocation16 + $0x30] sm:$0xff]   ;;  %v12827_v48 = vld [vmem:[#allocation16 + $0x28] sm:$0xff]  }
0x2d13   :  { %12407 = vmatpush3.bf16.msra.mxu1 %v7371_v54  ;;  %12426 = vmatprep.mubr.msk.bf16.mxu0 %vm13445_vm0, %v13444_v1  ;;  %v12828_v54 = vld [vmem:[#allocation16 + $0x20] sm:$0xff]  }
0x2d14   :  { %12418 = vmatprep.subr.bf16.mxu1 %v13444_v1 }
0x2d15   :  { %v7464_v44 = vpop.permute.xlu0 %7463 }
0x2d1b   :  { %v13108_v49 = vpop.eup %13107 }
0x2d1c   :  { %v7314_v62 = vmul.f32 %v13108_v49, %v13104_v20  ;;  %v12829_v49 = vld [vmem:[#allocation16 + $0x18] sm:$0xff]  }
0x2d1e   :  { %v7316_v2 = vpack.c.bf16 %v7314_v62, %v7314_v62  ;;  %v12830_v62 = vld [vmem:[#allocation16 + $0x10] sm:$0xff]  }
0x2d20   :  { %12409 = vmatmul.mubr.msk.bf16.vlgmr.msra.gmra.mxu1 %vm1072_vm5, %v7316_v2  ;;  %v12831_v2 = vld [vmem:[#allocation16 + $0x8] sm:$0xff]  }
0x2d21   :  { %12419 = vmatpush3.bf16.xpose.msra.mxu1 %v7471_v6  ;;  %12420 = vmatprep.mubr.msk.bf16.mxu1 %vm13445_vm0, %v13444_v1 }
0x2d22   :  { %12430 = vmatprep.subr.bf16.mxu1 %v13444_v1 }
0x2d28   :  { %12421 = vmatmul.mubr.msk.bf16.vlgmr.msra.gmra.mxu1 %vm366_vm1, %v7464_v44 }
0x2d29   :  { %12432 = vmatprep.mubr.msk.bf16.mxu1 %vm13445_vm0, %v13444_v1 }
0x2dca   :  { %v7359_v7 = vpop.f32.mrf.mxu0 }
0x2dcc   :  { %v12404_v32 = vpop.f32.mrf.mxu0 }
0x2dce   :  { %v7362_v25 = vpop.f32.mrf.mxu0 }
0x2dcf   :  { %v12832_v25 = vld [vmem:[#allocation16] sm:$0xff]  }
0x2dd0   :  { %v12405_v41 = vpop.f32.mrf.mxu0 }
0x2dd2   :  { %v7457_v53 = vpop.f32.mrf.mxu0 }
0x2dd3   :  { %v7513_v16 = vsel %vm1072_vm5, %v7457_v53, -inf }
0x2dd4   :  { %7514 = vmax.xlane.f32.xlu1 %v7513_v16  ;;  %v12416_v9 = vpop.f32.mrf.mxu0 }
0x2dd6   :  { %v7460_v11 = vpop.f32.mrf.mxu0 }
0x2dd8   :  { %v12417_v57 = vpop.f32.mrf.mxu0 }
0x2de0   :  { %v7407_v12 = vpop.f32.mrf.mxu1 }
0x2de1   :  { %v12608_v31 = vpack.i.bf16 %v7407_v12, %v7359_v7 }
0x2de2   :  { %v12410_v13 = vpop.f32.mrf.mxu1 }
0x2de4   :  { %v7410_v15 = vpop.f32.mrf.mxu1 }
0x2de5   :  { %7537 = vrot.lane.b32.xlu1 %v14333_v58, %s13452_s28 }
0x2de6   :  { %v12411_v51 = vpop.f32.mrf.mxu1 }
0x2de8   :  { %v7507_v47 = vpop.f32.mrf.mxu1 }
0x2de9   :  { %12584 = vrot.lane.b32.xlu1 %v12583_v55, %s13452_s28  ;;  %v7516_v20 = vsel %vm1072_vm5, %v7507_v47, -inf }
0x2dea   :  { %7517 = vmax.xlane.f32.xlu0 %v7516_v20  ;;  %v12422_v52 = vpop.f32.mrf.mxu1 }
0x2dec   :  { %v7510_v23 = vpop.f32.mrf.mxu1 }
0x2ded   :  { %12589 = vrot.lane.b32.xlu1 %v12588_v4, %s13451_s9 }
0x2dee   :  { %v12423_v24 = vpop.f32.mrf.mxu1 }
0x2df1   :  { %12594 = vrot.lane.b32.xlu1 %v12593_v14, %s13450_s16 }
0x2df5   :  { %12604 = vrot.lane.b32.xlu1 %v12603_v50, %s13449_s15 }
0x2e5d   :  { %v7515_v58 = vpop.xlane.xlu1 %7514 }
0x2e5e   :  { %v7519_v30 = vsub.f32 %v7457_v53, %v7515_v58 }
0x2e60   :  { %v7521_v60 = vmul.f32 1.442695, %v7519_v30 }
0x2e61   :  { %v7538_v55 = vpop.permute.xlu1 %7537 }
0x2e62   :  { %13109 = vpow2.f32 %v7521_v60  ;;  %v7543_v29 = vsel %vm1100_vm4, %v7538_v55, 0 }
0x2e63   :  { %12425 = vmatpush3.bf16.msra.mxu0 %v7543_v29 }
0x2e64   :  { %12436 = vmatprep.subr.bf16.mxu0 %v13444_v1 }
0x2e65   :  { %v12585_v57 = vpop.permute.xlu1 %12584 }
0x2e66   :  { %v12587_v15 = vunpack.i.h.bf16 %v12585_v57  ;;  %v12586_v51 = vunpack.i.l.bf16 %v12585_v57 }
0x2e68   :  { %v7690_v30 = vsel %vm366_vm1, %v14382_v56, %v12587_v15  ;;  %v7689_v60 = vsel %vm366_vm1, %v14380_v63, %v12586_v51 }
0x2e69   :  { %v12590_v12 = vpop.permute.xlu1 %12589 }
0x2e6a   :  { %v12591_v20 = vunpack.i.l.bf16 %v12590_v12 }
0x2e6c   :  { %v7691_v29 = vsel %vm411_vm2, %v7689_v60, %v12591_v20  ;;  %v7955_v20 = vld [vmem:[#allocation17 + $0x300] sm:$0xff] }
0x2e6d   :  { %v12595_v13 = vpop.permute.xlu1 %12594 }
0x2e6e   :  { %v12597_v52 = vunpack.i.h.bf16 %v12595_v13  ;;  %v12596_v23 = vunpack.i.l.bf16 %v12595_v13 }
0x2e6f   :  { %v13110_v39 = vpop.eup %13109 }
0x2e70   :  { %v7525_v22 = vsel %vm1072_vm5, %v13110_v39, 0.0 }
0x2e71   :  { %7526 = vadd.xlane.f32.xlu0 %v7525_v22  ;;  %v12605_v22 = vpop.permute.xlu1 %12604 }
0x2e73   :  { %v7518_v4 = vpop.xlane.xlu0 %7517 }
0x2e74   :  { %v7520_v59 = vsub.f32 %v7507_v47, %v7518_v4  ;;  %v12592_v47 = vunpack.i.h.bf16 %v12590_v12  ;;  %v7693_v4 = vsel %vm2796_vm6, %v7691_v29, %v12596_v23  ;;  %v7956_v23 = vld [vmem:[#allocation17 + $0x308] sm:$0xff]  ;;  %v7939_v29 = vld [vmem:[#allocation17 + $0x280] sm:$0xff] }
0x2e76   :  { %v7523_v10 = vmul.f32 1.442695, %v7520_v59 }
0x2e78   :  { %13111 = vpow2.f32 %v7523_v10 }
0x2e85   :  { %v13112_v14 = vpop.eup %13111 }
0x2e86   :  { %v7528_v27 = vsel %vm1072_vm5, %v13112_v14, 0.0 }
0x2e87   :  { %7529 = vadd.xlane.f32.xlu0 %v7528_v27 }
0x2e9d   :  { %7585 = vrot.lane.b32.xlu0 %v14363_v19, %s13452_s28 }
0x2ea1   :  { %12599 = vrot.lane.b32.xlu0 %v12598_v21, %s13433_s26  ;;  %s14838_s26 = sld [smem:[#allocation47_spill]] }
0x2ea5   :  { %12609 = vrot.lane.b32.xlu0 %v12608_v31, %s13448_s19 }
0x2efa   :  { %v7527_v37 = vpop.xlane.xlu0 %7526 }
0x2efb   :  { %13113 = vrcp.f32 %v7527_v37  ;;  %v12607_v37 = vunpack.i.h.bf16 %v12605_v22 }
0x2f08   :  { %v13114_v50 = vpop.eup %13113 }
0x2f09   :  { %v7533_v26 = vmul.f32 %v13114_v50, %v13110_v39  ;;  %v7692_v39 = vsel %vm411_vm2, %v7690_v30, %v12592_v47  ;;  %v12606_v50 = vunpack.i.l.bf16 %v12605_v22  ;;  %v7940_v22 = vld [vmem:[#allocation17 + $0x288] sm:$0xff] }
0x2f0a   :  { %v7694_v59 = vsel %vm2796_vm6, %v7692_v39, %v12597_v52  ;;  %v7963_v52 = vld [vmem:[#allocation17 + $0x340] sm:$0xff] }
0x2f0b   :  { %v7535_v0 = vpack.c.bf16 %v7533_v26, %v7533_v26  ;;  %v11255_v30 = vcombine.low %v7955_v20, %v7963_v52  ;;  %v7947_v39 = vld [vmem:[#allocation17 + $0x2c0] sm:$0xff] }
0x2f0d   :  { %12427 = vmatmul.mubr.msk.bf16.vlgmr.msra.gmra.mxu0 %vm1072_vm5, %v7535_v0 }
0x2f0e   :  { %12452 = vmatprep.mubr.msk.bf16.mxu0 %vm13445_vm0, %v13444_v1  ;;  %12437 = vmatpush3.bf16.msra.mxu0 %v12825_v38 }
0x2f0f   :  { %12438 = vmatprep.subr.bf16.mxu0 %v13444_v1 }
0x2f10   :  { %v7530_v34 = vpop.xlane.xlu0 %7529 }
0x2f11   :  { %13115 = vrcp.f32 %v7530_v34 }
0x2f12   :  { %12439 = vmatpush3.bf16.msra.mxu0 %v12826_v61  ;;  %v11148_v61 = vld [vmem:[%s14838_s26] ss:$0 sm:$0xff] }
0x2f13   :  { %12440 = vmatprep.subr.bf16.mxu0 %v13444_v1 }
0x2f14   :  { %v7586_v19 = vpop.permute.xlu0 %7585 }
0x2f15   :  { %v7591_v5 = vsel %vm1100_vm4, %v7586_v19, 0 }
0x2f16   :  { %12431 = vmatpush3.bf16.msra.mxu1 %v7591_v5  ;;  %12441 = vmatpush3.bf16.msra.mxu0 %v12827_v48 }
0x2f17   :  { %12442 = vmatprep.subr.bf16.mxu0 %v13444_v1 }
0x2f18   :  { %v12600_v31 = vpop.permute.xlu0 %12599 }
0x2f19   :  { %v12602_v24 = vunpack.i.h.bf16 %v12600_v31  ;;  %v12601_v58 = vunpack.i.l.bf16 %v12600_v31 }
0x2f1a   :  { %12443 = vmatpush3.bf16.msra.mxu0 %v12828_v54 }
0x2f1b   :  { %12444 = vmatprep.subr.bf16.mxu0 %v13444_v1  ;;  %v7696_v10 = vsel %vm529_vm3, %v7694_v59, %v12602_v24  ;;  %v11256_v24 = vcombine.high %v7955_v20, %v7963_v52  ;;  %v7948_v59 = vld [vmem:[#allocation17 + $0x2c8] sm:$0xff] }
0x2f1c   :  { %v12610_v55 = vpop.permute.xlu0 %12609  ;;  %v7698_v0 = vsel %vm2801_vm7, %v7696_v10, %v12607_v37  ;;  %v11239_v10 = vcombine.low %v7939_v29, %v7947_v39  ;;  %v7931_v37 = vld [vmem:[#allocation17 + $0x240] sm:$0xff]  ;;  %v7868_v20 = vld [vmem:[#allocation17 + $0x48] sm:$0xff] }
0x2f1d   :  { %v12612_v27 = vunpack.i.h.bf16 %v12610_v55  ;;  %v12611_v56 = vunpack.i.l.bf16 %v12610_v55 }
0x2f1e   :  { %v13116_v8 = vpop.eup %13115  ;;  %12445 = vmatpush3.bf16.msra.mxu0 %v12829_v49 }
0x2f1f   :  { %v7534_v28 = vmul.f32 %v13116_v8, %v13112_v14  ;;  %12446 = vmatprep.subr.bf16.mxu0 %v13444_v1  ;;  %v7695_v14 = vsel %vm529_vm3, %v7693_v4, %v12601_v58  ;;  %v7700_v8 = vsel %vm2804_vm8, %v7698_v0, %v12612_v27  ;;  %v7964_v58 = vld [vmem:[#allocation17 + $0x348] sm:$0xff]  ;;  %v11240_v4 = vcombine.high %v7939_v29, %v7947_v39  ;;  %v7982_v39 = vld [vmem:[#allocation17 + $0x3d8] sm:$0xff] }
0x2f20   :  { %v7697_v26 = vsel %vm2801_vm7, %v7695_v14, %v12606_v50  ;;  %v11257_v60 = vcombine.low %v7956_v23, %v7964_v58  ;;  %v11258_v55 = vcombine.high %v7956_v23, %v7964_v58  ;;  %v11241_v14 = vcombine.low %v7940_v22, %v7948_v59  ;;  %v7924_v50 = vld [vmem:[#allocation17 + $0x208] sm:$0xff]  ;;  %v7973_v58 = vld [vmem:[#allocation17 + $0x390] sm:$0xff] }
0x2f21   :  { %v7536_v21 = vpack.c.bf16 %v7534_v28, %v7534_v28  ;;  %v7699_v5 = vsel %vm2804_vm8, %v7697_v26, %v12611_v56  ;;  %v11242_v27 = vcombine.high %v7940_v22, %v7948_v59  ;;  %v7923_v56 = vld [vmem:[#allocation17 + $0x200] sm:$0xff]  ;;  %v7932_v26 = vld [vmem:[#allocation17 + $0x248] sm:$0xff] }
0x2f22   :  { %12447 = vmatpush3.bf16.msra.mxu0 %v12830_v62  ;;  %v11223_v0 = vcombine.low %v7923_v56, %v7931_v37 }
0x2f23   :  { %12433 = vmatmul.mubr.msk.bf16.vlgmr.msra.gmra.mxu1 %vm1072_vm5, %v7536_v21  ;;  %12448 = vmatprep.subr.bf16.mxu0 %v13444_v1 }
0x2f24   :  { %8743 = vmatprep.mubr.bf16.mxu1 %v13446_v3 }
0x2f26   :  { %12449 = vmatpush3.bf16.msra.mxu0 %v12831_v2 }
0x2f27   :  { %12450 = vmatprep.subr.bf16.mxu0 %v13444_v1 }
0x2f2a   :  { %12451 = vmatpush3.bf16.msra.mxu0 %v12832_v25  ;;  %v7979_v25 = vld [vmem:[#allocation17 + $0x3c0] sm:$0xff] }
0x2fcd   :  { %v7579_v6 = vpop.f32.mrf.mxu0 }
0x2fcf   :  { %v12428_v44 = vpop.f32.mrf.mxu0 }
0x2fd1   :  { %v7582_v7 = vpop.f32.mrf.mxu0 }
0x2fd3   :  { %v12429_v32 = vpop.f32.mrf.mxu0 }
0x2fd4   :  { %v7971_v32 = vld [vmem:[#allocation17 + $0x380] sm:$0xff] }
0x2fe3   :  { %v7627_v41 = vpop.f32.mrf.mxu1 }
0x2fe4   :  { %v12613_v53 = vpack.i.bf16 %v7627_v41, %v7579_v6  ;;  %v7972_v41 = vld [vmem:[#allocation17 + $0x388] sm:$0xff] }
0x2fe5   :  { %v12434_v16 = vpop.f32.mrf.mxu1 }
0x2fe6   :  { %12614 = vrot.lane.b32.xlu1 %v12613_v53, %s13447_s14  ;;  %v11271_v53 = vcombine.low %v7971_v32, %v7979_v25  ;;  %v11272_v16 = vcombine.high %v7971_v32, %v7979_v25 }
0x2fe7   :  { %v7630_v9 = vpop.f32.mrf.mxu1 }
0x2fe8   :  { %v7980_v9 = vld [vmem:[#allocation17 + $0x3c8] sm:$0xff]  ;;  %8711 = vmatprep.subr.bf16.mxu1 %v11272_v16 }
0x2fe9   :  { %v12435_v11 = vpop.f32.mrf.mxu1  ;;  %v11274_v57 = vcombine.high %v7972_v41, %v7980_v9  ;;  %8712 = vmatpush1.bf16.msra.mxu1 %v11271_v53  ;;  %v7883_v53 = vld [vmem:[#allocation17 + $0xc0] sm:$0xff]  ;;  %v7876_v16 = vld [vmem:[#allocation17 + $0x88] sm:$0xff] }
0x2fea   :  { %v11273_v11 = vcombine.low %v7972_v41, %v7980_v9  ;;  %8713 = vmatprep.subr.bf16.mxu1 %v11256_v24  ;;  %v7875_v41 = vld [vmem:[#allocation17 + $0x80] sm:$0xff] }
0x2feb   :  { %8754 = vmatprep.subr.bf16.mxu0 %v11274_v57  ;;  %v11176_v9 = vcombine.high %v7875_v41, %v7883_v53  ;;  %v11175_v57 = vcombine.low %v7875_v41, %v7883_v53  ;;  %v7925_v53 = vld [vmem:[#allocation17 + $0x210] sm:$0xff] }
0x2fed   :  { %8714 = vmatpush1.bf16.msra.mxu1 %v11255_v30  ;;  %v7981_v30 = vld [vmem:[#allocation17 + $0x3d0] sm:$0xff] }
0x2fee   :  { %8715 = vmatprep.subr.bf16.mxu1 %v11240_v4  ;;  %v11276_v29 = vcombine.high %v7973_v58, %v7981_v30 }
0x2ff1   :  { %8716 = vmatpush1.bf16.msra.mxu1 %v11239_v10 }
0x3058   :  { %v12615_v63 = vpop.permute.xlu1 %12614 }
0x3059   :  { %v12617_v34 = vunpack.i.h.bf16 %v12615_v63  ;;  %v12616_v19 = vunpack.i.l.bf16 %v12615_v63  ;;  %v11224_v63 = vcombine.high %v7923_v56, %v7931_v37 }
0x305b   :  { %v7702_v28 = vsel %vm2807_vm9, %v7700_v8, %v12617_v34  ;;  %v7701_v21 = vsel %vm2807_vm9, %v7699_v5, %v12616_v19  ;;  %v11225_v34 = vcombine.low %v7924_v50, %v7932_v26  ;;  %v11226_v19 = vcombine.high %v7924_v50, %v7932_v26  ;;  %8717 = vmatprep.subr.bf16.mxu1 %v11224_v63  ;;  %v7907_v5 = vld [vmem:[#allocation17 + $0x180] sm:$0xff]  ;;  %v11157_v26 = vld [vmem:[%s14839_s6] ss:$0 sm:$0xff] }
0x305c   :  { %v7703_v38 = vpack.c.bf16 %v7702_v28, %v7701_v21  ;;  %8718 = vmatpush1.bf16.msra.mxu1 %v11223_v0  ;;  %v7915_v8 = vld [vmem:[#allocation17 + $0x1c0] sm:$0xff]  ;;  %v7908_v28 = vld [vmem:[#allocation17 + $0x188] sm:$0xff] }
0x305d   :  { %v11208_v21 = vcombine.high %v7907_v5, %v7915_v8 }
0x305e   :  { %12453 = vmatmul.mubr.bf16.vlgmr.msra.gmra.mxu0 %v7703_v38  ;;  %v7916_v38 = vld [vmem:[#allocation17 + $0x1c8] sm:$0xff] }
0x305f   :  { %8786 = vmatprep.mubr.bf16.mxu0 %v13446_v3  ;;  %8755 = vmatpush1.bf16.msra.mxu0 %v11273_v11  ;;  %v7884_v11 = vld [vmem:[#allocation17 + $0xc8] sm:$0xff] }
0x3060   :  { %8756 = vmatprep.subr.bf16.mxu0 %v11258_v55  ;;  %8719 = vmatprep.subr.bf16.mxu1 %v11208_v21  ;;  %v11275_v55 = vcombine.low %v7973_v58, %v7981_v30  ;;  %v7965_v21 = vld [vmem:[#allocation17 + $0x350] sm:$0xff] }
0x3061   :  { %v7893_v30 = vld [vmem:[#allocation17 + $0x110] sm:$0xff] }
0x3063   :  { %8757 = vmatpush1.bf16.msra.mxu0 %v11257_v60  ;;  %v7974_v60 = vld [vmem:[#allocation17 + $0x398] sm:$0xff] }
0x3064   :  { %8758 = vmatprep.subr.bf16.mxu0 %v11242_v27  ;;  %v11277_v22 = vcombine.low %v7974_v60, %v7982_v39  ;;  %v11278_v4 = vcombine.high %v7974_v60, %v7982_v39  ;;  %v7901_v60 = vld [vmem:[#allocation17 + $0x150] sm:$0xff] }
0x3067   :  { %8759 = vmatpush1.bf16.msra.mxu0 %v11241_v14 }
0x3068   :  { %8760 = vmatprep.subr.bf16.mxu0 %v11226_v19 }
0x306b   :  { %8761 = vmatpush1.bf16.msra.mxu0 %v11225_v34 }
0x311e   :  { %v7809_v48 = vpop.f32.mrf.mxu0 }
0x311f   :  { %v7810_v54 = vadd.f32 %v11148_v61, %v7809_v48  ;;  %v11209_v48 = vcombine.low %v7908_v28, %v7916_v38 }
0x3120   :  { %v12454_v49 = vpop.f32.mrf.mxu0 }
0x3121   :  { %v7816_v62 = vadd.f32 %v7810_v54, %v14301_v17  ;;  %v11210_v54 = vcombine.high %v7908_v28, %v7916_v38  ;;  %v7891_v49 = vld [vmem:[#allocation17 + $0x100] sm:$0xff]  ;;  %v7957_v28 = vld [vmem:[#allocation17 + $0x310] sm:$0xff]  ;;  %v7958_v38 = vld [vmem:[#allocation17 + $0x318] sm:$0xff] }
0x3122   :  { %v7812_v2 = vpop.f32.mrf.mxu0 }
0x3123   :  { %v7813_v6 = vadd.f32 %v11148_v61, %v7812_v2  ;;  %7818 = vadd.xlane.f32.xlu0 %v7816_v62  ;;  %v11207_v61 = vcombine.low %v7907_v5, %v7915_v8  ;;  %8762 = vmatprep.subr.bf16.mxu0 %v11210_v54  ;;  %v7892_v2 = vld [vmem:[#allocation17 + $0x108] sm:$0xff] }
0x3124   :  { %v12455_v44 = vpop.f32.mrf.mxu0  ;;  %8763 = vmatpush1.bf16.msra.mxu0 %v11209_v48  ;;  %v11158_v5 = vld [vmem:[%s14840_s7] ss:$0 sm:$0xff] }
0x3125   :  { %v7817_v7 = vadd.f32 %v7813_v6, %v14303_v18  ;;  %8720 = vmatpush1.bf16.msra.mxu1 %v11207_v61  ;;  %v7900_v44 = vld [vmem:[#allocation17 + $0x148] sm:$0xff]  ;;  %v7966_v61 = vld [vmem:[#allocation17 + $0x358] sm:$0xff] }
0x3126   :  { %v11193_v32 = vcombine.low %v7892_v2, %v7900_v44  ;;  %v11194_v25 = vcombine.high %v7892_v2, %v7900_v44  ;;  %v7941_v2 = vld [vmem:[#allocation17 + $0x290] sm:$0xff]  ;;  %v7942_v44 = vld [vmem:[#allocation17 + $0x298] sm:$0xff] }
0x3127   :  { %7820 = vadd.xlane.f32.xlu1 %v7817_v7 }
0x3128   :  { %8764 = vmatprep.subr.bf16.mxu0 %v11194_v25 }
0x3129   :  { %8765 = vmatpush1.bf16.msra.mxu0 %v11193_v32  ;;  %v11261_v32 = vcombine.low %v7958_v38, %v7966_v61 }
0x31ac   :  { %v7819_v17 = vpop.xlane.xlu0 %7818 }
0x31ad   :  { %v7822_v12 = vmul.f32 0.0078125, %v7819_v17  ;;  %v11177_v17 = vcombine.low %v7876_v16, %v7884_v11 }
0x31af   :  { %v14694_v31 = vsub.f32 %v7816_v62, %v7822_v12  ;;  %v7899_v62 = vld [vmem:[#allocation17 + $0x140] sm:$0xff]  ;;  %v11178_v12 = vcombine.high %v7876_v16, %v7884_v11  ;;  %v7933_v16 = vld [vmem:[#allocation17 + $0x250] sm:$0xff]  ;;  %v7934_v11 = vld [vmem:[#allocation17 + $0x258] sm:$0xff] }
0x31b0   :  { %v7821_v13 = vpop.xlane.xlu1 %7820  ;;  %v11192_v6 = vcombine.high %v7891_v49, %v7899_v62 }
0x31b1   :  { %v7823_v15 = vmul.f32 0.0078125, %v7821_v13  ;;  %v7826_v18 = vmul.f32 %v14694_v31, %v14694_v31  ;;  %8766 = vmatprep.subr.bf16.mxu0 %v11178_v12  ;;  %v7859_v13 = vld [vmem:[#allocation17] sm:$0xff]  ;;  %v11228_v12 = vcombine.high %v7925_v53, %v7933_v16 }
0x31b2   :  { %8721 = vmatprep.subr.bf16.mxu1 %v11192_v6  ;;  %8767 = vmatpush1.bf16.msra.mxu0 %v11177_v17  ;;  %v7949_v6 = vld [vmem:[#allocation17 + $0x2d0] sm:$0xff] }
0x31b3   :  { %v14698_v51 = vsub.f32 %v7817_v7, %v7823_v15  ;;  %7828 = vadd.xlane.f32.xlu0 %v7826_v18  ;;  %v11191_v7 = vcombine.low %v7891_v49, %v7899_v62  ;;  %v7867_v15 = vld [vmem:[#allocation17 + $0x40] sm:$0xff]  ;;  %v7860_v18 = vld [vmem:[#allocation17 + $0x8] sm:$0xff]  ;;  %v11262_v62 = vcombine.high %v7958_v38, %v7966_v61  ;;  %v11244_v25 = vcombine.high %v7941_v2, %v7949_v6 }
0x31b4   :  { %v11159_v52 = vcombine.low %v7859_v13, %v7867_v15  ;;  %v11161_v23 = vcombine.low %v7860_v18, %v7868_v20  ;;  %v11162_v24 = vcombine.high %v7860_v18, %v7868_v20  ;;  %v7917_v18 = vld [vmem:[#allocation17 + $0x1d0] sm:$0xff]  ;;  %v7918_v20 = vld [vmem:[#allocation17 + $0x1d8] sm:$0xff]  ;;  %v7975_v61 = vld [vmem:[#allocation17 + $0x3a0] sm:$0xff] }
0x31b5   :  { %v7827_v47 = vmul.f32 %v14698_v51, %v14698_v51  ;;  %8722 = vmatpush1.bf16.msra.mxu1 %v11191_v7  ;;  %v11259_v7 = vcombine.low %v7957_v28, %v7965_v21 }
0x31b6   :  { %8723 = vmatprep.subr.bf16.mxu1 %v11176_v9  ;;  %8768 = vmatprep.subr.bf16.mxu0 %v11162_v24  ;;  %v7926_v9 = vld [vmem:[#allocation17 + $0x218] sm:$0xff] }
0x31b7   :  { %7830 = vadd.xlane.f32.xlu0 %v7827_v47  ;;  %v11160_v47 = vcombine.high %v7859_v13, %v7867_v15  ;;  %8769 = vmatpush1.bf16.msra.mxu0 %v11161_v23  ;;  %v11230_v13 = vcombine.high %v7926_v9, %v7934_v11  ;;  %v7909_v15 = vld [vmem:[#allocation17 + $0x190] sm:$0xff]  ;;  %v11229_v23 = vcombine.low %v7926_v9, %v7934_v11 }
0x31b8   :  { %8840 = vmatprep.subr.bf16.mxu0 %v11278_v4  ;;  %v11212_v24 = vcombine.high %v7909_v15, %v7917_v18  ;;  %v11211_v39 = vcombine.low %v7909_v15, %v7917_v18  ;;  %v11196_v4 = vcombine.high %v7893_v30, %v7901_v60  ;;  %v7952_v15 = vld [vmem:[#allocation17 + $0x2e8] sm:$0xff] }
0x31b9   :  { %8724 = vmatpush1.bf16.msra.mxu1 %v11175_v57  ;;  %v11243_v57 = vcombine.low %v7941_v2, %v7949_v6  ;;  %v7984_v2 = vld [vmem:[#allocation17 + $0x3e8] sm:$0xff] }
0x31ba   :  { %8725 = vmatprep.subr.bf16.mxu1 %v11160_v47  ;;  %v7910_v47 = vld [vmem:[#allocation17 + $0x198] sm:$0xff] }
0x31bb   :  { %v11214_v58 = vcombine.high %v7910_v47, %v7918_v20 }
0x31bd   :  { %8726 = vmatpush1.bf16.msra.mxu1 %v11159_v52  ;;  %v11227_v52 = vcombine.low %v7925_v53, %v7933_v16  ;;  %v7968_v53 = vld [vmem:[#allocation17 + $0x368] sm:$0xff] }
0x31be   :  { %8797 = vmatprep.subr.bf16.mxu1 %v11276_v29  ;;  %v7902_v29 = vld [vmem:[#allocation17 + $0x158] sm:$0xff] }
0x323c   :  { %v7829_v59 = vpop.xlane.xlu0 %7828 }
0x323d   :  { %v7832_v10 = vmul.f32 0.0078125, %v7829_v59 }
0x323f   :  { %v7834_v14 = vadd.f32 1e-05, %v7832_v10  ;;  %v7877_v10 = vld [vmem:[#allocation17 + $0x90] sm:$0xff] }
0x3240   :  { %v7831_v27 = vpop.xlane.xlu0 %7830 }
0x3241   :  { %13117 = vrsqrt.f32 %v7834_v14  ;;  %v7833_v56 = vmul.f32 0.0078125, %v7831_v27  ;;  %v7885_v14 = vld [vmem:[#allocation17 + $0xd0] sm:$0xff]  ;;  %v7878_v27 = vld [vmem:[#allocation17 + $0x98] sm:$0xff] }
0x3243   :  { %v7835_v37 = vadd.f32 1e-05, %v7833_v56  ;;  %v7886_v56 = vld [vmem:[#allocation17 + $0xd8] sm:$0xff] }
0x3245   :  { %13119 = vrsqrt.f32 %v7835_v37  ;;  %v11195_v37 = vcombine.low %v7893_v30, %v7901_v60  ;;  %v7936_v30 = vld [vmem:[#allocation17 + $0x268] sm:$0xff] }
0x324e   :  { %v13118_v50 = vpop.eup %13117 }
0x324f   :  { %v7838_v63 = vmul.f32 %v13118_v50, %v14694_v31  ;;  %v11260_v31 = vcombine.high %v7957_v28, %v7965_v21  ;;  %v11181_v28 = vcombine.low %v7878_v27, %v7886_v56 }
0x3251   :  { %v7847_v34 = vmul.f32 %v11157_v26, %v7838_v63  ;;  %v11180_v63 = vcombine.high %v7877_v10, %v7885_v14 }
0x3252   :  { %v13120_v0 = vpop.eup %13119 }
0x3253   :  { %v7839_v19 = vmul.f32 %v13120_v0, %v14698_v51  ;;  %v14706_v48 = vadd.f32 %v11158_v5, %v7847_v34  ;;  %v7950_v51 = vld [vmem:[#allocation17 + $0x2d8] sm:$0xff]  ;;  %v7861_v0 = vld [vmem:[#allocation17 + $0x10] sm:$0xff] }
0x3254   :  { %v11246_v41 = vcombine.high %v7942_v44, %v7950_v51  ;;  %v11245_v17 = vcombine.low %v7942_v44, %v7950_v51  ;;  %v7869_v34 = vld [vmem:[#allocation17 + $0x50] sm:$0xff] }
0x3255   :  { %v7848_v8 = vmul.f32 %v11157_v26, %v7839_v19  ;;  %v11182_v26 = vcombine.high %v7878_v27, %v7886_v56  ;;  %v7862_v19 = vld [vmem:[#allocation17 + $0x18] sm:$0xff]  ;;  %v11164_v21 = vcombine.high %v7861_v0, %v7869_v34  ;;  %v11163_v6 = vcombine.low %v7861_v0, %v7869_v34  ;;  %v7904_v0 = vld [vmem:[#allocation17 + $0x168] sm:$0xff] }
0x3257   :  { %v14708_v54 = vadd.f32 %v11158_v5, %v7848_v8  ;;  %v7870_v5 = vld [vmem:[#allocation17 + $0x58] sm:$0xff]  ;;  %v11179_v8 = vcombine.low %v7877_v10, %v7885_v14  ;;  %v7920_v10 = vld [vmem:[#allocation17 + $0x1e8] sm:$0xff] }
0x3258   :  { %v11166_v38 = vcombine.high %v7862_v19, %v7870_v5  ;;  %v11165_v44 = vcombine.low %v7862_v19, %v7870_v5 }
0x3259   :  { %v14712_v49 = vpack.c.bf16 %v14708_v54, %v14706_v48 }
0x325b   :  { %8744 = vmatmul.mubr.bf16.vlgmr.msra.gmra.mxu1 %v14712_v49  ;;  %8787 = vmatmul.mubr.bf16.vlgmr.msra.gmra.mxu0 %v14712_v49 }
0x325c   :  { %8798 = vmatpush1.bf16.msra.mxu1 %v11275_v55  ;;  %8841 = vmatpush1.bf16.msra.mxu0 %v11277_v22  ;;  %v7894_v55 = vld [vmem:[#allocation17 + $0x118] sm:$0xff]  ;;  %v11213_v22 = vcombine.low %v7910_v47, %v7918_v20 }
0x325d   :  { %8799 = vmatprep.subr.bf16.mxu1 %v11260_v31  ;;  %8842 = vmatprep.subr.bf16.mxu0 %v11262_v62  ;;  %v11198_v59 = vcombine.high %v7894_v55, %v7902_v29  ;;  %v11197_v50 = vcombine.low %v7894_v55, %v7902_v29  ;;  %v7983_v31 = vld [vmem:[#allocation17 + $0x3e0] sm:$0xff]  ;;  %v7976_v62 = vld [vmem:[#allocation17 + $0x3a8] sm:$0xff] }
0x325e   :  { %8829 = vmatprep.mubr.bf16.mxu1 %v13446_v3  ;;  %8872 = vmatprep.mubr.bf16.mxu0 %v13446_v3  ;;  %v11280_v51 = vcombine.high %v7975_v61, %v7983_v31  ;;  %v11279_v16 = vcombine.low %v7975_v61, %v7983_v31  ;;  %v11281_v9 = vcombine.low %v7976_v62, %v7984_v2  ;;  %v7888_v61 = vld [vmem:[#allocation17 + $0xe8] sm:$0xff] }
0x3260   :  { %8800 = vmatpush1.bf16.msra.mxu1 %v11259_v7  ;;  %8843 = vmatpush1.bf16.msra.mxu0 %v11261_v32  ;;  %v11282_v7 = vcombine.high %v7976_v62, %v7984_v2  ;;  %v7959_v32 = vld [vmem:[#allocation17 + $0x320] sm:$0xff] }
0x3261   :  { %8801 = vmatprep.subr.bf16.mxu1 %v11244_v25  ;;  %8844 = vmatprep.subr.bf16.mxu0 %v11246_v41  ;;  %v7967_v25 = vld [vmem:[#allocation17 + $0x360] sm:$0xff]  ;;  %v7960_v41 = vld [vmem:[#allocation17 + $0x328] sm:$0xff] }
0x3262   :  { %v11264_v11 = vcombine.high %v7959_v32, %v7967_v25  ;;  %v11263_v18 = vcombine.low %v7959_v32, %v7967_v25  ;;  %v11265_v47 = vcombine.low %v7960_v41, %v7968_v53  ;;  %v7872_v32 = vld [vmem:[#allocation17 + $0x68] sm:$0xff] }
0x3264   :  { %8802 = vmatpush1.bf16.msra.mxu1 %v11243_v57  ;;  %8845 = vmatpush1.bf16.msra.mxu0 %v11245_v17  ;;  %v11266_v57 = vcombine.high %v7960_v41, %v7968_v53  ;;  %v7943_v17 = vld [vmem:[#allocation17 + $0x2a0] sm:$0xff] }
0x3265   :  { %8803 = vmatprep.subr.bf16.mxu1 %v11228_v12  ;;  %8846 = vmatprep.subr.bf16.mxu0 %v11230_v13  ;;  %v7951_v12 = vld [vmem:[#allocation17 + $0x2e0] sm:$0xff]  ;;  %v7944_v13 = vld [vmem:[#allocation17 + $0x2a8] sm:$0xff] }
0x3266   :  { %v11248_v20 = vcombine.high %v7943_v17, %v7951_v12  ;;  %v11247_v60 = vcombine.low %v7943_v17, %v7951_v12  ;;  %v11249_v55 = vcombine.low %v7944_v13, %v7952_v15  ;;  %v7986_v17 = vld [vmem:[#allocation17 + $0x3f8] sm:$0xff] }
0x3268   :  { %8804 = vmatpush1.bf16.msra.mxu1 %v11227_v52  ;;  %8847 = vmatpush1.bf16.msra.mxu0 %v11229_v23  ;;  %v11250_v52 = vcombine.high %v7944_v13, %v7952_v15  ;;  %v7927_v23 = vld [vmem:[#allocation17 + $0x220] sm:$0xff] }
0x3269   :  { %8805 = vmatprep.subr.bf16.mxu1 %v11212_v24  ;;  %8848 = vmatprep.subr.bf16.mxu0 %v11214_v58  ;;  %v7935_v24 = vld [vmem:[#allocation17 + $0x260] sm:$0xff]  ;;  %v7928_v58 = vld [vmem:[#allocation17 + $0x228] sm:$0xff] }
0x326a   :  { %v11232_v29 = vcombine.high %v7927_v23, %v7935_v24  ;;  %v11231_v14 = vcombine.low %v7927_v23, %v7935_v24  ;;  %v11233_v27 = vcombine.low %v7928_v58, %v7936_v30  ;;  %v7970_v23 = vld [vmem:[#allocation17 + $0x378] sm:$0xff] }
0x326c   :  { %8806 = vmatpush1.bf16.msra.mxu1 %v11211_v39  ;;  %8849 = vmatpush1.bf16.msra.mxu0 %v11213_v22  ;;  %v11234_v39 = vcombine.high %v7928_v58, %v7936_v30  ;;  %v7911_v22 = vld [vmem:[#allocation17 + $0x1a0] sm:$0xff] }
0x326d   :  { %8807 = vmatprep.subr.bf16.mxu1 %v11196_v4  ;;  %8850 = vmatprep.subr.bf16.mxu0 %v11198_v59  ;;  %v7919_v4 = vld [vmem:[#allocation17 + $0x1e0] sm:$0xff]  ;;  %v7912_v59 = vld [vmem:[#allocation17 + $0x1a8] sm:$0xff] }
0x326e   :  { %v11216_v56 = vcombine.high %v7911_v22, %v7919_v4  ;;  %v11215_v34 = vcombine.low %v7911_v22, %v7919_v4  ;;  %v11217_v19 = vcombine.low %v7912_v59, %v7920_v10  ;;  %v7954_v22 = vld [vmem:[#allocation17 + $0x2f8] sm:$0xff] }
0x3270   :  { %8808 = vmatpush1.bf16.msra.mxu1 %v11195_v37  ;;  %8851 = vmatpush1.bf16.msra.mxu0 %v11197_v50  ;;  %v11218_v37 = vcombine.high %v7912_v59, %v7920_v10  ;;  %v7895_v50 = vld [vmem:[#allocation17 + $0x120] sm:$0xff] }
0x3271   :  { %8809 = vmatprep.subr.bf16.mxu1 %v11180_v63  ;;  %8852 = vmatprep.subr.bf16.mxu0 %v11182_v26  ;;  %v7903_v63 = vld [vmem:[#allocation17 + $0x160] sm:$0xff]  ;;  %v7896_v26 = vld [vmem:[#allocation17 + $0x128] sm:$0xff] }
0x3272   :  { %v11200_v5 = vcombine.high %v7895_v50, %v7903_v63  ;;  %v11199_v31 = vcombine.low %v7895_v50, %v7903_v63  ;;  %v11201_v62 = vcombine.low %v7896_v26, %v7904_v0  ;;  %v7938_v50 = vld [vmem:[#allocation17 + $0x278] sm:$0xff] }
0x3274   :  { %8810 = vmatpush1.bf16.msra.mxu1 %v11179_v8  ;;  %8853 = vmatpush1.bf16.msra.mxu0 %v11181_v28  ;;  %v11202_v8 = vcombine.high %v7896_v26, %v7904_v0  ;;  %v7879_v28 = vld [vmem:[#allocation17 + $0xa0] sm:$0xff] }
0x3275   :  { %8811 = vmatprep.subr.bf16.mxu1 %v11164_v21  ;;  %8854 = vmatprep.subr.bf16.mxu0 %v11166_v38  ;;  %v7887_v21 = vld [vmem:[#allocation17 + $0xe0] sm:$0xff]  ;;  %v7880_v38 = vld [vmem:[#allocation17 + $0xa8] sm:$0xff] }
0x3276   :  { %v11184_v2 = vcombine.high %v7879_v28, %v7887_v21  ;;  %v11183_v25 = vcombine.low %v7879_v28, %v7887_v21  ;;  %v11185_v41 = vcombine.low %v7880_v38, %v7888_v61  ;;  %v7922_v28 = vld [vmem:[#allocation17 + $0x1f8] sm:$0xff] }
0x3278   :  { %8812 = vmatpush1.bf16.msra.mxu1 %v11163_v6  ;;  %8855 = vmatpush1.bf16.msra.mxu0 %v11165_v44  ;;  %v11186_v6 = vcombine.high %v7880_v38, %v7888_v61  ;;  %v7863_v44 = vld [vmem:[#allocation17 + $0x20] sm:$0xff] }
0x3279   :  { %8883 = vmatprep.subr.bf16.mxu1 %v11280_v51  ;;  %8926 = vmatprep.subr.bf16.mxu0 %v11282_v7  ;;  %v7871_v51 = vld [vmem:[#allocation17 + $0x60] sm:$0xff]  ;;  %v7864_v7 = vld [vmem:[#allocation17 + $0x28] sm:$0xff] }
0x327a   :  { %v11168_v53 = vcombine.high %v7863_v44, %v7871_v51  ;;  %v11167_v12 = vcombine.low %v7863_v44, %v7871_v51  ;;  %v11169_v13 = vcombine.low %v7864_v7, %v7872_v32 }
0x327b   :  { %8830 = vmatmul.mubr.bf16.vlgmr.msra.gmra.mxu1 %v14712_v49  ;;  %8873 = vmatmul.mubr.bf16.vlgmr.msra.gmra.mxu0 %v14712_v49 }
0x327c   :  { %8884 = vmatpush1.bf16.msra.mxu1 %v11279_v16  ;;  %8927 = vmatpush1.bf16.msra.mxu0 %v11281_v9  ;;  %v11170_v16 = vcombine.high %v7864_v7, %v7872_v32  ;;  %v7977_v9 = vld [vmem:[#allocation17 + $0x3b0] sm:$0xff] }
0x327d   :  { %8885 = vmatprep.subr.bf16.mxu1 %v11264_v11  ;;  %8928 = vmatprep.subr.bf16.mxu0 %v11266_v57  ;;  %v7985_v11 = vld [vmem:[#allocation17 + $0x3f0] sm:$0xff]  ;;  %v7978_v57 = vld [vmem:[#allocation17 + $0x3b8] sm:$0xff] }
0x327e   :  { %8915 = vmatprep.mubr.bf16.mxu1 %v13446_v3  ;;  %8958 = vmatprep.mubr.bf16.mxu0 %v13446_v3  ;;  %v11284_v15 = vcombine.high %v7977_v9, %v7985_v11  ;;  %v11283_v24 = vcombine.low %v7977_v9, %v7985_v11  ;;  %v11285_v58 = vcombine.low %v7978_v57, %v7986_v17 }
0x3280   :  { %8886 = vmatpush1.bf16.msra.mxu1 %v11263_v18  ;;  %8929 = vmatpush1.bf16.msra.mxu0 %v11265_v47  ;;  %v11286_v18 = vcombine.high %v7978_v57, %v7986_v17  ;;  %v7961_v47 = vld [vmem:[#allocation17 + $0x330] sm:$0xff] }
0x3281   :  { %8887 = vmatprep.subr.bf16.mxu1 %v11248_v20  ;;  %8930 = vmatprep.subr.bf16.mxu0 %v11250_v52  ;;  %v7969_v20 = vld [vmem:[#allocation17 + $0x370] sm:$0xff]  ;;  %v7962_v52 = vld [vmem:[#allocation17 + $0x338] sm:$0xff] }
0x3282   :  { %v11268_v30 = vcombine.high %v7961_v47, %v7969_v20  ;;  %v11267_v4 = vcombine.low %v7961_v47, %v7969_v20  ;;  %v11269_v59 = vcombine.low %v7962_v52, %v7970_v23 }
0x3284   :  { %8888 = vmatpush1.bf16.msra.mxu1 %v11247_v60  ;;  %8931 = vmatpush1.bf16.msra.mxu0 %v11249_v55  ;;  %v11270_v60 = vcombine.high %v7962_v52, %v7970_v23  ;;  %v7945_v55 = vld [vmem:[#allocation17 + $0x2b0] sm:$0xff] }
0x3285   :  { %8889 = vmatprep.subr.bf16.mxu1 %v11232_v29  ;;  %8932 = vmatprep.subr.bf16.mxu0 %v11234_v39  ;;  %v7953_v29 = vld [vmem:[#allocation17 + $0x2f0] sm:$0xff]  ;;  %v7946_v39 = vld [vmem:[#allocation17 + $0x2b8] sm:$0xff] }
0x3286   :  { %v11252_v10 = vcombine.high %v7945_v55, %v7953_v29  ;;  %v11251_v63 = vcombine.low %v7945_v55, %v7953_v29  ;;  %v11253_v26 = vcombine.low %v7946_v39, %v7954_v22  ;;  %v12835_v55 = vld [vmem:[#allocation19 + $0x38] sm:$0xff]  }
0x3287   :  { %v12836_v29 = vld [vmem:[#allocation19 + $0xb8] sm:$0xff]  }
0x3288   :  { %8890 = vmatpush1.bf16.msra.mxu1 %v11231_v14  ;;  %8933 = vmatpush1.bf16.msra.mxu0 %v11233_v27  ;;  %v11254_v14 = vcombine.high %v7946_v39, %v7954_v22  ;;  %v7929_v27 = vld [vmem:[#allocation17 + $0x230] sm:$0xff] }
0x3289   :  { %8891 = vmatprep.subr.bf16.mxu1 %v11216_v56  ;;  %8934 = vmatprep.subr.bf16.mxu0 %v11218_v37  ;;  %v7937_v56 = vld [vmem:[#allocation17 + $0x270] sm:$0xff]  ;;  %v7930_v37 = vld [vmem:[#allocation17 + $0x238] sm:$0xff] }
0x328a   :  { %v11236_v0 = vcombine.high %v7929_v27, %v7937_v56  ;;  %v11235_v21 = vcombine.low %v7929_v27, %v7937_v56  ;;  %v11237_v38 = vcombine.low %v7930_v37, %v7938_v50  ;;  %v12837_v39 = vld [vmem:[#allocation19 + $0x70] sm:$0xff]   ;;  %v12843_v27 = vld [vmem:[#allocation19 + $0x28] sm:$0xff]  }
0x328b   :  { %v12838_v22 = vld [vmem:[#allocation19 + $0xf0] sm:$0xff]   ;;  %v12844_v56 = vld [vmem:[#allocation19 + $0xa8] sm:$0xff]  }
0x328c   :  { %8892 = vmatpush1.bf16.msra.mxu1 %v11215_v34  ;;  %8935 = vmatpush1.bf16.msra.mxu0 %v11217_v19  ;;  %v11238_v34 = vcombine.high %v7930_v37, %v7938_v50  ;;  %v7913_v19 = vld [vmem:[#allocation17 + $0x1b0] sm:$0xff]  ;;  %v12845_v37 = vld [vmem:[#allocation19 + $0x60] sm:$0xff]  }
0x328d   :  { %8893 = vmatprep.subr.bf16.mxu1 %v11200_v5  ;;  %8936 = vmatprep.subr.bf16.mxu0 %v11202_v8  ;;  %v7921_v5 = vld [vmem:[#allocation17 + $0x1f0] sm:$0xff]  ;;  %v7914_v8 = vld [vmem:[#allocation17 + $0x1b8] sm:$0xff]  ;;  %v12846_v50 = vld [vmem:[#allocation19 + $0xe0] sm:$0xff]  }
0x328e   :  { %v11220_v61 = vcombine.high %v7913_v19, %v7921_v5  ;;  %v11219_v44 = vcombine.low %v7913_v19, %v7921_v5  ;;  %v11221_v51 = vcombine.low %v7914_v8, %v7922_v28  ;;  %v12852_v19 = vld [vmem:[#allocation19 + $0x98] sm:$0xff]   ;;  %v12853_v5 = vld [vmem:[#allocation19 + $0x50] sm:$0xff]  }
0x3290   :  { %8894 = vmatpush1.bf16.msra.mxu1 %v11199_v31  ;;  %8937 = vmatpush1.bf16.msra.mxu0 %v11201_v62  ;;  %v7897_v31 = vld [vmem:[#allocation17 + $0x130] sm:$0xff] }
0x3291   :  { %8895 = vmatprep.subr.bf16.mxu1 %v11184_v2  ;;  %8938 = vmatprep.subr.bf16.mxu0 %v11186_v6  ;;  %v7905_v62 = vld [vmem:[#allocation17 + $0x170] sm:$0xff]  ;;  %v7898_v2 = vld [vmem:[#allocation17 + $0x138] sm:$0xff] }
0x3292   :  { %v7906_v6 = vld [vmem:[#allocation17 + $0x178] sm:$0xff]  ;;  %v11204_v7 = vcombine.high %v7897_v31, %v7905_v62  ;;  %v11203_v9 = vcombine.low %v7897_v31, %v7905_v62  ;;  %v12860_v31 = vld [vmem:[#allocation19 + $0x88] sm:$0xff]   ;;  %v12861_v62 = vld [vmem:[#allocation19 + $0x40] sm:$0xff]  }
0x3293   :  { %v11206_v32 = vcombine.high %v7898_v2, %v7906_v6  ;;  %v11205_v11 = vcombine.low %v7898_v2, %v7906_v6  ;;  %v12862_v2 = vld [vmem:[#allocation19 + $0xc0] sm:$0xff]  }
0x3294   :  { %8896 = vmatpush1.bf16.msra.mxu1 %v11183_v25  ;;  %8939 = vmatpush1.bf16.msra.mxu0 %v11185_v41  ;;  %v7881_v25 = vld [vmem:[#allocation17 + $0xb0] sm:$0xff]  ;;  %v12863_v6 = vld [vmem:[#allocation19] sm:$0xff]  }
0x3295   :  { %8897 = vmatprep.subr.bf16.mxu1 %v11168_v53  ;;  %8940 = vmatprep.subr.bf16.mxu0 %v11170_v16  ;;  %v7889_v41 = vld [vmem:[#allocation17 + $0xf0] sm:$0xff]  ;;  %v7882_v53 = vld [vmem:[#allocation17 + $0xb8] sm:$0xff] }
0x3296   :  { %v7890_v16 = vld [vmem:[#allocation17 + $0xf8] sm:$0xff]  ;;  %v11188_v57 = vcombine.high %v7881_v25, %v7889_v41  ;;  %v11187_v47 = vcombine.low %v7881_v25, %v7889_v41 }
0x3297   :  { %v11190_v17 = vcombine.high %v7882_v53, %v7890_v16  ;;  %v11189_v20 = vcombine.low %v7882_v53, %v7890_v16 }
0x3298   :  { %8898 = vmatpush1.bf16.msra.mxu1 %v11167_v12  ;;  %8941 = vmatpush1.bf16.msra.mxu0 %v11169_v13  ;;  %v7865_v12 = vld [vmem:[#allocation17 + $0x30] sm:$0xff] }
0x3299   :  { %8969 = vmatprep.subr.bf16.mxu1 %v11284_v15  ;;  %9012 = vmatprep.subr.bf16.mxu0 %v11286_v18  ;;  %v7873_v13 = vld [vmem:[#allocation17 + $0x70] sm:$0xff]  ;;  %v7866_v15 = vld [vmem:[#allocation17 + $0x38] sm:$0xff] }
0x329a   :  { %v7874_v18 = vld [vmem:[#allocation17 + $0x78] sm:$0xff]  ;;  %v11172_v52 = vcombine.high %v7865_v12, %v7873_v13 }
0x329b   :  { %8916 = vmatmul.mubr.bf16.vlgmr.msra.gmra.mxu1 %v14712_v49  ;;  %8959 = vmatmul.mubr.bf16.vlgmr.msra.gmra.mxu0 %v14712_v49  ;;  %v11174_v23 = vcombine.high %v7866_v15, %v7874_v18 }
0x329c   :  { %8970 = vmatpush1.bf16.msra.mxu1 %v11283_v24  ;;  %9013 = vmatpush1.bf16.msra.mxu0 %v11285_v58  ;;  %v11171_v24 = vcombine.low %v7865_v12, %v7873_v13  ;;  %v11173_v58 = vcombine.low %v7866_v15, %v7874_v18 }
0x329d   :  { %8971 = vmatprep.subr.bf16.mxu1 %v11268_v30  ;;  %9014 = vmatprep.subr.bf16.mxu0 %v11270_v60  ;;  %v12833_v30 = vld [vmem:[#allocation19 + $0x78] sm:$0xff]  }
0x329e   :  { %9001 = vmatprep.mubr.bf16.mxu1 %v13446_v3  ;;  %9044 = vmatprep.mubr.bf16.mxu0 %v13446_v3  ;;  %v11222_v3 = vcombine.high %v7914_v8, %v7922_v28  ;;  %v12834_v60 = vld [vmem:[#allocation19 + $0xf8] sm:$0xff]   ;;  %v12854_v8 = vld [vmem:[#allocation19 + $0xd0] sm:$0xff]  }
0x329f   :  { %v12855_v28 = vld [vmem:[#allocation19 + $0x10] sm:$0xff]  }
0x32a0   :  { %8972 = vmatpush1.bf16.msra.mxu1 %v11267_v4  ;;  %9015 = vmatpush1.bf16.msra.mxu0 %v11269_v59  ;;  %v12839_v4 = vld [vmem:[#allocation19 + $0x30] sm:$0xff]  }
0x32a1   :  { %8973 = vmatprep.subr.bf16.mxu1 %v11252_v10  ;;  %9016 = vmatprep.subr.bf16.mxu0 %v11254_v14  ;;  %v12840_v59 = vld [vmem:[#allocation19 + $0xb0] sm:$0xff]   ;;  %v12841_v10 = vld [vmem:[#allocation19 + $0x68] sm:$0xff]  }
0x32a2   :  { %v12842_v14 = vld [vmem:[#allocation19 + $0xe8] sm:$0xff]  }
0x32a4   :  { %8974 = vmatpush1.bf16.msra.mxu1 %v11251_v63  ;;  %9017 = vmatpush1.bf16.msra.mxu0 %v11253_v26  ;;  %v12847_v63 = vld [vmem:[#allocation19 + $0x20] sm:$0xff]   ;;  %v12849_v26 = vld [vmem:[#allocation19 + $0x58] sm:$0xff]  }
0x32a5   :  { %8975 = vmatprep.subr.bf16.mxu1 %v11236_v0  ;;  %9018 = vmatprep.subr.bf16.mxu0 %v11238_v34  ;;  %v12850_v0 = vld [vmem:[#allocation19 + $0xd8] sm:$0xff]  }
0x32a6   :  { %v12851_v34 = vld [vmem:[#allocation19 + $0x18] sm:$0xff]  }
0x32a8   :  { %8976 = vmatpush1.bf16.msra.mxu1 %v11235_v21  ;;  %9019 = vmatpush1.bf16.msra.mxu0 %v11237_v38  ;;  %v12856_v21 = vld [vmem:[#allocation19 + $0x90] sm:$0xff]   ;;  %v12857_v38 = vld [vmem:[#allocation19 + $0x48] sm:$0xff]  }
0x32a9   :  { %8977 = vmatprep.subr.bf16.mxu1 %v11220_v61  ;;  %9020 = vmatprep.subr.bf16.mxu0 %v11222_v3  ;;  %v12858_v61 = vld [vmem:[#allocation19 + $0xc8] sm:$0xff]  }
0x32aa   :  { %v12859_v3 = vld [vmem:[#allocation19 + $0x8] sm:$0xff]  }
0x32ac   :  { %8978 = vmatpush1.bf16.msra.mxu1 %v11219_v44  ;;  %9021 = vmatpush1.bf16.msra.mxu0 %v11221_v51  ;;  %v12864_v44 = vld [vmem:[#allocation19 + $0x80] sm:$0xff]   ;;  %v12865_v51 = vld [vmem:[#allocation19 + $0x178] sm:$0xff]  }
0x32ad   :  { %8979 = vmatprep.subr.bf16.mxu1 %v11204_v7  ;;  %9022 = vmatprep.subr.bf16.mxu0 %v11206_v32  ;;  %v12866_v7 = vld [vmem:[#allocation19 + $0x1f8] sm:$0xff]   ;;  %v14729_v32 = vld [vmem:[%s14841_s10] sm:$0xff] }
0x32ae   :  { %v7998_v53 = vrot.slane %v14729_v32, %v13803_v35  ;;  %v8006_v16 = vrot.slane %v14729_v32, %v14221_v36 }
0x32b0   :  { %8980 = vmatpush1.bf16.msra.mxu1 %v11203_v9  ;;  %9023 = vmatpush1.bf16.msra.mxu0 %v11205_v11  ;;  %v7994_v9 = vrot.slane %v14729_v32, %v13808_v40  ;;  %v8002_v11 = vrot.slane %v14729_v32, %v13799_v33 }
0x32b1   :  { %8981 = vmatprep.subr.bf16.mxu1 %v11188_v57  ;;  %9024 = vmatprep.subr.bf16.mxu0 %v11190_v17 }
0x32b4   :  { %8982 = vmatpush1.bf16.msra.mxu1 %v11187_v47  ;;  %9025 = vmatpush1.bf16.msra.mxu0 %v11189_v20 }
0x32b5   :  { %8983 = vmatprep.subr.bf16.mxu1 %v11172_v52  ;;  %9026 = vmatprep.subr.bf16.mxu0 %v11174_v23 }
0x32b8   :  { %8984 = vmatpush1.bf16.msra.mxu1 %v11171_v24  ;;  %9027 = vmatpush1.bf16.msra.mxu0 %v11173_v58 }
0x32b9   :  { %11781 = vmatprep.subr.bf16.mxu1 %v12833_v30  ;;  %11803 = vmatprep.subr.bf16.mxu0 %v12834_v60 }
0x32bb   :  { %9002 = vmatmul.mubr.bf16.vlgmr.msra.gmra.mxu1 %v14712_v49  ;;  %9045 = vmatmul.mubr.bf16.vlgmr.msra.gmra.mxu0 %v14712_v49  ;;  %v12848_v49 = vld [vmem:[#allocation19 + $0xa0] sm:$0xff]  }
0x32bc   :  { %11782 = vmatpush3.bf16.msra.mxu1 %v12835_v55  ;;  %11804 = vmatpush3.bf16.msra.mxu0 %v12836_v29 }
0x32bd   :  { %11783 = vmatprep.subr.bf16.mxu1 %v12837_v39  ;;  %11805 = vmatprep.subr.bf16.mxu0 %v12838_v22 }
0x32c0   :  { %11784 = vmatpush3.bf16.msra.mxu1 %v12839_v4  ;;  %11806 = vmatpush3.bf16.msra.mxu0 %v12840_v59 }
0x32c1   :  { %11785 = vmatprep.subr.bf16.mxu1 %v12841_v10  ;;  %11807 = vmatprep.subr.bf16.mxu0 %v12842_v14 }
0x32c4   :  { %11786 = vmatpush3.bf16.msra.mxu1 %v12843_v27  ;;  %11808 = vmatpush3.bf16.msra.mxu0 %v12844_v56 }
0x32c5   :  { %11787 = vmatprep.subr.bf16.mxu1 %v12845_v37  ;;  %11809 = vmatprep.subr.bf16.mxu0 %v12846_v50  ;;  %v12867_v37 = vld [vmem:[#allocation19 + $0x138] sm:$0xff]  }
0x32c6   :  { %v12868_v50 = vld [vmem:[#allocation19 + $0x1b8] sm:$0xff]  }
0x32c8   :  { %11788 = vmatpush3.bf16.msra.mxu1 %v12847_v63  ;;  %11810 = vmatpush3.bf16.msra.mxu0 %v12848_v49 }
0x32c9   :  { %11789 = vmatprep.subr.bf16.mxu1 %v12849_v26  ;;  %11811 = vmatprep.subr.bf16.mxu0 %v12850_v0  ;;  %v12869_v26 = vld [vmem:[#allocation19 + $0x170] sm:$0xff]  }
0x32ca   :  { %v12870_v0 = vld [vmem:[#allocation19 + $0x1f0] sm:$0xff]  }
0x32cc   :  { %11790 = vmatpush3.bf16.msra.mxu1 %v12851_v34  ;;  %11812 = vmatpush3.bf16.msra.mxu0 %v12852_v19  ;;  %v12871_v34 = vld [vmem:[#allocation19 + $0x130] sm:$0xff]  }
0x32cd   :  { %11791 = vmatprep.subr.bf16.mxu1 %v12853_v5  ;;  %11813 = vmatprep.subr.bf16.mxu0 %v12854_v8  ;;  %v12872_v19 = vld [vmem:[#allocation19 + $0x1b0] sm:$0xff]   ;;  %v12873_v5 = vld [vmem:[#allocation19 + $0x168] sm:$0xff]  }
0x32ce   :  { %v12874_v8 = vld [vmem:[#allocation19 + $0x1e8] sm:$0xff]  }
0x32d0   :  { %11792 = vmatpush3.bf16.msra.mxu1 %v12855_v28  ;;  %11814 = vmatpush3.bf16.msra.mxu0 %v12856_v21  ;;  %v12875_v28 = vld [vmem:[#allocation19 + $0x128] sm:$0xff]  }
0x32d1   :  { %11793 = vmatprep.subr.bf16.mxu1 %v12857_v38  ;;  %11815 = vmatprep.subr.bf16.mxu0 %v12858_v61  ;;  %v12876_v21 = vld [vmem:[#allocation19 + $0x1a8] sm:$0xff]   ;;  %v12877_v38 = vld [vmem:[#allocation19 + $0x160] sm:$0xff]  }
0x32d2   :  { %v12878_v61 = vld [vmem:[#allocation19 + $0x1e0] sm:$0xff]  }
0x32d4   :  { %11794 = vmatpush3.bf16.msra.mxu1 %v12859_v3  ;;  %11816 = vmatpush3.bf16.msra.mxu0 %v12860_v31  ;;  %v12879_v3 = vld [vmem:[#allocation19 + $0x120] sm:$0xff]  }
0x32d5   :  { %11795 = vmatprep.subr.bf16.mxu1 %v12861_v62  ;;  %11817 = vmatprep.subr.bf16.mxu0 %v12862_v2  ;;  %v12880_v31 = vld [vmem:[#allocation19 + $0x1a0] sm:$0xff]   ;;  %v12881_v62 = vld [vmem:[#allocation19 + $0x158] sm:$0xff]  }
0x32d6   :  { %v12882_v2 = vld [vmem:[#allocation19 + $0x1d8] sm:$0xff]  }
0x32d8   :  { %11796 = vmatpush3.bf16.msra.mxu1 %v12863_v6  ;;  %11818 = vmatpush3.bf16.msra.mxu0 %v12864_v44  ;;  %v12883_v6 = vld [vmem:[#allocation19 + $0x118] sm:$0xff]  }
0x32d9   :  { %11825 = vmatprep.subr.bf16.mxu1 %v12865_v51  ;;  %11847 = vmatprep.subr.bf16.mxu0 %v12866_v7  ;;  %v12884_v44 = vld [vmem:[#allocation19 + $0x198] sm:$0xff]   ;;  %v12885_v51 = vld [vmem:[#allocation19 + $0x150] sm:$0xff]  }
0x32da   :  { %v12886_v7 = vld [vmem:[#allocation19 + $0x1d0] sm:$0xff]  }
0x331b   :  { %v8745_v25 = vpop.f32.mrf.mxu1  ;;  %v8788_v41 = vpop.f32.mrf.mxu0 }
0x331c   :  { %v8746_v52 = vadd.f32 %v8745_v25, %v7994_v9  ;;  %v8789_v23 = vadd.f32 %v8788_v41, %v8002_v11  ;;  %v12887_v25 = vld [vmem:[#allocation19 + $0x110] sm:$0xff]  }
0x331d   :  { %v8747_v57 = vpop.f32.mrf.mxu1  ;;  %v8790_v17 = vpop.f32.mrf.mxu0  ;;  %v12888_v41 = vld [vmem:[#allocation19 + $0x190] sm:$0xff]  }
0x331e   :  { %v8748_v15 = vadd.f32 %v8747_v57, %v7998_v53  ;;  %v8791_v18 = vadd.f32 %v8790_v17, %v8006_v16  ;;  %v9055_v10 = vmax.f32 %v8746_v52, 0.0  ;;  %v9057_v14 = vmax.f32 %v8789_v23, 0.0 }
0x331f   :  { %v8749_v12 = vpop.f32.mrf.mxu1  ;;  %v8792_v13 = vpop.f32.mrf.mxu0  ;;  %v8014_v57 = vrot.slane %v14729_v32, %v14235_v43  ;;  %v8022_v17 = vrot.slane %v14729_v32, %v14238_v46 }
0x3320   :  { %v8750_v47 = vadd.f32 %v8749_v12, %v7994_v9  ;;  %v8793_v20 = vadd.f32 %v8792_v13, %v8002_v11  ;;  %v9056_v39 = vmax.f32 %v8748_v15, 0.0  ;;  %v9058_v22 = vmax.f32 %v8791_v18, 0.0  ;;  %v12889_v9 = vld [vmem:[#allocation19 + $0x148] sm:$0xff]  }
0x3321   :  { %v8751_v24 = vpop.f32.mrf.mxu1  ;;  %v8794_v58 = vpop.f32.mrf.mxu0  ;;  %v12890_v11 = vld [vmem:[#allocation19 + $0x1c8] sm:$0xff]   ;;  %v8010_v12 = vrot.slane %v14729_v32, %v14241_v42  ;;  %v8018_v13 = vrot.slane %v14729_v32, %v14244_v45 }
0x3322   :  { %v8752_v30 = vadd.f32 %v8751_v24, %v7998_v53  ;;  %v8795_v60 = vadd.f32 %v8794_v58, %v8006_v16  ;;  %v9071_v55 = vmax.f32 %v8750_v47, 0.0  ;;  %v9073_v29 = vmax.f32 %v8793_v20, 0.0  ;;  %v12891_v47 = vld [vmem:[#allocation19 + $0x108] sm:$0xff]   ;;  %v12893_v24 = vld [vmem:[#allocation19 + $0x140] sm:$0xff]  }
0x3323   :  { %v12892_v20 = vld [vmem:[#allocation19 + $0x188] sm:$0xff]   ;;  %v12894_v58 = vld [vmem:[#allocation19 + $0x1c0] sm:$0xff]  }
0x3324   :  { %v9072_v4 = vmax.f32 %v8752_v30, 0.0  ;;  %v9074_v59 = vmax.f32 %v8795_v60, 0.0  ;;  %v9087_v63 = vpack.c.bf16 %v9071_v55, %v9055_v10  ;;  %v9089_v49 = vpack.c.bf16 %v9073_v29, %v9057_v14  ;;  %v12895_v14 = vld [vmem:[#allocation19 + $0x100] sm:$0xff]  }
0x3326   :  { %v9088_v27 = vpack.c.bf16 %v9072_v4, %v9056_v39  ;;  %v9090_v56 = vpack.c.bf16 %v9074_v59, %v9058_v22 }
0x3328   :  { %10166 = vmatprep.mubr.bf16.mxu1 %v9088_v27  ;;  %10207 = vmatprep.mubr.bf16.mxu0 %v9090_v56  ;;  %v12896_v27 = vld [vmem:[#allocation19 + $0x180] sm:$0xff]  }
0x3329   :  { %10167 = vmatmul.mubr.bf16.vlgmr.msra.gmra.mxu1 %v9087_v63  ;;  %10208 = vmatmul.mubr.bf16.vlgmr.msra.gmra.mxu0 %v9089_v49  ;;  %v12898_v63 = vld [vmem:[#allocation19 + $0x2f8] sm:$0xff]  }
0x332a   :  { %11826 = vmatpush3.bf16.msra.mxu1 %v12867_v37  ;;  %11848 = vmatpush3.bf16.msra.mxu0 %v12868_v50  ;;  %v12897_v50 = vld [vmem:[#allocation19 + $0x278] sm:$0xff]  }
0x332b   :  { %11827 = vmatprep.subr.bf16.mxu1 %v12869_v26  ;;  %11849 = vmatprep.subr.bf16.mxu0 %v12870_v0 }
0x332e   :  { %11828 = vmatpush3.bf16.msra.mxu1 %v12871_v34  ;;  %11850 = vmatpush3.bf16.msra.mxu0 %v12872_v19 }
0x332f   :  { %11829 = vmatprep.subr.bf16.mxu1 %v12873_v5  ;;  %11851 = vmatprep.subr.bf16.mxu0 %v12874_v8 }
0x3332   :  { %11830 = vmatpush3.bf16.msra.mxu1 %v12875_v28  ;;  %11852 = vmatpush3.bf16.msra.mxu0 %v12876_v21  ;;  %v12899_v21 = vld [vmem:[#allocation19 + $0x238] sm:$0xff]  }
0x3333   :  { %11831 = vmatprep.subr.bf16.mxu1 %v12877_v38  ;;  %11853 = vmatprep.subr.bf16.mxu0 %v12878_v61  ;;  %v12900_v38 = vld [vmem:[#allocation19 + $0x2b8] sm:$0xff]  }
0x3336   :  { %11832 = vmatpush3.bf16.msra.mxu1 %v12879_v3  ;;  %11854 = vmatpush3.bf16.msra.mxu0 %v12880_v31  ;;  %v12901_v31 = vld [vmem:[#allocation19 + $0x270] sm:$0xff]  }
0x3337   :  { %11833 = vmatprep.subr.bf16.mxu1 %v12881_v62  ;;  %11855 = vmatprep.subr.bf16.mxu0 %v12882_v2  ;;  %v12902_v62 = vld [vmem:[#allocation19 + $0x2f0] sm:$0xff]  }
0x3338   :  { %v12903_v2 = vld [vmem:[#allocation19 + $0x230] sm:$0xff]  }
0x333a   :  { %11834 = vmatpush3.bf16.msra.mxu1 %v12883_v6  ;;  %11856 = vmatpush3.bf16.msra.mxu0 %v12884_v44  ;;  %v12904_v6 = vld [vmem:[#allocation19 + $0x2b0] sm:$0xff]   ;;  %v12905_v44 = vld [vmem:[#allocation19 + $0x268] sm:$0xff]  }
0x333b   :  { %v8831_v53 = vpop.f32.mrf.mxu1  ;;  %v8874_v16 = vpop.f32.mrf.mxu0  ;;  %11835 = vmatprep.subr.bf16.mxu1 %v12885_v51  ;;  %11857 = vmatprep.subr.bf16.mxu0 %v12886_v7  ;;  %v12906_v51 = vld [vmem:[#allocation19 + $0x2e8] sm:$0xff]  }
0x333c   :  { %v8832_v39 = vadd.f32 %v8831_v53, %v8010_v12  ;;  %v8875_v22 = vadd.f32 %v8874_v16, %v8018_v13  ;;  %v12907_v7 = vld [vmem:[#allocation19 + $0x228] sm:$0xff]   ;;  %v12910_v53 = vld [vmem:[#allocation19 + $0x2e0] sm:$0xff]  }
0x333d   :  { %v8833_v15 = vpop.f32.mrf.mxu1  ;;  %v8876_v18 = vpop.f32.mrf.mxu0  ;;  %v12911_v16 = vld [vmem:[#allocation19 + $0x220] sm:$0xff]  }
0x333e   :  { %11836 = vmatpush3.bf16.msra.mxu1 %v12887_v25  ;;  %11858 = vmatpush3.bf16.msra.mxu0 %v12888_v41  ;;  %v8834_v30 = vadd.f32 %v8833_v15, %v8014_v57  ;;  %v8877_v60 = vadd.f32 %v8876_v18, %v8022_v17  ;;  %v9059_v19 = vmax.f32 %v8832_v39, 0.0  ;;  %v9061_v5 = vmax.f32 %v8875_v22, 0.0  ;;  %v12908_v25 = vld [vmem:[#allocation19 + $0x2a8] sm:$0xff]   ;;  %v12909_v41 = vld [vmem:[#allocation19 + $0x260] sm:$0xff]   ;;  %v12918_v15 = vld [vmem:[#allocation19 + $0x2d0] sm:$0xff]  }
0x333f   :  { %v8835_v52 = vpop.f32.mrf.mxu1  ;;  %v8878_v23 = vpop.f32.mrf.mxu0  ;;  %11837 = vmatprep.subr.bf16.mxu1 %v12889_v9  ;;  %11859 = vmatprep.subr.bf16.mxu0 %v12890_v11  ;;  %v12912_v9 = vld [vmem:[#allocation19 + $0x2a0] sm:$0xff]   ;;  %v12913_v11 = vld [vmem:[#allocation19 + $0x258] sm:$0xff]  }
0x3340   :  { %v8836_v55 = vadd.f32 %v8835_v52, %v8010_v12  ;;  %v8879_v29 = vadd.f32 %v8878_v23, %v8018_v13  ;;  %v9060_v49 = vmax.f32 %v8834_v30, 0.0  ;;  %v9062_v26 = vmax.f32 %v8877_v60, 0.0  ;;  %v12916_v12 = vld [vmem:[#allocation19 + $0x298] sm:$0xff]   ;;  %v12917_v13 = vld [vmem:[#allocation19 + $0x250] sm:$0xff]  }
0x3341   :  { %v8837_v4 = vpop.f32.mrf.mxu1  ;;  %v8880_v32 = vpop.f32.mrf.mxu0  ;;  %v14748_v18 = vld [vmem:[%s14841_s10 + $0x8] sm:$0xff] }
0x3342   :  { %v8838_v59 = vadd.f32 %v8837_v4, %v8014_v57  ;;  %v8881_v10 = vadd.f32 %v8880_v32, %v8022_v17  ;;  %11838 = vmatpush3.bf16.msra.mxu1 %v12891_v47  ;;  %11860 = vmatpush3.bf16.msra.mxu0 %v12892_v20  ;;  %v9075_v56 = vmax.f32 %v8836_v55, 0.0  ;;  %v9077_v37 = vmax.f32 %v8879_v29, 0.0  ;;  %v12914_v57 = vld [vmem:[#allocation19 + $0x2d8] sm:$0xff]   ;;  %v12919_v47 = vld [vmem:[#allocation19 + $0x210] sm:$0xff]   ;;  %v12923_v4 = vld [vmem:[#allocation19 + $0x208] sm:$0xff]  }
0x3343   :  { %11839 = vmatprep.subr.bf16.mxu1 %v12893_v24  ;;  %11861 = vmatprep.subr.bf16.mxu0 %v12894_v58  ;;  %v12915_v17 = vld [vmem:[#allocation19 + $0x218] sm:$0xff]   ;;  %v12920_v20 = vld [vmem:[#allocation19 + $0x290] sm:$0xff]   ;;  %v12921_v24 = vld [vmem:[#allocation19 + $0x248] sm:$0xff]   ;;  %v8030_v30 = vrot.slane %v14748_v18, %v13803_v35  ;;  %v8038_v60 = vrot.slane %v14748_v18, %v14221_v36  ;;  %v8026_v55 = vrot.slane %v14748_v18, %v13808_v40 }
0x3344   :  { %v9076_v0 = vmax.f32 %v8838_v59, 0.0  ;;  %v9078_v34 = vmax.f32 %v8881_v10, 0.0  ;;  %v9091_v61 = vpack.c.bf16 %v9075_v56, %v9059_v19  ;;  %v9093_v3 = vpack.c.bf16 %v9077_v37, %v9061_v5  ;;  %v12922_v58 = vld [vmem:[#allocation19 + $0x2c8] sm:$0xff]   ;;  %v12925_v35 = vld [vmem:[#allocation19 + $0x240] sm:$0xff]  }
0x3345   :  { %v8034_v29 = vrot.slane %v14748_v18, %v13799_v33  ;;  %v12924_v32 = vld [vmem:[#allocation19 + $0x288] sm:$0xff]  }
0x3346   :  { %v9092_v8 = vpack.c.bf16 %v9076_v0, %v9060_v49  ;;  %v9094_v28 = vpack.c.bf16 %v9078_v34, %v9062_v26  ;;  %11840 = vmatpush3.bf16.msra.mxu1 %v12895_v14  ;;  %11862 = vmatpush3.bf16.msra.mxu0 %v12896_v27  ;;  %v12926_v14 = vld [vmem:[#allocation19 + $0x2c0] sm:$0xff]  }
0x3347   :  { %11869 = vmatprep.subr.bf16.mxu1 %v12897_v50  ;;  %11891 = vmatprep.subr.bf16.mxu0 %v12898_v63  ;;  %v12927_v0 = vld [vmem:[#allocation19 + $0x200] sm:$0xff]  }
0x3348   :  { %10248 = vmatprep.mubr.bf16.mxu1 %v9092_v8  ;;  %10289 = vmatprep.mubr.bf16.mxu0 %v9094_v28  ;;  %v12928_v34 = vld [vmem:[#allocation19 + $0x280] sm:$0xff]   ;;  %v12929_v8 = vld [vmem:[#allocation19 + $0x378] sm:$0xff]  }
0x3349   :  { %10249 = vmatmul.mubr.bf16.vlgmr.msra.gmra.mxu1 %v9091_v61  ;;  %10290 = vmatmul.mubr.bf16.vlgmr.msra.gmra.mxu0 %v9093_v3  ;;  %v12930_v28 = vld [vmem:[#allocation19 + $0x3f8] sm:$0xff]  }
0x334a   :  { %11870 = vmatpush3.bf16.msra.mxu1 %v12899_v21  ;;  %11892 = vmatpush3.bf16.msra.mxu0 %v12900_v38 }
0x334b   :  { %11871 = vmatprep.subr.bf16.mxu1 %v12901_v31  ;;  %11893 = vmatprep.subr.bf16.mxu0 %v12902_v62 }
0x334e   :  { %11872 = vmatpush3.bf16.msra.mxu1 %v12903_v2  ;;  %11894 = vmatpush3.bf16.msra.mxu0 %v12904_v6 }
0x334f   :  { %11873 = vmatprep.subr.bf16.mxu1 %v12905_v44  ;;  %11895 = vmatprep.subr.bf16.mxu0 %v12906_v51  ;;  %v12931_v44 = vld [vmem:[#allocation19 + $0x338] sm:$0xff]  }
0x3350   :  { %v12932_v51 = vld [vmem:[#allocation19 + $0x3b8] sm:$0xff]  }
0x3352   :  { %11874 = vmatpush3.bf16.msra.mxu1 %v12907_v7  ;;  %11896 = vmatpush3.bf16.msra.mxu0 %v12908_v25 }
0x3353   :  { %11875 = vmatprep.subr.bf16.mxu1 %v12909_v41  ;;  %11897 = vmatprep.subr.bf16.mxu0 %v12910_v53  ;;  %v12933_v41 = vld [vmem:[#allocation19 + $0x370] sm:$0xff]  }
0x3354   :  { %v12934_v53 = vld [vmem:[#allocation19 + $0x3f0] sm:$0xff]  }
0x3356   :  { %11876 = vmatpush3.bf16.msra.mxu1 %v12911_v16  ;;  %11898 = vmatpush3.bf16.msra.mxu0 %v12912_v9  ;;  %v12935_v16 = vld [vmem:[#allocation19 + $0x330] sm:$0xff]  }
0x3357   :  { %11877 = vmatprep.subr.bf16.mxu1 %v12913_v11  ;;  %11899 = vmatprep.subr.bf16.mxu0 %v12914_v57  ;;  %v12936_v9 = vld [vmem:[#allocation19 + $0x3b0] sm:$0xff]   ;;  %v12937_v11 = vld [vmem:[#allocation19 + $0x368] sm:$0xff]  }
0x3358   :  { %v12938_v57 = vld [vmem:[#allocation19 + $0x3e8] sm:$0xff]  }
0x335a   :  { %11878 = vmatpush3.bf16.msra.mxu1 %v12915_v17  ;;  %11900 = vmatpush3.bf16.msra.mxu0 %v12916_v12  ;;  %v12939_v17 = vld [vmem:[#allocation19 + $0x328] sm:$0xff]  }
0x335b   :  { %v8917_v52 = vpop.f32.mrf.mxu1  ;;  %v8960_v23 = vpop.f32.mrf.mxu0  ;;  %11879 = vmatprep.subr.bf16.mxu1 %v12917_v13  ;;  %11901 = vmatprep.subr.bf16.mxu0 %v12918_v15  ;;  %v12940_v12 = vld [vmem:[#allocation19 + $0x3a8] sm:$0xff]   ;;  %v12941_v13 = vld [vmem:[#allocation19 + $0x360] sm:$0xff]  }
0x335c   :  { %v8918_v40 = vadd.f32 %v8917_v52, %v8026_v55  ;;  %v8961_v50 = vadd.f32 %v8960_v23, %v8034_v29  ;;  %v12942_v15 = vld [vmem:[#allocation19 + $0x3e0] sm:$0xff]   ;;  %v12945_v52 = vld [vmem:[#allocation19 + $0x358] sm:$0xff]  }
0x335d   :  { %v8919_v39 = vpop.f32.mrf.mxu1  ;;  %v8962_v22 = vpop.f32.mrf.mxu0  ;;  %v12946_v23 = vld [vmem:[#allocation19 + $0x3d8] sm:$0xff]  }
0x335e   :  { %11880 = vmatpush3.bf16.msra.mxu1 %v12919_v47  ;;  %11902 = vmatpush3.bf16.msra.mxu0 %v12920_v20  ;;  %v8920_v27 = vadd.f32 %v8919_v39, %v8030_v30  ;;  %v8963_v36 = vadd.f32 %v8962_v22, %v8038_v60  ;;  %v9063_v31 = vmax.f32 %v8918_v40, 0.0  ;;  %v9065_v62 = vmax.f32 %v8961_v50, 0.0  ;;  %v12943_v47 = vld [vmem:[#allocation19 + $0x320] sm:$0xff]  }
0x335f   :  { %v8921_v59 = vpop.f32.mrf.mxu1  ;;  %v8964_v10 = vpop.f32.mrf.mxu0  ;;  %11881 = vmatprep.subr.bf16.mxu1 %v12921_v24  ;;  %11903 = vmatprep.subr.bf16.mxu0 %v12922_v58  ;;  %v12944_v20 = vld [vmem:[#allocation19 + $0x3a0] sm:$0xff]   ;;  %v12947_v24 = vld [vmem:[#allocation19 + $0x318] sm:$0xff]  }
0x3360   :  { %v8922_v56 = vadd.f32 %v8921_v59, %v8026_v55  ;;  %v8965_v37 = vadd.f32 %v8964_v10, %v8034_v29  ;;  %v9064_v21 = vmax.f32 %v8920_v27, 0.0  ;;  %v9066_v38 = vmax.f32 %v8963_v36, 0.0  ;;  %v12948_v58 = vld [vmem:[#allocation19 + $0x398] sm:$0xff]   ;;  %v12951_v55 = vld [vmem:[#allocation19 + $0x310] sm:$0xff]  }
0x3361   :  { %v8923_v63 = vpop.f32.mrf.mxu1  ;;  %v8966_v33 = vpop.f32.mrf.mxu0  ;;  %v12952_v29 = vld [vmem:[#allocation19 + $0x390] sm:$0xff]   ;;  %v8046_v59 = vrot.slane %v14748_v18, %v14235_v43  ;;  %v8054_v10 = vrot.slane %v14748_v18, %v14238_v46  ;;  %v12957_v43 = vld [vmem:[#allocation19 + $0x340] sm:$0xff]  }
0x3362   :  { %v8924_v49 = vadd.f32 %v8923_v63, %v8030_v30  ;;  %v8967_v26 = vadd.f32 %v8966_v33, %v8038_v60  ;;  %11882 = vmatpush3.bf16.msra.mxu1 %v12923_v4  ;;  %11904 = vmatpush3.bf16.msra.mxu0 %v12924_v32  ;;  %v9079_v19 = vmax.f32 %v8922_v56, 0.0  ;;  %v9081_v5 = vmax.f32 %v8965_v37, 0.0  ;;  %v12949_v30 = vld [vmem:[#allocation19 + $0x350] sm:$0xff]   ;;  %v12953_v4 = vld [vmem:[#allocation19 + $0x348] sm:$0xff]   ;;  %v12958_v63 = vld [vmem:[#allocation19 + $0x3c0] sm:$0xff]  }
0x3363   :  { %11883 = vmatprep.subr.bf16.mxu1 %v12925_v35  ;;  %11905 = vmatprep.subr.bf16.mxu0 %v12926_v14  ;;  %v12950_v60 = vld [vmem:[#allocation19 + $0x3d0] sm:$0xff]   ;;  %v12954_v32 = vld [vmem:[#allocation19 + $0x3c8] sm:$0xff]   ;;  %v8042_v35 = vrot.slane %v14748_v18, %v14241_v42  ;;  %v8050_v14 = vrot.slane %v14748_v18, %v14244_v45 }
0x3364   :  { %v9080_v61 = vmax.f32 %v8924_v49, 0.0  ;;  %v9082_v3 = vmax.f32 %v8967_v26, 0.0  ;;  %v9095_v7 = vpack.c.bf16 %v9079_v19, %v9063_v31  ;;  %v9097_v25 = vpack.c.bf16 %v9081_v5, %v9065_v62  ;;  %v12955_v56 = vld [vmem:[#allocation19 + $0x308] sm:$0xff]   ;;  %v12959_v5 = vld [vmem:[#allocation19 + $0x300] sm:$0xff]  }
0x3365   :  { %v12956_v37 = vld [vmem:[#allocation19 + $0x388] sm:$0xff]  }
0x3366   :  { %v9096_v2 = vpack.c.bf16 %v9080_v61, %v9064_v21  ;;  %v9098_v6 = vpack.c.bf16 %v9082_v3, %v9066_v38  ;;  %11884 = vmatpush3.bf16.msra.mxu1 %v12927_v0  ;;  %11906 = vmatpush3.bf16.msra.mxu0 %v12928_v34 }
0x3367   :  { %11913 = vmatprep.subr.bf16.mxu1 %v12929_v8  ;;  %11935 = vmatprep.subr.bf16.mxu0 %v12930_v28  ;;  %v12960_v8 = vld [vmem:[#allocation19 + $0x380] sm:$0xff]  }
0x3368   :  { %10330 = vmatprep.mubr.bf16.mxu1 %v9096_v2  ;;  %10371 = vmatprep.mubr.bf16.mxu0 %v9098_v6 }
0x3369   :  { %10331 = vmatmul.mubr.bf16.vlgmr.msra.gmra.mxu1 %v9095_v7  ;;  %10372 = vmatmul.mubr.bf16.vlgmr.msra.gmra.mxu0 %v9097_v25 }
0x336a   :  { %11914 = vmatpush3.bf16.msra.mxu1 %v12931_v44  ;;  %11936 = vmatpush3.bf16.msra.mxu0 %v12932_v51 }
0x336b   :  { %11915 = vmatprep.subr.bf16.mxu1 %v12933_v41  ;;  %11937 = vmatprep.subr.bf16.mxu0 %v12934_v53 }
0x336e   :  { %11916 = vmatpush3.bf16.msra.mxu1 %v12935_v16  ;;  %11938 = vmatpush3.bf16.msra.mxu0 %v12936_v9 }
0x336f   :  { %11917 = vmatprep.subr.bf16.mxu1 %v12937_v11  ;;  %11939 = vmatprep.subr.bf16.mxu0 %v12938_v57 }
0x3372   :  { %11918 = vmatpush3.bf16.msra.mxu1 %v12939_v17  ;;  %11940 = vmatpush3.bf16.msra.mxu0 %v12940_v12 }
0x3373   :  { %11919 = vmatprep.subr.bf16.mxu1 %v12941_v13  ;;  %11941 = vmatprep.subr.bf16.mxu0 %v12942_v15 }
0x3376   :  { %11920 = vmatpush3.bf16.msra.mxu1 %v12943_v47  ;;  %11942 = vmatpush3.bf16.msra.mxu0 %v12944_v20 }
0x3377   :  { %11921 = vmatprep.subr.bf16.mxu1 %v12945_v52  ;;  %11943 = vmatprep.subr.bf16.mxu0 %v12946_v23 }
0x337a   :  { %11922 = vmatpush3.bf16.msra.mxu1 %v12947_v24  ;;  %11944 = vmatpush3.bf16.msra.mxu0 %v12948_v58  ;;  %v11287_v58 = vld [vmem:[%s14842_s13] ss:$0 sm:$0xff] }
0x337b   :  { %v9003_v39 = vpop.f32.mrf.mxu1  ;;  %v9046_v22 = vpop.f32.mrf.mxu0  ;;  %11923 = vmatprep.subr.bf16.mxu1 %v12949_v30  ;;  %11945 = vmatprep.subr.bf16.mxu0 %v12950_v60 }
0x337c   :  { %v9004_v42 = vadd.f32 %v9003_v39, %v8042_v35  ;;  %v9047_v0 = vadd.f32 %v9046_v22, %v8050_v14 }
0x337d   :  { %v9005_v27 = vpop.f32.mrf.mxu1  ;;  %v9048_v36 = vpop.f32.mrf.mxu0 }
0x337e   :  { %11924 = vmatpush3.bf16.msra.mxu1 %v12951_v55  ;;  %11946 = vmatpush3.bf16.msra.mxu0 %v12952_v29  ;;  %v9006_v33 = vadd.f32 %v9005_v27, %v8046_v59  ;;  %v9049_v46 = vadd.f32 %v9048_v36, %v8054_v10  ;;  %v9067_v62 = vmax.f32 %v9004_v42, 0.0  ;;  %v9069_v2 = vmax.f32 %v9047_v0, 0.0 }
0x337f   :  { %v9007_v40 = vpop.f32.mrf.mxu1  ;;  %v9050_v50 = vpop.f32.mrf.mxu0  ;;  %11925 = vmatprep.subr.bf16.mxu1 %v12953_v4  ;;  %11947 = vmatprep.subr.bf16.mxu0 %v12954_v32 }
0x3380   :  { %v9008_v49 = vadd.f32 %v9007_v40, %v8042_v35  ;;  %v9051_v26 = vadd.f32 %v9050_v50, %v8050_v14  ;;  %v9068_v38 = vmax.f32 %v9006_v33, 0.0  ;;  %v9070_v61 = vmax.f32 %v9049_v46, 0.0 }
0x3381   :  { %v9009_v34 = vpop.f32.mrf.mxu1  ;;  %v9052_v45 = vpop.f32.mrf.mxu0 }
0x3382   :  { %v9010_v18 = vadd.f32 %v9009_v34, %v8046_v59  ;;  %v9053_v19 = vadd.f32 %v9052_v45, %v8054_v10  ;;  %11926 = vmatpush3.bf16.msra.mxu1 %v12955_v56  ;;  %11948 = vmatpush3.bf16.msra.mxu0 %v12956_v37  ;;  %v9083_v28 = vmax.f32 %v9008_v49, 0.0  ;;  %v9085_v21 = vmax.f32 %v9051_v26, 0.0 }
0x3383   :  { %11927 = vmatprep.subr.bf16.mxu1 %v12957_v43  ;;  %11949 = vmatprep.subr.bf16.mxu0 %v12958_v63 }
0x3384   :  { %v9084_v3 = vmax.f32 %v9010_v18, 0.0  ;;  %v9086_v31 = vmax.f32 %v9053_v19, 0.0  ;;  %v9099_v51 = vpack.c.bf16 %v9083_v28, %v9067_v62  ;;  %v9101_v7 = vpack.c.bf16 %v9085_v21, %v9069_v2 }
0x3386   :  { %v9100_v6 = vpack.c.bf16 %v9084_v3, %v9068_v38  ;;  %v9102_v44 = vpack.c.bf16 %v9086_v31, %v9070_v61  ;;  %11928 = vmatpush3.bf16.msra.mxu1 %v12959_v5  ;;  %11950 = vmatpush3.bf16.msra.mxu0 %v12960_v8 }
0x3387   :  { %12456 = vmatprep.subr.bf16.mxu1 %v13444_v1 }
0x3388   :  { %10412 = vmatprep.mubr.bf16.mxu1 %v9100_v6  ;;  %10453 = vmatprep.mubr.bf16.mxu0 %v9102_v44 }
0x3389   :  { %10413 = vmatmul.mubr.bf16.vlgmr.msra.gmra.mxu1 %v9099_v51  ;;  %10454 = vmatmul.mubr.bf16.vlgmr.msra.gmra.mxu0 %v9101_v7 }
0x338a   :  { %12472 = vmatprep.mubr.msk.bf16.mxu1 %vm13445_vm0, %v13444_v1 }
0x33e9   :  { %v11797_v25 = vpop.f32.mrf.mxu1  ;;  %v11819_v41 = vpop.f32.mrf.mxu0 }
0x33eb   :  { %v11798_v53 = vpop.f32.mrf.mxu1  ;;  %v11820_v16 = vpop.f32.mrf.mxu0 }
0x33ec   :  { %v11799_v24 = vadd.f32 %v11798_v53, %v11797_v25  ;;  %v11821_v4 = vadd.f32 %v11820_v16, %v11819_v41 }
0x33ed   :  { %v11800_v9 = vpop.f32.mrf.mxu1  ;;  %v11822_v11 = vpop.f32.mrf.mxu0 }
0x33ee   :  { %v10169_v29 = vadd.f32 %v11799_v24, %v11287_v58  ;;  %v12964_v24 = vld [vmem:[#allocation20 + $0x20] sm:$0xff]  }
0x33ef   :  { %v11801_v57 = vpop.f32.mrf.mxu1  ;;  %v11823_v17 = vpop.f32.mrf.mxu0 }
0x33f0   :  { %v11802_v39 = vadd.f32 %v11801_v57, %v11800_v9  ;;  %v10210_v10 = vadd.f32 %v11821_v4, %v10169_v29  ;;  %v11824_v27 = vadd.f32 %v11823_v17, %v11822_v11 }
0x33f2   :  { %v10172_v35 = vadd.f32 %v11802_v39, %v11287_v58  ;;  %v12965_v58 = vld [vmem:[#allocation20 + $0x18] sm:$0xff]  }
0x33f4   :  { %v10213_v40 = vadd.f32 %v11824_v27, %v10172_v35  ;;  %v11416_v35 = vld [vmem:[%s14843_s17] ss:$0 sm:$0xff] }
0x33f5   :  { %v11417_v27 = vld [vmem:[%s14844_s25] ss:$0 sm:$0xff] }
0x3409   :  { %v11841_v12 = vpop.f32.mrf.mxu1  ;;  %v11863_v13 = vpop.f32.mrf.mxu0 }
0x340b   :  { %v11842_v15 = vpop.f32.mrf.mxu1  ;;  %v11864_v47 = vpop.f32.mrf.mxu0 }
0x340c   :  { %v11843_v32 = vadd.f32 %v11842_v15, %v11841_v12  ;;  %v11865_v50 = vadd.f32 %v11864_v47, %v11863_v13 }
0x340d   :  { %v11844_v20 = vpop.f32.mrf.mxu1  ;;  %v11866_v52 = vpop.f32.mrf.mxu0 }
0x340e   :  { %v10251_v36 = vadd.f32 %v11843_v32, %v10210_v10 }
0x340f   :  { %v11845_v23 = vpop.f32.mrf.mxu1  ;;  %v11867_v30 = vpop.f32.mrf.mxu0 }
0x3410   :  { %v11846_v56 = vadd.f32 %v11845_v23, %v11844_v20  ;;  %v10292_v33 = vadd.f32 %v11865_v50, %v10251_v36  ;;  %v11868_v26 = vadd.f32 %v11867_v30, %v11866_v52  ;;  %v12961_v23 = vld [vmem:[#allocation20 + $0x38] sm:$0xff]   ;;  %v12966_v30 = vld [vmem:[#allocation20 + $0x10] sm:$0xff]  }
0x3411   :  { %12457 = vmatpush3.bf16.msra.mxu1 %v12961_v23 }
0x3412   :  { %v10254_v46 = vadd.f32 %v11846_v56, %v10213_v40  ;;  %12458 = vmatprep.subr.bf16.mxu1 %v13444_v1 }
0x3414   :  { %v10295_v18 = vadd.f32 %v11868_v26, %v10254_v46 }
0x3429   :  { %v11885_v60 = vpop.f32.mrf.mxu1  ;;  %v11907_v55 = vpop.f32.mrf.mxu0 }
0x342b   :  { %v11886_v22 = vpop.f32.mrf.mxu1  ;;  %v11908_v59 = vpop.f32.mrf.mxu0 }
0x342c   :  { %v11887_v43 = vadd.f32 %v11886_v22, %v11885_v60  ;;  %v11909_v19 = vadd.f32 %v11908_v59, %v11907_v55  ;;  %v12967_v60 = vld [vmem:[#allocation20 + $0x8] sm:$0xff]   ;;  %v12968_v55 = vld [vmem:[#allocation20] sm:$0xff]  }
0x342d   :  { %v11888_v14 = vpop.f32.mrf.mxu1  ;;  %v11910_v37 = vpop.f32.mrf.mxu0 }
0x342e   :  { %v10333_v42 = vadd.f32 %v11887_v43, %v10292_v33 }
0x342f   :  { %v11889_v63 = vpop.f32.mrf.mxu1  ;;  %v11911_v49 = vpop.f32.mrf.mxu0 }
0x3430   :  { %v11890_v0 = vadd.f32 %v11889_v63, %v11888_v14  ;;  %v10374_v28 = vadd.f32 %v11909_v19, %v10333_v42  ;;  %v11912_v31 = vadd.f32 %v11911_v49, %v11910_v37 }
0x3432   :  { %v10336_v21 = vadd.f32 %v11890_v0, %v10295_v18 }
0x3434   :  { %v10377_v51 = vadd.f32 %v11912_v31, %v10336_v21 }
0x3449   :  { %v11929_v34 = vpop.f32.mrf.mxu1  ;;  %v11951_v45 = vpop.f32.mrf.mxu0 }
0x344b   :  { %v11930_v5 = vpop.f32.mrf.mxu1  ;;  %v11952_v8 = vpop.f32.mrf.mxu0 }
0x344c   :  { %v11931_v38 = vadd.f32 %v11930_v5, %v11929_v34  ;;  %v11953_v2 = vadd.f32 %v11952_v8, %v11951_v45 }
0x344d   :  { %v11932_v61 = vpop.f32.mrf.mxu1  ;;  %v11954_v3 = vpop.f32.mrf.mxu0 }
0x344e   :  { %v10415_v62 = vadd.f32 %v11931_v38, %v10374_v28 }
0x344f   :  { %v11933_v6 = vpop.f32.mrf.mxu1  ;;  %v11955_v44 = vpop.f32.mrf.mxu0 }
0x3450   :  { %v10456_v7 = vadd.f32 %v11953_v2, %v10415_v62  ;;  %v11934_v25 = vadd.f32 %v11933_v6, %v11932_v61  ;;  %v11956_v53 = vadd.f32 %v11955_v44, %v11954_v3  ;;  %v11418_v62 = vld [vmem:[%s14845_s8] ss:$0 sm:$0xff] }
0x3452   :  { %v10418_v41 = vadd.f32 %v11934_v25, %v10377_v51  ;;  %v10462_v16 = vadd.f32 %v10456_v7, %v14706_v48  ;;  %v12962_v48 = vld [vmem:[#allocation20 + $0x30] sm:$0xff]  }
0x3453   :  { %12459 = vmatpush3.bf16.msra.mxu1 %v12962_v48  ;;  %v11429_v48 = vld [vmem:[%s13671_s21] ss:$0 sm:$0xff] }
0x3454   :  { %v10459_v9 = vadd.f32 %v11956_v53, %v10418_v41  ;;  %10464 = vadd.xlane.f32.xlu0 %v10462_v16  ;;  %12460 = vmatprep.subr.bf16.mxu1 %v13444_v1 }
0x3456   :  { %v10463_v11 = vadd.f32 %v10459_v9, %v14708_v54  ;;  %v12963_v54 = vld [vmem:[#allocation20 + $0x28] sm:$0xff]  }
0x3457   :  { %12461 = vmatpush3.bf16.msra.mxu1 %v12963_v54 }
0x3458   :  { %10466 = vadd.xlane.f32.xlu1 %v10463_v11  ;;  %12462 = vmatprep.subr.bf16.mxu1 %v13444_v1 }
0x345b   :  { %12463 = vmatpush3.bf16.msra.mxu1 %v12964_v24 }
0x345c   :  { %12464 = vmatprep.subr.bf16.mxu1 %v13444_v1 }
0x345f   :  { %12465 = vmatpush3.bf16.msra.mxu1 %v12965_v58 }
0x3460   :  { %12466 = vmatprep.subr.bf16.mxu1 %v13444_v1 }
0x3463   :  { %12467 = vmatpush3.bf16.msra.mxu1 %v12966_v30  ;;  %v11430_v30 = vld [vmem:[#allocation2] ss:$0 sm:$0xff] }
0x3464   :  { %12468 = vmatprep.subr.bf16.mxu1 %v13444_v1 }
0x3467   :  { %12469 = vmatpush3.bf16.msra.mxu1 %v12967_v60 }
0x3468   :  { %12470 = vmatprep.subr.bf16.mxu1 %v13444_v1 }
0x346b   :  { %12471 = vmatpush3.bf16.msra.mxu1 %v12968_v55 }
0x34dd   :  { %v10465_v57 = vpop.xlane.xlu0 %10464 }
0x34de   :  { %v10468_v17 = vmul.f32 0.0078125, %v10465_v57 }
0x34e0   :  { %v10470_v12 = vsub.f32 %v10462_v16, %v10468_v17 }
0x34e1   :  { %v10467_v13 = vpop.xlane.xlu1 %10466 }
0x34e2   :  { %v10469_v15 = vmul.f32 0.0078125, %v10467_v13  ;;  %v10472_v47 = vmul.f32 %v10470_v12, %v10470_v12 }
0x34e4   :  { %v10471_v20 = vsub.f32 %v10463_v11, %v10469_v15  ;;  %10474 = vadd.xlane.f32.xlu0 %v10472_v47  ;;  %v11427_v15 = vld [vmem:[%s14846_s24] ss:$0 sm:$0xff] }
0x34e6   :  { %v10473_v52 = vmul.f32 %v10471_v20, %v10471_v20 }
0x34e8   :  { %10476 = vadd.xlane.f32.xlu1 %v10473_v52 }
0x356d   :  { %v10475_v29 = vpop.xlane.xlu0 %10474 }
0x356e   :  { %v10478_v39 = vmul.f32 0.0078125, %v10475_v29 }
0x3570   :  { %v10480_v22 = vadd.f32 1e-05, %v10478_v39 }
0x3571   :  { %v10477_v4 = vpop.xlane.xlu1 %10476 }
0x3572   :  { %13121 = vrsqrt.f32 %v10480_v22  ;;  %v10479_v32 = vmul.f32 0.0078125, %v10477_v4 }
0x3574   :  { %v10481_v59 = vadd.f32 1e-05, %v10479_v32 }
0x3576   :  { %13123 = vrsqrt.f32 %v10481_v59 }
0x357f   :  { %v13122_v10 = vpop.eup %13121 }
0x3580   :  { %v10484_v14 = vmul.f32 %v13122_v10, %v10470_v12 }
0x3582   :  { %v10493_v36 = vmul.f32 %v11416_v35, %v10484_v14 }
0x3583   :  { %v13124_v56 = vpop.eup %13123 }
0x3584   :  { %v10502_v37 = vadd.f32 %v11417_v27, %v10493_v36  ;;  %v10485_v40 = vmul.f32 %v13124_v56, %v10471_v20  ;;  %v11428_v20 = vld [vmem:[%s13666_s4] ss:$0 sm:$0xff] }
0x3586   :  { %v10504_v50 = vrot.slane %v10502_v37, 4  ;;  %v10494_v43 = vmul.f32 %v11416_v35, %v10485_v40 }
0x3588   :  { %v10505_v1 = vadd.f32 %v10504_v50, %v10502_v37  ;;  %v10503_v63 = vadd.f32 %v11417_v27, %v10494_v43 }
0x358a   :  { %v10510_v33 = vrot.slane %v10503_v63, 4  ;;  %v10506_v46 = vrot.slane %v10505_v1, 2 }
0x358c   :  { %v10511_v49 = vadd.f32 %v10510_v33, %v10503_v63  ;;  %v10507_v26 = vadd.f32 %v10506_v46, %v10505_v1 }
0x358e   :  { %v10508_v42 = vrot.slane %v10507_v26, 1  ;;  %v10512_v0 = vrot.slane %v10511_v49, 2 }
0x3590   :  { %v10509_v34 = vadd.f32 %v10508_v42, %v10507_v26  ;;  %v10513_v45 = vadd.f32 %v10512_v0, %v10511_v49 }
0x3592   :  { %v10514_v18 = vrot.slane %v10513_v45, 1  ;;  %v10517_v19 = vmul.f32 0.125, %v10509_v34 }
0x3594   :  { %v10515_v5 = vadd.f32 %v10514_v18, %v10513_v45  ;;  %v10519_v28 = vpack.c.bf16 %v10517_v19, %v10517_v19 }
0x3596   :  { %v10518_v8 = vmul.f32 0.125, %v10515_v5  ;;  %v10546_v38 = vunpack.c.l.b16 %v10519_v28 }
0x3598   :  { %v10520_v21 = vpack.c.bf16 %v10518_v8, %v10518_v8 }
0x359a   :  { %v10547_v61 = vunpack.c.l.b16 %v10520_v21 }
0x359c   :  { %v10549_v3 = vsel %vm10548_vm10, %v10547_v61, %v10546_v38 }
0x359d   :  { %v10550_v31 = vpack.c.b16 %v10549_v3, %v10549_v3 }
0x359f   :  { %12473 = vmatmul.mubr.bf16.vlgmr.msra.gmra.mxu1 %v10550_v31 }
0x365f   :  { %v10634_v2 = vpop.f32.mrf.mxu1 }
0x3660   :  { %v10635_v6 = vadd.f32 %v11418_v62, %v10634_v2 }
0x3661   :  { %v12474_v44 = vpop.f32.mrf.mxu1 }
0x3662   :  { %v10641_v51 = vsel %vm10640_vm11, %v10635_v6, 0.0 }
0x3663   :  { %10642 = vadd.xlane.f32.xlu0 %v10641_v51  ;;  %v10637_v7 = vpop.f32.mrf.mxu1 }
0x3665   :  { %v12475_v25 = vpop.f32.mrf.mxu1 }
0x36ec   :  { %v10643_v41 = vpop.xlane.xlu0 %10642 }
0x36ed   :  { %v10644_v53 = vmul.f32 0.015625, %v10643_v41 }
0x36ef   :  { %v10645_v16 = vsub.f32 %v10635_v6, %v10644_v53 }
0x36f1   :  { %v10646_v9 = vmul.f32 %v10645_v16, %v10645_v16 }
0x36f3   :  { %v10647_v11 = vsel %vm10640_vm11, %v10646_v9, 0.0 }
0x36f4   :  { %10648 = vadd.xlane.f32.xlu1 %v10647_v11 }
0x377d   :  { %v10649_v57 = vpop.xlane.xlu1 %10648 }
0x377e   :  { %v10650_v17 = vmul.f32 0.015625, %v10649_v57 }
0x3780   :  { %v10651_v12 = vadd.f32 1e-05, %v10650_v17 }
0x3782   :  { %13125 = vrsqrt.f32 %v10651_v12 }
0x378f   :  { %v13126_v13 = vpop.eup %13125 }
0x3790   :  { %v10653_v47 = vmul.f32 %v13126_v13, %v10645_v16 }
0x3792   :  { %v10661_v52 = vmul.f32 %v11427_v15, %v10653_v47 }
0x3794   :  { %v10669_v23 = vadd.f32 %v11428_v20, %v10661_v52 }
0x3796   :  { %v10670_v54 = vmax.f32 %v10669_v23, 0.0 }
0x3798   :  { %v10678_v24 = vmul.f32 %v11429_v48, %v10670_v54 }
0x379a   :  { %v10679_v58 = vsel %vm10640_vm11, %v10678_v24, 0.0 }
0x379b   :  { %10680 = vadd.xlane.f32.xlu0 %v10679_v58 }
0x3824   :  { %v10681_v60 = vpop.xlane.xlu0 %10680 }
0x3825   :  { %v10689_v55 = vadd.f32 %v11430_v30, %v10681_v60 }
0x3827   :  { %10691 = vst.msk [vmem:[%s13679_s3] sm:$0x3] %vm10690_vm12, %v10689_v55 }
0x3828   :  { %10696 = vsyncpa [#allocation4], 1 }
0x3829   :  { %10697 = vsyncpa [#allocation6], 1 }
0x382a   :  { %10698 = vsyncpa [#allocation9], 1 }
0x382b   :  { %10699 = vsyncpa [#allocation12], 1 }
0x382c   :  { %10700 = vsyncpa [#allocation15], 1 }
0x382d   :  { %10701 = vsyncpa [#allocation18], 1 }
0x382e   :  { %10702 = vsyncpa [#allocation21], 1 }

</bundles_post_ra>
